<compile_context>
chip_gen: v7x
topology: tpu7x:2x2x1
jax: 0.10.0
libtpu: 0.0.40
codegen_flags: <defaults>
</compile_context>

<pallas_src>
from functools import partial

import jax
import jax.numpy as jnp
from jax.experimental import pallas as pl
from jax.experimental.pallas import tpu as pltpu


# ---------------------------------------------------------------------------
# Fused whole-network kernel: SIREN MLP + f_band epilogue, feature-major.
# ---------------------------------------------------------------------------
def _fused_mlp_kernel(*refs, n_layers, w0, ww, alpha):
    """refs = (xT, W1, b1, ..., Wn, bn, sdf, yT_out, band_out).

    xT:   (n_in, block_cols)         feature-major input tile
    Wi:   (out_i, in_i)              PyTorch layout, whole array (VMEM resident)
    bi:   (out_i, 1)
    sdf:  (1, block_cols)
    yT:   (n_out, block_cols)
    band: (1, block_cols)
    """
    x_ref = refs[0]
    wb = refs[1:1 + 2 * n_layers]
    sdf_ref = refs[1 + 2 * n_layers]
    y_ref = refs[2 + 2 * n_layers]
    band_ref = refs[3 + 2 * n_layers]

    h = x_ref[...]                                        # (n_in, bc) f32
    for i in range(n_layers):
        w = wb[2 * i][...]                                # (out_i, in_i)
        b = wb[2 * i + 1][...]                            # (out_i, 1) -> bcast
        z = jnp.dot(w, h,
                    preferred_element_type=jnp.float32,
                    precision=jax.lax.Precision.HIGHEST) + b
        if i < n_layers - 1:
            # w0 / ww are compile-time immediates (no SMEM plumbing).
            h = jnp.sin((w0 if i == 0 else ww) * z)
        else:
            h = z
    y_ref[...] = h.astype(y_ref.dtype)

    # f_band(sdf) = 1 - exp(-alpha * sdf^2); exp runs on the EUP slot, so this
    # is essentially free filler under the matmuls above.
    s = sdf_ref[...]
    band_ref[...] = (1.0 - jnp.exp(-alpha * s * s)).astype(band_ref.dtype)


def _pick_block_cols(n, per_col_bytes, target_bytes=4 << 20):
    """Column tile: ~target_bytes of per-point working set, multiple of 256
    (MXU / lane alignment), leaving >= 2 grid steps when possible (v7x has
    2 TensorCores sharing 'parallel' grid axes)."""
    bc = target_bytes // max(per_col_bytes, 1)
    if n >= 512:
        bc = min(bc, n // 2)
    if bc >= n:
        return n                      # single full-width block (always legal)
    return max(256, (bc // 256) * 256)


def hodge_siren_forward(x, sdf, params, *, w0=1.0, ww=None, alpha=0.1,
                        omegas=None, block_cols=None):
    """Forward pass of HODGE_SIREN's translatable core.

    x:      (N, n_in) coordinates
    sdf:    (N,) signed-distance values
    params: list of (W, b) with W of shape (out, in) (PyTorch layout).
    """
    if ww is None:
        ww = w0
    if omegas:
        for k, v in omegas.items():
            if 0 <= k < x.shape[1]:
                x = x.at[:, k].set(v * x[:, k] / w0)

    n, n_in = x.shape
    n_layers = len(params)
    n_out = params[-1][0].shape[0]
    hidden_max = max(w.shape[0] for w, _ in params)

    xT = x.T                                   # (n_in, N)  feature-major
    sdf2 = sdf.reshape(1, n)

    if block_cols is None:
        # bytes per point column: input + output + sdf + band + 2 activations.
        per_col = 4 * (n_in + n_out + 2 + 2 * hidden_max)
        block_cols = _pick_block_cols(n, per_col)
    grid = (pl.cdiv(n, block_cols),)

    flat_inputs = [xT]
    in_specs = [pl.BlockSpec((n_in, block_cols), lambda i: (0, i))]
    for w, b in params:
        flat_inputs += [w, b.reshape(-1, 1)]
        in_specs += [
            pl.BlockSpec(w.shape, lambda i: (0, 0)),          # whole weight
            pl.BlockSpec((b.shape[0], 1), lambda i: (0, 0)),  # whole bias
        ]
    flat_inputs.append(sdf2)
    in_specs.append(pl.BlockSpec((1, block_cols), lambda i: (0, i)))

    kernel = partial(_fused_mlp_kernel, n_layers=n_layers,
                     w0=float(w0), ww=float(ww), alpha=float(alpha))

    yT, band = pl.pallas_call(
        kernel,
        out_shape=(jax.ShapeDtypeStruct((n_out, n), x.dtype),
                   jax.ShapeDtypeStruct((1, n), sdf.dtype)),
        grid=grid,
        in_specs=in_specs,
        out_specs=(pl.BlockSpec((n_out, block_cols), lambda i: (0, i)),
                   pl.BlockSpec((1, block_cols), lambda i: (0, i))),
        compiler_params=pltpu.CompilerParams(
            dimension_semantics=("parallel",),
        ),
    )(*flat_inputs)

    # TODO(synk): the final Hodge field V = rot(jac(D)) + grad(G) * band is not
    # computed (undefined helpers / no autodiff through pallas_call).
    return {"model_in": x, "model_out": yT.T, "band": band.reshape(n, 1)}


# ---------------------------------------------------------------------------
# SIREN init (Sitzmann et al. 2020), weights stored PyTorch-style (out, in).
# ---------------------------------------------------------------------------
def init_siren_params(key, n_in, hidden_layers, n_out, *, w0, ww):
    dims = [n_in] + list(hidden_layers) + [n_out]
    params = []
    for i in range(len(dims) - 1):
        fan_in, fan_out = dims[i], dims[i + 1]
        key, kw, kb = jax.random.split(key, 3)
        if i == 0:
            bound = 1.0 / fan_in                      # first_layer_sine_init
        else:
            bound = (6.0 / fan_in) ** 0.5 / ww        # sine_init
        w = jax.random.uniform(kw, (fan_out, fan_in), jnp.float32, -bound, bound)
        b = jax.random.uniform(kb, (fan_out,), jnp.float32, -bound, bound)
        params.append((w, b))
    return params


def siren_forward_ref(x, params, *, w0, ww):
    h = x
    last = len(params) - 1
    for i, (w, b) in enumerate(params):
        z = jnp.dot(h, w.T, precision=jax.lax.Precision.HIGHEST) + b
        h = jnp.sin((w0 if i == 0 else ww) * z) if i < last else z
    return h


if __name__ == "__main__":
    key = jax.random.PRNGKey(0)
    k_params, k_x, k_sdf = jax.random.split(key, 3)

    # Shapes implied by HODGE_SIREN: N points x 4 coords (x, y, z, t) in,
    # 4 outputs (scalar potential G + 3-vector D), small hidden MLP.
    N, n_in, n_out = 1024, 4, 4
    hidden = [32, 32]
    w0, ww, alpha = 1.0, 1.0, 0.1                     # module defaults

    params = init_siren_params(k_params, n_in, hidden, n_out, w0=w0, ww=ww)
    x = jax.random.uniform(k_x, (N, n_in), jnp.float32, -1.0, 1.0)
    sdf = jax.random.normal(k_sdf, (N,), jnp.float32)

    out = hodge_siren_forward(x, sdf, params, w0=w0, ww=ww, alpha=alpha)
    out = jax.block_until_ready(out)

    # Pure-JAX reference checks.
    y_ref = siren_forward_ref(x, params, w0=w0, ww=ww)
    band_ref = (1.0 - jnp.exp(-alpha * sdf ** 2)).reshape(N, 1)

    assert out["model_out"].shape == (N, n_out) and out["model_out"].dtype == x.dtype
    assert out["band"].shape == (N, 1)
    assert jnp.allclose(out["model_out"], y_ref, atol=1e-4, rtol=1e-4), "SIREN mismatch"
    assert jnp.allclose(out["band"], band_ref, atol=1e-5, rtol=1e-5), "band mismatch"

    print("KERNEL_OK")
</pallas_src>

<mosaic_0001>
module attributes {stable_mosaic.version = 11 : i64} {
  func.func @_fused_mlp_kernel(%arg0: i32, %arg1: memref<4x512xf32, #tpu.memory_space<vmem>>, %arg2: memref<32x4xf32, #tpu.memory_space<vmem>>, %arg3: memref<32x1xf32, #tpu.memory_space<vmem>>, %arg4: memref<32x32xf32, #tpu.memory_space<vmem>>, %arg5: memref<32x1xf32, #tpu.memory_space<vmem>>, %arg6: memref<4x32xf32, #tpu.memory_space<vmem>>, %arg7: memref<4x1xf32, #tpu.memory_space<vmem>>, %arg8: memref<1x512xf32, #tpu.memory_space<vmem>>, %arg9: memref<4x512xf32, #tpu.memory_space<vmem>>, %arg10: memref<1x512xf32, #tpu.memory_space<vmem>>) attributes {dimension_semantics = [#tpu.dimension_semantics<parallel>], iteration_bounds = array<i64: 2>, scalar_prefetch = 0 : i64, scratch_operands = 0 : i64, tpu.core_type = #tpu.core_type<tc>, window_params = [{transform_indices = @transform_0, window_bounds = array<i64: 4, 512>}, {pipeline_mode = #tpu.pipeline_mode<synchronous>, transform_indices = @transform_1, window_bounds = array<i64: 32, 4>}, {pipeline_mode = #tpu.pipeline_mode<synchronous>, transform_indices = @transform_2, window_bounds = array<i64: 32, 1>}, {pipeline_mode = #tpu.pipeline_mode<synchronous>, transform_indices = @transform_3, window_bounds = array<i64: 32, 32>}, {pipeline_mode = #tpu.pipeline_mode<synchronous>, transform_indices = @transform_4, window_bounds = array<i64: 32, 1>}, {pipeline_mode = #tpu.pipeline_mode<synchronous>, transform_indices = @transform_5, window_bounds = array<i64: 4, 32>}, {pipeline_mode = #tpu.pipeline_mode<synchronous>, transform_indices = @transform_6, window_bounds = array<i64: 4, 1>}, {transform_indices = @transform_7, window_bounds = array<i64: 1, 512>}, {transform_indices = @transform_8, window_bounds = array<i64: 4, 512>}, {transform_indices = @transform_9, window_bounds = array<i64: 1, 512>}]} {
    %c0 = arith.constant 0 : index
    %c0_0 = arith.constant 0 : index
    %0 = vector.load %arg1[%c0, %c0_0] : memref<4x512xf32, #tpu.memory_space<vmem>>, vector<4x512xf32>
    %c0_1 = arith.constant 0 : index
    %c0_2 = arith.constant 0 : index
    %1 = vector.load %arg2[%c0_1, %c0_2] : memref<32x4xf32, #tpu.memory_space<vmem>>, vector<32x4xf32>
    %c0_3 = arith.constant 0 : index
    %c0_4 = arith.constant 0 : index
    %2 = vector.load %arg3[%c0_3, %c0_4] : memref<32x1xf32, #tpu.memory_space<vmem>>, vector<32x1xf32>
    %cst = arith.constant dense<0.000000e+00> : vector<32x512xf32>
    %3 = tpu.matmul %1, %0, %cst {dimension_numbers = #tpu.dot_dimension_numbers<[1], [0], [0], [1], [0, 0, 1, 1], [], []>, precision = #tpu.contract_precision<fp32>} : vector<32x4xf32>, vector<4x512xf32>, vector<32x512xf32> -> vector<32x512xf32>
    %4 = vector.broadcast %2 : vector<32x1xf32> to vector<32x512xf32>
    %5 = arith.addf %3, %4 : vector<32x512xf32>
    %cst_5 = arith.constant 1.000000e+00 : f32
    %6 = vector.broadcast %cst_5 : f32 to vector<32x512xf32>
    %7 = arith.mulf %6, %5 : vector<32x512xf32>
    %8 = math.sin %7 : vector<32x512xf32>
    %c0_6 = arith.constant 0 : index
    %c0_7 = arith.constant 0 : index
    %9 = vector.load %arg4[%c0_6, %c0_7] : memref<32x32xf32, #tpu.memory_space<vmem>>, vector<32x32xf32>
    %c0_8 = arith.constant 0 : index
    %c0_9 = arith.constant 0 : index
    %10 = vector.load %arg5[%c0_8, %c0_9] : memref<32x1xf32, #tpu.memory_space<vmem>>, vector<32x1xf32>
    %cst_10 = arith.constant dense<0.000000e+00> : vector<32x512xf32>
    %11 = tpu.matmul %9, %8, %cst_10 {dimension_numbers = #tpu.dot_dimension_numbers<[1], [0], [0], [1], [0, 0, 1, 1], [], []>, precision = #tpu.contract_precision<fp32>} : vector<32x32xf32>, vector<32x512xf32>, vector<32x512xf32> -> vector<32x512xf32>
    %12 = vector.broadcast %10 : vector<32x1xf32> to vector<32x512xf32>
    %13 = arith.addf %11, %12 : vector<32x512xf32>
    %cst_11 = arith.constant 1.000000e+00 : f32
    %14 = vector.broadcast %cst_11 : f32 to vector<32x512xf32>
    %15 = arith.mulf %14, %13 : vector<32x512xf32>
    %16 = math.sin %15 : vector<32x512xf32>
    %c0_12 = arith.constant 0 : index
    %c0_13 = arith.constant 0 : index
    %17 = vector.load %arg6[%c0_12, %c0_13] : memref<4x32xf32, #tpu.memory_space<vmem>>, vector<4x32xf32>
    %c0_14 = arith.constant 0 : index
    %c0_15 = arith.constant 0 : index
    %18 = vector.load %arg7[%c0_14, %c0_15] : memref<4x1xf32, #tpu.memory_space<vmem>>, vector<4x1xf32>
    %cst_16 = arith.constant dense<0.000000e+00> : vector<4x512xf32>
    %19 = tpu.matmul %17, %16, %cst_16 {dimension_numbers = #tpu.dot_dimension_numbers<[1], [0], [0], [1], [0, 0, 1, 1], [], []>, precision = #tpu.contract_precision<fp32>} : vector<4x32xf32>, vector<32x512xf32>, vector<4x512xf32> -> vector<4x512xf32>
    %20 = vector.broadcast %18 : vector<4x1xf32> to vector<4x512xf32>
    %21 = arith.addf %19, %20 : vector<4x512xf32>
    %c0_17 = arith.constant 0 : index
    %c0_18 = arith.constant 0 : index
    %22 = vector.load %arg9[%c0_17, %c0_18] : memref<4x512xf32, #tpu.memory_space<vmem>>, vector<4x512xf32>
    tpu.vector_store %arg9[%c0_17, %c0_18], %21 {strides = array<i32>} : memref<4x512xf32, #tpu.memory_space<vmem>>, vector<4x512xf32>,
    %c0_19 = arith.constant 0 : index
    %c0_20 = arith.constant 0 : index
    %23 = vector.load %arg8[%c0_19, %c0_20] : memref<1x512xf32, #tpu.memory_space<vmem>>, vector<1x512xf32>
    %cst_21 = arith.constant -1.000000e-01 : f32
    %24 = vector.broadcast %cst_21 : f32 to vector<1x512xf32>
    %25 = arith.mulf %24, %23 : vector<1x512xf32>
    %26 = arith.mulf %25, %23 : vector<1x512xf32>
    %27 = math.exp %26 : vector<1x512xf32>
    %cst_22 = arith.constant 1.000000e+00 : f32
    %28 = vector.broadcast %cst_22 : f32 to vector<1x512xf32>
    %29 = arith.subf %28, %27 : vector<1x512xf32>
    %c0_23 = arith.constant 0 : index
    %c0_24 = arith.constant 0 : index
    %30 = vector.load %arg10[%c0_23, %c0_24] : memref<1x512xf32, #tpu.memory_space<vmem>>, vector<1x512xf32>
    tpu.vector_store %arg10[%c0_23, %c0_24], %29 {strides = array<i32>} : memref<1x512xf32, #tpu.memory_space<vmem>>, vector<1x512xf32>,
    return
  }
  func.func @transform_0(%arg0: i32) -> (i32, i32) {
    %c0_i32 = arith.constant 0 : i32
    %c0_i32_0 = arith.constant 0 : i32
    return %c0_i32, %arg0 : i32, i32
  }
  func.func @transform_1(%arg0: i32) -> (i32, i32) {
    %c0_i32 = arith.constant 0 : i32
    %c0_i32_0 = arith.constant 0 : i32
    %c0_i32_1 = arith.constant 0 : i32
    return %c0_i32, %c0_i32_0 : i32, i32
  }
  func.func @transform_2(%arg0: i32) -> (i32, i32) {
    %c0_i32 = arith.constant 0 : i32
    %c0_i32_0 = arith.constant 0 : i32
    %c0_i32_1 = arith.constant 0 : i32
    return %c0_i32, %c0_i32_0 : i32, i32
  }
  func.func @transform_3(%arg0: i32) -> (i32, i32) {
    %c0_i32 = arith.constant 0 : i32
    %c0_i32_0 = arith.constant 0 : i32
    %c0_i32_1 = arith.constant 0 : i32
    return %c0_i32, %c0_i32_0 : i32, i32
  }
  func.func @transform_4(%arg0: i32) -> (i32, i32) {
    %c0_i32 = arith.constant 0 : i32
    %c0_i32_0 = arith.constant 0 : i32
    %c0_i32_1 = arith.constant 0 : i32
    return %c0_i32, %c0_i32_0 : i32, i32
  }
  func.func @transform_5(%arg0: i32) -> (i32, i32) {
    %c0_i32 = arith.constant 0 : i32
    %c0_i32_0 = arith.constant 0 : i32
    %c0_i32_1 = arith.constant 0 : i32
    return %c0_i32, %c0_i32_0 : i32, i32
  }
  func.func @transform_6(%arg0: i32) -> (i32, i32) {
    %c0_i32 = arith.constant 0 : i32
    %c0_i32_0 = arith.constant 0 : i32
    %c0_i32_1 = arith.constant 0 : i32
    return %c0_i32, %c0_i32_0 : i32, i32
  }
  func.func @transform_7(%arg0: i32) -> (i32, i32) {
    %c0_i32 = arith.constant 0 : i32
    %c0_i32_0 = arith.constant 0 : i32
    return %c0_i32, %arg0 : i32, i32
  }
  func.func @transform_8(%arg0: i32) -> (i32, i32) {
    %c0_i32 = arith.constant 0 : i32
    %c0_i32_0 = arith.constant 0 : i32
    return %c0_i32, %arg0 : i32, i32
  }
  func.func @transform_9(%arg0: i32) -> (i32, i32) {
    %c0_i32 = arith.constant 0 : i32
    %c0_i32_0 = arith.constant 0 : i32
    return %c0_i32, %arg0 : i32, i32
  }
}

</mosaic_0001>

<bundles_post_ra>
// kernel: tpu_custom_call.1
= control target key start
LH: loop header
LB: loop body
LE: loop exit
PB: predicated region body
PF: predicated region fallthrough
CT: control target
= control target key end

     0   :  { %15 = vsyncpa [#allocation3], 0  ;;  %s12541_s0 = inlined_call_operand.vmem [shape: f32[4,1024], index: 0, kind: input, shape index: {}]   ;;  %s12542_s1 = inlined_call_operand.vmem [shape: f32[32,4], index: 1, kind: input, shape index: {}]   ;;  %s12543_s2 = inlined_call_operand.vmem [shape: f32[32,1], index: 2, kind: input, shape index: {}]   ;;  %s12544_s3 = inlined_call_operand.vmem [shape: f32[32,32], index: 3, kind: input, shape index: {}]   ;;  %s12545_s4 = inlined_call_operand.vmem [shape: f32[32,1], index: 4, kind: input, shape index: {}]   ;;  %s12546_s5 = inlined_call_operand.vmem [shape: f32[4,32], index: 5, kind: input, shape index: {}]   ;;  %s12547_s6 = inlined_call_operand.vmem [shape: f32[4,1], index: 6, kind: input, shape index: {}]   ;;  %s12548_s7 = inlined_call_operand.vmem [shape: f32[1,1024], index: 7, kind: input, shape index: {}]   ;;  %s12549_s8 = inlined_call_operand.hbm [shape: f32[4,1024], index: 8, kind: output, shape index: {0}]   ;;  %s12550_s9 = inlined_call_operand.hbm [shape: f32[1,1024], index: 9, kind: output, shape index: {1}]  }
   0x1   :  { %17 = vsyncpa [#allocation3 + $0x1], 0 }
   0x2   :  { %18 = vsyncpa [#allocation5], 0 }
   0x3   :  { %20 = vsyncpa [#allocation5 + $0x1], 0  ;;  %s8670_s30 = smov 0   ;;  %s8672_s10 = smov 0  }
   0x4   :  { %s8674_s11 = smov 0   ;;  %s8676_s12 = smov 0  }
   0x5 LB: > { %s8691_s13 = sadd.s32 4294967295, %s8608_s12   ;;  %s7645_s14 = sadd.s32 4294967294, %s8608_s12   ;;  %s8608_s12 = sphi %s8676_s12, %s12930_s12   ;;  %s8604_s11 = sphi %s8674_s11, %s12929_s11   ;;  %s8600_s10 = sphi %s8672_s10, %s12928_s10   ;;  %s8596_s30 = sphi %s8670_s30, %s12927_s30  }
   0x6   : > { %s8695_s15 = sadd.s32 1, %s8608_s12   ;;  %s211_s16 = sadd.s32 1, %s8604_s11 }
   0x7   : > { %s208_s17 = ssub.s32 %s8608_s12, %s8695_s15  ;;  %p221_p0 = scmp.ne.s32.totalorder %s8604_s11, %s8600_s10 }
   0x8   : > { %p209_p1 = scmp.eq.s32.totalorder %s208_s17, 0  ;;  %p222_p2 = scmp.eq.s32.totalorder %s8691_s13, 1 }
   0x9   : > { %p227_p3 = scmp.ne.s32.totalorder %s8600_s10, %s8596_s30  ;;  %p228_p4 = scmp.eq.s32.totalorder %s7645_s14, 1 }
   0xa   : > { %s8706_s18 = scalar_select %p209_p1, %s8604_s11, %s211_s16  }
   0xb   : > { %p8708_p5 = por %p222_p2, %p221_p0  ;;  %p8712_p6 = por %p228_p4, %p227_p3 }
   0xc   : > { %p7648_p7 = scmp.ge.s32.totalorder %s8608_s12, 1  ;;  %p307_p8 = scmp.lt.s32.totalorder %s8608_s12, 3 }
   0xe   : > { %p308_p9 = pnand %p7648_p7, %p307_p8 }
  0x10   : > { %311 = sbr.rel (%p308_p9) target bundleno = 1757 (0x6dd), region = 52 }
  0x17   : > { %s7651_s21 = sshll.u32 %s8691_s13, 2  ;;  %v367_v0 = vld [vmem:[%s12542_s1] sm:$0xff]  ;;  %vm399_vm0 = vcmask 31744   ;;  %v368_v1 = vld [vmem:[%s12542_s1 + $0x8] sm:$0xff]  ;;  %v12551_v2 = vmov 0.0   ;;  %v369_v5 = vld [vmem:[%s12542_s1 + $0x10] sm:$0xff] }
  0x18   : > { %p8725_p10 = scmp.lt.s32.totalorder %s7651_s21, 7  ;;  %487 = vmatprep.mubr.f32.mxu0 %v12551_v2  ;;  %1099 = vmatprep.mubr.f32.mxu1 %v12551_v2  ;;  %v401_v3 = vsel %vm399_vm0, %v367_v0, 0  ;;  %v404_v4 = vsel %vm399_vm0, %v368_v1, 0  ;;  %v370_v6 = vld [vmem:[%s12542_s1 + $0x18] sm:$0xff]  ;;  %v407_v9 = vsel %vm399_vm0, %v369_v5, 0  ;;  %v8611_v11 = vmov 0  }
  0x19   : > { %v8737_v7 = vand.u32 4294901760, %v401_v3  ;;  %v8739_v8 = vand.u32 4294901760, %v404_v4  ;;  %v410_v10 = vsel %vm399_vm0, %v370_v6, 0  ;;  %8380 = vset.pattern.permute.xlu0 %v8611_v11  ;;  %v371_v12 = vld [vmem:[%s12543_s2] sm:$0xff]  ;;  %8381 = vset.pattern.permute.xlu1 %v8611_v11  ;;  %v8748_v13 = vand.u32 4294901760, %v407_v9  ;;  %v373_v14 = vld [vmem:[%s12543_s2 + $0x10] sm:$0xff] }
  0x1a   : > { %s12932_s21 = smov (!%p8725_p10, %s7651_s21), 7  ;;  %377 = vperm.xlu0 %8380, %v371_v12   ;;  %v372_v17 = vld [vmem:[%s12543_s2 + $0x8] sm:$0xff]  ;;  %387 = vperm.xlu1 %8381, %v373_v14   ;;  %vm412_vm1 = vcmask 1043456   ;;  %v8763_v18 = vand.u32 4294901760, %v410_v10  ;;  %v374_v19 = vld [vmem:[%s12543_s2 + $0x18] sm:$0xff]  ;;  %v3313_v29 = vld [vmem:[%s12545_s4] sm:$0xff] }
  0x1b   : > { %v8754_v15 = vsub.f32 %v401_v3, %v8737_v7  ;;  %v8757_v16 = vsub.f32 %v404_v4, %v8739_v8  ;;  %s7652_s26 = sshll.u32 %s12932_s21, 2  ;;  %v8778_v22 = vsub.f32 %v407_v9, %v8748_v13  ;;  %v3314_v34 = vld [vmem:[%s12545_s4 + $0x8] sm:$0xff]  ;;  %v3315_v51 = vld [vmem:[%s12545_s4 + $0x10] sm:$0xff]  ;;  %v3316_v52 = vld [vmem:[%s12545_s4 + $0x18] sm:$0xff]  ;;  %s361_s17 = scalar_lea.vmem %s12548_s7, %s12932_s21 }
  0x1c   : > { %s356_s16 = scalar_lea.vmem %s12541_s0, %s7652_s26  ;;  %v8792_v33 = vsub.f32 %v410_v10, %v8763_v18  ;;  %v6395_v3 = vld [vmem:[%s12547_s6] sm:$0xf]  ;;  %s12460_s22 = sand.u32 1, %s8600_s10  }
  0x1d   : > { %v8772_v20 = vand.u32 4294901760, %v8754_v15  ;;  %v8775_v21 = vand.u32 4294901760, %v8757_v16  ;;  %v365_v23 = vld [vmem:[%s356_s16] sm:$0xff]  ;;  %v366_v24 = vld [vmem:[%s356_s16 + $0x8] sm:$0xff]  ;;  %v8802_v38 = vand.u32 4294901760, %v8778_v22  ;;  %s7650_s23 = sshll.u32 %s12460_s22, 2 }
  0x1e   : > { %382 = vperm.xlu0 %8380, %v372_v17   ;;  %v397_v25 = vcombine.high %v365_v23, %v365_v23  ;;  %v398_v26 = vcombine.high %v366_v24, %v366_v24  ;;  %v413_v27 = vsel %vm412_vm1, %v365_v23, 0  ;;  %v417_v28 = vsel %vm412_vm1, %v366_v24, 0  ;;  %392 = vperm.xlu1 %8381, %v374_v19   ;;  %s7791_s24 = sshll.u32 %s8691_s13, 6  ;;  %s351_s25 = scalar_lea.vmem [#allocation4], %s7650_s23 }
  0x1f   : > { %v8785_v30 = vand.u32 4294901760, %v413_v27  ;;  %v8787_v31 = vand.u32 4294901760, %v417_v28  ;;  %v491_v32 = vsub.f32 %v8754_v15, %v8772_v20  ;;  %v502_v37 = vsub.f32 %v8757_v16, %v8775_v21  ;;  %s7545_s26 = sshll.u32 %s351_s25, 4  ;;  %s12467_s28 = scalar_lea.hbm %s12550_s9, %s7791_s24  ;;  %s12469_s26 = int_to_ptr.vmem [resolvable:$true] %s7545_s26 }
  0x20   : > { %v415_v35 = vsel %vm412_vm1, %v397_v25, 0  ;;  %v419_v36 = vsel %vm412_vm1, %v398_v26, 0  ;;  %v513_v49 = vsub.f32 %v8778_v22, %v8802_v38  ;;  %v8829_v50 = vand.u32 4294901760, %v8792_v33  ;;  %s7517_s29 = scalar_lea.sflag [#allocation5], %s12460_s22  ;;  %s8514_s14 = scalar_lea.vmem %s12469_s26, 64 }
  0x21   : > { %v8804_v39 = vand.u32 4294901760, %v415_v35  ;;  %v8806_v40 = vand.u32 4294901760, %v419_v36  ;;  %v8809_v41 = vsub.f32 %v413_v27, %v8785_v30  ;;  %v8812_v42 = vsub.f32 %v417_v28, %v8787_v31  ;;  %p8515_p11 = scmp.ne.s32.totalorder %s12469_s26, %s8514_s14  ;;  %s8618_s16 = smov [#allocation4]  }
  0x22   : > { %3319 = vperm.xlu0 %8380, %v3313_v29   ;;  %v492_v43 = vand.u32 4294901760, %v491_v32  ;;  %3324 = vperm.xlu1 %8381, %v3314_v34   ;;  %v503_v48 = vand.u32 4294901760, %v502_v37  ;;  %v514_v63 = vand.u32 4294901760, %v513_v49  ;;  %v524_v0 = vsub.f32 %v8792_v33, %v8829_v50 }
  0x23   : > { %422 = vmatprep.subr.mxu0 %v8804_v39  ;;  %1034 = vmatprep.subr.mxu1 %v8806_v40  ;;  %v8817_v44 = vsub.f32 %v415_v35, %v8804_v39  ;;  %v8820_v45 = vsub.f32 %v419_v36, %v8806_v40  ;;  %v540_v46 = vand.u32 4294901760, %v8809_v41  ;;  %v1152_v47 = vand.u32 4294901760, %v8812_v42  ;;  %p8516_p12 = pnand %p8515_p11, %p8708_p5 }
  0x24   : > { %424 = vmatpush1.msra.mxu0 %v8785_v30  ;;  %1036 = vmatpush1.msra.mxu1 %v8787_v31  ;;  %v525_v1 = vand.u32 4294901760, %v524_v0 }
  0x25   : > { %493 = vmatmul.mubr.f32.vlgmr.msra.gmra.mrb[0].mxu0 %v492_v43  ;;  %1105 = vmatmul.mubr.f32.vlgmr.msra.gmra.mrb[0].mxu1 %v492_v43  ;;  %v534_v53 = vand.u32 4294901760, %v8817_v44  ;;  %v1146_v54 = vand.u32 4294901760, %v8820_v45  ;;  %v541_v55 = vsub.f32 %v8809_v41, %v540_v46  ;;  %v1153_v56 = vsub.f32 %v8812_v42, %v1152_v47  ;;  %p8517_p13 = pneg %p8516_p12 }
  0x26   : > { %498 = vmatprep.mubr.f32.mxu0 %v12551_v2  ;;  %1110 = vmatprep.mubr.f32.mxu1 %v12551_v2 }
  0x27   : > { %v535_v57 = vsub.f32 %v8817_v44, %v534_v53  ;;  %v1147_v58 = vsub.f32 %v8820_v45, %v1146_v54  ;;  %3329 = vperm.xlu0 %8380, %v3315_v51   ;;  %3334 = vperm.xlu1 %8381, %v3316_v52   ;;  %v542_v59 = vand.u32 4294901760, %v541_v55  ;;  %v1154_v60 = vand.u32 4294901760, %v1153_v56 }
  0x28   : > { %v12563_v52 = vmov 2102212464  }
  0x29   : > { %504 = vmatmul.mubr.f32.gmra.mrb[2].mxu0 %v503_v48  ;;  %1116 = vmatmul.mubr.f32.gmra.mrb[2].mxu1 %v503_v48  ;;  %v536_v61 = vand.u32 4294901760, %v535_v57  ;;  %v1148_v62 = vand.u32 4294901760, %v1147_v58  ;;  %v12555_v48 = vmov 2475754826  }
  0x2a   : > { %509 = vmatprep.mubr.f32.mxu0 %v12551_v2  ;;  %1121 = vmatprep.mubr.f32.mxu1 %v12551_v2 }
  0x2b   : > { %537 = vmatprep.subr.mxu0 %v536_v61  ;;  %1149 = vmatprep.subr.mxu1 %v1148_v62  ;;  %v12567_v61 = vmov 1326507024  }
  0x2c   : > { %543 = vmatpush1.msra.mxu0 %v542_v59  ;;  %1155 = vmatpush1.msra.mxu1 %v1154_v60 }
  0x2d   : > { %515 = vmatmul.mubr.f32.gmra.mrb[4].mxu0 %v514_v63  ;;  %1127 = vmatmul.mubr.f32.gmra.mrb[4].mxu1 %v514_v63 }
  0x2e   : > { %520 = vmatprep.mubr.f32.mxu0 %v12551_v2  ;;  %1132 = vmatprep.mubr.f32.mxu1 %v12551_v2 }
  0x2f   : > { %637 = vmatprep.subr.mxu0 %v8817_v44  ;;  %1249 = vmatprep.subr.mxu1 %v8820_v45  ;;  %v12557_v44 = vmov 683565275  }
  0x30   : > { %6398 = vperm.xlu0 %8380, %v6395_v3  }
  0x31   : > { %526 = vmatmul.mubr.f32.gmra.mrb[6].mxu0 %v525_v1  ;;  %1138 = vmatmul.mubr.f32.gmra.mrb[6].mxu1 %v525_v1 }
  0x32   : > { %606 = vmatprep.mubr.f32.mxu0 %v12551_v2  ;;  %1218 = vmatprep.mubr.f32.mxu1 %v12551_v2 }
  0x35   : > { %608 = vmatmul.mubr.f32.vlgmr.msra.gmra.mrb[0].mxu0 %v8737_v7  ;;  %1220 = vmatmul.mubr.f32.vlgmr.msra.gmra.mrb[0].mxu1 %v8737_v7 }
  0x36   : > { %613 = vmatprep.mubr.f32.mxu0 %v12551_v2  ;;  %1225 = vmatprep.mubr.f32.mxu1 %v12551_v2 }
  0x37   : > { %640 = vmatpush1.msra.mxu0 %v8809_v41  ;;  %1252 = vmatpush1.msra.mxu1 %v8812_v42 }
  0x38   : > { %737 = vmatprep.subr.mxu0 %v8804_v39  ;;  %1349 = vmatprep.subr.mxu1 %v8806_v40 }
  0x39   : > { %615 = vmatmul.mubr.f32.gmra.mrb[2].mxu0 %v8739_v8  ;;  %1227 = vmatmul.mubr.f32.gmra.mrb[2].mxu1 %v8739_v8 }
  0x3a   : > { %620 = vmatprep.mubr.f32.mxu0 %v12551_v2  ;;  %1232 = vmatprep.mubr.f32.mxu1 %v12551_v2 }
  0x3d   : > { %622 = vmatmul.mubr.f32.gmra.mrb[4].mxu0 %v8748_v13  ;;  %1234 = vmatmul.mubr.f32.gmra.mrb[4].mxu1 %v8748_v13 }
  0x3e   : > { %627 = vmatprep.mubr.f32.mxu0 %v12551_v2  ;;  %1239 = vmatprep.mubr.f32.mxu1 %v12551_v2 }
  0x41   : > { %629 = vmatmul.mubr.f32.gmra.mrb[6].mxu0 %v8763_v18  ;;  %1241 = vmatmul.mubr.f32.gmra.mrb[6].mxu1 %v8763_v18 }
  0x42   : > { %703 = vmatprep.mubr.f32.mxu0 %v12551_v2  ;;  %1315 = vmatprep.mubr.f32.mxu1 %v12551_v2 }
  0x45   : > { %706 = vmatmul.mubr.f32.vlgmr.msra.gmra.mrb[0].mxu0 %v8754_v15  ;;  %1318 = vmatmul.mubr.f32.vlgmr.msra.gmra.mrb[0].mxu1 %v8754_v15 }
  0x46   : > { %711 = vmatprep.mubr.f32.mxu0 %v12551_v2  ;;  %1323 = vmatprep.mubr.f32.mxu1 %v12551_v2 }
  0x47   : > { %739 = vmatpush1.msra.mxu0 %v8785_v30  ;;  %1351 = vmatpush1.msra.mxu1 %v8787_v31 }
  0x48   : > { %842 = vmatprep.subr.mxu0 %v534_v53  ;;  %1454 = vmatprep.subr.mxu1 %v1146_v54  ;;  %v12569_v54 = vmov 920167782  }
  0x49   : > { %714 = vmatmul.mubr.f32.gmra.mrb[2].mxu0 %v8757_v16  ;;  %1326 = vmatmul.mubr.f32.gmra.mrb[2].mxu1 %v8757_v16 }
  0x4a   : > { %719 = vmatprep.mubr.f32.mxu0 %v12551_v2  ;;  %1331 = vmatprep.mubr.f32.mxu1 %v12551_v2 }
  0x4d   : > { %722 = vmatmul.mubr.f32.gmra.mrb[4].mxu0 %v8778_v22  ;;  %1334 = vmatmul.mubr.f32.gmra.mrb[4].mxu1 %v8778_v22 }
  0x4e   : > { %727 = vmatprep.mubr.f32.mxu0 %v12551_v2  ;;  %1339 = vmatprep.mubr.f32.mxu1 %v12551_v2 }
  0x51   : > { %730 = vmatmul.mubr.f32.gmra.mrb[6].mxu0 %v8792_v33  ;;  %1342 = vmatmul.mubr.f32.gmra.mrb[6].mxu1 %v8792_v33 }
  0x52   : > { %802 = vmatprep.mubr.f32.mxu0 %v12551_v2  ;;  %1414 = vmatprep.mubr.f32.mxu1 %v12551_v2 }
  0x55   : > { %806 = vmatmul.mubr.f32.vlgmr.msra.gmra.mrb[0].mxu0 %v8772_v20  ;;  %1418 = vmatmul.mubr.f32.vlgmr.msra.gmra.mrb[0].mxu1 %v8772_v20 }
  0x56   : > { %811 = vmatprep.mubr.f32.mxu0 %v12551_v2  ;;  %1423 = vmatprep.mubr.f32.mxu1 %v12551_v2 }
  0x57   : > { %846 = vmatpush1.msra.mxu0 %v540_v46  ;;  %1458 = vmatpush1.msra.mxu1 %v1152_v47 }
  0x58   : > { %939 = vmatprep.subr.mxu0 %v8804_v39  ;;  %1551 = vmatprep.subr.mxu1 %v8806_v40 }
  0x59   : > { %815 = vmatmul.mubr.f32.gmra.mrb[2].mxu0 %v8775_v21  ;;  %1427 = vmatmul.mubr.f32.gmra.mrb[2].mxu1 %v8775_v21 }
  0x5a   : > { %820 = vmatprep.mubr.f32.mxu0 %v12551_v2  ;;  %1432 = vmatprep.mubr.f32.mxu1 %v12551_v2 }
  0x5d   : > { %824 = vmatmul.mubr.f32.gmra.mrb[4].mxu0 %v8802_v38  ;;  %1436 = vmatmul.mubr.f32.gmra.mrb[4].mxu1 %v8802_v38 }
  0x5e   : > { %829 = vmatprep.mubr.f32.mxu0 %v12551_v2  ;;  %1441 = vmatprep.mubr.f32.mxu1 %v12551_v2 }
  0x61   : > { %833 = vmatmul.mubr.f32.gmra.mrb[6].mxu0 %v8829_v50  ;;  %1445 = vmatmul.mubr.f32.gmra.mrb[6].mxu1 %v8829_v50  ;;  %v12559_v50 = vmov 2131351028  }
  0x62   : > { %909 = vmatprep.mubr.f32.mxu0 %v12551_v2  ;;  %1521 = vmatprep.mubr.f32.mxu1 %v12551_v2 }
  0x65   : > { %911 = vmatmul.mubr.f32.vlgmr.msra.gmra.mrb[0].mxu0 %v8737_v7  ;;  %1523 = vmatmul.mubr.f32.vlgmr.msra.gmra.mrb[0].mxu1 %v8737_v7 }
  0x66   : > { %916 = vmatprep.mubr.f32.mxu0 %v12551_v2  ;;  %1528 = vmatprep.mubr.f32.mxu1 %v12551_v2 }
  0x67   : > { %941 = vmatpush1.msra.mxu0 %v8785_v30  ;;  %1553 = vmatpush1.msra.mxu1 %v8787_v31 }
  0x69   : > { %918 = vmatmul.mubr.f32.gmra.mrb[2].mxu0 %v8739_v8  ;;  %1530 = vmatmul.mubr.f32.gmra.mrb[2].mxu1 %v8739_v8 }
  0x6a   : > { %923 = vmatprep.mubr.f32.mxu0 %v12551_v2  ;;  %1535 = vmatprep.mubr.f32.mxu1 %v12551_v2 }
  0x6d   : > { %925 = vmatmul.mubr.f32.gmra.mrb[4].mxu0 %v8748_v13  ;;  %1537 = vmatmul.mubr.f32.gmra.mrb[4].mxu1 %v8748_v13 }
  0x6e   : > { %930 = vmatprep.mubr.f32.mxu0 %v12551_v2  ;;  %1542 = vmatprep.mubr.f32.mxu1 %v12551_v2 }
  0x71   : > { %932 = vmatmul.mubr.f32.gmra.mrb[6].mxu0 %v8763_v18  ;;  %1544 = vmatmul.mubr.f32.gmra.mrb[6].mxu1 %v8763_v18 }
  0x72   : > { %1004 = vmatprep.mubr.f32.mxu0 %v12551_v2  ;;  %1616 = vmatprep.mubr.f32.mxu1 %v12551_v2 }
  0x75   : > { %1006 = vmatmul.mubr.f32.vlgmr.msra.gmra.mrb[0].mxu0 %v8737_v7  ;;  %1618 = vmatmul.mubr.f32.vlgmr.msra.gmra.mrb[0].mxu1 %v8737_v7 }
  0x76   : > { %1011 = vmatprep.mubr.f32.mxu0 %v12551_v2  ;;  %1623 = vmatprep.mubr.f32.mxu1 %v12551_v2 }
  0x79   : > { %1013 = vmatmul.mubr.f32.gmra.mrb[2].mxu0 %v8739_v8  ;;  %1625 = vmatmul.mubr.f32.gmra.mrb[2].mxu1 %v8739_v8 }
  0x7a   : > { %1018 = vmatprep.mubr.f32.mxu0 %v12551_v2  ;;  %1630 = vmatprep.mubr.f32.mxu1 %v12551_v2 }
  0x7d   : > { %1020 = vmatmul.mubr.f32.gmra.mrb[4].mxu0 %v8748_v13  ;;  %1632 = vmatmul.mubr.f32.gmra.mrb[4].mxu1 %v8748_v13 }
  0x7e   : > { %1025 = vmatprep.mubr.f32.mxu0 %v12551_v2  ;;  %1637 = vmatprep.mubr.f32.mxu1 %v12551_v2 }
  0x81   : > { %1027 = vmatmul.mubr.f32.gmra.mrb[6].mxu0 %v8763_v18  ;;  %1639 = vmatmul.mubr.f32.gmra.mrb[6].mxu1 %v8763_v18 }
  0x82   : > { %3422 = vmatprep.mubr.f32.mxu0 %v12551_v2  ;;  %4112 = vmatprep.mubr.f32.mxu1 %v12551_v2 }
  0x99   : > { %v378_v4 = vpop.permute.xlu0 %377 }
 0x148   : > { %v1007_v5 = vpop.f32.mrb[0].mxu0  ;;  %v1619_v6 = vpop.f32.mrb[0].mxu1 }
 0x149   : > { %v8956_v7 = vadd.f32 %v1007_v5, %v378_v4  ;;  %v8958_v8 = vadd.f32 %v1619_v6, %v378_v4  ;;  %v1009_v9 = vpop.f32.mrb[1].mxu0  ;;  %v1621_v10 = vpop.f32.mrb[1].mxu1 }
 0x14a   : > { %v8960_v11 = vadd.f32 %v1009_v9, %v378_v4  ;;  %v8979_v33 = vadd.f32 %v1621_v10, %v378_v4 }
 0x14b   : > { %12674 = vst [vmem:[#allocation8_spill] sm:$0xff] %v8956_v7  ;;  %12675 = vst [vmem:[#allocation9_spill] sm:$0xff] %v8958_v8  ;;  %v1645_v12 = vand.u32 2147483647, %v8956_v7  ;;  %v1648_v13 = vand.u32 2139095040, %v8956_v7  ;;  %v1856_v15 = vand.u32 2139095040, %v8958_v8 }
 0x14c   : > { %v1853_v14 = vand.u32 2147483647, %v8958_v8  ;;  %v8966_v16 = vpop.f32.mrb[2].mxu0  ;;  %v1752_v18 = vand.u32 2139095040, %v8960_v11  ;;  %v8973_v24 = vpop.f32.mrb[2].mxu1  ;;  %12676 = vst [vmem:[#allocation10_spill] sm:$0xff] %v8979_v33 }
 0x14d   : > { %v1649_v17 = vshrl.u32 %v1648_v13, 23  ;;  %v1652_v19 = vand.u32 8388607, %v1645_v12  ;;  %v1857_v20 = vshrl.u32 %v1856_v15, 23  ;;  %v8975_v28 = vpop.f32.mrb[3].mxu0  ;;  %v8977_v29 = vpop.f32.mrb[3].mxu1 }
 0x14e   : > { %v1860_v21 = vand.u32 8388607, %v1853_v14  ;;  %v1753_v23 = vshrl.u32 %v1752_v18, 23  ;;  %v1749_v41 = vand.u32 2147483647, %v8960_v11  ;;  %v1960_v42 = vand.u32 2139095040, %v8979_v33 }
 0x14f   : > { %v7654_v22 = vadd.s32 4294967169, %v1649_v17  ;;  %v7662_v25 = vadd.s32 4294967169, %v1857_v20  ;;  %v1653_v30 = vor.u32 8388608, %v1652_v19 }
 0x150   : > { %v7658_v27 = vadd.s32 4294967169, %v1753_v23  ;;  %v1861_v31 = vor.u32 8388608, %v1860_v21  ;;  %v9003_v4 = vpop.f32.mrb[4].mxu0 }
 0x151   : > { %v1655_v26 = vadd.s32 1, %v7654_v22  ;;  %v1863_v32 = vadd.s32 1, %v7662_v25  ;;  %v8983_v39 = vshll.u32 %v1653_v30, 8 }
 0x152   : > { %v8981_v35 = vadd.s32 1, %v7658_v27  ;;  %v8985_v40 = vshll.u32 %v1861_v31, 8 }
 0x153   : > { %vm1656_vm2 = vcmp.gt.s32.totalorder %v1655_v26, 0  ;;  %vm1864_vm3 = vcmp.gt.s32.totalorder %v1863_v32, 0 }
 0x154   : > { %v1657_v34 = vsel %vm1656_vm2, %v1655_v26, 0  ;;  %v1865_v38 = vsel %vm1864_vm3, %v1863_v32, 0  ;;  %vm1760_vm4 = vcmp.gt.s32.totalorder %v8981_v35, 0 }
 0x155   : > { %v1658_v36 = vshrl.u32 %v1657_v34, 5  ;;  %v1659_v37 = vand.u32 31, %v1657_v34  ;;  %v8990_v46 = vshrl.u32 %v1865_v38, 5  ;;  %v1867_v47 = vand.u32 31, %v1865_v38 }
 0x157   : > { %v1660_v43 = vsub.s32 32, %v1659_v37  ;;  %v1662_v45 = vshll.u32 %v12557_v44, %v1659_v37  ;;  %v1665_v49 = vshll.u32 %v12555_v48, %v1659_v37  ;;  %v1668_v51 = vshll.u32 %v12559_v50, %v1659_v37 }
 0x158   : > { %v1671_v53 = vshll.u32 %v12563_v52, %v1659_v37  ;;  %v1674_v55 = vshll.u32 %v12569_v54, %v1659_v37  ;;  %vm1677_vm5 = vcmp.lt.s32.totalorder %v1658_v36, 1  ;;  %vm1678_vm6 = vcmp.lt.s32.totalorder %v1658_v36, 2 }
 0x159   : > { %v1663_v56 = vshrl.u32 %v12555_v48, %v1660_v43  ;;  %v1666_v57 = vshrl.u32 %v12559_v50, %v1660_v43  ;;  %v1669_v58 = vshrl.u32 %v12563_v52, %v1660_v43  ;;  %v1661_v59 = vshrl.u32 %v12557_v44, %v1660_v43 }
 0x15a   : > { %v1672_v60 = vshrl.u32 %v12569_v54, %v1660_v43  ;;  %v1675_v62 = vshrl.u32 %v12567_v61, %v1660_v43  ;;  %v1868_v3 = vsub.s32 32, %v1867_v47  ;;  %vm1679_vm7 = vcmp.lt.s32.totalorder %v1658_v36, 3 }
 0x15b   : > { %v1664_v63 = vor.u32 %v1663_v56, %v1662_v45  ;;  %v1667_v0 = vor.u32 %v1666_v57, %v1665_v49  ;;  %v1670_v1 = vor.u32 %v1669_v58, %v1668_v51  ;;  %vm1680_vm8 = vcmp.lt.s32.totalorder %v1658_v36, 4 }
 0x15c   : > { %v1673_v5 = vor.u32 %v1672_v60, %v1671_v53  ;;  %v1676_v6 = vor.u32 %v1675_v62, %v1674_v55  ;;  %v1870_v20 = vshll.u32 %v12557_v44, %v1867_v47  ;;  %v1871_v23 = vshrl.u32 %v12555_v48, %v1868_v3 }
 0x15d   : > { %v1681_v9 = vsel %vm1677_vm5, %v1661_v59, %v1664_v63  ;;  %v1682_v10 = vsel %vm1680_vm8, %v1670_v1, 2102212464  ;;  %v1685_v13 = vsel %vm1677_vm5, %v1664_v63, %v1667_v0  ;;  %v1689_v15 = vsel %vm1677_vm5, %v1667_v0, %v1670_v1 }
 0x15e   : > { %v1683_v17 = vsel %vm1679_vm7, %v1667_v0, %v1682_v10  ;;  %v1686_v18 = vsel %vm1680_vm8, %v1673_v5, 920167782  ;;  %v1690_v19 = vsel %vm1680_vm8, %v1676_v6, 1326507024  ;;  %v1873_v25 = vshll.u32 %v12555_v48, %v1867_v47 }
 0x15f   : > { %v1687_v21 = vsel %vm1679_vm7, %v1670_v1, %v1686_v18  ;;  %v1691_v22 = vsel %vm1679_vm7, %v1673_v5, %v1690_v19  ;;  %v1684_v26 = vsel %vm1678_vm6, %v1681_v9, %v1683_v17  ;;  %v1874_v31 = vshrl.u32 %v12559_v50, %v1868_v3 }
 0x160   : > { %v1688_v27 = vsel %vm1678_vm6, %v1685_v13, %v1687_v21  ;;  %v1692_v30 = vsel %vm1678_vm6, %v1689_v15, %v1691_v22  ;;  %v1872_v43 = vor.u32 %v1871_v23, %v1870_v20  ;;  %v1876_v49 = vshll.u32 %v12559_v50, %v1867_v47 }
 0x161   : > { %v9016_v32 = vmul.u32.u64.low %v8983_v39, %v1692_v30  ;;  %v9017_v34 = vmul.u32.u64.high %v8983_v39, %v1692_v30, %v9016_v32  ;;  %v9020_v37 = vmul.u32.u64.low %v8983_v39, %v1688_v27  ;;  %v9021_v38 = vmul.u32.u64.high %v8983_v39, %v1688_v27, %v9020_v37 }
 0x162   : > { %v1875_v45 = vor.u32 %v1874_v31, %v1873_v25  ;;  %v1877_v51 = vshrl.u32 %v12563_v52, %v1868_v3  ;;  %v1879_v36 = vshll.u32 %v12563_v52, %v1867_v47  ;;  %v1880_v53 = vshrl.u32 %v12569_v54, %v1868_v3 }
 0x163   : > { %v1883_v55 = vshrl.u32 %v12567_v61, %v1868_v3  ;;  %v1761_v56 = vsel %vm1760_vm4, %v8981_v35, 0  ;;  %v1700_v57 = vmul.u32 %v8983_v39, %v1684_v26  ;;  %v1869_v58 = vshrl.u32 %v12557_v44, %v1868_v3 }
 0x164   : > { %v1878_v59 = vor.u32 %v1877_v51, %v1876_v49  ;;  %v1882_v60 = vshll.u32 %v12569_v54, %v1867_v47  ;;  %vm1702_vm9 = vc.u32 %v9017_v34, %v9020_v37  ;;  %v1703_v62 = vadd.s32 1, %v9021_v38  ;;  %v9064_v51 = vpop.f32.mrb[4].mxu1 }
 0x165   : > { %v1881_v63 = vor.u32 %v1880_v53, %v1879_v36  ;;  %vm1885_vm10 = vcmp.lt.s32.totalorder %v8990_v46, 1  ;;  %vm1887_vm11 = vcmp.lt.s32.totalorder %v8990_v46, 3  ;;  %vm1888_vm12 = vcmp.lt.s32.totalorder %v8990_v46, 4 }
 0x166   : > { %v1884_v0 = vor.u32 %v1883_v55, %v1882_v60  ;;  %v1893_v35 = vsel %vm1885_vm10, %v1872_v43, %v1875_v45  ;;  %v1704_v39 = vsel %vm1702_vm9, %v1703_v62, %v9021_v38  ;;  %v1890_v1 = vsel %vm1888_vm12, %v1878_v59, 2102212464 }
 0x167   : > { %v1894_v3 = vsel %vm1888_vm12, %v1881_v63, 920167782  ;;  %v1897_v5 = vsel %vm1885_vm10, %v1875_v45, %v1878_v59  ;;  %v1705_v47 = vadd.s32 %v1704_v39, %v1700_v57  ;;  %vm1886_vm13 = vcmp.lt.s32.totalorder %v8990_v46, 2 }
 0x168   : > { %v1895_v6 = vsel %vm1887_vm11, %v1878_v59, %v1894_v3  ;;  %v1898_v9 = vsel %vm1888_vm12, %v1884_v0, 1326507024  ;;  %v1889_v10 = vsel %vm1885_vm10, %v1869_v58, %v1872_v43  ;;  %v1891_v13 = vsel %vm1887_vm11, %v1875_v45, %v1890_v1 }
 0x169   : > { %v1896_v15 = vsel %vm1886_vm13, %v1893_v35, %v1895_v6  ;;  %v1899_v17 = vsel %vm1887_vm11, %v1881_v63, %v1898_v9  ;;  %v1706_v18 = vadd.s32 536870912, %v1705_v47  ;;  %v1763_v25 = vand.u32 31, %v1761_v56 }
 0x16a   : > { %v1900_v19 = vsel %vm1886_vm13, %v1897_v5, %v1899_v17  ;;  %v9044_v20 = vmul.u32.u64.low %v8985_v40, %v1896_v15  ;;  %v9045_v21 = vmul.u32.u64.high %v8985_v40, %v1896_v15, %v9044_v20  ;;  %v1892_v46 = vsel %vm1886_vm13, %v1889_v10, %v1891_v13 }
 0x16b   : > { %v9049_v22 = vmul.u32.u64.low %v8985_v40, %v1900_v19  ;;  %v9050_v23 = vmul.u32.u64.high %v8985_v40, %v1900_v19, %v9049_v22  ;;  %v9052_v26 = vshrl.u32 %v1706_v18, 30  ;;  %v1764_v27 = vsub.s32 32, %v1763_v25 }
 0x16c   : > { %v1911_v31 = vadd.s32 1, %v9045_v21  ;;  %v1756_v32 = vand.u32 8388607, %v1749_v41  ;;  %v1961_v38 = vshrl.u32 %v1960_v42, 23  ;;  %v1908_v43 = vmul.u32 %v8985_v40, %v1892_v46 }
 0x16d   : > { %v1708_v30 = vshll.u32 %v9052_v26, 30  ;;  %vm1910_vm14 = vc.u32 %v9050_v23, %v9044_v20  ;;  %v1762_v45 = vshrl.u32 %v1761_v56, 5  ;;  %v1767_v49 = vshrl.u32 %v12555_v48, %v1764_v27 }
 0x16e   : > { %v1912_v53 = vsel %vm1910_vm14, %v1911_v31, %v9045_v21  ;;  %v1766_v55 = vshll.u32 %v12557_v44, %v1763_v25  ;;  %v1770_v57 = vshrl.u32 %v12559_v50, %v1764_v27  ;;  %v1769_v42 = vshll.u32 %v12555_v48, %v1763_v25 }
 0x16f   : > { %v9066_v36 = vsub.s32 %v1705_v47, %v1708_v30  ;;  %v1913_v58 = vadd.s32 %v1912_v53, %v1908_v43  ;;  %v1772_v40 = vshll.u32 %v12559_v50, %v1763_v25  ;;  %v1773_v59 = vshrl.u32 %v12563_v52, %v1764_v27 }
 0x170   : > { %v1768_v60 = vor.u32 %v1767_v49, %v1766_v55  ;;  %v1775_v62 = vshll.u32 %v12563_v52, %v1763_v25  ;;  %v1776_v63 = vshrl.u32 %v12569_v54, %v1764_v27  ;;  %v1771_v35 = vor.u32 %v1770_v57, %v1769_v42 }
 0x171   : > { %v1711_v56 = vsub.s32 0, %v9066_v36  ;;  %v1914_v0 = vadd.s32 536870912, %v1913_v58  ;;  %v1778_v39 = vshll.u32 %v12569_v54, %v1763_v25  ;;  %v1779_v1 = vshrl.u32 %v12567_v61, %v1764_v27 }
 0x172   : > { %v1774_v5 = vor.u32 %v1773_v59, %v1772_v40  ;;  %v1777_v47 = vor.u32 %v1776_v63, %v1775_v62  ;;  %vm1784_vm15 = vcmp.lt.s32.totalorder %v1762_v45, 4  ;;  %v1757_v13 = vor.u32 8388608, %v1756_v32 }
 0x173   : > { %v7655_v3 = vmin.u32 %v1711_v56, %v9066_v36  ;;  %v9080_v6 = vshrl.u32 %v1914_v0, 30  ;;  %v1780_v9 = vor.u32 %v1779_v1, %v1778_v39  ;;  %vm1781_vm0 = vcmp.lt.s32.totalorder %v1762_v45, 1 }
 0x174   : > { %v1790_v15 = vsel %vm1784_vm15, %v1777_v47, 920167782  ;;  %vm1783_vm1 = vcmp.lt.s32.totalorder %v1762_v45, 3  ;;  %v1789_v18 = vsel %vm1781_vm0, %v1768_v60, %v1771_v35  ;;  %v7666_v19 = vadd.s32 4294967169, %v1961_v38 }
 0x175   : > { %v1713_v10 = vclz %v7655_v3  ;;  %v1916_v17 = vshll.u32 %v9080_v6, 30  ;;  %v1791_v22 = vsel %vm1783_vm1, %v1774_v5, %v1790_v15  ;;  %v1793_v25 = vsel %vm1781_vm0, %v1771_v35, %v1774_v5 }
 0x176   : > { %v1794_v46 = vsel %vm1784_vm15, %v1780_v9, 1326507024  ;;  %vm1782_vm2 = vcmp.lt.s32.totalorder %v1762_v45, 2  ;;  %v1765_v32 = vshrl.u32 %v12557_v44, %v1764_v27  ;;  %v1786_v43 = vsel %vm1784_vm15, %v1774_v5, 2102212464 }
 0x177   : > { %v7656_v21 = vadd.s32 4294967294, %v1713_v10  ;;  %v9088_v30 = vsub.s32 %v1913_v58, %v1916_v17  ;;  %v1795_v31 = vsel %vm1783_vm1, %v1777_v47, %v1794_v46  ;;  %v1792_v53 = vsel %vm1782_vm2, %v1789_v18, %v1791_v22  ;;  %v9120_v22 = vpop.f32.mrb[5].mxu0 }
 0x178   : > { %v1796_v49 = vsel %vm1782_vm2, %v1793_v25, %v1795_v31  ;;  %v1797_v55 = vshll.u32 %v1757_v13, 8  ;;  %v1967_v57 = vadd.s32 1, %v7666_v19  ;;  %v1785_v58 = vsel %vm1781_vm0, %v1765_v32, %v1768_v60  ;;  %v9117_v19 = vpop.permute.xlu0 %382 }
 0x179   : > { %vm7657_vm3 = vcmp.lt.s32.totalorder %v7656_v21, 0  ;;  %v1919_v38 = vsub.s32 0, %v9088_v30  ;;  %v1787_v59 = vsel %vm1783_vm1, %v1771_v35, %v1786_v43  ;;  %v12561_v0 = vand.u32 2147483647, %v8979_v33 }
 0x17a   : > { %v1716_v42 = vsel %vm7657_vm3, 0, %v7656_v21  ;;  %v9099_v56 = vmul.u32.u64.low %v1797_v55, %v1796_v49  ;;  %v9100_v62 = vmul.u32.u64.high %v1797_v55, %v1796_v49, %v9099_v56  ;;  %vm1968_vm4 = vcmp.gt.s32.totalorder %v1967_v57, 0 }
 0x17b   : > { %v7663_v40 = vmin.u32 %v1919_v38, %v9088_v30  ;;  %v9102_v27 = vmul.u32.u64.low %v1797_v55, %v1792_v53  ;;  %v9103_v63 = vmul.u32.u64.high %v1797_v55, %v1792_v53, %v9102_v27  ;;  %v1717_v39 = vsub.s32 32, %v1716_v42 }
 0x17c   : > { %v1721_v3 = vsub.s32 4294967266, %v1716_v42  ;;  %v1788_v5 = vsel %vm1782_vm2, %v1785_v58, %v1787_v59  ;;  %v1969_v60 = vsel %vm1968_vm4, %v1967_v57, 0  ;;  %v1701_v47 = vadd.s32 %v9020_v37, %v9017_v34 }
 0x17d   : > { %v1921_v1 = vclz %v7663_v40  ;;  %vm1806_vm5 = vc.u32 %v9100_v62, %v9102_v27  ;;  %v1731_v9 = vsub.s32 4, %v9052_v26  ;;  %v1807_v10 = vadd.s32 1, %v9103_v63 }
 0x17e   : > { %v1964_v13 = vand.u32 8388607, %v12561_v0  ;;  %v1971_v15 = vand.u32 31, %v1969_v60  ;;  %v1719_v17 = vshrl.u32 %v1701_v47, %v1717_v39  ;;  %v1939_v45 = vsub.s32 4, %v9080_v6 }
 0x17f   : > { %v7664_v35 = vadd.s32 4294967294, %v1921_v1  ;;  %v1804_v18 = vmul.u32 %v1797_v55, %v1788_v5  ;;  %v1722_v21 = vadd.s32 127, %v1721_v3  ;;  %v1808_v34 = vsel %vm1806_vm5, %v1807_v10, %v9103_v63 }
 0x180   : > { %v1972_v37 = vsub.s32 32, %v1971_v15  ;;  %vm1647_vm7 = vcmp.lt.s32.totalorder %v8956_v7, 0  ;;  %vm1855_vm8 = vcmp.lt.s32.totalorder %v8958_v8, 0  ;;  %v9126_v46 = vadd.f32 %v8966_v16, %v9117_v19 }
 0x181   : > { %vm7665_vm6 = vcmp.lt.s32.totalorder %v7664_v35, 0  ;;  %v1809_v25 = vadd.s32 %v1808_v34, %v1804_v18  ;;  %v1718_v31 = vshll.u32 %v9066_v36, %v1716_v42  ;;  %v9132_v32 = vsel %vm1647_vm7, %v1731_v9, %v9052_v26 }
 0x182   : > { %12677 = vst [vmem:[#allocation11_spill] sm:$0xff] %v9126_v46  ;;  %v1909_v43 = vadd.s32 %v9044_v20, %v9050_v23  ;;  %v1965_v49 = vor.u32 8388608, %v1964_v13  ;;  %v9136_v38 = vsel %vm7665_vm6, 0, %v7664_v35  ;;  %v9141_v53 = vsel %vm1855_vm8, %v1939_v45, %v9080_v6 }
 0x183   : > { %v1810_v16 = vadd.s32 536870912, %v1809_v25  ;;  %v1975_v55 = vshrl.u32 %v12555_v48, %v1972_v37  ;;  %v1720_v36 = vor.u32 %v1719_v17, %v1718_v31  ;;  %v1723_v57 = vshll.u32 %v1722_v21, 23 }
 0x184   : > { %v9144_v42 = vshrl.u32 %v1969_v60, 5  ;;  %v1978_v26 = vshrl.u32 %v12559_v50, %v1972_v37  ;;  %v1974_v20 = vshll.u32 %v12557_v44, %v1971_v15  ;;  %v1977_v23 = vshll.u32 %v12555_v48, %v1971_v15 }
 0x185   : > { %v9147_v58 = vshrl.u32 %v1810_v16, 30  ;;  %v1981_v40 = vshrl.u32 %v12563_v52, %v1972_v37  ;;  %v1929_v6 = vsub.s32 4294967266, %v9136_v38  ;;  %v1983_v59 = vshll.u32 %v12563_v52, %v1971_v15 }
 0x186   : > { %v1984_v56 = vshrl.u32 %v12569_v54, %v1972_v37  ;;  %v9155_v63 = vshll.u32 %v1965_v49, 8  ;;  %v1976_v1 = vor.u32 %v1975_v55, %v1974_v20  ;;  %v1979_v3 = vor.u32 %v1978_v26, %v1977_v23 }
 0x187   : > { %v1812_v39 = vshll.u32 %v9147_v58, 30  ;;  %v1980_v5 = vshll.u32 %v12559_v50, %v1971_v15  ;;  %v1724_v60 = vor.u32 4788187, %v1723_v57  ;;  %v1727_v47 = vcvt.s32.f32 %v1720_v36 }
 0x188   : > { %v1985_v35 = vor.u32 %v1984_v56, %v1983_v59  ;;  %v2064_v9 = vand.u32 2139095040, %v9126_v46  ;;  %vm9162_vm9 = vcmp.le.f32.partialorder %v1645_v12, 0.7853982  ;;  %vm1989_vm10 = vcmp.lt.s32.totalorder %v9144_v42, 1 }
 0x189   : > { %v9166_v13 = vsub.s32 %v1809_v25, %v1812_v39  ;;  %v1982_v17 = vor.u32 %v1981_v40, %v1980_v5  ;;  %vm1990_vm11 = vcmp.lt.s32.totalorder %v9144_v42, 2  ;;  %vm9172_vm12 = vcmp.le.f32.partialorder %v1853_v14, 0.7853982 }
 0x18a   : > { %v1925_v18 = vsub.s32 32, %v9136_v38  ;;  %v1930_v21 = vadd.s32 127, %v1929_v6  ;;  %v1986_v12 = vshll.u32 %v12569_v54, %v1971_v15  ;;  %v1987_v34 = vshrl.u32 %v12567_v61, %v1972_v37 }
 0x18b   : > { %v1815_v25 = vsub.s32 0, %v9166_v13  ;;  %vm1991_vm13 = vcmp.lt.s32.totalorder %v9144_v42, 3  ;;  %vm1992_vm14 = vcmp.lt.s32.totalorder %v9144_v42, 4  ;;  %v1997_v31 = vsel %vm1989_vm10, %v1976_v1, %v1979_v3 }
 0x18c   : > { %v1725_v14 = vand.u32 2147483647, %v1724_v60  ;;  %v1973_v49 = vshrl.u32 %v12557_v44, %v1972_v37  ;;  %v1988_v16 = vor.u32 %v1987_v34, %v1986_v12  ;;  %v1998_v55 = vsel %vm1992_vm14, %v1985_v35, 920167782 }
 0x18d   : > { %v7659_v36 = vmin.u32 %v1815_v25, %v9166_v13  ;;  %v1994_v57 = vsel %vm1992_vm14, %v1982_v17, 2102212464  ;;  %v1999_v15 = vsel %vm1991_vm13, %v1982_v17, %v1998_v55  ;;  %v2001_v26 = vsel %vm1989_vm10, %v1979_v3, %v1982_v17 }
 0x18e   : > { %v1927_v20 = vshrl.u32 %v1909_v43, %v1925_v18  ;;  %v1931_v23 = vshll.u32 %v1930_v21, 23  ;;  %v2000_v40 = vsel %vm1990_vm11, %v1997_v31, %v1999_v15  ;;  %v2002_v6 = vsel %vm1992_vm14, %v1988_v16, 1326507024 }
 0x18f   : > { %v1817_v59 = vclz %v7659_v36  ;;  %v1993_v37 = vsel %vm1989_vm10, %v1973_v49, %v1976_v1  ;;  %v2003_v56 = vsel %vm1991_vm13, %v1985_v35, %v2002_v6  ;;  %v2065_v39 = vshrl.u32 %v2064_v9, 23 }
 0x190   : > { %v1995_v5 = vsel %vm1991_vm13, %v1979_v3, %v1994_v57  ;;  %v2004_v60 = vsel %vm1990_vm11, %v2001_v26, %v2003_v56  ;;  %v9201_v43 = vmul.u32.u64.low %v9155_v63, %v2000_v40  ;;  %v9202_v17 = vmul.u32.u64.high %v9155_v63, %v2000_v40, %v9201_v43 }
 0x191   : > { %v1728_v18 = vmul.f32 %v1727_v47, %v1725_v14  ;;  %v7660_v21 = vadd.s32 4294967294, %v1817_v59  ;;  %v9206_v12 = vmul.u32.u64.low %v9155_v63, %v2004_v60  ;;  %v9207_v1 = vmul.u32.u64.high %v9155_v63, %v2004_v60, %v9206_v12 }
 0x192   : > { %v1734_v35 = vsel %vm9162_vm9, 0, %v9132_v32  ;;  %v1926_v3 = vshll.u32 %v9088_v30, %v9136_v38  ;;  %v1932_v9 = vor.u32 4788187, %v1931_v23  ;;  %v7670_v34 = vadd.s32 4294967169, %v2065_v39  ;;  %v9227_v23 = vpop.f32.mrb[5].mxu1 }
 0x193   : > { %v1942_v25 = vsel %vm9172_vm12, 0, %v9141_v53  ;;  %vm7661_vm15 = vcmp.lt.s32.totalorder %v7660_v21, 0  ;;  %v1996_v47 = vsel %vm1990_vm11, %v1993_v37, %v1995_v5  ;;  %v2061_v31 = vand.u32 2147483647, %v9126_v46 }
 0x194   : > { %v1928_v14 = vor.u32 %v1927_v20, %v1926_v3  ;;  %v1820_v49 = vsel %vm7661_vm15, 0, %v7660_v21  ;;  %v2015_v16 = vadd.s32 1, %v9202_v17  ;;  %v2071_v32 = vadd.s32 1, %v7670_v34 }
 0x195   : > { %v1729_v55 = vxor.u32 2147483648, %v1728_v18  ;;  %v1805_v30 = vadd.s32 %v9102_v27, %v9100_v62  ;;  %v1821_v38 = vsub.s32 32, %v1820_v49  ;;  %v1825_v36 = vsub.s32 4294967266, %v1820_v49 }
 0x196   : > { %v1933_v57 = vand.u32 2147483647, %v1932_v9  ;;  %v2012_v53 = vmul.u32 %v9155_v63, %v1996_v47  ;;  %vm2014_vm0 = vc.u32 %v9207_v1, %v9201_v43  ;;  %vm2072_vm1 = vcmp.gt.s32.totalorder %v2071_v32, 0 }
 0x197   : > { %v1823_v42 = vshrl.u32 %v1805_v30, %v1821_v38  ;;  %v1826_v15 = vadd.s32 127, %v1825_v36  ;;  %v2016_v26 = vsel %vm2014_vm0, %v2015_v16, %v9202_v17  ;;  %v2073_v20 = vsel %vm2072_vm1, %v2071_v32, 0 }
 0x198   : > { %v9229_v40 = vadd.s32 3, %v1734_v35  ;;  %v1935_v6 = vcvt.s32.f32 %v1928_v14  ;;  %v2017_v62 = vadd.s32 %v2016_v26, %v2012_v53  ;;  %v2075_v27 = vand.u32 31, %v2073_v20 }
 0x199   : > { %v1730_v59 = vsel %vm1647_vm7, %v1729_v55, %v1728_v18  ;;  %v9233_v63 = vadd.s32 3, %v1942_v25  ;;  %v1822_v37 = vshll.u32 %v9166_v13, %v1820_v49  ;;  %v1827_v56 = vshll.u32 %v1826_v15, 23 }
 0x19a   : > { %v1936_v39 = vmul.f32 %v1935_v6, %v1933_v57  ;;  %v2018_v5 = vadd.s32 536870912, %v2017_v62  ;;  %v2068_v60 = vand.u32 8388607, %v2061_v31  ;;  %v2076_v17 = vsub.s32 32, %v2075_v27 }
 0x19b   : > { %v1824_v21 = vor.u32 %v1823_v42, %v1822_v37  ;;  %v9238_v12 = vshrl.u32 %v2073_v20, 5  ;;  %v2078_v35 = vshll.u32 %v12557_v44, %v2075_v27  ;;  %v9243_v3 = vadd.f32 %v8973_v24, %v9117_v19 }
 0x19c   : > { %v9245_v18 = vshrl.u32 %v2018_v5, 30  ;;  %v2079_v13 = vshrl.u32 %v12555_v48, %v2076_v17  ;;  %v2081_v9 = vshll.u32 %v12555_v48, %v2075_v27  ;;  %v2082_v34 = vshrl.u32 %v12559_v50, %v2076_v17 }
 0x19d   : > { %12682 = vst [vmem:[#allocation12_spill] sm:$0xff] %v9243_v3  ;;  %v1828_v25 = vor.u32 4788187, %v1827_v56  ;;  %v2085_v47 = vshrl.u32 %v12563_v52, %v2076_v17  ;;  %v2087_v14 = vshll.u32 %v12563_v52, %v2075_v27  ;;  %v2088_v49 = vshrl.u32 %v12569_v54, %v2076_v17 }
 0x19e   : > { %v2020_v16 = vshll.u32 %v9245_v18, 30  ;;  %v2080_v32 = vor.u32 %v2079_v13, %v2078_v35  ;;  %v2083_v24 = vor.u32 %v2082_v34, %v2081_v9  ;;  %v2084_v55 = vshll.u32 %v12559_v50, %v2075_v27 }
 0x19f   : > { %v1733_v30 = vsel %vm9162_vm9, %v8956_v7, %v1730_v59  ;;  %v2089_v38 = vor.u32 %v2088_v49, %v2087_v14  ;;  %v2090_v36 = vshll.u32 %v12569_v54, %v2075_v27  ;;  %v2091_v57 = vshrl.u32 %v12567_v61, %v2076_v17 }
 0x1a0   : > { %v1937_v53 = vxor.u32 2147483648, %v1936_v39  ;;  %v9260_v42 = vsub.s32 %v2017_v62, %v2020_v16  ;;  %v2069_v15 = vor.u32 8388608, %v2068_v60  ;;  %v2086_v26 = vor.u32 %v2085_v47, %v2084_v55 }
 0x1a1   : > { %v1829_v20 = vand.u32 2147483647, %v1828_v25  ;;  %v2092_v6 = vor.u32 %v2091_v57, %v2090_v36  ;;  %vm2093_vm2 = vcmp.lt.s32.totalorder %v9238_v12, 1  ;;  %v2272_v37 = vand.u32 2139095040, %v9243_v3 }
 0x1a2   : > { %v1831_v56 = vcvt.s32.f32 %v1824_v21  ;;  %v2023_v10 = vsub.s32 0, %v9260_v42  ;;  %vm2096_vm3 = vcmp.lt.s32.totalorder %v9238_v12, 4  ;;  %v2101_v27 = vsel %vm2093_vm2, %v2080_v32, %v2083_v24 }
 0x1a3   : > { %v2077_v59 = vshrl.u32 %v12557_v44, %v2076_v17  ;;  %vm2094_vm4 = vcmp.lt.s32.totalorder %v9238_v12, 2  ;;  %vm2095_vm5 = vcmp.lt.s32.totalorder %v9238_v12, 3  ;;  %v2102_v62 = vsel %vm2096_vm3, %v2089_v38, 920167782 }
 0x1a4   : > { %v7667_v5 = vmin.u32 %v2023_v10, %v9260_v42  ;;  %v2098_v60 = vsel %vm2096_vm3, %v2086_v26, 2102212464  ;;  %v2103_v35 = vsel %vm2095_vm5, %v2086_v26, %v2102_v62  ;;  %v2105_v21 = vsel %vm2093_vm2, %v2083_v24, %v2086_v26 }
 0x1a5   : > { %v1832_v13 = vmul.f32 %v1831_v56, %v1829_v20  ;;  %v2104_v9 = vsel %vm2094_vm4, %v2101_v27, %v2103_v35  ;;  %v2106_v34 = vsel %vm2096_vm3, %v2092_v6, 1326507024  ;;  %v2109_v25 = vshll.u32 %v2069_v15, 8 }
 0x1a6   : > { %vm1751_vm6 = vcmp.lt.s32.totalorder %v8960_v11, 0  ;;  %v2025_v17 = vclz %v7667_v5  ;;  %v2097_v47 = vsel %vm2093_vm2, %v2077_v59, %v2080_v32  ;;  %v2107_v14 = vsel %vm2095_vm5, %v2089_v38, %v2106_v34 }
 0x1a7   : > { %v2273_v49 = vshrl.u32 %v2272_v37, 23  ;;  %v2099_v16 = vsel %vm2095_vm5, %v2083_v24, %v2098_v60  ;;  %v2108_v55 = vsel %vm2094_vm4, %v2105_v21, %v2107_v14  ;;  %vm1959_vm7 = vcmp.lt.s32.totalorder %v8979_v33, 0  ;;  %v9325_v21 = vpop.permute.xlu1 %387  ;;  %v9342_v14 = vpop.f32.mrb[6].mxu0 }
 0x1a8   : > { %v9281_v36 = vmul.u32.u64.low %v2109_v25, %v2104_v9  ;;  %v9282_v57 = vmul.u32.u64.high %v2109_v25, %v2104_v9, %v9281_v36  ;;  %v7668_v26 = vadd.s32 4294967294, %v2025_v17  ;;  %v9290_v56 = vand.u32 3, %v9229_v40 }
 0x1a9   : > { %v9286_v15 = vmul.u32.u64.low %v2109_v25, %v2108_v55  ;;  %v9287_v20 = vmul.u32.u64.high %v2109_v25, %v2108_v55, %v9286_v15  ;;  %v7678_v6 = vadd.s32 4294967169, %v2273_v49  ;;  %v1938_v32 = vsel %vm1855_vm8, %v1937_v53, %v1936_v39 }
 0x1aa   : > { %12683 = vst [vmem:[#allocation13_spill] sm:$0xff] %v9290_v56  ;;  %v9295_v24 = vand.u32 3, %v9233_v63  ;;  %v12553_v38 = vand.u32 2147483647, %v9243_v3  ;;  %vm7669_vm9 = vcmp.lt.s32.totalorder %v7668_v26, 0  ;;  %v2100_v37 = vsel %vm2094_vm4, %v2097_v47, %v2099_v16 }
 0x1ab   : > { %v2279_v10 = vadd.s32 1, %v7678_v6  ;;  %v9302_v27 = vadd.f32 %v8975_v28, %v9117_v19  ;;  %8384 = vcosq.f32 %v1733_v30  ;;  %v1835_v40 = vsub.s32 4, %v9147_v58 }
 0x1ac   : > { %12684 = vst [vmem:[#allocation14_spill] sm:$0xff] %v9295_v24  ;;  %v9305_v59 = vsel %vm7669_vm9, 0, %v7668_v26  ;;  %v2119_v39 = vadd.s32 1, %v9282_v57  ;;  %8386 = vsinq.f32 %v1733_v30  ;;  %v1941_v63 = vsel %vm9172_vm12, %v8958_v8, %v1938_v32 }
 0x1ad   : > { %v1833_v53 = vxor.u32 2147483648, %v1832_v13  ;;  %v2043_v12 = vsub.s32 4, %v9245_v18  ;;  %v2116_v62 = vmul.u32 %v2109_v25, %v2100_v37  ;;  %vm2118_vm8 = vc.u32 %v9287_v20, %v9281_v36 }
 0x1ae   : > { %v2276_v28 = vand.u32 8388607, %v12553_v38  ;;  %vm2280_vm10 = vcmp.gt.s32.totalorder %v2279_v10, 0  ;;  %vm9318_vm11 = vcmp.le.f32.partialorder %v1749_v41, 0.7853982  ;;  %v2033_v45 = vsub.s32 4294967266, %v9305_v59 }
 0x1af   : > { %v2120_v30 = vsel %vm2118_vm8, %v2119_v39, %v9282_v57  ;;  %v2281_v60 = vsel %vm2280_vm10, %v2279_v10, 0  ;;  %v2168_v35 = vand.u32 2139095040, %v9302_v27  ;;  %8388 = vcosq.f32 %v1941_v63 }
 0x1b0   : > { %v9330_v9 = vsel %vm1751_vm6, %v1835_v40, %v9147_v58  ;;  %v2121_v34 = vadd.s32 %v2120_v30, %v2116_v62  ;;  %v2283_v41 = vand.u32 31, %v2281_v60  ;;  %8390 = vsinq.f32 %v1941_v63 }
 0x1b1   : > { %v2013_v25 = vadd.s32 %v9201_v43, %v9207_v1  ;;  %v9336_v17 = vadd.f32 %v8977_v29, %v9117_v19  ;;  %v9340_v47 = vadd.f32 %v9003_v4, %v9325_v21  ;;  %v2029_v49 = vsub.s32 32, %v9305_v59 }
 0x1b2   : > { %v9348_v58 = vsel %vm1959_vm7, %v2043_v12, %v9245_v18  ;;  %v2122_v16 = vadd.s32 536870912, %v2121_v34  ;;  %v2284_v55 = vsub.s32 32, %v2283_v41  ;;  %v1834_v43 = vsel %vm1751_vm6, %v1833_v53, %v1832_v13 }
 0x1b3   : > { %12687 = vst [vmem:[#allocation15_spill] sm:$0xff] %v9336_v17  ;;  %12688 = vst [vmem:[#allocation16_spill] sm:$0xff] %v9340_v47  ;;  %v2034_v29 = vadd.s32 127, %v2033_v45  ;;  %v2277_v19 = vor.u32 8388608, %v2276_v28  ;;  %v2169_v1 = vshrl.u32 %v2168_v35, 23  ;;  %v2286_v4 = vshll.u32 %v12557_v44, %v2283_v41 }
 0x1b4   : > { %v9352_v57 = vshrl.u32 %v2122_v16, 30  ;;  %v2287_v26 = vshrl.u32 %v12555_v48, %v2284_v55  ;;  %v2290_v15 = vshrl.u32 %v12559_v50, %v2284_v55  ;;  %v2289_v6 = vshll.u32 %v12555_v48, %v2283_v41 }
 0x1b5   : > { %v2293_v18 = vshrl.u32 %v12563_v52, %v2284_v55  ;;  %v2295_v32 = vshll.u32 %v12563_v52, %v2283_v41  ;;  %v2296_v37 = vshrl.u32 %v12569_v54, %v2284_v55  ;;  %v9361_v13 = vpop.eup %8384  ;;  %v2031_v10 = vshrl.u32 %v2013_v25, %v2029_v49 }
 0x1b6   : > { %12689 = vst [vmem:[#allocation17_spill] sm:$0xff] %v9361_v13  ;;  %v2124_v40 = vshll.u32 %v9352_v57, 30  ;;  %v2282_v39 = vshrl.u32 %v2281_v60, 5  ;;  %v2292_v63 = vshll.u32 %v12559_v50, %v2283_v41  ;;  %v9365_v53 = vpop.eup %8386  ;;  %v2288_v12 = vor.u32 %v2287_v26, %v2286_v4 }
 0x1b7   : > { %12690 = vst [vmem:[#allocation18_spill] sm:$0xff] %v9365_v53  ;;  %v2291_v62 = vor.u32 %v2290_v15, %v2289_v6  ;;  %v2297_v28 = vor.u32 %v2296_v37, %v2295_v32  ;;  %v2299_v45 = vshrl.u32 %v12567_v61, %v2284_v55  ;;  %v9371_v30 = vsel %vm9318_vm11, %v8960_v11, %v1834_v43 }
 0x1b8   : > { %v9373_v35 = vsub.s32 %v2121_v34, %v2124_v40  ;;  %v2294_v25 = vor.u32 %v2293_v18, %v2292_v63  ;;  %v2298_v49 = vshll.u32 %v12569_v54, %v2283_v41  ;;  %v2030_v60 = vshll.u32 %v9260_v42, %v9305_v59 }
 0x1b9   : > { %v2035_v16 = vshll.u32 %v2034_v29, 23  ;;  %v2317_v2 = vshll.u32 %v2277_v19, 8  ;;  %v12554_v4 = vand.u32 2147483647, %v9302_v27  ;;  %v9379_v26 = vpop.eup %8388  ;;  %vm2301_vm12 = vcmp.lt.s32.totalorder %v2282_v39, 1 }
 0x1ba   : > { %12691 = vst [vmem:[#allocation19_spill] sm:$0xff] %v9379_v26  ;;  %v2127_v15 = vsub.s32 0, %v9373_v35  ;;  %v2300_v6 = vor.u32 %v2299_v45, %v2298_v49  ;;  %vm2304_vm13 = vcmp.lt.s32.totalorder %v2282_v39, 4  ;;  %v9382_v43 = vpop.eup %8390  ;;  %v2032_v34 = vor.u32 %v2031_v10, %v2030_v60 }
 0x1bb   : > { %12692 = vst [vmem:[#allocation20_spill] sm:$0xff] %v9382_v43  ;;  %vm2063_vm14 = vcmp.lt.s32.totalorder %v9126_v46, 0  ;;  %v2309_v41 = vsel %vm2301_vm12, %v2288_v12, %v2291_v62  ;;  %v2310_v42 = vsel %vm2304_vm13, %v2297_v28, 920167782  ;;  %v7674_v59 = vadd.s32 4294967169, %v2169_v1 }
 0x1bc   : > { %v7671_v29 = vmin.u32 %v2127_v15, %v9373_v35  ;;  %v2285_v19 = vshrl.u32 %v12557_v44, %v2284_v55  ;;  %vm2303_vm15 = vcmp.lt.s32.totalorder %v2282_v39, 3  ;;  %v2306_v18 = vsel %vm2304_vm13, %v2294_v25, 2102212464 }
 0x1bd   : > { %v2036_v32 = vor.u32 4788187, %v2035_v16  ;;  %vm2302_vm0 = vcmp.lt.s32.totalorder %v2282_v39, 2  ;;  %v2311_v37 = vsel %vm2303_vm15, %v2294_v25, %v2310_v42  ;;  %v2313_v40 = vsel %vm2301_vm12, %v2291_v62, %v2294_v25 }
 0x1be   : > { %vm9393_vm1 = vcmp.le.f32.partialorder %v2061_v31, 0.7853982  ;;  %v2129_v63 = vclz %v7671_v29  ;;  %v2305_v1 = vsel %vm2301_vm12, %v2285_v19, %v2288_v12  ;;  %v2312_v45 = vsel %vm2302_vm0, %v2309_v41, %v2311_v37 }
 0x1bf   : > { %v2314_v55 = vsel %vm2304_vm13, %v2300_v6, 1326507024  ;;  %v2307_v49 = vsel %vm2303_vm15, %v2291_v62, %v2306_v18  ;;  %v9400_v16 = vmul.u32.u64.low %v2317_v2, %v2312_v45  ;;  %v9401_v15 = vmul.u32.u64.high %v2317_v2, %v2312_v45, %v9400_v16  ;;  %v9412_v62 = vpop.f32.mrb[6].mxu1 }
 0x1c0   : > { %v2315_v60 = vsel %vm2303_vm15, %v2297_v28, %v2314_v55  ;;  %v7672_v25 = vadd.s32 4294967294, %v2129_v63  ;;  %v2147_v42 = vsub.s32 4, %v9352_v57  ;;  %v2175_v38 = vadd.s32 1, %v7674_v59 }
 0x1c1   : > { %v2316_v31 = vsel %vm2302_vm0, %v2313_v40, %v2315_v60  ;;  %8392 = vcosq.f32 %v9371_v30  ;;  %v2172_v6 = vand.u32 8388607, %v12554_v4  ;;  %v2037_v28 = vand.u32 2147483647, %v2036_v32 }
 0x1c2   : > { %v9407_v29 = vmul.u32.u64.low %v2317_v2, %v2316_v31  ;;  %v9408_v12 = vmul.u32.u64.high %v2317_v2, %v2316_v31, %v9407_v29  ;;  %vm7673_vm2 = vcmp.lt.s32.totalorder %v7672_v25, 0  ;;  %v2308_v41 = vsel %vm2302_vm0, %v2305_v1, %v2307_v49 }
 0x1c3   : > { %vm2176_vm3 = vcmp.gt.s32.totalorder %v2175_v38, 0  ;;  %v2132_v19 = vsel %vm7673_vm2, 0, %v7672_v25  ;;  %v2327_v18 = vadd.s32 1, %v9401_v15  ;;  %v2039_v40 = vcvt.s32.f32 %v2032_v34 }
 0x1c4   : > { %v2177_v37 = vsel %vm2176_vm3, %v2175_v38, 0  ;;  %v2137_v63 = vsub.s32 4294967266, %v2132_v19  ;;  %v2148_v45 = vsel %vm2063_vm14, %v2147_v42, %v9352_v57  ;;  %v2376_v55 = vand.u32 2139095040, %v9336_v17 }
 0x1c5   : > { %v2117_v32 = vadd.s32 %v9281_v36, %v9287_v20  ;;  %v2324_v39 = vmul.u32 %v2317_v2, %v2308_v41  ;;  %vm2326_vm4 = vc.u32 %v9408_v12, %v9400_v16  ;;  %v2179_v1 = vand.u32 31, %v2177_v37 }
 0x1c6   : > { %v2040_v49 = vmul.f32 %v2039_v40, %v2037_v28  ;;  %v2138_v38 = vadd.s32 127, %v2137_v63  ;;  %v2328_v60 = vsel %vm2326_vm4, %v2327_v18, %v9401_v15  ;;  %v2173_v34 = vor.u32 8388608, %v2172_v6 }
 0x1c7   : > { %v2133_v25 = vsub.s32 32, %v2132_v19  ;;  %v2150_v31 = vsel %vm9393_vm1, 0, %v2148_v45  ;;  %v2329_v57 = vadd.s32 %v2328_v60, %v2324_v39  ;;  %v2180_v42 = vsub.s32 32, %v2179_v1 }
 0x1c8   : > { %v2178_v29 = vshrl.u32 %v2177_v37, 5  ;;  %v2182_v4 = vshll.u32 %v12557_v44, %v2179_v1  ;;  %v2185_v2 = vshll.u32 %v12555_v48, %v2179_v1  ;;  %v2377_v36 = vshrl.u32 %v2376_v55, 23 }
 0x1c9   : > { %v2139_v20 = vshll.u32 %v2138_v38, 23  ;;  %v2330_v41 = vadd.s32 536870912, %v2329_v57  ;;  %v2183_v28 = vshrl.u32 %v12555_v48, %v2180_v42  ;;  %v2186_v40 = vshrl.u32 %v12559_v50, %v2180_v42 }
 0x1ca   : > { %v2188_v15 = vshll.u32 %v12559_v50, %v2179_v1  ;;  %v2189_v6 = vshrl.u32 %v12563_v52, %v2180_v42  ;;  %v2191_v18 = vshll.u32 %v12563_v52, %v2179_v1  ;;  %v2192_v63 = vshrl.u32 %v12569_v54, %v2180_v42 }
 0x1cb   : > { %v9436_v37 = vpop.eup %8392  ;;  %v2135_v45 = vshrl.u32 %v2117_v32, %v2133_v25  ;;  %v9438_v39 = vshrl.u32 %v2330_v41, 30  ;;  %v2184_v55 = vor.u32 %v2183_v28, %v2182_v4  ;;  %v2187_v38 = vor.u32 %v2186_v40, %v2185_v2 }
 0x1cc   : > { %v2190_v60 = vor.u32 %v2189_v6, %v2188_v15  ;;  %v2193_v59 = vor.u32 %v2192_v63, %v2191_v18  ;;  %v2194_v48 = vshll.u32 %v12569_v54, %v2179_v1  ;;  %v2195_v44 = vshrl.u32 %v12567_v61, %v2180_v42 }
 0x1cd   : > { %v2041_v50 = vxor.u32 2147483648, %v2040_v49  ;;  %v2154_v0 = vadd.s32 3, %v2150_v31  ;;  %v2332_v26 = vshll.u32 %v9438_v39, 30  ;;  %v2213_v52 = vshll.u32 %v2173_v34, 8 }
 0x1ce   : > { %v12695_v24 = vand.u32 2147483647, %v8979_v33  ;;  %v2134_v4 = vshll.u32 %v9373_v35, %v2132_v19  ;;  %v2140_v32 = vor.u32 4788187, %v2139_v20  ;;  %v2196_v25 = vor.u32 %v2195_v44, %v2194_v48 }
 0x1cf   : > { %vm2197_vm6 = vcmp.lt.s32.totalorder %v2178_v29, 1  ;;  %v9450_v2 = vsub.s32 %v2329_v57, %v2332_v26  ;;  %vm2200_vm9 = vcmp.lt.s32.totalorder %v2178_v29, 4  ;;  %v7682_v31 = vadd.s32 4294967169, %v2377_v36 }
 0x1d0   : > { %vm9445_vm5 = vcmp.le.f32.partialorder %v12695_v24, 0.7853982  ;;  %v2205_v1 = vsel %vm2197_vm6, %v2184_v55, %v2187_v38  ;;  %v2136_v41 = vor.u32 %v2135_v45, %v2134_v4  ;;  %vm2199_vm8 = vcmp.lt.s32.totalorder %v2178_v29, 3 }
 0x1d1   : > { %v2202_v34 = vsel %vm2200_vm9, %v2190_v60, 2102212464  ;;  %v2206_v28 = vsel %vm2200_vm9, %v2193_v59, 920167782  ;;  %vm2271_vm10 = vcmp.lt.s32.totalorder %v9243_v3, 0  ;;  %v2335_v24 = vsub.s32 0, %v9450_v2 }
 0x1d2   : > { %v12698_v40 = vmov 683565275   ;;  %vm2198_vm12 = vcmp.lt.s32.totalorder %v2178_v29, 2  ;;  %v2207_v35 = vsel %vm2199_vm8, %v2190_v60, %v2206_v28  ;;  %v2141_v44 = vand.u32 2147483647, %v2140_v32 }
 0x1d3   : > { %v2181_v15 = vshrl.u32 %v12698_v40, %v2180_v42  ;;  %v2208_v48 = vsel %vm2198_vm12, %v2205_v1, %v2207_v35  ;;  %v2209_v26 = vsel %vm2197_vm6, %v2187_v38, %v2190_v60  ;;  %v2210_v19 = vsel %vm2200_vm9, %v2196_v25, 1326507024 }
 0x1d4   : > { %v7679_v57 = vmin.u32 %v2335_v24, %v9450_v2  ;;  %v2203_v20 = vsel %vm2199_vm8, %v2187_v38, %v2202_v34  ;;  %v2211_v6 = vsel %vm2199_vm8, %v2193_v59, %v2210_v19  ;;  %v2042_v18 = vsel %vm1959_vm7, %v2041_v50, %v2040_v49 }
 0x1d5   : > { %v2201_v36 = vsel %vm2197_vm6, %v2181_v15, %v2184_v55  ;;  %v2212_v63 = vsel %vm2198_vm12, %v2209_v26, %v2211_v6  ;;  %v9463_v42 = vmul.u32.u64.low %v2213_v52, %v2208_v48  ;;  %v9464_v45 = vmul.u32.u64.high %v2213_v52, %v2208_v48, %v9463_v42  ;;  %v9489_v15 = vpop.f32.mrb[7].mxu0 }
 0x1d6   : > { %v2143_v4 = vcvt.s32.f32 %v2136_v41  ;;  %v2337_v32 = vclz %v7679_v57  ;;  %v9467_v1 = vmul.u32.u64.low %v2213_v52, %v2212_v63  ;;  %v9468_v60 = vmul.u32.u64.high %v2213_v52, %v2212_v63, %v9467_v1 }
 0x1d7   : > { %8394 = vsinq.f32 %v9371_v30  ;;  %v2355_v55 = vsub.s32 4, %v9438_v39  ;;  %v2204_v59 = vsel %vm2198_vm12, %v2201_v36, %v2203_v20  ;;  %v2383_v38 = vadd.s32 1, %v7682_v31 }
 0x1d8   : > { %v9476_v50 = vsel %vm9445_vm5, %v8979_v33, %v2042_v18  ;;  %v9478_v49 = vmul.f32 %v2143_v4, %v2141_v44  ;;  %v9480_v25 = vand.u32 3, %v2154_v0  ;;  %v7680_v41 = vadd.s32 4294967294, %v2337_v32 }
 0x1d9   : > { %v2325_v34 = vadd.s32 %v9400_v16, %v9408_v12  ;;  %v2223_v30 = vadd.s32 1, %v9464_v45  ;;  %v12700_v28 = vand.u32 2147483647, %v9336_v17  ;;  %vm2384_vm7 = vcmp.gt.s32.totalorder %v2383_v38, 0 }
 0x1da   : > { %12699 = vst [vmem:[#allocation21_spill] sm:$0xff] %v9480_v25  ;;  %vm7681_vm13 = vcmp.lt.s32.totalorder %v7680_v41, 0  ;;  %v2220_v31 = vmul.u32 %v2213_v52, %v2204_v59  ;;  %vm2222_vm15 = vc.u32 %v9468_v60, %v9463_v42  ;;  %v2385_v24 = vsel %vm2384_vm7, %v2383_v38, 0 }
 0x1db   : > { %v2380_v29 = vand.u32 8388607, %v12700_v28  ;;  %v2340_v0 = vsel %vm7681_vm13, 0, %v7680_v41  ;;  %v9494_v35 = vsel %vm2271_vm10, %v2355_v55, %v9438_v39  ;;  %v2224_v16 = vsel %vm2222_vm15, %v2223_v30, %v9464_v45 }
 0x1dc   : > { %v2387_v12 = vand.u32 31, %v2385_v24  ;;  %v2145_v44 = vxor.u32 2147483648, %v9478_v49  ;;  %v2341_v48 = vsub.s32 32, %v2340_v0  ;;  %v2345_v26 = vsub.s32 4294967266, %v2340_v0 }
 0x1dd   : > { %v2225_v52 = vadd.s32 %v2224_v16, %v2220_v31  ;;  %v2342_v19 = vshll.u32 %v9450_v2, %v2340_v0  ;;  %v2381_v57 = vor.u32 8388608, %v2380_v29  ;;  %v9499_v36 = vshrl.u32 %v2385_v24, 5 }
 0x1de   : > { %v2388_v20 = vsub.s32 32, %v2387_v12  ;;  %v2343_v6 = vshrl.u32 %v2325_v34, %v2341_v48  ;;  %v2346_v18 = vadd.s32 127, %v2345_v26  ;;  %v2390_v39 = vshll.u32 %v12698_v40, %v2387_v12 }
 0x1df   : > { %v2226_v63 = vadd.s32 536870912, %v2225_v52  ;;  %v12701_v4 = vmov 2475754826   ;;  %v12702_v1 = vmov 2131351028   ;;  %v2480_v61 = vand.u32 2139095040, %v9340_v47 }
 0x1e0   : > { %v2391_v32 = vshrl.u32 %v12701_v4, %v2388_v20  ;;  %v2393_v45 = vshll.u32 %v12701_v4, %v2387_v12  ;;  %v2394_v55 = vshrl.u32 %v12702_v1, %v2388_v20  ;;  %v12703_v59 = vmov 2102212464  }
 0x1e1   : > { %v2397_v38 = vshrl.u32 %v12703_v59, %v2388_v20  ;;  %v2347_v41 = vshll.u32 %v2346_v18, 23  ;;  %v9506_v30 = vshrl.u32 %v2226_v63, 30  ;;  %v2396_v2 = vshll.u32 %v12702_v1, %v2387_v12  ;;  %v9510_v34 = vpop.eup %8394 }
 0x1e2   : > { %v2400_v28 = vshrl.u32 %v12569_v54, %v2388_v20  ;;  %v2344_v29 = vor.u32 %v2343_v6, %v2342_v19  ;;  %v2392_v31 = vor.u32 %v2391_v32, %v2390_v39  ;;  %v2395_v24 = vor.u32 %v2394_v55, %v2393_v45 }
 0x1e3   : > { %v2399_v0 = vshll.u32 %v12703_v59, %v2387_v12  ;;  %v12704_v16 = vand.u32 2147483647, %v9243_v3  ;;  %v2348_v26 = vor.u32 4788187, %v2347_v41  ;;  %v2228_v18 = vshll.u32 %v9506_v30, 30 }
 0x1e4   : > { %v2398_v63 = vor.u32 %v2397_v38, %v2396_v2  ;;  %v12707_v8 = vmov 920167782   ;;  %v12708_v19 = vmov 1326507024   ;;  %v2421_v39 = vshll.u32 %v2381_v57, 8 }
 0x1e5   : > { %vm9515_vm0 = vcmp.le.f32.partialorder %v12704_v16, 0.7853982  ;;  %v2401_v54 = vor.u32 %v2400_v28, %v2399_v0  ;;  %v2402_v25 = vshll.u32 %v12707_v8, %v2387_v12  ;;  %v2403_v6 = vshrl.u32 %v12708_v19, %v2388_v20 }
 0x1e6   : > { %v2349_v32 = vand.u32 2147483647, %v2348_v26  ;;  %v9523_v45 = vsub.s32 %v2225_v52, %v2228_v18  ;;  %v2389_v55 = vshrl.u32 %v12698_v40, %v2388_v20  ;;  %vm2405_vm2 = vcmp.lt.s32.totalorder %v9499_v36, 1 }
 0x1e7   : > { %v2351_v16 = vcvt.s32.f32 %v2344_v29  ;;  %v2404_v41 = vor.u32 %v2403_v6, %v2402_v25  ;;  %vm2408_vm3 = vcmp.lt.s32.totalorder %v9499_v36, 4  ;;  %v2413_v38 = vsel %vm2405_vm2, %v2392_v31, %v2395_v24 }
 0x1e8   : > { %v2231_v2 = vsub.s32 0, %v9523_v45  ;;  %vm2407_vm4 = vcmp.lt.s32.totalorder %v9499_v36, 3  ;;  %v2410_v12 = vsel %vm2408_vm3, %v2398_v63, 2102212464  ;;  %v2414_v28 = vsel %vm2408_vm3, %v2401_v54, 920167782 }
 0x1e9   : > { %vm2406_vm6 = vcmp.lt.s32.totalorder %v9499_v36, 2  ;;  %v2415_v57 = vsel %vm2407_vm4, %v2398_v63, %v2414_v28  ;;  %v2417_v52 = vsel %vm2405_vm2, %v2395_v24, %v2398_v63  ;;  %v2418_v0 = vsel %vm2408_vm3, %v2404_v41, 1326507024 }
 0x1ea   : > { %v2352_v26 = vmul.f32 %v2351_v16, %v2349_v32  ;;  %v7675_v20 = vmin.u32 %v2231_v2, %v9523_v45  ;;  %v2409_v18 = vsel %vm2405_vm2, %v2389_v55, %v2392_v31  ;;  %v2416_v25 = vsel %vm2406_vm6, %v2413_v38, %v2415_v57 }
 0x1eb   : > { %v2411_v29 = vsel %vm2407_vm4, %v2395_v24, %v2410_v12  ;;  %v2419_v6 = vsel %vm2407_vm4, %v2401_v54, %v2418_v0  ;;  %v9534_v13 = vmul.u32.u64.low %v2421_v39, %v2416_v25  ;;  %v9535_v53 = vmul.u32.u64.high %v2421_v39, %v2416_v25, %v9534_v13  ;;  %v9570_v12 = vpop.f32.mrb[7].mxu1 }
 0x1ec   : > { %v2233_v56 = vclz %v7675_v20  ;;  %v2420_v7 = vsel %vm2406_vm6, %v2417_v52, %v2419_v6  ;;  %v12579_v63 = vand.u32 2147483647, %v9340_v47  ;;  %v2481_v41 = vshrl.u32 %v2480_v61, 23 }
 0x1ed   : > { %v2146_v31 = vsel %vm2063_vm14, %v2145_v44, %v9478_v49  ;;  %v2358_v24 = vsel %vm9515_vm0, 0, %v9494_v35  ;;  %v9547_v54 = vmul.u32.u64.low %v2421_v39, %v2420_v7  ;;  %v9548_v32 = vmul.u32.u64.high %v2421_v39, %v2420_v7, %v9547_v54 }
 0x1ee   : > { %8396 = vcosq.f32 %v9476_v50  ;;  %v7676_v55 = vadd.s32 4294967294, %v2233_v56  ;;  %v2412_v16 = vsel %vm2406_vm6, %v2409_v18, %v2411_v29  ;;  %v7686_v38 = vadd.s32 4294967169, %v2481_v41 }
 0x1ef   : > { %8398 = vsinq.f32 %v9476_v50  ;;  %v2353_v61 = vxor.u32 2147483648, %v2352_v26  ;;  %v2431_v2 = vadd.s32 1, %v9535_v53  ;;  %v9557_v49 = vadd.f32 %v9064_v51, %v9325_v21 }
 0x1f0   : > { %v2149_v7 = vsel %vm9393_vm1, %v9126_v46, %v2146_v31  ;;  %v9562_v35 = vadd.s32 3, %v2358_v24  ;;  %vm7677_vm14 = vcmp.lt.s32.totalorder %v7676_v55, 0  ;;  %v2487_v56 = vadd.s32 1, %v7686_v38 }
 0x1f1   : > { %12709 = vst [vmem:[#allocation22_spill] sm:$0xff] %v9557_v49  ;;  %v2236_v44 = vsel %vm7677_vm14, 0, %v7676_v55  ;;  %v2428_v36 = vmul.u32 %v2421_v39, %v2412_v16  ;;  %vm2430_vm9 = vc.u32 %v9548_v32, %v9534_v13  ;;  %v9568_v50 = vand.u32 8388607, %v12579_v63 }
 0x1f2   : > { %v2221_v51 = vadd.s32 %v9463_v42, %v9468_v60  ;;  %v2237_v10 = vsub.s32 32, %v2236_v44  ;;  %v2241_v28 = vsub.s32 4294967266, %v2236_v44  ;;  %v2432_v57 = vsel %vm2430_vm9, %v2431_v2, %v9535_v53 }
 0x1f3   : > { %v2354_v52 = vsel %vm2271_vm10, %v2353_v61, %v2352_v26  ;;  %v2433_v39 = vadd.s32 %v2432_v57, %v2428_v36  ;;  %vm2488_vm1 = vcmp.gt.s32.totalorder %v2487_v56, 0  ;;  %v2688_v0 = vand.u32 2139095040, %v9557_v49 }
 0x1f4   : > { %8400 = vcosq.f32 %v2149_v7  ;;  %v2239_v20 = vshrl.u32 %v2221_v51, %v2237_v10  ;;  %v2242_v18 = vadd.s32 127, %v2241_v28  ;;  %v2489_v25 = vsel %vm2488_vm1, %v2487_v56, 0 }
 0x1f5   : > { %8402 = vsinq.f32 %v2149_v7  ;;  %v2434_v29 = vadd.s32 536870912, %v2433_v39  ;;  %v2491_v6 = vand.u32 31, %v2489_v25  ;;  %v9580_v42 = vadd.f32 %v9120_v22, %v9325_v21 }
 0x1f6   : > { %v9585_v53 = vsel %vm9515_vm0, %v9243_v3, %v2354_v52  ;;  %v2238_v60 = vshll.u32 %v9523_v45, %v2236_v44  ;;  %v2243_v26 = vshll.u32 %v2242_v18, 23  ;;  %v2485_v24 = vor.u32 8388608, %v9568_v50 }
 0x1f7   : > { %v9589_v31 = vshrl.u32 %v2434_v29, 30  ;;  %v2492_v54 = vsub.s32 32, %v2491_v6  ;;  %v2689_v55 = vshrl.u32 %v2688_v0, 23  ;;  %v2490_v38 = vshrl.u32 %v2489_v25, 5 }
 0x1f8   : > { %v9592_v16 = vpop.eup %8396  ;;  %v2240_v22 = vor.u32 %v2239_v20, %v2238_v60  ;;  %v2494_v61 = vshll.u32 %v12698_v40, %v2491_v6  ;;  %v2497_v48 = vshll.u32 %v12701_v4, %v2491_v6  ;;  %v2244_v45 = vor.u32 4788187, %v2243_v26 }
 0x1f9   : > { %v9596_v2 = vpop.eup %8398  ;;  %v2436_v7 = vshll.u32 %v9589_v31, 30  ;;  %v2495_v56 = vshrl.u32 %v12701_v4, %v2492_v54  ;;  %v2500_v44 = vshll.u32 %v12702_v1, %v2491_v6  ;;  %v2498_v36 = vshrl.u32 %v12702_v1, %v2492_v54 }
 0x1fa   : > { %v2501_v50 = vshrl.u32 %v12703_v59, %v2492_v54  ;;  %v2503_v51 = vshll.u32 %v12703_v59, %v2491_v6  ;;  %v2504_v10 = vshrl.u32 %v12707_v8, %v2492_v54  ;;  %8404 = vcosq.f32 %v9585_v53 }
 0x1fb   : > { %v9606_v28 = vsub.s32 %v2433_v39, %v2436_v7  ;;  %v2496_v57 = vor.u32 %v2495_v56, %v2494_v61  ;;  %v12584_v52 = vand.u32 2147483647, %v9557_v49  ;;  %v2499_v0 = vor.u32 %v2498_v36, %v2497_v48 }
 0x1fc   : > { %v2502_v20 = vor.u32 %v2501_v50, %v2500_v44  ;;  %v2505_v18 = vor.u32 %v2504_v10, %v2503_v51  ;;  %v7694_v25 = vadd.s32 4294967169, %v2689_v55  ;;  %v2247_v29 = vcvt.s32.f32 %v2240_v22 }
 0x1fd   : > { %v2439_v60 = vsub.s32 0, %v9606_v28  ;;  %v2506_v26 = vshll.u32 %v12707_v8, %v2491_v6  ;;  %v2507_v41 = vshrl.u32 %v12708_v19, %v2492_v54  ;;  %v2245_v3 = vand.u32 2147483647, %v2244_v45 }
 0x1fe   : > { %v9612_v63 = vpop.eup %8400  ;;  %v2493_v39 = vshrl.u32 %v12698_v40, %v2492_v54  ;;  %vm2509_vm8 = vcmp.lt.s32.totalorder %v2490_v38, 1  ;;  %vm2512_vm10 = vcmp.lt.s32.totalorder %v2490_v38, 4  ;;  %vm2510_vm12 = vcmp.lt.s32.totalorder %v2490_v38, 2 }
 0x1ff   : > { %12710 = vst [vmem:[#allocation23_spill] sm:$0xff] %v9612_v63  ;;  %v9615_v61 = vpop.eup %8402  ;;  %v7683_v48 = vmin.u32 %v2439_v60, %v9606_v28  ;;  %v2508_v7 = vor.u32 %v2507_v41, %v2506_v26  ;;  %v2514_v55 = vsel %vm2512_vm10, %v2502_v20, 2102212464  ;;  %v2517_v22 = vsel %vm2509_vm8, %v2496_v57, %v2499_v0 }
 0x200   : > { %12711 = vst [vmem:[#allocation24_spill] sm:$0xff] %v9615_v61  ;;  %vm2511_vm7 = vcmp.lt.s32.totalorder %v2490_v38, 3  ;;  %v2513_v6 = vsel %vm2509_vm8, %v2493_v39, %v2496_v57  ;;  %v2518_v56 = vsel %vm2512_vm10, %v2505_v18, 920167782  ;;  %vm2167_vm13 = vcmp.lt.s32.totalorder %v9302_v27, 0 }
 0x201   : > { %v2441_v45 = vclz %v7683_v48  ;;  %v2515_v44 = vsel %vm2511_vm7, %v2499_v0, %v2514_v55  ;;  %v2519_v54 = vsel %vm2511_vm7, %v2502_v20, %v2518_v56  ;;  %v2521_v36 = vsel %vm2509_vm8, %v2499_v0, %v2502_v20 }
 0x202   : > { %v2248_v50 = vmul.f32 %v2247_v29, %v2245_v3  ;;  %v2520_v51 = vsel %vm2510_vm12, %v2517_v22, %v2519_v54  ;;  %v2522_v10 = vsel %vm2512_vm10, %v2508_v7, 1326507024  ;;  %v2525_v41 = vshll.u32 %v2485_v24, 8 }
 0x203   : > { %v7684_v60 = vadd.s32 4294967294, %v2441_v45  ;;  %v2523_v26 = vsel %vm2511_vm7, %v2505_v18, %v2522_v10  ;;  %v2692_v63 = vand.u32 8388607, %v12584_v52  ;;  %v2695_v57 = vadd.s32 1, %v7694_v25 }
 0x204   : > { %v2516_v39 = vsel %vm2510_vm12, %v2513_v6, %v2515_v44  ;;  %v2524_v61 = vsel %vm2510_vm12, %v2521_v36, %v2523_v26  ;;  %v9627_v48 = vmul.u32.u64.low %v2525_v41, %v2520_v51  ;;  %v9628_v55 = vmul.u32.u64.high %v2525_v41, %v2520_v51, %v9627_v48  ;;  %v9631_v3 = vpop.eup %8404 }
 0x205   : > { %12712 = vst [vmem:[#allocation25_spill] sm:$0xff] %v9631_v3  ;;  %vm7685_vm15 = vcmp.lt.s32.totalorder %v7684_v60, 0  ;;  %v9633_v0 = vmul.u32.u64.low %v2525_v41, %v2524_v61  ;;  %v9634_v20 = vmul.u32.u64.high %v2525_v41, %v2524_v61, %v9633_v0  ;;  %vm2696_vm0 = vcmp.gt.s32.totalorder %v2695_v57, 0 }
 0x206   : > { %8406 = vsinq.f32 %v9585_v53  ;;  %v2249_v24 = vxor.u32 2147483648, %v2248_v50  ;;  %v2444_v18 = vsel %vm7685_vm15, 0, %v7684_v60  ;;  %v2697_v25 = vsel %vm2696_vm0, %v2695_v57, 0 }
 0x207   : > { %v2429_v38 = vadd.s32 %v9534_v13, %v9548_v32  ;;  %v2445_v29 = vsub.s32 32, %v2444_v18  ;;  %v2449_v7 = vsub.s32 4294967266, %v2444_v18  ;;  %v2693_v22 = vor.u32 8388608, %v2692_v63 }
 0x208   : > { %v2532_v6 = vmul.u32 %v2525_v41, %v2516_v39  ;;  %v2535_v56 = vadd.s32 1, %v9628_v55  ;;  %v2699_v45 = vand.u32 31, %v2697_v25  ;;  %v12713_v61 = vand.u32 2147483647, %v9302_v27 }
 0x209   : > { %v2446_v53 = vshll.u32 %v9606_v28, %v2444_v18  ;;  %v2447_v36 = vshrl.u32 %v2429_v38, %v2445_v29  ;;  %v2450_v51 = vadd.s32 127, %v2449_v7  ;;  %vm2534_vm3 = vc.u32 %v9634_v20, %v9627_v48 }
 0x20a   : > { %vm9643_vm2 = vcmp.le.f32.partialorder %v12713_v61, 0.7853982  ;;  %v2250_v13 = vsel %vm2167_vm13, %v2249_v24, %v2248_v50  ;;  %v2536_v63 = vsel %vm2534_vm3, %v2535_v56, %v9628_v55  ;;  %v9653_v32 = vshrl.u32 %v2697_v25, 5 }
 0x20b   : > { %v2700_v10 = vsub.s32 32, %v2699_v45  ;;  %v2448_v41 = vor.u32 %v2447_v36, %v2446_v53  ;;  %v2451_v60 = vshll.u32 %v2450_v51, 23  ;;  %vm2479_vm4 = vcmp.lt.s32.totalorder %v9340_v47, 0 }
 0x20c   : > { %v2537_v26 = vadd.s32 %v2536_v63, %v2532_v6  ;;  %v2702_v28 = vshll.u32 %v12698_v40, %v2699_v45  ;;  %v2705_v39 = vshll.u32 %v12701_v4, %v2699_v45  ;;  %v2708_v25 = vshll.u32 %v12702_v1, %v2699_v45 }
 0x20d   : > { %v2703_v57 = vshrl.u32 %v12701_v4, %v2700_v10  ;;  %v2706_v0 = vshrl.u32 %v12702_v1, %v2700_v10  ;;  %v2709_v50 = vshrl.u32 %v12703_v59, %v2700_v10  ;;  %v2452_v24 = vor.u32 4788187, %v2451_v60 }
 0x20e   : > { %v2455_v55 = vcvt.s32.f32 %v2448_v41  ;;  %v2538_v18 = vadd.s32 536870912, %v2537_v26  ;;  %v12716_v38 = vand.u32 2147483647, %v9340_v47  ;;  %v2711_v56 = vshll.u32 %v12703_v59, %v2699_v45 }
 0x20f   : > { %v2704_v7 = vor.u32 %v2703_v57, %v2702_v28  ;;  %v2707_v6 = vor.u32 %v2706_v0, %v2705_v39  ;;  %v2712_v61 = vshrl.u32 %v12707_v8, %v2700_v10  ;;  %vm2375_vm14 = vcmp.lt.s32.totalorder %v9336_v17, 0 }
 0x210   : > { %vm9664_vm6 = vcmp.le.f32.partialorder %v12716_v38, 0.7853982  ;;  %v2453_v53 = vand.u32 2147483647, %v2452_v24  ;;  %v2539_v36 = vshrl.u32 %v2538_v18, 30  ;;  %v2714_v51 = vshll.u32 %v12707_v8, %v2699_v45  ;;  %v9673_v41 = vpop.eup %8406 }
 0x211   : > { %v2715_v63 = vshrl.u32 %v12708_v19, %v2700_v10  ;;  %12719 = vst [vmem:[#allocation26_spill] sm:$0xff] %v9673_v41  ;;  %v2710_v60 = vor.u32 %v2709_v50, %v2708_v25  ;;  %v2713_v38 = vor.u32 %v2712_v61, %v2711_v56  ;;  %v9675_v52 = vshll.u32 %v2693_v22, 8 }
 0x212   : > { %v2584_v28 = vand.u32 2139095040, %v9580_v42  ;;  %v2456_v57 = vmul.f32 %v2455_v55, %v2453_v53  ;;  %v2540_v39 = vshll.u32 %v2539_v36, 30  ;;  %v2563_v0 = vsub.s32 4, %v2539_v36 }
 0x213   : > { %v2716_v44 = vor.u32 %v2715_v63, %v2714_v51  ;;  %v2253_v24 = vsel %vm9643_vm2, %v9302_v27, %v2250_v13  ;;  %v2701_v45 = vshrl.u32 %v12698_v40, %v2700_v10  ;;  %vm2717_vm9 = vcmp.lt.s32.totalorder %v9653_v32, 1 }
 0x214   : > { %v12720_v18 = vand.u32 2147483647, %v9580_v42  ;;  %v12721_v22 = vand.u32 2147483647, %v9336_v17  ;;  %v12722_v25 = vmov 0  ;;  %v2457_v55 = vxor.u32 2147483648, %v2456_v57 }
 0x215   : > { %v9693_v56 = vsub.s32 %v2537_v26, %v2540_v39  ;;  %vm2720_vm8 = vcmp.lt.s32.totalorder %v9653_v32, 4  ;;  %v2725_v13 = vsel %vm2717_vm9, %v2704_v7, %v2707_v6  ;;  %v2564_v10 = vsel %vm2479_vm4, %v2563_v0, %v2539_v36 }
 0x216   : > { %v9685_v50 = vand.u32 8388607, %v12720_v18  ;;  %vm9689_vm1 = vcmp.le.f32.partialorder %v12721_v22, 0.7853982  ;;  %v2722_v61 = vsel %vm2720_vm8, %v2710_v60, 2102212464  ;;  %v2729_v18 = vsel %vm2717_vm9, %v2707_v6, %v2710_v60 }
 0x217   : > { %v12723_v25 = vsel %vm9689_vm1, 4294967295, %v12722_v25  ;;  %v2726_v53 = vsel %vm2720_vm8, %v2713_v38, 920167782  ;;  %v2730_v51 = vsel %vm2720_vm8, %v2716_v44, 1326507024  ;;  %v2543_v63 = vsub.s32 0, %v9693_v56 }
 0x218   : > { %12724 = vst [vmem:[#allocation27_spill] sm:$0xff] %v12723_v25  ;;  %vm2719_vm10 = vcmp.lt.s32.totalorder %v9653_v32, 3  ;;  %v2585_v26 = vshrl.u32 %v2584_v28, 23  ;;  %vm2718_vm12 = vcmp.lt.s32.totalorder %v9653_v32, 2  ;;  %v2721_v39 = vsel %vm2717_vm9, %v2701_v45, %v2704_v7 }
 0x219   : > { %v2727_v22 = vsel %vm2719_vm10, %v2710_v60, %v2726_v53  ;;  %v2731_v3 = vsel %vm2719_vm10, %v2713_v38, %v2730_v51  ;;  %v7687_v36 = vmin.u32 %v2543_v63, %v9693_v56  ;;  %v2566_v44 = vsel %vm9664_vm6, 0, %v2564_v10 }
 0x21a   : > { %v2723_v0 = vsel %vm2719_vm10, %v2707_v6, %v2722_v61  ;;  %v2728_v41 = vsel %vm2718_vm12, %v2725_v13, %v2727_v22  ;;  %v2458_v46 = vsel %vm2375_vm14, %v2457_v55, %v2456_v57  ;;  %v2732_v28 = vsel %vm2718_vm12, %v2729_v18, %v2731_v3 }
 0x21b   : > { %v9717_v33 = vmul.u32.u64.low %v9675_v52, %v2728_v41  ;;  %v9718_v7 = vmul.u32.u64.high %v9675_v52, %v2728_v41, %v9717_v33  ;;  %v2545_v60 = vclz %v7687_v36  ;;  %v7690_v6 = vadd.s32 4294967169, %v2585_v26 }
 0x21c   : > { %v9722_v38 = vmul.u32.u64.low %v9675_v52, %v2732_v28  ;;  %v9723_v45 = vmul.u32.u64.high %v9675_v52, %v2732_v28, %v9722_v38  ;;  %v9726_v10 = vand.u32 3, %v9562_v35  ;;  %v12726_v57 = vsub.s32 4, %v9506_v30 }
 0x21d   : > { %8408 = vcosq.f32 %v2253_v24  ;;  %v2724_v41 = vsel %vm2718_vm12, %v2721_v39, %v2723_v0  ;;  %v2459_v55 = vsub.s32 4, %v9589_v31  ;;  %v7688_v13 = vadd.s32 4294967294, %v2545_v60  ;;  %v9760_v0 = vpop.permute.xlu1 %392 }
 0x21e   : > { %12725 = vst [vmem:[#allocation28_spill] sm:$0xff] %v9726_v10  ;;  %v9733_v3 = vsel %vm2167_vm13, %v12726_v57, %v9506_v30  ;;  %8410 = vsinq.f32 %v2253_v24  ;;  %v2591_v61 = vadd.s32 1, %v7690_v6  ;;  %v2461_v35 = vsel %vm9689_vm1, %v9336_v17, %v2458_v46 }
 0x21f   : > { %v2570_v53 = vadd.s32 3, %v2566_v44  ;;  %v2743_v51 = vadd.s32 1, %v9718_v7  ;;  %v2589_v63 = vor.u32 8388608, %v9685_v50  ;;  %vm7689_vm7 = vcmp.lt.s32.totalorder %v7688_v13, 0 }
 0x220   : > { %v2740_v30 = vmul.u32 %v9675_v52, %v2724_v41  ;;  %vm2742_vm13 = vc.u32 %v9723_v45, %v9717_v33  ;;  %vm2592_vm15 = vcmp.gt.s32.totalorder %v2591_v61, 0  ;;  %v2548_v32 = vsel %vm7689_vm7, 0, %v7688_v13 }
 0x221   : > { %v2744_v24 = vsel %vm2742_vm13, %v2743_v51, %v9718_v7  ;;  %v2593_v18 = vsel %vm2592_vm15, %v2591_v61, 0  ;;  %v9749_v26 = vadd.f32 %v9227_v23, %v9325_v21  ;;  %v2533_v46 = vadd.s32 %v9627_v48, %v9634_v20 }
 0x222   : > { %v2549_v39 = vsub.s32 32, %v2548_v32  ;;  %v2553_v50 = vsub.s32 4294967266, %v2548_v32  ;;  %v2745_v22 = vadd.s32 %v2744_v24, %v2740_v30  ;;  %v9756_v52 = vsel %vm2375_vm14, %v2459_v55, %v9589_v31 }
 0x223   : > { %12727 = vst [vmem:[#allocation29_spill] sm:$0xff] %v9749_v26  ;;  %12728 = vst [vmem:[#allocation30_spill] sm:$0xff] %v9756_v52  ;;  %8412 = vcosq.f32 %v2461_v35  ;;  %v9758_v36 = vand.u32 3, %v2570_v53  ;;  %v2595_v44 = vand.u32 31, %v2593_v18  ;;  %v9762_v48 = vshll.u32 %v2589_v63, 8 }
 0x224   : > { %8414 = vsinq.f32 %v2461_v35  ;;  %v2551_v23 = vshrl.u32 %v2533_v46, %v2549_v39  ;;  %v2554_v21 = vadd.s32 127, %v2553_v50  ;;  %v2746_v28 = vadd.s32 536870912, %v2745_v22 }
 0x225   : > { %12729 = vst [vmem:[#allocation31_spill] sm:$0xff] %v9758_v36  ;;  %v2596_v7 = vsub.s32 32, %v2595_v44  ;;  %v2792_v20 = vand.u32 2139095040, %v9749_v26  ;;  %v9767_v60 = vadd.f32 %v9342_v14, %v9760_v0  ;;  %v2550_v31 = vshll.u32 %v9693_v56, %v2548_v32 }
 0x226   : > { %v2555_v38 = vshll.u32 %v2554_v21, 23  ;;  %vm2687_vm0 = vcmp.lt.s32.totalorder %v9557_v49, 0  ;;  %v2747_v6 = vshrl.u32 %v2746_v28, 30  ;;  %v2594_v57 = vshrl.u32 %v2593_v18, 5 }
 0x227   : > { %v9771_v41 = vpop.eup %8408  ;;  %v2598_v55 = vshll.u32 %v12698_v40, %v2595_v44  ;;  %v2599_v13 = vshrl.u32 %v12701_v4, %v2596_v7  ;;  %v2602_v61 = vshrl.u32 %v12702_v1, %v2596_v7  ;;  %v2605_v35 = vshrl.u32 %v12703_v59, %v2596_v7 }
 0x228   : > { %v9777_v53 = vpop.eup %8410  ;;  %v2552_v14 = vor.u32 %v2551_v23, %v2550_v31  ;;  %v2556_v51 = vor.u32 4788187, %v2555_v38  ;;  %v2748_v56 = vshll.u32 %v2747_v6, 30  ;;  %v2604_v63 = vshll.u32 %v12702_v1, %v2595_v44 }
 0x229   : > { %v2771_v30 = vsub.s32 4, %v2747_v6  ;;  %v2601_v32 = vshll.u32 %v12701_v4, %v2595_v44  ;;  %v2607_v24 = vshll.u32 %v12703_v59, %v2595_v44  ;;  %v2608_v18 = vshrl.u32 %v12707_v8, %v2596_v7 }
 0x22a   : > { %v2557_v46 = vand.u32 2147483647, %v2556_v51  ;;  %v12730_v39 = vand.u32 2147483647, %v9557_v49  ;;  %v9789_v21 = vsub.s32 %v2745_v22, %v2748_v56  ;;  %v2600_v23 = vor.u32 %v2599_v13, %v2598_v55 }
 0x22b   : > { %v2606_v28 = vor.u32 %v2605_v35, %v2604_v63  ;;  %v2603_v31 = vor.u32 %v2602_v61, %v2601_v32  ;;  %v2609_v38 = vor.u32 %v2608_v18, %v2607_v24  ;;  %v2610_v36 = vshll.u32 %v12707_v8, %v2595_v44 }
 0x22c   : > { %vm9785_vm3 = vcmp.le.f32.partialorder %v12730_v39, 0.7853982  ;;  %v2611_v10 = vshrl.u32 %v12708_v19, %v2596_v7  ;;  %v2559_v17 = vcvt.s32.f32 %v2552_v14  ;;  %v2741_v51 = vadd.s32 %v9717_v33, %v9723_v45 }
 0x22d   : > { %v2751_v25 = vsub.s32 0, %v9789_v21  ;;  %v9797_v52 = vpop.eup %8412  ;;  %v2597_v22 = vshrl.u32 %v12698_v40, %v2596_v7  ;;  %vm2616_vm14 = vcmp.lt.s32.totalorder %v2594_v57, 4  ;;  %v2793_v13 = vshrl.u32 %v2792_v20, 23 }
 0x22e   : > { %12733 = vst [vmem:[#allocation32_spill] sm:$0xff] %v9797_v52  ;;  %v2612_v55 = vor.u32 %v2611_v10, %v2610_v36  ;;  %v9800_v61 = vpop.eup %8414  ;;  %v2560_v44 = vmul.f32 %v2559_v17, %v2557_v46  ;;  %vm2613_vm9 = vcmp.lt.s32.totalorder %v2594_v57, 1  ;;  %v2618_v14 = vsel %vm2616_vm14, %v2606_v28, 2102212464 }
 0x22f   : > { %v7695_v35 = vmin.u32 %v2751_v25, %v9789_v21  ;;  %v2772_v33 = vsel %vm2687_vm0, %v2771_v30, %v2747_v6  ;;  %vm2615_vm8 = vcmp.lt.s32.totalorder %v2594_v57, 3  ;;  %v2621_v45 = vsel %vm2613_vm9, %v2600_v23, %v2603_v31 }
 0x230   : > { %v2622_v56 = vsel %vm2616_vm14, %v2609_v38, 920167782  ;;  %vm2614_vm10 = vcmp.lt.s32.totalorder %v2594_v57, 2  ;;  %v2625_v36 = vsel %vm2613_vm9, %v2603_v31, %v2606_v28  ;;  %v2617_v7 = vsel %vm2613_vm9, %v2597_v22, %v2600_v23 }
 0x231   : > { %v2753_v63 = vclz %v7695_v35  ;;  %v2623_v10 = vsel %vm2615_vm8, %v2606_v28, %v2622_v56  ;;  %v2619_v20 = vsel %vm2615_vm8, %v2603_v31, %v2618_v14  ;;  %v2626_v17 = vsel %vm2616_vm14, %v2612_v55, 1326507024 }
 0x232   : > { %v2624_v32 = vsel %vm2614_vm10, %v2621_v45, %v2623_v10  ;;  %v2561_v25 = vxor.u32 2147483648, %v2560_v44  ;;  %v2627_v18 = vsel %vm2615_vm8, %v2609_v38, %v2626_v17  ;;  %v7698_v46 = vadd.s32 4294967169, %v2793_v13 }
 0x233   : > { %v7696_v24 = vadd.s32 4294967294, %v2753_v63  ;;  %v2774_v6 = vsel %vm9785_vm3, 0, %v2772_v33  ;;  %v2628_v30 = vsel %vm2614_vm10, %v2625_v36, %v2627_v18  ;;  %v2620_v28 = vsel %vm2614_vm10, %v2617_v7, %v2619_v20 }
 0x234   : > { %v9811_v39 = vmul.u32.u64.low %v9762_v48, %v2624_v32  ;;  %v9812_v52 = vmul.u32.u64.high %v9762_v48, %v2624_v32, %v9811_v39  ;;  %v9816_v23 = vmul.u32.u64.low %v9762_v48, %v2628_v30  ;;  %v9817_v31 = vmul.u32.u64.high %v9762_v48, %v2628_v30, %v9816_v23 }
 0x235   : > { %vm7697_vm12 = vcmp.lt.s32.totalorder %v7696_v24, 0  ;;  %v12734_v22 = vand.u32 2147483647, %v9749_v26  ;;  %v2799_v55 = vadd.s32 1, %v7698_v46  ;;  %v12597_v13 = vand.u32 2147483647, %v9767_v60 }
 0x236   : > { %v2756_v57 = vsel %vm7697_vm12, 0, %v7696_v24  ;;  %v2562_v35 = vsel %vm2479_vm4, %v2561_v25, %v2560_v44  ;;  %v2778_v45 = vadd.s32 3, %v2774_v6  ;;  %v2636_v63 = vmul.u32 %v9762_v48, %v2620_v28 }
 0x237   : > { %v2796_v38 = vand.u32 8388607, %v12734_v22  ;;  %v2757_v14 = vsub.s32 32, %v2756_v57  ;;  %v2761_v33 = vsub.s32 4294967266, %v2756_v57  ;;  %v2758_v56 = vshll.u32 %v9789_v21, %v2756_v57 }
 0x238   : > { %v2639_v10 = vadd.s32 1, %v9812_v52  ;;  %vm2800_vm7 = vcmp.gt.s32.totalorder %v2799_v55, 0  ;;  %vm2638_vm13 = vc.u32 %v9817_v31, %v9811_v39  ;;  %v2896_v20 = vand.u32 2139095040, %v9767_v60 }
 0x239   : > { %v2759_v36 = vshrl.u32 %v2741_v51, %v2757_v14  ;;  %v2762_v7 = vadd.s32 127, %v2761_v33  ;;  %v2801_v44 = vsel %vm2800_vm7, %v2799_v55, 0  ;;  %v9833_v17 = vadd.f32 %v9412_v62, %v9760_v0 }
 0x23a   : > { %v2640_v32 = vsel %vm2638_vm13, %v2639_v10, %v9812_v52  ;;  %v9837_v48 = vadd.f32 %v9489_v15, %v9760_v0  ;;  %v9841_v24 = vadd.f32 %v9570_v12, %v9760_v0  ;;  %v2565_v52 = vsel %vm9664_vm6, %v9340_v47, %v2562_v35 }
 0x23b   : > { %v2760_v21 = vor.u32 %v2759_v36, %v2758_v56  ;;  %v2763_v25 = vshll.u32 %v2762_v7, 23  ;;  %v2641_v51 = vadd.s32 %v2640_v32, %v2636_v63  ;;  %v9846_v18 = vand.u32 3, %v2778_v45 }
 0x23c   : > { %v2797_v46 = vor.u32 8388608, %v2796_v38  ;;  %v2803_v62 = vand.u32 31, %v2801_v44  ;;  %v2897_v28 = vshrl.u32 %v2896_v20, 23  ;;  %v9850_v15 = vand.u32 8388607, %v12597_v13 }
 0x23d   : > { %12735 = vst [vmem:[#allocation33_spill] sm:$0xff] %v9846_v18  ;;  %v2764_v6 = vor.u32 4788187, %v2763_v25  ;;  %v2642_v30 = vadd.s32 536870912, %v2641_v51  ;;  %v2767_v23 = vcvt.s32.f32 %v2760_v21  ;;  %v2802_v57 = vshrl.u32 %v2801_v44, 5 }
 0x23e   : > { %v2804_v22 = vsub.s32 32, %v2803_v62  ;;  %v2806_v12 = vshll.u32 %v12698_v40, %v2803_v62  ;;  %v2809_v29 = vshll.u32 %v12701_v4, %v2803_v62  ;;  %v2812_v35 = vshll.u32 %v12702_v1, %v2803_v62 }
 0x23f   : > { %v2765_v0 = vand.u32 2147483647, %v2764_v6  ;;  %v2643_v55 = vshrl.u32 %v2642_v30, 30  ;;  %v2815_v45 = vshll.u32 %v12703_v59, %v2803_v62  ;;  %v2818_v36 = vshll.u32 %v12707_v8, %v2803_v62 }
 0x240   : > { %v2807_v38 = vshrl.u32 %v12701_v4, %v2804_v22  ;;  %v2810_v14 = vshrl.u32 %v12702_v1, %v2804_v22  ;;  %v2813_v33 = vshrl.u32 %v12703_v59, %v2804_v22  ;;  %v2816_v10 = vshrl.u32 %v12707_v8, %v2804_v22 }
 0x241   : > { %v2768_v56 = vmul.f32 %v2767_v23, %v2765_v0  ;;  %v2644_v63 = vshll.u32 %v2643_v55, 30  ;;  %v2819_v44 = vshrl.u32 %v12708_v19, %v2804_v22  ;;  %v2837_v30 = vshll.u32 %v2797_v46, 8 }
 0x242   : > { %v2808_v7 = vor.u32 %v2807_v38, %v2806_v12  ;;  %v2811_v20 = vor.u32 %v2810_v14, %v2809_v29  ;;  %v2814_v32 = vor.u32 %v2813_v33, %v2812_v35  ;;  %v2817_v6 = vor.u32 %v2816_v10, %v2815_v45 }
 0x243   : > { %v2769_v21 = vxor.u32 2147483648, %v2768_v56  ;;  %v9862_v25 = vsub.s32 %v2641_v51, %v2644_v63  ;;  %v2820_v13 = vor.u32 %v2819_v44, %v2818_v36  ;;  %vm2824_vm4 = vcmp.lt.s32.totalorder %v2802_v57, 4 }
 0x244   : > { %v7702_v18 = vadd.s32 4294967169, %v2897_v28  ;;  %v2901_v23 = vor.u32 8388608, %v9850_v15  ;;  %vm2583_vm6 = vcmp.lt.s32.totalorder %v9580_v42, 0  ;;  %v2805_v62 = vshrl.u32 %v12698_v40, %v2804_v22 }
 0x245   : > { %v2647_v0 = vsub.s32 0, %v9862_v25  ;;  %vm2821_vm15 = vcmp.lt.s32.totalorder %v2802_v57, 1  ;;  %v2826_v12 = vsel %vm2824_vm4, %v2814_v32, 2102212464  ;;  %vm2822_vm14 = vcmp.lt.s32.totalorder %v2802_v57, 2 }
 0x246   : > { %vm2823_vm9 = vcmp.lt.s32.totalorder %v2802_v57, 3  ;;  %v2829_v51 = vsel %vm2821_vm15, %v2808_v7, %v2811_v20  ;;  %v2830_v29 = vsel %vm2824_vm4, %v2817_v6, 920167782  ;;  %v2770_v46 = vsel %vm2687_vm0, %v2769_v21, %v2768_v56 }
 0x247   : > { %v7691_v28 = vmin.u32 %v2647_v0, %v9862_v25  ;;  %v2825_v15 = vsel %vm2821_vm15, %v2805_v62, %v2808_v7  ;;  %v2831_v35 = vsel %vm2823_vm9, %v2814_v32, %v2830_v29  ;;  %v2827_v38 = vsel %vm2823_vm9, %v2811_v20, %v2826_v12 }
 0x248   : > { %v2832_v14 = vsel %vm2822_vm14, %v2829_v51, %v2831_v35  ;;  %v2833_v33 = vsel %vm2821_vm15, %v2811_v20, %v2814_v32  ;;  %v2834_v22 = vsel %vm2824_vm4, %v2820_v13, 1326507024  ;;  %8416 = vcosq.f32 %v2565_v52 }
 0x249   : > { %v2649_v45 = vclz %v7691_v28  ;;  %v2835_v63 = vsel %vm2823_vm9, %v2817_v6, %v2834_v22  ;;  %v9875_v10 = vmul.u32.u64.low %v2837_v30, %v2832_v14  ;;  %v9876_v36 = vmul.u32.u64.high %v2837_v30, %v2832_v14, %v9875_v10 }
 0x24a   : > { %v2667_v44 = vsub.s32 4, %v2643_v55  ;;  %v2836_v56 = vsel %vm2822_vm14, %v2833_v33, %v2835_v63  ;;  %v2903_v21 = vadd.s32 1, %v7702_v18  ;;  %8418 = vsinq.f32 %v2565_v52 }
 0x24b   : > { %v7692_v7 = vadd.s32 4294967294, %v2649_v45  ;;  %v9880_v0 = vmul.u32.u64.low %v2837_v30, %v2836_v56  ;;  %v9881_v62 = vmul.u32.u64.high %v2837_v30, %v2836_v56, %v9880_v0  ;;  %v9886_v13 = vsel %vm9785_vm3, %v9557_v49, %v2770_v46 }
 0x24c   : > { %v2637_v20 = vadd.s32 %v9811_v39, %v9817_v31  ;;  %v2828_v32 = vsel %vm2822_vm14, %v2825_v15, %v2827_v38  ;;  %vm2904_vm0 = vcmp.gt.s32.totalorder %v2903_v21, 0  ;;  %v2847_v6 = vadd.s32 1, %v9876_v36 }
 0x24d   : > { %vm7693_vm8 = vcmp.lt.s32.totalorder %v7692_v7, 0  ;;  %v2905_v18 = vsel %vm2904_vm0, %v2903_v21, 0  ;;  %v9892_v52 = vshll.u32 %v2901_v23, 8  ;;  %v9896_v51 = vsel %vm2583_vm6, %v2667_v44, %v2643_v55 }
 0x24e   : > { %v2652_v12 = vsel %vm7693_vm8, 0, %v7692_v7  ;;  %v2907_v50 = vand.u32 31, %v2905_v18  ;;  %8420 = vcosq.f32 %v9886_v13  ;;  %v2844_v57 = vmul.u32 %v2837_v30, %v2828_v32 }
 0x24f   : > { %v2653_v39 = vsub.s32 32, %v2652_v12  ;;  %v2657_v31 = vsub.s32 4294967266, %v2652_v12  ;;  %v2654_v46 = vshll.u32 %v9862_v25, %v2652_v12  ;;  %vm2846_vm3 = vc.u32 %v9881_v62, %v9875_v10 }
 0x250   : > { %v2908_v23 = vsub.s32 32, %v2907_v50  ;;  %v3104_v28 = vand.u32 2139095040, %v9833_v17  ;;  %v2848_v55 = vsel %vm2846_vm3, %v2847_v6, %v9876_v36  ;;  %v2910_v38 = vshll.u32 %v12698_v40, %v2907_v50 }
 0x251   : > { %v2655_v15 = vshrl.u32 %v2637_v20, %v2653_v39  ;;  %v2658_v35 = vadd.s32 127, %v2657_v31  ;;  %v2849_v14 = vadd.s32 %v2848_v55, %v2844_v57  ;;  %v2913_v22 = vshll.u32 %v12701_v4, %v2907_v50 }
 0x252   : > { %v2911_v33 = vshrl.u32 %v12701_v4, %v2908_v23  ;;  %v2914_v30 = vshrl.u32 %v12702_v1, %v2908_v23  ;;  %v2916_v63 = vshll.u32 %v12702_v1, %v2907_v50  ;;  %v2917_v44 = vshrl.u32 %v12703_v59, %v2908_v23  ;;  %v9911_v56 = vpop.eup %8416 }
 0x253   : > { %v2656_v25 = vor.u32 %v2655_v15, %v2654_v46  ;;  %v2659_v45 = vshll.u32 %v2658_v35, 23  ;;  %12736 = vst [vmem:[#allocation34_spill] sm:$0xff] %v9911_v56  ;;  %v2850_v21 = vadd.s32 536870912, %v2849_v14  ;;  %v2906_v7 = vshrl.u32 %v2905_v18, 5 }
 0x254   : > { %v2919_v36 = vshll.u32 %v12703_v59, %v2907_v50  ;;  %v2920_v0 = vshrl.u32 %v12707_v8, %v2908_v23  ;;  %v9915_v20 = vpop.eup %8418  ;;  %v2912_v6 = vor.u32 %v2911_v33, %v2910_v38  ;;  %v2915_v12 = vor.u32 %v2914_v30, %v2913_v22 }
 0x255   : > { %12737 = vst [vmem:[#allocation35_spill] sm:$0xff] %v9915_v20  ;;  %v2660_v32 = vor.u32 4788187, %v2659_v45  ;;  %v2918_v39 = vor.u32 %v2917_v44, %v2916_v63  ;;  %v2851_v31 = vshrl.u32 %v2850_v21, 30  ;;  %v2922_v46 = vshll.u32 %v12707_v8, %v2907_v50 }
 0x256   : > { %v2921_v57 = vor.u32 %v2920_v0, %v2919_v36  ;;  %v2923_v15 = vshrl.u32 %v12708_v19, %v2908_v23  ;;  %v2663_v55 = vcvt.s32.f32 %v2656_v25  ;;  %v3105_v29 = vshrl.u32 %v3104_v28, 23 }
 0x257   : > { %v2661_v35 = vand.u32 2147483647, %v2660_v32  ;;  %v12738_v18 = vand.u32 2147483647, %v9833_v17  ;;  %v12739_v56 = vand.u32 2147483647, %v9580_v42  ;;  %8422 = vsinq.f32 %v9886_v13 }
 0x258   : > { %v2852_v38 = vshll.u32 %v2851_v31, 30  ;;  %v2924_v33 = vor.u32 %v2923_v15, %v2922_v46  ;;  %vm2925_vm12 = vcmp.lt.s32.totalorder %v2906_v7, 1  ;;  %vm2928_vm7 = vcmp.lt.s32.totalorder %v2906_v7, 4  ;;  %v9927_v22 = vpop.eup %8420 }
 0x259   : > { %v3108_v49 = vand.u32 8388607, %v12738_v18  ;;  %vm9923_vm10 = vcmp.le.f32.partialorder %v12739_v56, 0.7853982  ;;  %12742 = vst [vmem:[#allocation36_spill] sm:$0xff] %v9927_v22  ;;  %v2664_v50 = vmul.f32 %v2663_v55, %v2661_v35  ;;  %vm2927_vm13 = vcmp.lt.s32.totalorder %v2906_v7, 3 }
 0x25a   : > { %v2933_v30 = vsel %vm2925_vm12, %v2912_v6, %v2915_v12  ;;  %v2934_v28 = vsel %vm2928_vm7, %v2921_v57, 920167782  ;;  %vm2791_vm4 = vcmp.lt.s32.totalorder %v9749_v26, 0  ;;  %v9932_v25 = vsub.s32 %v2849_v14, %v2852_v38 }
 0x25b   : > { %vm2926_vm15 = vcmp.lt.s32.totalorder %v2906_v7, 2  ;;  %v2930_v45 = vsel %vm2928_vm7, %v2918_v39, 2102212464  ;;  %v2935_v63 = vsel %vm2927_vm13, %v2918_v39, %v2934_v28  ;;  %v2665_v44 = vxor.u32 2147483648, %v2664_v50 }
 0x25c   : > { %v2909_v56 = vshrl.u32 %v12698_v40, %v2908_v23  ;;  %v2936_v21 = vsel %vm2926_vm15, %v2933_v30, %v2935_v63  ;;  %v2937_v36 = vsel %vm2925_vm12, %v2915_v12, %v2918_v39  ;;  %v2855_v0 = vsub.s32 0, %v9932_v25 }
 0x25d   : > { %v2938_v32 = vsel %vm2928_vm7, %v2924_v33, 1326507024  ;;  %v9942_v46 = vmul.u32.u64.low %v9892_v52, %v2936_v21  ;;  %v9943_v14 = vmul.u32.u64.high %v9892_v52, %v2936_v21, %v9942_v46  ;;  %v2931_v35 = vsel %vm2927_vm13, %v2915_v12, %v2930_v45 }
 0x25e   : > { %v2929_v15 = vsel %vm2925_vm12, %v2909_v56, %v2912_v6  ;;  %v2939_v55 = vsel %vm2927_vm13, %v2921_v57, %v2938_v32  ;;  %v7710_v23 = vadd.s32 4294967169, %v3105_v29  ;;  %v2666_v18 = vsel %vm2583_vm6, %v2665_v44, %v2664_v50 }
 0x25f   : > { %v7699_v39 = vmin.u32 %v2855_v0, %v9932_v25  ;;  %v2940_v38 = vsel %vm2926_vm15, %v2937_v36, %v2939_v55  ;;  %v12603_v33 = vand.u32 2147483647, %v9837_v48  ;;  %v2875_v30 = vsub.s32 4, %v2851_v31 }
 0x260   : > { %v9955_v28 = vmul.u32.u64.low %v9892_v52, %v2940_v38  ;;  %v9956_v63 = vmul.u32.u64.high %v9892_v52, %v2940_v38, %v9955_v28  ;;  %v3111_v6 = vadd.s32 1, %v7710_v23  ;;  %v2932_v12 = vsel %vm2926_vm15, %v2929_v15, %v2931_v35 }
 0x261   : > { %v2857_v56 = vclz %v7699_v39  ;;  %v2951_v29 = vadd.s32 1, %v9943_v14  ;;  %v3109_v57 = vor.u32 8388608, %v3108_v49  ;;  %v9964_v50 = vsel %vm9923_vm10, %v9580_v42, %v2666_v18 }
 0x262   : > { %v2845_v45 = vadd.s32 %v9875_v10, %v9881_v62  ;;  %vm3112_vm6 = vcmp.gt.s32.totalorder %v3111_v6, 0  ;;  %v3000_v36 = vand.u32 2139095040, %v9837_v48  ;;  %v9971_v7 = vand.u32 8388607, %v12603_v33  ;;  %v10003_v33 = vpop.eup %8422 }
 0x263   : > { %v7700_v44 = vadd.s32 4294967294, %v2857_v56  ;;  %v3113_v21 = vsel %vm3112_vm6, %v3111_v6, 0  ;;  %v9975_v49 = vsel %vm2791_vm4, %v2875_v30, %v2851_v31  ;;  %v2948_v13 = vmul.u32 %v9892_v52, %v2932_v12  ;;  %12747 = vst [vmem:[#allocation38_spill] sm:$0xff] %v10003_v33 }
 0x264   : > { %12743 = vst [vmem:[#allocation37_spill] sm:$0xff] %v9975_v49  ;;  %vm2950_vm14 = vc.u32 %v9956_v63, %v9942_v46  ;;  %v3115_v0 = vand.u32 31, %v3113_v21  ;;  %8424 = vcosq.f32 %v9964_v50  ;;  %vm2895_vm0 = vcmp.lt.s32.totalorder %v9767_v60, 0 }
 0x265   : > { %vm7701_vm9 = vcmp.lt.s32.totalorder %v7700_v44, 0  ;;  %v2952_v10 = vsel %vm2950_vm14, %v2951_v29, %v9943_v14  ;;  %v9983_v62 = vshll.u32 %v3109_v57, 8  ;;  %v9985_v35 = vshrl.u32 %v3113_v21, 5 }
 0x266   : > { %v2860_v32 = vsel %vm7701_vm9, 0, %v7700_v44  ;;  %v2953_v15 = vadd.s32 %v2952_v10, %v2948_v13  ;;  %v3116_v31 = vsub.s32 32, %v3115_v0  ;;  %v12744_v23 = vand.u32 2147483647, %v9767_v60 }
 0x267   : > { %v2861_v55 = vsub.s32 32, %v2860_v32  ;;  %v2865_v52 = vsub.s32 4294967266, %v2860_v32  ;;  %v3001_v39 = vshrl.u32 %v3000_v36, 23  ;;  %v2862_v14 = vshll.u32 %v9932_v25, %v2860_v32 }
 0x268   : > { %vm9989_vm8 = vcmp.le.f32.partialorder %v12744_v23, 0.7853982  ;;  %v2954_v30 = vadd.s32 536870912, %v2953_v15  ;;  %v3118_v28 = vshll.u32 %v12698_v40, %v3115_v0  ;;  %v3119_v6 = vshrl.u32 %v12701_v4, %v3116_v31 }
 0x269   : > { %v2863_v56 = vshrl.u32 %v2845_v45, %v2861_v55  ;;  %v2866_v12 = vadd.s32 127, %v2865_v52  ;;  %v3122_v29 = vshrl.u32 %v12702_v1, %v3116_v31  ;;  %v3125_v57 = vshrl.u32 %v12703_v59, %v3116_v31 }
 0x26a   : > { %v2955_v44 = vshrl.u32 %v2954_v30, 30  ;;  %v3120_v21 = vor.u32 %v3119_v6, %v3118_v28  ;;  %v3121_v13 = vshll.u32 %v12701_v4, %v3115_v0  ;;  %v3124_v36 = vshll.u32 %v12702_v1, %v3115_v0 }
 0x26b   : > { %v2864_v10 = vor.u32 %v2863_v56, %v2862_v14  ;;  %v2867_v23 = vshll.u32 %v2866_v12, 23  ;;  %v3127_v25 = vshll.u32 %v12703_v59, %v3115_v0  ;;  %v3128_v32 = vshrl.u32 %v12707_v8, %v3116_v31 }
 0x26c   : > { %v2956_v45 = vshll.u32 %v2955_v44, 30  ;;  %v2979_v55 = vsub.s32 4, %v2955_v44  ;;  %v3126_v52 = vor.u32 %v3125_v57, %v3124_v36  ;;  %v3131_v38 = vshrl.u32 %v12708_v19, %v3116_v31 }
 0x26d   : > { %v2868_v22 = vor.u32 4788187, %v2867_v23  ;;  %v3123_v30 = vor.u32 %v3122_v29, %v3121_v13  ;;  %v3129_v28 = vor.u32 %v3128_v32, %v3127_v25  ;;  %v3130_v6 = vshll.u32 %v12707_v8, %v3115_v0 }
 0x26e   : > { %v12748_v47 = vand.u32 2147483647, %v9749_v26  ;;  %v12749_v14 = vmov 0  ;;  %v2871_v56 = vcvt.s32.f32 %v2864_v10  ;;  %v10013_v12 = vsub.s32 %v2953_v15, %v2956_v45  ;;  %v10018_v36 = vpop.eup %8424 }
 0x26f   : > { %v2980_v33 = vsel %vm2895_vm0, %v2979_v55, %v2955_v44  ;;  %v3117_v57 = vshrl.u32 %v12698_v40, %v3116_v31  ;;  %12752 = vst [vmem:[#allocation40_spill] sm:$0xff] %v10018_v36  ;;  %v2869_v29 = vand.u32 2147483647, %v2868_v22  ;;  %v3132_v13 = vor.u32 %v3131_v38, %v3130_v6 }
 0x270   : > { %vm10009_vm3 = vcmp.le.f32.partialorder %v12748_v47, 0.7853982  ;;  %vm3133_vm12 = vcmp.lt.s32.totalorder %v9985_v35, 1  ;;  %vm3136_vm7 = vcmp.lt.s32.totalorder %v9985_v35, 4  ;;  %v2959_v47 = vsub.s32 0, %v10013_v12 }
 0x271   : > { %v12750_v14 = vsel %vm10009_vm3, 4294967295, %v12749_v14  ;;  %v2982_v0 = vsel %vm9989_vm8, 0, %v2980_v33  ;;  %vm3134_vm13 = vcmp.lt.s32.totalorder %v9985_v35, 2  ;;  %v3138_v15 = vsel %vm3136_vm7, %v3126_v52, 2102212464 }
 0x272   : > { %12751 = vst [vmem:[#allocation39_spill] sm:$0xff] %v12750_v14  ;;  %v2872_v44 = vmul.f32 %v2871_v56, %v2869_v29  ;;  %vm3135_vm15 = vcmp.lt.s32.totalorder %v9985_v35, 3  ;;  %v3141_v22 = vsel %vm3133_vm12, %v3120_v21, %v3123_v30  ;;  %v3142_v31 = vsel %vm3136_vm7, %v3129_v28, 920167782 }
 0x273   : > { %v7703_v38 = vmin.u32 %v2959_v47, %v10013_v12  ;;  %v3137_v10 = vsel %vm3133_vm12, %v3117_v57, %v3120_v21  ;;  %v3139_v33 = vsel %vm3135_vm15, %v3123_v30, %v3138_v15  ;;  %v3143_v23 = vsel %vm3135_vm15, %v3126_v52, %v3142_v31 }
 0x274   : > { %v2873_v25 = vxor.u32 2147483648, %v2872_v44  ;;  %v3144_v32 = vsel %vm3134_vm13, %v3141_v22, %v3143_v23  ;;  %v3145_v45 = vsel %vm3133_vm12, %v3123_v30, %v3126_v52  ;;  %v3146_v55 = vsel %vm3136_vm7, %v3132_v13, 1326507024 }
 0x275   : > { %v2961_v6 = vclz %v7703_v38  ;;  %v3147_v56 = vsel %vm3135_vm15, %v3129_v28, %v3146_v55  ;;  %v10043_v29 = vmul.u32.u64.low %v9983_v62, %v3144_v32  ;;  %v10044_v47 = vmul.u32.u64.high %v9983_v62, %v3144_v32, %v10043_v29 }
 0x276   : > { %v2874_v21 = vsel %vm2791_vm4, %v2873_v25, %v2872_v44  ;;  %v2986_v57 = vadd.s32 3, %v2982_v0  ;;  %v3148_v15 = vsel %vm3134_vm13, %v3145_v45, %v3147_v56  ;;  %v7706_v22 = vadd.s32 4294967169, %v3001_v39 }
 0x277   : > { %v7704_v31 = vadd.s32 4294967294, %v2961_v6  ;;  %v3140_v52 = vsel %vm3134_vm13, %v3137_v10, %v3139_v33  ;;  %v10053_v30 = vmul.u32.u64.low %v9983_v62, %v3148_v15  ;;  %v10054_v13 = vmul.u32.u64.high %v9983_v62, %v3148_v15, %v10053_v30 }
 0x278   : > { %8426 = vsinq.f32 %v9964_v50  ;;  %v2877_v28 = vsel %vm10009_vm3, %v9749_v26, %v2874_v21  ;;  %v3007_v44 = vadd.s32 1, %v7706_v22  ;;  %v12608_v0 = vand.u32 2147483647, %v9841_v24 }
 0x279   : > { %v2949_v39 = vadd.s32 %v9942_v46, %v9956_v63  ;;  %vm7705_vm4 = vcmp.lt.s32.totalorder %v7704_v31, 0  ;;  %v3159_v35 = vadd.s32 1, %v10044_v47  ;;  %v3208_v38 = vand.u32 2139095040, %v9841_v24 }
 0x27a   : > { %v2964_v10 = vsel %vm7705_vm4, 0, %v7704_v31  ;;  %v10065_v33 = vand.u32 3, %v2986_v57  ;;  %v3156_v50 = vmul.u32 %v9983_v62, %v3140_v52  ;;  %vm3008_vm6 = vcmp.gt.s32.totalorder %v3007_v44, 0 }
 0x27b   : > { %8428 = vcosq.f32 %v2877_v28  ;;  %v2965_v23 = vsub.s32 32, %v2964_v10  ;;  %v2969_v25 = vsub.s32 4294967266, %v2964_v10  ;;  %v12754_v32 = vor.u32 8388608, %v9971_v7 }
 0x27c   : > { %12753 = vst [vmem:[#allocation41_spill] sm:$0xff] %v10065_v33  ;;  %8430 = vsinq.f32 %v2877_v28  ;;  %vm3158_vm14 = vc.u32 %v10054_v13, %v10043_v29  ;;  %v3009_v46 = vsel %vm3008_vm6, %v3007_v44, 0  ;;  %v3209_v63 = vshrl.u32 %v3208_v38, 23 }
 0x27d   : > { %v10070_v45 = vshll.u32 %v12754_v32, 8  ;;  %v2966_v55 = vshll.u32 %v10013_v12, %v2964_v10  ;;  %v2967_v6 = vshrl.u32 %v2949_v39, %v2965_v23  ;;  %v2970_v56 = vadd.s32 127, %v2969_v25 }
 0x27e   : > { %vm3103_vm9 = vcmp.lt.s32.totalorder %v9833_v17, 0  ;;  %v3160_v62 = vsel %vm3158_vm14, %v3159_v35, %v10044_v47  ;;  %v3011_v57 = vand.u32 31, %v3009_v46  ;;  %v10078_v7 = vand.u32 8388607, %v12608_v0 }
 0x27f   : > { %v3161_v21 = vadd.s32 %v3160_v62, %v3156_v50  ;;  %v2968_v22 = vor.u32 %v2967_v6, %v2966_v55  ;;  %v2971_v31 = vshll.u32 %v2970_v56, 23  ;;  %v12755_v12 = vand.u32 2147483647, %v9833_v17 }
 0x280   : > { %v10090_v47 = vadd.s32 %v10043_v29, %v10054_v13  ;;  %v3010_v30 = vshrl.u32 %v3009_v46, 5  ;;  %v3012_v44 = vsub.s32 32, %v3011_v57  ;;  %v3014_v39 = vshll.u32 %v12698_v40, %v3011_v57 }
 0x281   : > { %vm10085_vm12 = vcmp.le.f32.partialorder %v12755_v12, 0.7853982  ;;  %v3162_v28 = vadd.s32 536870912, %v3161_v21  ;;  %v7714_v35 = vadd.s32 4294967169, %v3209_v63  ;;  %v2972_v38 = vor.u32 4788187, %v2971_v31 }
 0x282   : > { %v2975_v10 = vcvt.s32.f32 %v2968_v22  ;;  %v3017_v50 = vshll.u32 %v12701_v4, %v3011_v57  ;;  %v3020_v23 = vshll.u32 %v12702_v1, %v3011_v57  ;;  %v10095_v25 = vpop.eup %8426  ;;  %v3015_v55 = vshrl.u32 %v12701_v4, %v3012_v44 }
 0x283   : > { %v3163_v32 = vshrl.u32 %v3162_v28, 30  ;;  %v3018_v29 = vshrl.u32 %v12702_v1, %v3012_v44  ;;  %v3023_v13 = vshll.u32 %v12703_v59, %v3011_v57  ;;  %v2973_v46 = vand.u32 2147483647, %v2972_v38 }
 0x284   : > { %v3021_v6 = vshrl.u32 %v12703_v59, %v3012_v44  ;;  %v3024_v63 = vshrl.u32 %v12707_v8, %v3012_v44  ;;  %v3026_v56 = vshll.u32 %v12707_v8, %v3011_v57  ;;  %v3016_v31 = vor.u32 %v3015_v55, %v3014_v39 }
 0x285   : > { %v3164_v62 = vshll.u32 %v3163_v32, 30  ;;  %v3187_v22 = vsub.s32 4, %v3163_v32  ;;  %v3019_v12 = vor.u32 %v3018_v29, %v3017_v50  ;;  %v10103_v0 = vpop.eup %8428  ;;  %v2976_v28 = vmul.f32 %v2975_v10, %v2973_v46 }
 0x286   : > { %v3022_v15 = vor.u32 %v3021_v6, %v3020_v23  ;;  %v3025_v33 = vor.u32 %v3024_v63, %v3023_v13  ;;  %v3027_v26 = vshrl.u32 %v12708_v19, %v3012_v44  ;;  %v10106_v14 = vpop.eup %8430  ;;  %v3013_v57 = vshrl.u32 %v12698_v40, %v3012_v44 }
 0x287   : > { %v10108_v38 = vsub.s32 %v3161_v21, %v3164_v62  ;;  %v3188_v49 = vsel %vm3103_vm9, %v3187_v22, %v3163_v32  ;;  %vm3029_vm7 = vcmp.lt.s32.totalorder %v3010_v30, 1  ;;  %v2977_v36 = vxor.u32 2147483648, %v2976_v28 }
 0x288   : > { %v3028_v39 = vor.u32 %v3027_v26, %v3026_v56  ;;  %vm3031_vm13 = vcmp.lt.s32.totalorder %v3010_v30, 3  ;;  %vm3032_vm15 = vcmp.lt.s32.totalorder %v3010_v30, 4  ;;  %v3190_v50 = vsel %vm10085_vm12, 0, %v3188_v49 }
 0x289   : > { %v3167_v10 = vsub.s32 0, %v10108_v38  ;;  %v3033_v23 = vsel %vm3029_vm7, %v3013_v57, %v3016_v31  ;;  %v3034_v55 = vsel %vm3032_vm15, %v3022_v15, 2102212464  ;;  %v2978_v21 = vsel %vm2895_vm0, %v2977_v36, %v2976_v28 }
 0x28a   : > { %v3035_v32 = vsel %vm3031_vm13, %v3019_v12, %v3034_v55  ;;  %v3037_v29 = vsel %vm3029_vm7, %v3016_v31, %v3019_v12  ;;  %v3038_v44 = vsel %vm3032_vm15, %v3025_v33, 920167782  ;;  %vm3030_vm4 = vcmp.lt.s32.totalorder %v3010_v30, 2 }
 0x28b   : > { %v7711_v26 = vmin.u32 %v3167_v10, %v10108_v38  ;;  %v3041_v13 = vsel %vm3029_vm7, %v3019_v12, %v3022_v15  ;;  %v3213_v46 = vor.u32 8388608, %v10078_v7  ;;  %v2981_v49 = vsel %vm9989_vm8, %v9767_v60, %v2978_v21 }
 0x28c   : > { %v3194_v6 = vadd.s32 3, %v3190_v50  ;;  %v3039_v63 = vsel %vm3031_vm13, %v3022_v15, %v3038_v44  ;;  %v3042_v36 = vsel %vm3032_vm15, %v3028_v39, 1326507024  ;;  %v3036_v62 = vsel %vm3030_vm4, %v3033_v23, %v3035_v32 }
 0x28d   : > { %v3169_v56 = vclz %v7711_v26  ;;  %v3040_v22 = vsel %vm3030_vm4, %v3037_v29, %v3039_v63  ;;  %v3043_v31 = vsel %vm3031_vm13, %v3025_v33, %v3042_v36  ;;  %v3215_v7 = vadd.s32 1, %v7714_v35 }
 0x28e   : > { %v3044_v28 = vsel %vm3030_vm4, %v3041_v13, %v3043_v31  ;;  %v10130_v57 = vmul.u32.u64.low %v10070_v45, %v3040_v22  ;;  %v10131_v12 = vmul.u32.u64.high %v10070_v45, %v3040_v22, %v10130_v57  ;;  %v10138_v15 = vshll.u32 %v3213_v46, 8 }
 0x28f   : > { %v7712_v10 = vadd.s32 4294967294, %v3169_v56  ;;  %v10135_v18 = vmul.u32.u64.low %v10070_v45, %v3044_v28  ;;  %v10136_v50 = vmul.u32.u64.high %v10070_v45, %v3044_v28, %v10135_v18  ;;  %8432 = vcosq.f32 %v2981_v49 }
 0x290   : > { %v10140_v39 = vand.u32 3, %v3194_v6  ;;  %v3052_v30 = vmul.u32 %v10070_v45, %v3036_v62  ;;  %vm3216_vm0 = vcmp.gt.s32.totalorder %v3215_v7, 0  ;;  %8434 = vsinq.f32 %v2981_v49 }
 0x291   : > { %vm7713_vm8 = vcmp.lt.s32.totalorder %v7712_v10, 0  ;;  %v3217_v33 = vsel %vm3216_vm0, %v3215_v7, 0  ;;  %v12758_v35 = vsel %vm9318_vm11, 0, %v9330_v9  ;;  %v3055_v21 = vadd.s32 1, %v10131_v12 }
 0x292   : > { %v10147_v23 = vadd.s32 3, %v12758_v35  ;;  %v3172_v55 = vsel %vm7713_vm8, 0, %v7712_v10  ;;  %v3219_v32 = vand.u32 31, %v3217_v33  ;;  %v1846_v29 = vxor.u32 2147483648, %v9510_v34 }
 0x293   : > { %v3173_v44 = vsub.s32 32, %v3172_v55  ;;  %v3177_v26 = vsub.s32 4294967266, %v3172_v55  ;;  %v10151_v13 = vshrl.u32 %v3217_v33, 5  ;;  %v2254_v45 = vsel %vm9643_vm2, 0, %v9733_v3 }
 0x294   : > { %v3174_v5 = vshll.u32 %v10108_v38, %v3172_v55  ;;  %vm3054_vm11 = vc.u32 %v10136_v50, %v10130_v57  ;;  %v3220_v9 = vsub.s32 32, %v3219_v32  ;;  %v3222_v46 = vshll.u32 %v12698_v40, %v3219_v32 }
 0x295   : > { %v3175_v49 = vshrl.u32 %v10090_v47, %v3173_v44  ;;  %v3178_v6 = vadd.s32 127, %v3177_v26  ;;  %v3056_v63 = vsel %vm3054_vm11, %v3055_v21, %v10131_v12  ;;  %v3225_v36 = vshll.u32 %v12701_v4, %v3219_v32 }
 0x296   : > { %v3057_v56 = vadd.s32 %v3056_v63, %v3052_v30  ;;  %v3223_v62 = vshrl.u32 %v12701_v4, %v3220_v9  ;;  %v3226_v22 = vshrl.u32 %v12702_v1, %v3220_v9  ;;  %v3228_v38 = vshll.u32 %v12702_v1, %v3219_v32 }
 0x297   : > { %v3176_v31 = vor.u32 %v3175_v49, %v3174_v5  ;;  %v3179_v28 = vshll.u32 %v3178_v6, 23  ;;  %v3221_v7 = vshrl.u32 %v12698_v40, %v3220_v9  ;;  %v3229_v10 = vshrl.u32 %v12703_v59, %v3220_v9 }
 0x298   : > { %v3058_v18 = vadd.s32 536870912, %v3057_v56  ;;  %v3224_v47 = vor.u32 %v3223_v62, %v3222_v46  ;;  %v3231_v33 = vshll.u32 %v12703_v59, %v3219_v32  ;;  %v3232_v12 = vshrl.u32 %v12707_v8, %v3220_v9 }
 0x299   : > { %v3180_v35 = vor.u32 4788187, %v3179_v28  ;;  %v3183_v30 = vcvt.s32.f32 %v3176_v31  ;;  %v3227_v55 = vor.u32 %v3226_v22, %v3225_v36  ;;  %v3230_v21 = vor.u32 %v3229_v10, %v3228_v38  ;;  %v10170_v44 = vpop.eup %8432 }
 0x29a   : > { %vm2999_vm6 = vcmp.lt.s32.totalorder %v9837_v48, 0  ;;  %v3059_v26 = vshrl.u32 %v3058_v18, 30  ;;  %v3233_v5 = vor.u32 %v3232_v12, %v3231_v33  ;;  %v3234_v49 = vshll.u32 %v12707_v8, %v3219_v32  ;;  %v10175_v63 = vpop.eup %8434 }
 0x29b   : > { %v3235_v6 = vshrl.u32 %v12708_v19, %v3220_v9  ;;  %v3181_v46 = vand.u32 2147483647, %v3180_v35  ;;  %vm3237_vm14 = vcmp.lt.s32.totalorder %v10151_v13, 1  ;;  %vm3238_vm7 = vcmp.lt.s32.totalorder %v10151_v13, 2 }
 0x29c   : > { %vm3239_vm13 = vcmp.lt.s32.totalorder %v10151_v13, 3  ;;  %v3060_v36 = vshll.u32 %v3059_v26, 30  ;;  %vm3240_vm15 = vcmp.lt.s32.totalorder %v10151_v13, 4  ;;  %v3241_v22 = vsel %vm3237_vm14, %v3221_v7, %v3224_v47 }
 0x29d   : > { %v3236_v62 = vor.u32 %v3235_v6, %v3234_v49  ;;  %v3184_v38 = vmul.f32 %v3183_v30, %v3181_v46  ;;  %v3242_v32 = vsel %vm3240_vm15, %v3230_v21, 2102212464  ;;  %v3245_v9 = vsel %vm3237_vm14, %v3224_v47, %v3227_v55 }
 0x29e   : > { %v3246_v31 = vsel %vm3240_vm15, %v3233_v5, 920167782  ;;  %v10189_v28 = vsub.s32 %v3057_v56, %v3060_v36  ;;  %v3083_v10 = vsub.s32 4, %v3059_v26  ;;  %v3243_v18 = vsel %vm3239_vm13, %v3227_v55, %v3242_v32 }
 0x29f   : > { %v3247_v33 = vsel %vm3239_vm13, %v3230_v21, %v3246_v31  ;;  %v3185_v7 = vxor.u32 2147483648, %v3184_v38  ;;  %v3244_v12 = vsel %vm3238_vm7, %v3241_v22, %v3243_v18  ;;  %v3249_v47 = vsel %vm3237_vm14, %v3227_v55, %v3230_v21 }
 0x2a0   : > { %v3248_v35 = vsel %vm3238_vm7, %v3245_v9, %v3247_v33  ;;  %vm1841_vm4 = vweird.f32 %v8960_v11  ;;  %v3063_v56 = vsub.s32 0, %v10189_v28  ;;  %v3250_v30 = vsel %vm3240_vm15, %v3236_v62, 1326507024 }
 0x2a1   : > { %v10206_v49 = vmul.u32.u64.low %v10138_v15, %v3248_v35  ;;  %v10207_v6 = vmul.u32.u64.high %v10138_v15, %v3248_v35, %v10206_v49  ;;  %v3186_v46 = vsel %vm3103_vm9, %v3185_v7, %v3184_v38  ;;  %v3251_v36 = vsel %vm3239_vm13, %v3233_v5, %v3250_v30 }
 0x2a2   : > { %v1843_v22 = vand.u32 3, %v10147_v23  ;;  %v1849_v55 = vxor.u32 2147483648, %v9436_v37  ;;  %v3053_v21 = vadd.s32 %v10130_v57, %v10136_v50  ;;  %v7707_v32 = vmin.u32 %v3063_v56, %v10189_v28 }
 0x2a3   : > { %v3252_v62 = vsel %vm3238_vm7, %v3249_v47, %v3251_v36  ;;  %v2258_v38 = vadd.s32 3, %v2254_v45  ;;  %v10226_v5 = vsel %vm2999_vm6, %v3083_v10, %v3059_v26  ;;  %v3260_v57 = vmul.u32 %v10138_v15, %v3244_v12 }
 0x2a4   : > { %v10229_v23 = vmul.u32.u64.low %v10138_v15, %v3252_v62  ;;  %v10230_v9 = vmul.u32.u64.high %v10138_v15, %v3252_v62, %v10229_v23  ;;  %vm2257_vm9 = vweird.f32 %v9302_v27  ;;  %v3189_v50 = vsel %vm10085_vm12, %v9833_v17, %v3186_v46 }
 0x2a5   : > { %v3065_v54 = vclz %v7707_v32  ;;  %v3263_v3 = vadd.s32 1, %v10207_v6  ;;  %vm1845_vm2 = vcmp.eq.s32.totalorder %v1843_v22, 0  ;;  %vm1848_vm0 = vcmp.eq.s32.totalorder %v1843_v22, 2 }
 0x2a6   : > { %v1847_v13 = vsel %vm1845_vm2, %v9436_v37, %v1846_v29  ;;  %v2259_v45 = vand.u32 3, %v2258_v38  ;;  %v2262_v26 = vxor.u32 2147483648, %v9777_v53  ;;  %vm1844_vm8 = vcmp.lt.s32.totalorder %v1843_v22, 2 }
 0x2a7   : > { %v7708_v31 = vadd.s32 4294967294, %v3065_v54  ;;  %v1850_v15 = vsel %vm1848_vm0, %v1849_v55, %v9510_v34  ;;  %v2265_v10 = vxor.u32 2147483648, %v9771_v41  ;;  %8436 = vcosq.f32 %v3189_v50 }
 0x2a8   : > { %vm3262_vm12 = vc.u32 %v10230_v9, %v10206_v49  ;;  %v1851_v52 = vsel %vm1844_vm8, %v1847_v13, %v1850_v15  ;;  %v2046_v18 = vsel %vm9445_vm5, 0, %v9348_v58  ;;  %vm2261_vm14 = vcmp.eq.s32.totalorder %v2259_v45, 0 }
 0x2a9   : > { %vm7709_vm11 = vcmp.lt.s32.totalorder %v7708_v31, 0  ;;  %v3264_v37 = vsel %vm3262_vm12, %v3263_v3, %v10207_v6  ;;  %v1852_v29 = vsel %vm1841_vm4, nan, %v1851_v52  ;;  %v2263_v34 = vsel %vm2261_vm14, %v9771_v41, %v2262_v26  ;;  %v12772_v52 = vld [vmem:[#allocation24_spill] sm:$0xff] }
 0x2aa   : > { %v3068_v33 = vsel %vm7709_vm11, 0, %v7708_v31  ;;  %v3265_v7 = vadd.s32 %v3264_v37, %v3260_v57  ;;  %vm2264_vm7 = vcmp.eq.s32.totalorder %v2259_v45, 2  ;;  %vm2260_vm13 = vcmp.lt.s32.totalorder %v2259_v45, 2  ;;  %v12759_v57 = vld [vmem:[#allocation10_spill] sm:$0xff] }
 0x2ab   : > { %v3069_v12 = vsub.s32 32, %v3068_v33  ;;  %v3073_v35 = vsub.s32 4294967266, %v3068_v33  ;;  %v2266_v47 = vsel %vm2264_vm7, %v2265_v10, %v9777_v53  ;;  %v3070_v43 = vshll.u32 %v10189_v28, %v3068_v33  ;;  %v12763_v10 = vld [vmem:[#allocation30_spill] sm:$0xff] }
 0x2ac   : > { %v3266_v58 = vadd.s32 536870912, %v3265_v7  ;;  %v2267_v56 = vsel %vm2260_vm13, %v2263_v34, %v2266_v47  ;;  %v3350_v30 = vand.u32 4294901760, %v1852_v29  ;;  %vm3207_vm5 = vcmp.lt.s32.totalorder %v9841_v24, 0 }
 0x2ad   : > { %v3071_v6 = vshrl.u32 %v3053_v21, %v3069_v12  ;;  %v3074_v46 = vadd.s32 127, %v3073_v35  ;;  %v2268_v11 = vsel %vm2257_vm9, nan, %v2267_v56  ;;  %v2050_v36 = vadd.s32 3, %v2046_v18  ;;  %v12765_v35 = vld [vmem:[#allocation32_spill] sm:$0xff] }
 0x2ae   : > { %8438 = vsinq.f32 %v3189_v50  ;;  %v3267_v41 = vshrl.u32 %v3266_v58, 30  ;;  %v3354_v22 = vand.u32 4294901760, %v2268_v11  ;;  %v2054_v55 = vxor.u32 2147483648, %v9596_v2  ;;  %v12766_v58 = vld [vmem:[#allocation15_spill] sm:$0xff] }
 0x2af   : > { %v3072_v32 = vor.u32 %v3071_v6, %v3070_v43  ;;  %v3075_v53 = vshll.u32 %v3074_v46, 23  ;;  %v2051_v62 = vand.u32 3, %v2050_v36  ;;  %v2057_v28 = vxor.u32 2147483648, %v9592_v16  ;;  %v12767_v46 = vld [vmem:[#allocation8_spill] sm:$0xff]  ;;  %v12769_v36 = vld [vmem:[#allocation18_spill] sm:$0xff] }
 0x2b0   : > { %v10260_v38 = vadd.s32 %v10206_v49, %v10230_v9  ;;  %v3268_v21 = vshll.u32 %v3267_v41, 30  ;;  %v10262_v23 = vpack.c.bf16 %v3354_v22, %v3350_v30  ;;  %vm2049_vm15 = vweird.f32 %v12759_v57 }
 0x2b1   : > { %v12760_v27 = vand.u32 2147483647, %v9837_v48  ;;  %v3076_v54 = vor.u32 4788187, %v3075_v53  ;;  %v3291_v3 = vsub.s32 4, %v3267_v41  ;;  %v10271_v13 = vsub.f32 %v1852_v29, %v3350_v30  ;;  %v10273_v45 = vpop.eup %8436 }
 0x2b2   : > { %vm2053_vm9 = vcmp.eq.s32.totalorder %v2051_v62, 0  ;;  %v3079_v49 = vcvt.s32.f32 %v3072_v32  ;;  %v10275_v9 = vsub.s32 %v3265_v7, %v3268_v21  ;;  %7793 = vmatprep.subr.bf16.mxu0 %v10262_v23  ;;  %vm2056_vm2 = vcmp.eq.s32.totalorder %v2051_v62, 2 }
 0x2b3   : > { %vm10267_vm4 = vcmp.le.f32.partialorder %v12760_v27, 0.7853982  ;;  %v2055_v26 = vsel %vm2053_vm9, %v9592_v16, %v2054_v55  ;;  %v3077_v31 = vand.u32 2147483647, %v3076_v54  ;;  %vm2052_vm0 = vcmp.lt.s32.totalorder %v2051_v62, 2 }
 0x2b4   : > { %v2058_v15 = vsel %vm2056_vm2, %v2057_v28, %v9596_v2  ;;  %v2462_v18 = vsel %vm9689_vm1, 0, %v12763_v10  ;;  %v3271_v37 = vsub.s32 0, %v10275_v9  ;;  %v10284_v29 = vsub.f32 %v2268_v11, %v3354_v22  ;;  %v12768_v11 = vld [vmem:[#allocation13_spill] sm:$0xff] }
 0x2b5   : > { %v2059_v33 = vsel %vm2052_vm0, %v2055_v26, %v2058_v15  ;;  %v2466_v7 = vadd.s32 3, %v2462_v18  ;;  %v3080_v34 = vmul.f32 %v3079_v49, %v3077_v31  ;;  %v2470_v16 = vxor.u32 2147483648, %v9800_v61  ;;  %v12771_v31 = vld [vmem:[#allocation11_spill] sm:$0xff] }
 0x2b6   : > { %v2060_v12 = vsel %vm2049_vm15, nan, %v2059_v33  ;;  %v2473_v47 = vxor.u32 2147483648, %v12765_v35  ;;  %v7715_v2 = vmin.u32 %v3271_v37, %v10275_v9  ;;  %v10293_v43 = vsel %vm3207_vm5, %v3291_v3, %v3267_v41  ;;  %v12770_v3 = vld [vmem:[#allocation17_spill] sm:$0xff] }
 0x2b7   : > { %vm2465_vm1 = vweird.f32 %v12766_v58  ;;  %v2467_v56 = vand.u32 3, %v2466_v7  ;;  %v3081_v30 = vxor.u32 2147483648, %v3080_v34  ;;  %v4040_v6 = vand.u32 4294901760, %v2060_v12 }
 0x2b8   : > { %vm1737_vm8 = vweird.f32 %v12767_v46  ;;  %vm1740_vm12 = vcmp.lt.s32.totalorder %v12768_v11, 2  ;;  %v1742_v22 = vxor.u32 2147483648, %v12769_v36  ;;  %v10299_v55 = vpop.eup %8438  ;;  %v3273_v32 = vclz %v7715_v2  ;;  %v12778_v46 = vld [vmem:[#allocation19_spill] sm:$0xff] }
 0x2b9   : > { %vm2469_vm11 = vcmp.eq.s32.totalorder %v2467_v56, 0  ;;  %vm2472_vm14 = vcmp.eq.s32.totalorder %v2467_v56, 2  ;;  %vm1741_vm7 = vcmp.eq.s32.totalorder %v12768_v11, 0  ;;  %v3082_v41 = vsel %vm2999_vm6, %v3081_v30, %v3080_v34  ;;  %v12773_v34 = vld [vmem:[#allocation21_spill] sm:$0xff] }
 0x2ba   : > { %vm2468_vm13 = vcmp.lt.s32.totalorder %v2467_v56, 2  ;;  %v2471_v53 = vsel %vm2469_vm11, %v12765_v35, %v2470_v16  ;;  %v2474_v62 = vsel %vm2472_vm14, %v2473_v47, %v9800_v61  ;;  %v3085_v28 = vsel %vm10267_vm4, %v9837_v48, %v3082_v41  ;;  %v12774_v35 = vld [vmem:[#allocation23_spill] sm:$0xff] }
 0x2bb   : > { %v7716_v21 = vadd.s32 4294967294, %v3273_v32  ;;  %v2475_v57 = vsel %vm2468_vm13, %v2471_v53, %v2474_v62  ;;  %vm1744_vm15 = vcmp.eq.s32.totalorder %v12768_v11, 2  ;;  %v10312_v54 = vsub.f32 %v2060_v12, %v4040_v6  ;;  %v12775_v11 = vld [vmem:[#allocation9_spill] sm:$0xff]  ;;  %v12777_v62 = vld [vmem:[#allocation14_spill] sm:$0xff] }
 0x2bc   : > { %v2476_v27 = vsel %vm2465_vm1, nan, %v2475_v57  ;;  %v1743_v49 = vsel %vm1741_vm7, %v12770_v3, %v1742_v22  ;;  %v1745_v26 = vxor.u32 2147483648, %v12770_v3  ;;  %8440 = vcosq.f32 %v3085_v28 }
 0x2bd   : > { %vm7717_vm6 = vcmp.lt.s32.totalorder %v7716_v21, 0  ;;  %v4044_v61 = vand.u32 4294901760, %v2476_v27  ;;  %vm2153_vm9 = vweird.f32 %v12771_v31  ;;  %8442 = vsinq.f32 %v3085_v28 }
 0x2be   : > { %v3276_v15 = vsel %vm7717_vm6, 0, %v7716_v21  ;;  %v1746_v10 = vsel %vm1744_vm15, %v1745_v26, %v12769_v36  ;;  %v2158_v18 = vxor.u32 2147483648, %v12772_v52  ;;  %vm2157_vm2 = vcmp.eq.s32.totalorder %v12773_v34, 0 }
 0x2bf   : > { %v3277_v37 = vsub.s32 32, %v3276_v15  ;;  %v3281_v33 = vsub.s32 4294967266, %v3276_v15  ;;  %v10319_v7 = vpack.c.bf16 %v4044_v61, %v4040_v6  ;;  %v3278_v12 = vshll.u32 %v10275_v9, %v3276_v15 }
 0x2c0   : > { %v1747_v16 = vsel %vm1740_vm12, %v1743_v49, %v1746_v10  ;;  %vm2156_vm0 = vcmp.lt.s32.totalorder %v12773_v34, 2  ;;  %v2159_v47 = vsel %vm2157_vm2, %v12774_v35, %v2158_v18  ;;  %v2161_v30 = vxor.u32 2147483648, %v12774_v35 }
 0x2c1   : > { %v3279_v2 = vshrl.u32 %v10260_v38, %v3277_v37  ;;  %v3282_v58 = vadd.s32 127, %v3281_v33  ;;  %7841 = vmatprep.subr.bf16.mxu1 %v10319_v7  ;;  %v1748_v56 = vsel %vm1737_vm8, nan, %v1747_v16  ;;  %v10332_v6 = vsub.f32 %v2476_v27, %v4044_v61  ;;  %v12776_v38 = vld [vmem:[#allocation20_spill] sm:$0xff] }
 0x2c2   : > { %vm2160_vm1 = vcmp.eq.s32.totalorder %v12773_v34, 2  ;;  %v3352_v9 = vand.u32 4294901760, %v1748_v56  ;;  %vm1945_vm12 = vweird.f32 %v12775_v11  ;;  %v1950_v41 = vxor.u32 2147483648, %v12776_v38  ;;  %v12782_v33 = vld [vmem:[#allocation12_spill] sm:$0xff]  ;;  %v12783_v34 = vld [vmem:[#allocation26_spill] sm:$0xff] }
 0x2c3   : > { %v3280_v36 = vor.u32 %v3279_v2, %v3278_v12  ;;  %v3283_v22 = vshll.u32 %v3282_v58, 23  ;;  %v2162_v32 = vsel %vm2160_vm1, %v2161_v30, %v12772_v52  ;;  %vm1948_vm11 = vcmp.lt.s32.totalorder %v12777_v62, 2  ;;  %v12785_v58 = vld [vmem:[#allocation25_spill] sm:$0xff] }
 0x2c4   : > { %v2163_v53 = vsel %vm2156_vm0, %v2159_v47, %v2162_v32  ;;  %vm1949_vm8 = vcmp.eq.s32.totalorder %v12777_v62, 0  ;;  %v1953_v28 = vxor.u32 2147483648, %v12778_v46  ;;  %v12779_v21 = vand.u32 2147483647, %v9841_v24  ;;  %v12784_v47 = vld [vmem:[#allocation28_spill] sm:$0xff] }
 0x2c5   : > { %v3284_v27 = vor.u32 4788187, %v3283_v22  ;;  %v2164_v3 = vsel %vm2153_vm9, nan, %v2163_v53  ;;  %v1951_v49 = vsel %vm1949_vm8, %v12778_v46, %v1950_v41  ;;  %vm1952_vm7 = vcmp.eq.s32.totalorder %v12777_v62, 2  ;;  %v12786_v46 = vld [vmem:[#allocation40_spill] sm:$0xff] }
 0x2c6   : > { %vm10343_vm14 = vcmp.le.f32.partialorder %v12779_v21, 0.7853982  ;;  %v3287_v26 = vcvt.s32.f32 %v3280_v36  ;;  %v3356_v61 = vand.u32 4294901760, %v2164_v3  ;;  %v10351_v15 = vsub.f32 %v1748_v56, %v3352_v9  ;;  %v8441_v52 = vpop.eup %8440 }
 0x2c7   : > { %v1954_v10 = vsel %vm1952_vm7, %v1953_v28, %v12776_v38  ;;  %v3285_v18 = vand.u32 2147483647, %v3284_v27  ;;  %vm2361_vm13 = vweird.f32 %v12782_v33  ;;  %v2366_v12 = vxor.u32 2147483648, %v12783_v34  ;;  %v8443_v16 = vpop.eup %8442 }
 0x2c8   : > { %v1955_v37 = vsel %vm1948_vm11, %v1951_v49, %v1954_v10  ;;  %v10356_v31 = vpack.c.bf16 %v3356_v61, %v3352_v9  ;;  %vm2364_vm15 = vcmp.lt.s32.totalorder %v12784_v47, 2  ;;  %vm2365_vm6 = vcmp.eq.s32.totalorder %v12784_v47, 0 }
 0x2c9   : > { %v1956_v35 = vsel %vm1945_vm12, nan, %v1955_v37  ;;  %v3288_v2 = vmul.f32 %v3287_v26, %v3285_v18  ;;  %v2367_v56 = vsel %vm2365_vm6, %v12785_v58, %v2366_v12  ;;  %v2369_v30 = vxor.u32 2147483648, %v12785_v58 }
 0x2ca   : > { %v4042_v36 = vand.u32 4294901760, %v1956_v35  ;;  %7795 = vmatpush1.bf16.msra.mxu0 %v10356_v31  ;;  %v10365_v22 = vsub.f32 %v2164_v3, %v3356_v61  ;;  %vm2368_vm9 = vcmp.eq.s32.totalorder %v12784_v47, 2  ;;  %v2670_v9 = vsel %vm9923_vm10, 0, %v9896_v51  ;;  %v12787_v61 = vld [vmem:[#allocation37_spill] sm:$0xff] }
 0x2cb   : > { %vm2673_vm2 = vweird.f32 %v9580_v42  ;;  %v3289_v11 = vxor.u32 2147483648, %v3288_v2  ;;  %v2370_v32 = vsel %vm2368_vm9, %v2369_v30, %v12783_v34  ;;  %v2674_v38 = vadd.s32 3, %v2670_v9 }
 0x2cc   : > { %v2678_v41 = vxor.u32 2147483648, %v10095_v25  ;;  %v2371_v53 = vsel %vm2364_vm15, %v2367_v56, %v2370_v32  ;;  %v10374_v62 = vsub.f32 %v1956_v35, %v4042_v36  ;;  %v2681_v28 = vxor.u32 2147483648, %v12786_v46 }
 0x2cd   : > { %v3086_v21 = vsel %vm10267_vm4, 0, %v10226_v5  ;;  %v3290_v51 = vsel %vm3207_vm5, %v3289_v11, %v3288_v2  ;;  %v2372_v20 = vsel %vm2361_vm13, nan, %v2371_v53  ;;  %v2675_v27 = vand.u32 3, %v2674_v38 }
 0x2ce   : > { %v3090_v3 = vadd.s32 3, %v3086_v21  ;;  %v3293_v49 = vsel %vm10343_vm14, %v9841_v24, %v3290_v51  ;;  %v4046_v26 = vand.u32 4294901760, %v2372_v20  ;;  %vm3089_vm10 = vweird.f32 %v9837_v48  ;;  %v12791_v21 = vld [vmem:[#allocation31_spill] sm:$0xff] }
 0x2cf   : > { %v2878_v50 = vsel %vm10009_vm3, 0, %v12787_v61  ;;  %8444 = vcosq.f32 %v3293_v49  ;;  %vm2677_vm4 = vcmp.eq.s32.totalorder %v2675_v27, 0  ;;  %v3094_v5 = vxor.u32 2147483648, %v8443_v16  ;;  %v12792_v48 = vld [vmem:[#allocation35_spill] sm:$0xff] }
 0x2d0   : > { %v3097_v18 = vxor.u32 2147483648, %v8441_v52  ;;  %8446 = vsinq.f32 %v3293_v49  ;;  %v10391_v37 = vpack.c.bf16 %v4046_v26, %v4042_v36  ;;  %v2679_v33 = vsel %vm2677_vm4, %v12786_v46, %v2678_v41  ;;  %v12789_v41 = vld [vmem:[#allocation29_spill] sm:$0xff]  ;;  %v12790_v46 = vld [vmem:[#allocation16_spill] sm:$0xff] }
 0x2d1   : > { %vm2680_vm5 = vcmp.eq.s32.totalorder %v2675_v27, 2  ;;  %vm2676_vm0 = vcmp.lt.s32.totalorder %v2675_v27, 2  ;;  %v3091_v12 = vand.u32 3, %v3090_v3  ;;  %v2882_v35 = vadd.s32 3, %v2878_v50  ;;  %v12793_v50 = vld [vmem:[#allocation34_spill] sm:$0xff] }
 0x2d2   : > { %v2682_v34 = vsel %vm2680_vm5, %v2681_v28, %v10095_v25  ;;  %7843 = vmatpush1.bf16.msra.mxu1 %v10391_v37  ;;  %v2886_v2 = vxor.u32 2147483648, %v10106_v14  ;;  %v2889_v58 = vxor.u32 2147483648, %v10103_v0  ;;  %v3294_v56 = vsel %vm10343_vm14, 0, %v10293_v43 }
 0x2d3   : > { %v2683_v47 = vsel %vm2676_vm0, %v2679_v33, %v2682_v34  ;;  %vm3092_vm3 = vcmp.lt.s32.totalorder %v3091_v12, 2  ;;  %vm3093_vm1 = vcmp.eq.s32.totalorder %v3091_v12, 0  ;;  %vm3096_vm12 = vcmp.eq.s32.totalorder %v3091_v12, 2  ;;  %v12794_v34 = vld [vmem:[#allocation41_spill] sm:$0xff] }
 0x2d4   : > { %v2684_v30 = vsel %vm2673_vm2, nan, %v2683_v47  ;;  %v3095_v25 = vsel %vm3093_vm1, %v8441_v52, %v3094_v5  ;;  %v3098_v36 = vsel %vm3096_vm12, %v3097_v18, %v8443_v16  ;;  %v2883_v11 = vand.u32 3, %v2882_v35 }
 0x2d5   : > { %v3358_v9 = vand.u32 4294901760, %v2684_v30  ;;  %v10403_v32 = vsub.f32 %v2372_v20, %v4046_v26  ;;  %v3099_v38 = vsel %vm3092_vm3, %v3095_v25, %v3098_v36  ;;  %vm2881_vm11 = vweird.f32 %v12789_v41 }
 0x2d6   : > { %v3298_v53 = vadd.s32 3, %v3294_v56  ;;  %v3100_v57 = vsel %vm3089_vm10, nan, %v3099_v38  ;;  %vm2884_vm8 = vcmp.lt.s32.totalorder %v2883_v11, 2  ;;  %vm2885_vm14 = vcmp.eq.s32.totalorder %v2883_v11, 0 }
 0x2d7   : > { %v10408_v43 = vsub.f32 %v2684_v30, %v3358_v9  ;;  %vm3297_vm7 = vweird.f32 %v9841_v24  ;;  %v3362_v42 = vand.u32 4294901760, %v3100_v57  ;;  %v2887_v52 = vsel %vm2885_vm14, %v10103_v0, %v2886_v2 }
 0x2d8   : > { %vm2888_vm13 = vcmp.eq.s32.totalorder %v2883_v11, 2  ;;  %v3299_v16 = vand.u32 3, %v3298_v53  ;;  %vm2569_vm15 = vweird.f32 %v12790_v46  ;;  %vm2572_vm6 = vcmp.lt.s32.totalorder %v12791_v21, 2  ;;  %v12796_v53 = vld [vmem:[#allocation33_spill] sm:$0xff] }
 0x2d9   : > { %v2890_v28 = vsel %vm2888_vm13, %v2889_v58, %v10106_v14  ;;  %vm2573_vm9 = vcmp.eq.s32.totalorder %v12791_v21, 0  ;;  %v2574_v51 = vxor.u32 2147483648, %v12792_v48  ;;  %v8445_v20 = vpop.eup %8444  ;;  %v10417_v27 = vpack.c.bf16 %v3362_v42, %v3358_v9  ;;  %v12795_v9 = vld [vmem:[#allocation22_spill] sm:$0xff] }
 0x2da   : > { %v10419_v3 = vsub.f32 %v3100_v57, %v3362_v42  ;;  %v2891_v49 = vsel %vm2884_vm8, %v2887_v52, %v2890_v28  ;;  %vm3300_vm2 = vcmp.lt.s32.totalorder %v3299_v16, 2  ;;  %v8447_v0 = vpop.eup %8446  ;;  %vm3301_vm10 = vcmp.eq.s32.totalorder %v3299_v16, 0  ;;  %v12797_v42 = vld [vmem:[#allocation38_spill] sm:$0xff] }
 0x2db   : > { %v2892_v26 = vsel %vm2881_vm11, nan, %v2891_v49  ;;  %vm3304_vm4 = vcmp.eq.s32.totalorder %v3299_v16, 2  ;;  %v3305_v14 = vxor.u32 2147483648, %v8445_v20  ;;  %7797 = vmatprep.subr.bf16.mxu0 %v10417_v27  ;;  %v3302_v61 = vxor.u32 2147483648, %v8447_v0 }
 0x2dc   : > { %v4048_v10 = vand.u32 4294901760, %v2892_v26  ;;  %v2575_v5 = vsel %vm2573_vm9, %v12793_v50, %v2574_v51  ;;  %vm2576_vm5 = vcmp.eq.s32.totalorder %v12791_v21, 2  ;;  %v2577_v33 = vxor.u32 2147483648, %v12793_v50  ;;  %v12798_v21 = vld [vmem:[#allocation36_spill] sm:$0xff] }
 0x2dd   : > { %v3306_v18 = vsel %vm3304_vm4, %v3305_v14, %v8447_v0  ;;  %vm2985_vm0 = vweird.f32 %v9767_v60  ;;  %vm2988_vm3 = vcmp.lt.s32.totalorder %v12794_v34, 2  ;;  %v3303_v12 = vsel %vm3301_vm10, %v8445_v20, %v3302_v61 }
 0x2de   : > { %v10429_v35 = vsub.f32 %v2892_v26, %v4048_v10  ;;  %vm2989_vm1 = vcmp.eq.s32.totalorder %v12794_v34, 0  ;;  %v2990_v47 = vxor.u32 2147483648, %v10175_v63  ;;  %v3307_v2 = vsel %vm3300_vm2, %v3303_v12, %v3306_v18 }
 0x2df   : > { %v2578_v58 = vsel %vm2576_vm5, %v2577_v33, %v12792_v48  ;;  %vm2992_vm12 = vcmp.eq.s32.totalorder %v12794_v34, 2  ;;  %v2993_v56 = vxor.u32 2147483648, %v10170_v44  ;;  %v3308_v30 = vsel %vm3297_vm7, nan, %v3307_v2  ;;  %v3309_v34 = vld [vmem:[%s12544_s3] sm:$0xff] }
 0x2e0   : > { %v2579_v25 = vsel %vm2572_vm6, %v2575_v5, %v2578_v58  ;;  %v2991_v36 = vsel %vm2989_vm1, %v10170_v44, %v2990_v47  ;;  %vm2777_vm11 = vweird.f32 %v12795_v9  ;;  %v4052_v11 = vand.u32 4294901760, %v3308_v30 }
 0x2e1   : > { %v2580_v38 = vsel %vm2569_vm15, nan, %v2579_v25  ;;  %v2994_v41 = vsel %vm2992_vm12, %v2993_v56, %v10175_v63  ;;  %vm2780_vm8 = vcmp.lt.s32.totalorder %v12796_v53, 2  ;;  %vm2781_vm14 = vcmp.eq.s32.totalorder %v12796_v53, 0 }
 0x2e2   : > { %v2995_v57 = vsel %vm2988_vm3, %v2991_v36, %v2994_v41  ;;  %v3360_v24 = vand.u32 4294901760, %v2580_v38  ;;  %v2782_v52 = vxor.u32 2147483648, %v12797_v42  ;;  %v10451_v16 = vpack.c.bf16 %v4052_v11, %v4048_v10 }
 0x2e3   : > { %v10453_v44 = vsub.f32 %v3308_v30, %v4052_v11  ;;  %v2996_v46 = vsel %vm2985_vm0, nan, %v2995_v57  ;;  %vm2784_vm7 = vcmp.eq.s32.totalorder %v12796_v53, 2  ;;  %v2785_v51 = vxor.u32 2147483648, %v12798_v21 }
 0x2e4   : > { %v3364_v63 = vand.u32 4294901760, %v2996_v46  ;;  %v10458_v28 = vsub.f32 %v2580_v38, %v3360_v24  ;;  %v2783_v48 = vsel %vm2781_vm14, %v12798_v21, %v2782_v52  ;;  %7845 = vmatprep.subr.bf16.mxu1 %v10451_v16  ;;  %vm3193_vm13 = vweird.f32 %v9833_v17  ;;  %v3310_v17 = vld [vmem:[%s12544_s3 + $0x8] sm:$0xff] }
 0x2e5   : > { %vm3196_vm15 = vcmp.lt.s32.totalorder %v10140_v39, 2  ;;  %vm3197_vm6 = vcmp.eq.s32.totalorder %v10140_v39, 0  ;;  %v3198_v60 = vxor.u32 2147483648, %v10299_v55  ;;  %v2786_v0 = vsel %vm2784_vm7, %v2785_v51, %v12797_v42 }
 0x2e6   : > { %v10467_v20 = vpack.c.bf16 %v3364_v63, %v3360_v24  ;;  %v10469_v49 = vsub.f32 %v2996_v46, %v3364_v63  ;;  %vm3200_vm9 = vcmp.eq.s32.totalorder %v10140_v39, 2  ;;  %v2787_v26 = vsel %vm2780_vm8, %v2783_v48, %v2786_v0 }
 0x2e7   : > { %v3199_v14 = vsel %vm3197_vm6, %v10273_v45, %v3198_v60  ;;  %v3201_v61 = vxor.u32 2147483648, %v10273_v45  ;;  %v3469_v10 = vand.u32 4294901760, %v10271_v13  ;;  %v2788_v50 = vsel %vm2777_vm11, nan, %v2787_v26 }
 0x2e8   : > { %7799 = vmatpush1.bf16.msra.mxu0 %v10467_v20  ;;  %v3481_v5 = vand.u32 4294901760, %v10284_v29  ;;  %v4159_v18 = vand.u32 4294901760, %v10312_v54  ;;  %v4171_v33 = vand.u32 4294901760, %v10332_v6  ;;  %v4050_v45 = vand.u32 4294901760, %v2788_v50 }
 0x2e9   : > { %v3202_v12 = vsel %vm3200_vm9, %v3201_v61, %v10299_v55  ;;  %v3470_v47 = vsub.f32 %v10271_v13, %v3469_v10  ;;  %vm3337_vm2 = vcmask 261120   ;;  %v3475_v57 = vand.u32 4294901760, %v10351_v15 }
 0x2ea   : > { %v3203_v2 = vsel %vm3196_vm15, %v3199_v14, %v3202_v12  ;;  %v3482_v58 = vsub.f32 %v10284_v29, %v3481_v5  ;;  %v4160_v56 = vsub.f32 %v10312_v54, %v4159_v18  ;;  %v4172_v55 = vsub.f32 %v10332_v6, %v4171_v33 }
 0x2eb   : > { %v3204_v30 = vsel %vm3193_vm13, nan, %v3203_v2  ;;  %v10504_v25 = vsub.f32 %v2788_v50, %v4050_v45  ;;  %v3471_v36 = vand.u32 4294901760, %v3470_v47  ;;  %v3339_v39 = vsel %vm3337_vm2, %v3309_v34, 0 }
 0x2ec   : > { %v4054_v9 = vand.u32 4294901760, %v3204_v30  ;;  %v3483_v11 = vand.u32 4294901760, %v3482_v58  ;;  %v4161_v38 = vand.u32 4294901760, %v4160_v56  ;;  %v4173_v41 = vand.u32 4294901760, %v4172_v55 }
 0x2ed   : > { %v10507_v53 = vand.u32 4294901760, %v3339_v39  ;;  %v3487_v24 = vand.u32 4294901760, %v10365_v22  ;;  %v4165_v42 = vand.u32 4294901760, %v10374_v62  ;;  %v3476_v51 = vsub.f32 %v10351_v15, %v3475_v57 }
 0x2ee   : > { %v10515_v52 = vpack.c.bf16 %v4054_v9, %v4050_v45  ;;  %v10517_v46 = vsub.f32 %v3204_v30, %v4054_v9  ;;  %v7800_v63 = vpack.c.bf16 %v3483_v11, %v3471_v36  ;;  %v7848_v21 = vpack.c.bf16 %v4173_v41, %v4161_v38 }
 0x2ef   : > { %v10520_v48 = vsub.f32 %v3339_v39, %v10507_v53  ;;  %v3488_v60 = vsub.f32 %v10365_v22, %v3487_v24  ;;  %v4166_v0 = vsub.f32 %v10374_v62, %v4165_v42  ;;  %v4177_v26 = vand.u32 4294901760, %v10403_v32 }
 0x2f0   : > { %7847 = vmatpush1.bf16.msra.mxu1 %v10515_v52  ;;  %7801 = vmatprep.subr.bf16.mxu0 %v7800_v63  ;;  %v3342_v14 = vsel %vm3337_vm2, %v3310_v17, 0  ;;  %v12619_v61 = vand.u32 4294901760, %v10408_v43  ;;  %v12618_v50 = vand.u32 4294901760, %v10419_v3  ;;  %v3477_v12 = vand.u32 4294901760, %v3476_v51 }
 0x2f1   : > { %7849 = vmatprep.subr.bf16.mxu1 %v7848_v21  ;;  %v10537_v34 = vand.u32 4294901760, %v10520_v48  ;;  %v3489_v45 = vand.u32 4294901760, %v3488_v60  ;;  %v4167_v47 = vand.u32 4294901760, %v4166_v0  ;;  %v4178_v2 = vsub.f32 %v10403_v32, %v4177_v26 }
 0x2f2   : > { %v10542_v58 = vand.u32 4294901760, %v3342_v14  ;;  %v3494_v56 = vsub.f32 %v10408_v43, %v12619_v61  ;;  %v3506_v55 = vsub.f32 %v10419_v3, %v12618_v50  ;;  %v12617_v39 = vand.u32 4294901760, %v10429_v35 }
 0x2f3   : > { %v3426_v30 = vsub.f32 %v10520_v48, %v10537_v34  ;;  %v7802_v36 = vpack.c.bf16 %v3489_v45, %v3477_v12  ;;  %v12615_v9 = vand.u32 4294901760, %v10453_v44  ;;  %v4179_v11 = vand.u32 4294901760, %v4178_v2 }
 0x2f4   : > { %v10555_v38 = vsub.f32 %v3342_v14, %v10542_v58  ;;  %v3495_v41 = vand.u32 4294901760, %v3494_v56  ;;  %v3507_v17 = vand.u32 4294901760, %v3506_v55  ;;  %v4184_v21 = vsub.f32 %v10429_v35, %v12617_v39 }
 0x2f5   : > { %v3427_v63 = vand.u32 4294901760, %v3426_v30  ;;  %v4196_v51 = vsub.f32 %v10453_v44, %v12615_v9  ;;  %v12614_v60 = vand.u32 4294901760, %v10458_v28  ;;  %v7850_v0 = vpack.c.bf16 %v4179_v11, %v4167_v47  ;;  %v3311_v47 = vld [vmem:[%s12544_s3 + $0x10] sm:$0xff] }
 0x2f6   : > { %v10565_v12 = vand.u32 4294901760, %v10555_v38  ;;  %v7804_v45 = vpack.c.bf16 %v3507_v17, %v3495_v41  ;;  %v12616_v14 = vand.u32 4294901760, %v10469_v49  ;;  %v4185_v2 = vand.u32 4294901760, %v4184_v21 }
 0x2f7   : > { %3428 = vmatmul.mubr.f32.vlgmr.msra.gmra.mrb[8].mxu0 %v3427_v63  ;;  %4118 = vmatmul.mubr.f32.vlgmr.msra.gmra.mrb[8].mxu1 %v3427_v63  ;;  %v4197_v56 = vand.u32 4294901760, %v4196_v51  ;;  %v3500_v55 = vsub.f32 %v10458_v28, %v12614_v60  ;;  %v12620_v30 = vand.u32 4294901760, %v10504_v25  ;;  %v4201_v17 = vand.u32 4294901760, %v10517_v46  ;;  %v3312_v63 = vld [vmem:[%s12544_s3 + $0x18] sm:$0xff] }
 0x2f8   : > { %7803 = vmatpush1.bf16.msra.mxu0 %v7802_v36  ;;  %7851 = vmatpush1.bf16.msra.mxu1 %v7850_v0  ;;  %v3437_v11 = vsub.f32 %v10555_v38, %v10565_v12  ;;  %v3512_v41 = vsub.f32 %v10469_v49, %v12616_v14  ;;  %v12799_v21 = vmov 0.0   ;;  %v3345_v39 = vsel %vm3337_vm2, %v3311_v47, 0 }
 0x2f9   : > { %3433 = vmatprep.mubr.f32.mxu0 %v12799_v21  ;;  %4123 = vmatprep.mubr.f32.mxu1 %v12799_v21  ;;  %v7852_v51 = vpack.c.bf16 %v4197_v56, %v4185_v2  ;;  %v3501_v36 = vand.u32 4294901760, %v3500_v55  ;;  %v4190_v0 = vsub.f32 %v10504_v25, %v12620_v30  ;;  %v4202_v14 = vsub.f32 %v10517_v46, %v4201_v17 }
 0x2fa   : > { %v3438_v60 = vand.u32 4294901760, %v3437_v11  ;;  %7805 = vmatprep.subr.bf16.mxu0 %v7804_v45  ;;  %v3513_v9 = vand.u32 4294901760, %v3512_v41  ;;  %v10593_v50 = vand.u32 4294901760, %v3345_v39  ;;  %v3348_v61 = vsel %vm3337_vm2, %v3312_v63, 0 }
 0x2fb   : > { %7853 = vmatprep.subr.bf16.mxu1 %v7852_v51  ;;  %v4191_v56 = vand.u32 4294901760, %v4190_v0  ;;  %v4203_v55 = vand.u32 4294901760, %v4202_v14  ;;  %v10596_v30 = vand.u32 4294901760, %v3348_v61  ;;  %v7808_v45 = vpack.c.bf16 %v10284_v29, %v10271_v13 }
 0x2fc   : > { %3439 = vmatmul.mubr.f32.gmra.mrb[10].mxu0 %v3438_v60  ;;  %4129 = vmatmul.mubr.f32.gmra.mrb[10].mxu1 %v3438_v60  ;;  %v7806_v2 = vpack.c.bf16 %v3513_v9, %v3501_v36  ;;  %v10603_v47 = vsub.f32 %v3345_v39, %v10593_v50  ;;  %v7856_v9 = vpack.c.bf16 %v10332_v6, %v10312_v54  ;;  %v12800_v54 = vand.u32 4294901760, %v10408_v43 }
 0x2fd   : > { %3444 = vmatprep.mubr.f32.mxu0 %v12799_v21  ;;  %4134 = vmatprep.mubr.f32.mxu1 %v12799_v21  ;;  %v7854_v11 = vpack.c.bf16 %v4203_v55, %v4191_v56  ;;  %v10606_v41 = vsub.f32 %v3348_v61, %v10596_v30  ;;  %v7810_v36 = vpack.c.bf16 %v10365_v22, %v10351_v15  ;;  %v12801_v6 = vand.u32 4294901760, %v10419_v3 }
 0x2fe   : > { %7807 = vmatpush1.bf16.msra.mxu0 %v7806_v2  ;;  %v10611_v60 = vand.u32 4294901760, %v10603_v47  ;;  %v7858_v0 = vpack.c.bf16 %v10403_v32, %v10374_v62  ;;  %v7812_v2 = vpack.c.bf16 %v10419_v3, %v10408_v43  ;;  %v7860_v56 = vpack.c.bf16 %v10453_v44, %v10429_v35 }
 0x2ff   : > { %7809 = vmatprep.subr.bf16.mxu0 %v7808_v45  ;;  %7855 = vmatpush1.bf16.msra.mxu1 %v7854_v11  ;;  %v10614_v14 = vand.u32 4294901760, %v10606_v41  ;;  %v7814_v55 = vpack.c.bf16 %v10469_v49, %v10458_v28  ;;  %v7862_v45 = vpack.c.bf16 %v10517_v46, %v10504_v25  ;;  %v7872_v11 = vpack.c.bf16 %v4171_v33, %v4159_v18 }
 0x300   : > { %7857 = vmatprep.subr.bf16.mxu1 %v7856_v9  ;;  %v3448_v39 = vsub.f32 %v10603_v47, %v10611_v60  ;;  %v7826_v13 = vpack.c.bf16 %v3487_v24, %v3475_v57  ;;  %v7874_v29 = vpack.c.bf16 %v4177_v26, %v4165_v42  ;;  %v12803_v15 = vand.u32 4294901760, %v10453_v44 }
 0x301   : > { %v3459_v63 = vsub.f32 %v10606_v41, %v10614_v14  ;;  %v12804_v62 = vand.u32 4294901760, %v10458_v28  ;;  %v12805_v32 = vand.u32 4294901760, %v10469_v49  ;;  %v12806_v3 = vand.u32 4294901760, %v10504_v25 }
 0x302   : > { %v3449_v61 = vand.u32 4294901760, %v3448_v39 }
 0x303   : > { %v3460_v51 = vand.u32 4294901760, %v3459_v63  ;;  %v7830_v43 = vpack.c.bf16 %v12805_v32, %v12804_v62 }
 0x304   : > { %3450 = vmatmul.mubr.f32.gmra.mrb[12].mxu0 %v3449_v61  ;;  %4140 = vmatmul.mubr.f32.gmra.mrb[12].mxu1 %v3449_v61 }
 0x305   : > { %3455 = vmatprep.mubr.f32.mxu0 %v12799_v21  ;;  %4145 = vmatprep.mubr.f32.mxu1 %v12799_v21 }
 0x308   : > { %3461 = vmatmul.mubr.f32.gmra.mrb[14].mxu0 %v3460_v51  ;;  %4151 = vmatmul.mubr.f32.gmra.mrb[14].mxu1 %v3460_v51 }
 0x309   : > { %3571 = vmatprep.mubr.f32.mxu0 %v12799_v21  ;;  %4261 = vmatprep.mubr.f32.mxu1 %v12799_v21 }
 0x30c   : > { %3573 = vmatmul.mubr.f32.vlgmr.msra.gmra.mrb[8].mxu0 %v10507_v53  ;;  %4263 = vmatmul.mubr.f32.vlgmr.msra.gmra.mrb[8].mxu1 %v10507_v53 }
 0x30d   : > { %7811 = vmatpush1.bf16.msra.mxu0 %v7810_v36  ;;  %7859 = vmatpush1.bf16.msra.mxu1 %v7858_v0 }
 0x30e   : > { %7813 = vmatprep.subr.bf16.mxu0 %v7812_v2  ;;  %7861 = vmatprep.subr.bf16.mxu1 %v7860_v56 }
 0x30f   : > { %3578 = vmatprep.mubr.f32.mxu0 %v12799_v21  ;;  %4268 = vmatprep.mubr.f32.mxu1 %v12799_v21 }
 0x310   : > { %3580 = vmatmul.mubr.f32.gmra.mrb[10].mxu0 %v10542_v58  ;;  %4270 = vmatmul.mubr.f32.gmra.mrb[10].mxu1 %v10542_v58 }
 0x311   : > { %7815 = vmatpush1.bf16.msra.mxu0 %v7814_v55  ;;  %7863 = vmatpush1.bf16.msra.mxu1 %v7862_v45 }
 0x312   : > { %7817 = vmatprep.subr.bf16.mxu0 %v10262_v23  ;;  %7865 = vmatprep.subr.bf16.mxu1 %v10319_v7 }
 0x313   : > { %3585 = vmatprep.mubr.f32.mxu0 %v12799_v21  ;;  %4275 = vmatprep.mubr.f32.mxu1 %v12799_v21 }
 0x314   : > { %3587 = vmatmul.mubr.f32.gmra.mrb[12].mxu0 %v10593_v50  ;;  %4277 = vmatmul.mubr.f32.gmra.mrb[12].mxu1 %v10593_v50 }
 0x315   : > { %3592 = vmatprep.mubr.f32.mxu0 %v12799_v21  ;;  %4282 = vmatprep.mubr.f32.mxu1 %v12799_v21 }
 0x318   : > { %3594 = vmatmul.mubr.f32.gmra.mrb[14].mxu0 %v10596_v30  ;;  %4284 = vmatmul.mubr.f32.gmra.mrb[14].mxu1 %v10596_v30 }
 0x319   : > { %3680 = vmatprep.mubr.f32.mxu0 %v12799_v21  ;;  %4370 = vmatprep.mubr.f32.mxu1 %v12799_v21 }
 0x31c   : > { %3683 = vmatmul.mubr.f32.vlgmr.msra.gmra.mrb[8].mxu0 %v10520_v48  ;;  %4373 = vmatmul.mubr.f32.vlgmr.msra.gmra.mrb[8].mxu1 %v10520_v48  ;;  %v7824_v48 = vpack.c.bf16 %v3481_v5, %v3469_v10  ;;  %v7828_v10 = vpack.c.bf16 %v12801_v6, %v12800_v54  ;;  %v12802_v5 = vand.u32 4294901760, %v10429_v35  ;;  %v7878_v35 = vpack.c.bf16 %v4201_v17, %v12806_v3 }
 0x31d   : > { %7819 = vmatpush1.bf16.msra.mxu0 %v10356_v31  ;;  %7867 = vmatpush1.bf16.msra.mxu1 %v10391_v37 }
 0x31e   : > { %7821 = vmatprep.subr.bf16.mxu0 %v10417_v27  ;;  %7869 = vmatprep.subr.bf16.mxu1 %v10451_v16  ;;  %v7876_v22 = vpack.c.bf16 %v12803_v15, %v12802_v5 }
 0x31f   : > { %3688 = vmatprep.mubr.f32.mxu0 %v12799_v21  ;;  %4378 = vmatprep.mubr.f32.mxu1 %v12799_v21 }
 0x320   : > { %3691 = vmatmul.mubr.f32.gmra.mrb[10].mxu0 %v10555_v38  ;;  %4381 = vmatmul.mubr.f32.gmra.mrb[10].mxu1 %v10555_v38 }
 0x321   : > { %7823 = vmatpush1.bf16.msra.mxu0 %v10467_v20  ;;  %7871 = vmatpush1.bf16.msra.mxu1 %v10515_v52 }
 0x322   : > { %7825 = vmatprep.subr.bf16.mxu0 %v7824_v48  ;;  %7873 = vmatprep.subr.bf16.mxu1 %v7872_v11 }
 0x323   : > { %3696 = vmatprep.mubr.f32.mxu0 %v12799_v21  ;;  %4386 = vmatprep.mubr.f32.mxu1 %v12799_v21 }
 0x324   : > { %3699 = vmatmul.mubr.f32.gmra.mrb[12].mxu0 %v10603_v47  ;;  %4389 = vmatmul.mubr.f32.gmra.mrb[12].mxu1 %v10603_v47 }
 0x325   : > { %3704 = vmatprep.mubr.f32.mxu0 %v12799_v21  ;;  %4394 = vmatprep.mubr.f32.mxu1 %v12799_v21 }
 0x328   : > { %3707 = vmatmul.mubr.f32.gmra.mrb[14].mxu0 %v10606_v41  ;;  %4397 = vmatmul.mubr.f32.gmra.mrb[14].mxu1 %v10606_v41 }
 0x329   : > { %3785 = vmatprep.mubr.f32.mxu0 %v12799_v21  ;;  %4475 = vmatprep.mubr.f32.mxu1 %v12799_v21 }
 0x32c   : > { %3789 = vmatmul.mubr.f32.vlgmr.msra.gmra.mrb[8].mxu0 %v10537_v34  ;;  %4479 = vmatmul.mubr.f32.vlgmr.msra.gmra.mrb[8].mxu1 %v10537_v34 }
 0x32d   : > { %7827 = vmatpush1.bf16.msra.mxu0 %v7826_v13  ;;  %7875 = vmatpush1.bf16.msra.mxu1 %v7874_v29 }
 0x32e   : > { %7829 = vmatprep.subr.bf16.mxu0 %v7828_v10  ;;  %7877 = vmatprep.subr.bf16.mxu1 %v7876_v22 }
 0x32f   : > { %3794 = vmatprep.mubr.f32.mxu0 %v12799_v21  ;;  %4484 = vmatprep.mubr.f32.mxu1 %v12799_v21 }
 0x330   : > { %3798 = vmatmul.mubr.f32.gmra.mrb[10].mxu0 %v10565_v12  ;;  %4488 = vmatmul.mubr.f32.gmra.mrb[10].mxu1 %v10565_v12 }
 0x331   : > { %7831 = vmatpush1.bf16.msra.mxu0 %v7830_v43  ;;  %7879 = vmatpush1.bf16.msra.mxu1 %v7878_v35 }
 0x332   : > { %7833 = vmatprep.subr.bf16.mxu0 %v10262_v23  ;;  %7881 = vmatprep.subr.bf16.mxu1 %v10319_v7  ;;  %v3320_v23 = vpop.permute.xlu0 %3319 }
 0x333   : > { %3803 = vmatprep.mubr.f32.mxu0 %v12799_v21  ;;  %4493 = vmatprep.mubr.f32.mxu1 %v12799_v21 }
 0x334   : > { %3807 = vmatmul.mubr.f32.gmra.mrb[12].mxu0 %v10611_v60  ;;  %4497 = vmatmul.mubr.f32.gmra.mrb[12].mxu1 %v10611_v60 }
 0x335   : > { %3812 = vmatprep.mubr.f32.mxu0 %v12799_v21  ;;  %4502 = vmatprep.mubr.f32.mxu1 %v12799_v21 }
 0x338   : > { %3816 = vmatmul.mubr.f32.gmra.mrb[14].mxu0 %v10614_v14  ;;  %4506 = vmatmul.mubr.f32.gmra.mrb[14].mxu1 %v10614_v14 }
 0x339   : > { %3910 = vmatprep.mubr.f32.mxu0 %v12799_v21  ;;  %4600 = vmatprep.mubr.f32.mxu1 %v12799_v21 }
 0x33c   : > { %3912 = vmatmul.mubr.f32.vlgmr.msra.gmra.mrb[8].mxu0 %v10507_v53  ;;  %4602 = vmatmul.mubr.f32.vlgmr.msra.gmra.mrb[8].mxu1 %v10507_v53 }
 0x33d   : > { %7835 = vmatpush1.bf16.msra.mxu0 %v10356_v31  ;;  %7883 = vmatpush1.bf16.msra.mxu1 %v10391_v37 }
 0x33e   : > { %7837 = vmatprep.subr.bf16.mxu0 %v10417_v27  ;;  %7885 = vmatprep.subr.bf16.mxu1 %v10451_v16 }
 0x33f   : > { %3917 = vmatprep.mubr.f32.mxu0 %v12799_v21  ;;  %4607 = vmatprep.mubr.f32.mxu1 %v12799_v21 }
 0x340   : > { %3919 = vmatmul.mubr.f32.gmra.mrb[10].mxu0 %v10542_v58  ;;  %4609 = vmatmul.mubr.f32.gmra.mrb[10].mxu1 %v10542_v58 }
 0x341   : > { %7839 = vmatpush1.bf16.msra.mxu0 %v10467_v20  ;;  %7887 = vmatpush1.bf16.msra.mxu1 %v10515_v52 }
 0x342   : > { %3924 = vmatprep.mubr.f32.mxu0 %v12799_v21  ;;  %4614 = vmatprep.mubr.f32.mxu1 %v12799_v21 }
 0x344   : > { %3926 = vmatmul.mubr.f32.gmra.mrb[12].mxu0 %v10593_v50  ;;  %4616 = vmatmul.mubr.f32.gmra.mrb[12].mxu1 %v10593_v50 }
 0x345   : > { %3931 = vmatprep.mubr.f32.mxu0 %v12799_v21  ;;  %4621 = vmatprep.mubr.f32.mxu1 %v12799_v21 }
 0x348   : > { %3933 = vmatmul.mubr.f32.gmra.mrb[14].mxu0 %v10596_v30  ;;  %4623 = vmatmul.mubr.f32.gmra.mrb[14].mxu1 %v10596_v30 }
 0x349   : > { %4011 = vmatprep.mubr.f32.mxu0 %v12799_v21  ;;  %4701 = vmatprep.mubr.f32.mxu1 %v12799_v21 }
 0x34c   : > { %4013 = vmatmul.mubr.f32.vlgmr.msra.gmra.mrb[8].mxu0 %v10507_v53  ;;  %4703 = vmatmul.mubr.f32.vlgmr.msra.gmra.mrb[8].mxu1 %v10507_v53 }
 0x34d   : > { %4018 = vmatprep.mubr.f32.mxu0 %v12799_v21  ;;  %4708 = vmatprep.mubr.f32.mxu1 %v12799_v21 }
 0x350   : > { %4020 = vmatmul.mubr.f32.gmra.mrb[10].mxu0 %v10542_v58  ;;  %4710 = vmatmul.mubr.f32.gmra.mrb[10].mxu1 %v10542_v58 }
 0x351   : > { %4025 = vmatprep.mubr.f32.mxu0 %v12799_v21  ;;  %4715 = vmatprep.mubr.f32.mxu1 %v12799_v21 }
 0x354   : > { %4027 = vmatmul.mubr.f32.gmra.mrb[12].mxu0 %v10593_v50  ;;  %4717 = vmatmul.mubr.f32.gmra.mrb[12].mxu1 %v10593_v50 }
 0x355   : > { %4032 = vmatprep.mubr.f32.mxu0 %v12799_v21  ;;  %4722 = vmatprep.mubr.f32.mxu1 %v12799_v21 }
 0x358   : > { %4034 = vmatmul.mubr.f32.gmra.mrb[14].mxu0 %v10596_v30  ;;  %4724 = vmatmul.mubr.f32.gmra.mrb[14].mxu1 %v10596_v30 }
 0x359   : > { %6476 = vmatprep.mubr.f32.mxu0 %v12799_v21  ;;  %7019 = vmatprep.mubr.f32.mxu1 %v12799_v21 }
 0x41f   : > { %v4014_v7 = vpop.f32.mrb[8].mxu0  ;;  %v4704_v31 = vpop.f32.mrb[8].mxu1 }
 0x420   : > { %v10764_v37 = vadd.f32 %v4014_v7, %v3320_v23  ;;  %v10766_v27 = vadd.f32 %v4704_v31, %v3320_v23  ;;  %v4016_v16 = vpop.f32.mrb[9].mxu0  ;;  %v4706_v44 = vpop.f32.mrb[9].mxu1 }
 0x421   : > { %v10768_v28 = vadd.f32 %v4016_v16, %v3320_v23  ;;  %v10787_v9 = vadd.f32 %v4706_v44, %v3320_v23 }
 0x422   : > { %12807 = vst [vmem:[#allocation10_spill] sm:$0xff] %v10764_v37  ;;  %12808 = vst [vmem:[#allocation30_spill] sm:$0xff] %v10766_v27  ;;  %v4730_v20 = vand.u32 2147483647, %v10764_v37  ;;  %v4733_v49 = vand.u32 2139095040, %v10764_v37  ;;  %v4941_v33 = vand.u32 2139095040, %v10766_v27 }
 0x423   : > { %v4938_v18 = vand.u32 2147483647, %v10766_v27  ;;  %v10774_v25 = vpop.f32.mrb[10].mxu0  ;;  %v4837_v57 = vand.u32 2139095040, %v10768_v28  ;;  %v10781_v50 = vpop.f32.mrb[10].mxu1  ;;  %12809 = vst [vmem:[#allocation27_spill] sm:$0xff] %v10787_v9 }
 0x424   : > { %v4734_v53 = vshrl.u32 %v4733_v49, 23  ;;  %v4737_v24 = vand.u32 8388607, %v4730_v20  ;;  %v4942_v42 = vshrl.u32 %v4941_v33, 23  ;;  %v10783_v12 = vpop.f32.mrb[11].mxu0  ;;  %v10785_v30 = vpop.f32.mrb[11].mxu1 }
 0x425   : > { %v4945_v52 = vand.u32 8388607, %v4938_v18  ;;  %v4838_v26 = vshrl.u32 %v4837_v57, 23  ;;  %v4834_v0 = vand.u32 2147483647, %v10768_v28  ;;  %v5045_v2 = vand.u32 2139095040, %v10787_v9 }
 0x426   : > { %v7718_v46 = vadd.s32 4294967169, %v4734_v53  ;;  %v7726_v34 = vadd.s32 4294967169, %v4942_v42  ;;  %v4738_v17 = vor.u32 8388608, %v4737_v24 }
 0x427   : > { %v7722_v38 = vadd.s32 4294967169, %v4838_v26  ;;  %v4946_v47 = vor.u32 8388608, %v4945_v52  ;;  %v10808_v23 = vpop.f32.mrb[12].mxu0 }
 0x428   : > { %v4740_v58 = vadd.s32 1, %v7718_v46  ;;  %v4948_v41 = vadd.s32 1, %v7726_v34  ;;  %v10789_v51 = vshll.u32 %v4738_v17, 8 }
 0x429   : > { %v4844_v14 = vadd.s32 1, %v7722_v38  ;;  %v10791_v36 = vshll.u32 %v4946_v47, 8 }
 0x42a   : > { %vm4741_vm10 = vcmp.gt.s32.totalorder %v4740_v58, 0  ;;  %vm4949_vm4 = vcmp.gt.s32.totalorder %v4948_v41, 0 }
 0x42b   : > { %v4742_v60 = vsel %vm4741_vm10, %v4740_v58, 0  ;;  %v4950_v61 = vsel %vm4949_vm4, %v4948_v41, 0  ;;  %vm4845_vm5 = vcmp.gt.s32.totalorder %v4844_v14, 0 }
 0x42c   : > { %v4743_v39 = vshrl.u32 %v4742_v60, 5  ;;  %v4744_v63 = vand.u32 31, %v4742_v60  ;;  %v10796_v45 = vshrl.u32 %v4950_v61, 5  ;;  %v4952_v48 = vand.u32 31, %v4950_v61 }
 0x42e   : > { %v4745_v56 = vsub.s32 32, %v4744_v63  ;;  %v4747_v55 = vshll.u32 %v12698_v40, %v4744_v63  ;;  %v4750_v11 = vshll.u32 %v12701_v4, %v4744_v63  ;;  %v4753_v13 = vshll.u32 %v12702_v1, %v4744_v63 }
 0x42f   : > { %v4756_v29 = vshll.u32 %v12703_v59, %v4744_v63  ;;  %v4759_v54 = vshll.u32 %v12707_v8, %v4744_v63  ;;  %vm4762_vm0 = vcmp.lt.s32.totalorder %v4743_v39, 1  ;;  %vm4763_vm3 = vcmp.lt.s32.totalorder %v4743_v39, 2 }
 0x430   : > { %v4748_v6 = vshrl.u32 %v12701_v4, %v4745_v56  ;;  %v4751_v10 = vshrl.u32 %v12702_v1, %v4745_v56  ;;  %v4754_v5 = vshrl.u32 %v12703_v59, %v4745_v56  ;;  %v4746_v15 = vshrl.u32 %v12698_v40, %v4745_v56 }
 0x431   : > { %v4757_v22 = vshrl.u32 %v12707_v8, %v4745_v56  ;;  %v4760_v62 = vshrl.u32 %v12708_v19, %v4745_v56  ;;  %v4953_v35 = vsub.s32 32, %v4952_v48  ;;  %vm4764_vm1 = vcmp.lt.s32.totalorder %v4743_v39, 3 }
 0x432   : > { %v4749_v32 = vor.u32 %v4748_v6, %v4747_v55  ;;  %v4752_v43 = vor.u32 %v4751_v10, %v4750_v11  ;;  %v4755_v3 = vor.u32 %v4754_v5, %v4753_v13  ;;  %vm4765_vm12 = vcmp.lt.s32.totalorder %v4743_v39, 4 }
 0x433   : > { %v4758_v7 = vor.u32 %v4757_v22, %v4756_v29  ;;  %v4761_v31 = vor.u32 %v4760_v62, %v4759_v54  ;;  %v4955_v42 = vshll.u32 %v12698_v40, %v4952_v48  ;;  %v4956_v26 = vshrl.u32 %v12701_v4, %v4953_v35 }
 0x434   : > { %v4766_v16 = vsel %vm4762_vm0, %v4746_v15, %v4749_v32  ;;  %v4767_v44 = vsel %vm4765_vm12, %v4755_v3, 2102212464  ;;  %v4770_v49 = vsel %vm4762_vm0, %v4749_v32, %v4752_v43  ;;  %v4774_v33 = vsel %vm4762_vm0, %v4752_v43, %v4755_v3 }
 0x435   : > { %v4768_v53 = vsel %vm4764_vm1, %v4752_v43, %v4767_v44  ;;  %v4771_v57 = vsel %vm4765_vm12, %v4758_v7, 920167782  ;;  %v4775_v24 = vsel %vm4765_vm12, %v4761_v31, 1326507024  ;;  %v4958_v34 = vshll.u32 %v12701_v4, %v4952_v48 }
 0x436   : > { %v4772_v52 = vsel %vm4764_vm1, %v4755_v3, %v4771_v57  ;;  %v4776_v46 = vsel %vm4764_vm1, %v4758_v7, %v4775_v24  ;;  %v4769_v58 = vsel %vm4763_vm3, %v4766_v16, %v4768_v53  ;;  %v4959_v47 = vshrl.u32 %v12702_v1, %v4953_v35 }
 0x437   : > { %v4773_v38 = vsel %vm4763_vm3, %v4770_v49, %v4772_v52  ;;  %v4777_v17 = vsel %vm4763_vm3, %v4774_v33, %v4776_v46  ;;  %v4957_v56 = vor.u32 %v4956_v26, %v4955_v42  ;;  %v4961_v11 = vshll.u32 %v12702_v1, %v4952_v48 }
 0x438   : > { %v10821_v41 = vmul.u32.u64.low %v10789_v51, %v4777_v17  ;;  %v10822_v60 = vmul.u32.u64.high %v10789_v51, %v4777_v17, %v10821_v41  ;;  %v10825_v63 = vmul.u32.u64.low %v10789_v51, %v4773_v38  ;;  %v10826_v61 = vmul.u32.u64.high %v10789_v51, %v4773_v38, %v10825_v63 }
 0x439   : > { %v4960_v55 = vor.u32 %v4959_v47, %v4958_v34  ;;  %v4962_v13 = vshrl.u32 %v12703_v59, %v4953_v35  ;;  %v4964_v39 = vshll.u32 %v12703_v59, %v4952_v48  ;;  %v4965_v29 = vshrl.u32 %v12707_v8, %v4953_v35 }
 0x43a   : > { %v4968_v54 = vshrl.u32 %v12708_v19, %v4953_v35  ;;  %v4846_v6 = vsel %vm4845_vm5, %v4844_v14, 0  ;;  %v4785_v10 = vmul.u32 %v10789_v51, %v4769_v58  ;;  %v4954_v5 = vshrl.u32 %v12698_v40, %v4953_v35 }
 0x43b   : > { %v4963_v15 = vor.u32 %v4962_v13, %v4961_v11  ;;  %v4967_v22 = vshll.u32 %v12707_v8, %v4952_v48  ;;  %vm4787_vm11 = vc.u32 %v10822_v60, %v10825_v63  ;;  %v4788_v62 = vadd.s32 1, %v10826_v61  ;;  %v10867_v13 = vpop.f32.mrb[12].mxu1 }
 0x43c   : > { %v4966_v32 = vor.u32 %v4965_v29, %v4964_v39  ;;  %vm4970_vm8 = vcmp.lt.s32.totalorder %v10796_v45, 1  ;;  %vm4972_vm14 = vcmp.lt.s32.totalorder %v10796_v45, 3  ;;  %vm4973_vm7 = vcmp.lt.s32.totalorder %v10796_v45, 4 }
 0x43d   : > { %v4969_v43 = vor.u32 %v4968_v54, %v4967_v22  ;;  %v4978_v14 = vsel %vm4970_vm8, %v4957_v56, %v4960_v55  ;;  %v4789_v51 = vsel %vm4787_vm11, %v4788_v62, %v10826_v61  ;;  %v4975_v3 = vsel %vm4973_vm7, %v4963_v15, 2102212464 }
 0x43e   : > { %v4979_v35 = vsel %vm4973_vm7, %v4966_v32, 920167782  ;;  %v4982_v7 = vsel %vm4970_vm8, %v4960_v55, %v4963_v15  ;;  %v4790_v48 = vadd.s32 %v4789_v51, %v4785_v10  ;;  %vm4971_vm13 = vcmp.lt.s32.totalorder %v10796_v45, 2 }
 0x43f   : > { %v4980_v31 = vsel %vm4972_vm14, %v4963_v15, %v4979_v35  ;;  %v4983_v16 = vsel %vm4973_vm7, %v4969_v43, 1326507024  ;;  %v4974_v44 = vsel %vm4970_vm8, %v4954_v5, %v4957_v56  ;;  %v4976_v49 = vsel %vm4972_vm14, %v4960_v55, %v4975_v3 }
 0x440   : > { %v4981_v33 = vsel %vm4971_vm13, %v4978_v14, %v4980_v31  ;;  %v4984_v53 = vsel %vm4972_vm14, %v4966_v32, %v4983_v16  ;;  %v4791_v57 = vadd.s32 536870912, %v4790_v48  ;;  %v4848_v34 = vand.u32 31, %v4846_v6 }
 0x441   : > { %v4985_v24 = vsel %vm4971_vm13, %v4982_v7, %v4984_v53  ;;  %v10847_v42 = vmul.u32.u64.low %v10791_v36, %v4981_v33  ;;  %v10848_v52 = vmul.u32.u64.high %v10791_v36, %v4981_v33, %v10847_v42  ;;  %v4977_v45 = vsel %vm4971_vm13, %v4974_v44, %v4976_v49 }
 0x442   : > { %v10852_v46 = vmul.u32.u64.low %v10791_v36, %v4985_v24  ;;  %v10853_v26 = vmul.u32.u64.high %v10791_v36, %v4985_v24, %v10852_v46  ;;  %v10855_v58 = vshrl.u32 %v4791_v57, 30  ;;  %v4849_v38 = vsub.s32 32, %v4848_v34 }
 0x443   : > { %v4996_v47 = vadd.s32 1, %v10848_v52  ;;  %v4841_v41 = vand.u32 8388607, %v4834_v0  ;;  %v5046_v61 = vshrl.u32 %v5045_v2, 23  ;;  %v4993_v56 = vmul.u32 %v10791_v36, %v4977_v45 }
 0x444   : > { %v4793_v17 = vshll.u32 %v10855_v58, 30  ;;  %vm4995_vm15 = vc.u32 %v10853_v26, %v10847_v42  ;;  %v4847_v55 = vshrl.u32 %v4846_v6, 5  ;;  %v4852_v11 = vshrl.u32 %v12701_v4, %v4849_v38 }
 0x445   : > { %v4997_v29 = vsel %vm4995_vm15, %v4996_v47, %v10848_v52  ;;  %v4851_v54 = vshll.u32 %v12698_v40, %v4848_v34  ;;  %v4855_v10 = vshrl.u32 %v12702_v1, %v4849_v38  ;;  %v4854_v2 = vshll.u32 %v12701_v4, %v4848_v34 }
 0x446   : > { %v10869_v39 = vsub.s32 %v4790_v48, %v4793_v17  ;;  %v4998_v5 = vadd.s32 %v4997_v29, %v4993_v56  ;;  %v4857_v36 = vshll.u32 %v12702_v1, %v4848_v34  ;;  %v4858_v15 = vshrl.u32 %v12703_v59, %v4849_v38 }
 0x447   : > { %v4853_v22 = vor.u32 %v4852_v11, %v4851_v54  ;;  %v4860_v62 = vshll.u32 %v12703_v59, %v4848_v34  ;;  %v4861_v32 = vshrl.u32 %v12707_v8, %v4849_v38  ;;  %v4856_v14 = vor.u32 %v4855_v10, %v4854_v2 }
 0x448   : > { %v4796_v6 = vsub.s32 0, %v10869_v39  ;;  %v4999_v43 = vadd.s32 536870912, %v4998_v5  ;;  %v4863_v51 = vshll.u32 %v12707_v8, %v4848_v34  ;;  %v4864_v3 = vshrl.u32 %v12708_v19, %v4849_v38 }
 0x449   : > { %v4859_v7 = vor.u32 %v4858_v15, %v4857_v36  ;;  %v4862_v48 = vor.u32 %v4861_v32, %v4860_v62  ;;  %vm4869_vm6 = vcmp.lt.s32.totalorder %v4847_v55, 4  ;;  %v4842_v49 = vor.u32 8388608, %v4841_v41 }
 0x44a   : > { %v7719_v35 = vmin.u32 %v4796_v6, %v10869_v39  ;;  %v10883_v31 = vshrl.u32 %v4999_v43, 30  ;;  %v4865_v16 = vor.u32 %v4864_v3, %v4863_v51  ;;  %vm4866_vm9 = vcmp.lt.s32.totalorder %v4847_v55, 1 }
 0x44b   : > { %v4875_v33 = vsel %vm4869_vm6, %v4862_v48, 920167782  ;;  %vm4868_vm10 = vcmp.lt.s32.totalorder %v4847_v55, 3  ;;  %v4874_v57 = vsel %vm4866_vm9, %v4853_v22, %v4856_v14  ;;  %v7730_v24 = vadd.s32 4294967169, %v5046_v61 }
 0x44c   : > { %v4798_v44 = vclz %v7719_v35  ;;  %v5001_v53 = vshll.u32 %v10883_v31, 30  ;;  %v4876_v46 = vsel %vm4868_vm10, %v4859_v7, %v4875_v33  ;;  %v4878_v34 = vsel %vm4866_vm9, %v4856_v14, %v4859_v7 }
 0x44d   : > { %v4879_v45 = vsel %vm4869_vm6, %v4865_v16, 1326507024  ;;  %vm4867_vm4 = vcmp.lt.s32.totalorder %v4847_v55, 2  ;;  %v4850_v41 = vshrl.u32 %v12698_v40, %v4849_v38  ;;  %v4871_v56 = vsel %vm4869_vm6, %v4859_v7, 2102212464 }
 0x44e   : > { %v7720_v52 = vadd.s32 4294967294, %v4798_v44  ;;  %v10891_v17 = vsub.s32 %v4998_v5, %v5001_v53  ;;  %v4880_v47 = vsel %vm4868_vm10, %v4862_v48, %v4879_v45  ;;  %v4877_v29 = vsel %vm4867_vm4, %v4874_v57, %v4876_v46  ;;  %v10923_v46 = vpop.f32.mrb[13].mxu0 }
 0x44f   : > { %v4881_v11 = vsel %vm4867_vm4, %v4878_v34, %v4880_v47  ;;  %v4882_v54 = vshll.u32 %v4842_v49, 8  ;;  %v5052_v10 = vadd.s32 1, %v7730_v24  ;;  %v4870_v5 = vsel %vm4866_vm9, %v4850_v41, %v4853_v22  ;;  %v10920_v24 = vpop.permute.xlu1 %3324 }
 0x450   : > { %vm7721_vm5 = vcmp.lt.s32.totalorder %v7720_v52, 0  ;;  %v5004_v61 = vsub.s32 0, %v10891_v17  ;;  %v4872_v15 = vsel %vm4868_vm10, %v4856_v14, %v4871_v56  ;;  %v12622_v43 = vand.u32 2147483647, %v10787_v9 }
 0x451   : > { %v4801_v2 = vsel %vm7721_vm5, 0, %v7720_v52  ;;  %v10902_v6 = vmul.u32.u64.low %v4882_v54, %v4881_v11  ;;  %v10903_v62 = vmul.u32.u64.high %v4882_v54, %v4881_v11, %v10902_v6  ;;  %vm5053_vm0 = vcmp.gt.s32.totalorder %v5052_v10, 0 }
 0x452   : > { %v7727_v36 = vmin.u32 %v5004_v61, %v10891_v17  ;;  %v10905_v38 = vmul.u32.u64.low %v4882_v54, %v4877_v29  ;;  %v10906_v32 = vmul.u32.u64.high %v4882_v54, %v4877_v29, %v10905_v38  ;;  %v4802_v51 = vsub.s32 32, %v4801_v2 }
 0x453   : > { %v4806_v35 = vsub.s32 4294967266, %v4801_v2  ;;  %v4873_v7 = vsel %vm4867_vm4, %v4870_v5, %v4872_v15  ;;  %v5054_v22 = vsel %vm5053_vm0, %v5052_v10, 0  ;;  %v4786_v48 = vadd.s32 %v10825_v63, %v10822_v60 }
 0x454   : > { %v5006_v3 = vclz %v7727_v36  ;;  %vm4891_vm3 = vc.u32 %v10903_v62, %v10905_v38  ;;  %v4816_v16 = vsub.s32 4, %v10855_v58  ;;  %v4892_v44 = vadd.s32 1, %v10906_v32 }
 0x455   : > { %v5049_v49 = vand.u32 8388607, %v12622_v43  ;;  %v5056_v33 = vand.u32 31, %v5054_v22  ;;  %v4804_v53 = vshrl.u32 %v4786_v48, %v4802_v51  ;;  %v5024_v55 = vsub.s32 4, %v10883_v31 }
 0x456   : > { %v7728_v14 = vadd.s32 4294967294, %v5006_v3  ;;  %v4889_v57 = vmul.u32 %v4882_v54, %v4873_v7  ;;  %v4807_v52 = vadd.s32 127, %v4806_v35  ;;  %v4893_v60 = vsel %vm4891_vm3, %v4892_v44, %v10906_v32 }
 0x457   : > { %v5057_v63 = vsub.s32 32, %v5056_v33  ;;  %vm4732_vm12 = vcmp.lt.s32.totalorder %v10764_v37, 0  ;;  %vm4940_vm11 = vcmp.lt.s32.totalorder %v10766_v27, 0  ;;  %v10929_v45 = vadd.f32 %v10774_v25, %v10920_v24 }
 0x458   : > { %vm7729_vm1 = vcmp.lt.s32.totalorder %v7728_v14, 0  ;;  %v4894_v34 = vadd.s32 %v4893_v60, %v4889_v57  ;;  %v4803_v47 = vshll.u32 %v10869_v39, %v4801_v2  ;;  %v10935_v41 = vsel %vm4732_vm12, %v4816_v16, %v10855_v58 }
 0x459   : > { %12810 = vst [vmem:[#allocation32_spill] sm:$0xff] %v10929_v45  ;;  %v4994_v56 = vadd.s32 %v10847_v42, %v10853_v26  ;;  %v5050_v11 = vor.u32 8388608, %v5049_v49  ;;  %v10939_v61 = vsel %vm7729_vm1, 0, %v7728_v14  ;;  %v10944_v29 = vsel %vm4940_vm11, %v5024_v55, %v10883_v31 }
 0x45a   : > { %v4895_v25 = vadd.s32 536870912, %v4894_v34  ;;  %v5060_v54 = vshrl.u32 %v12701_v4, %v5057_v63  ;;  %v4805_v39 = vor.u32 %v4804_v53, %v4803_v47  ;;  %v4808_v10 = vshll.u32 %v4807_v52, 23 }
 0x45b   : > { %v10947_v2 = vshrl.u32 %v5054_v22, 5  ;;  %v5063_v58 = vshrl.u32 %v12702_v1, %v5057_v63  ;;  %v5059_v42 = vshll.u32 %v12698_v40, %v5056_v33  ;;  %v5062_v26 = vshll.u32 %v12701_v4, %v5056_v33 }
 0x45c   : > { %v10950_v5 = vshrl.u32 %v4895_v25, 30  ;;  %v5066_v36 = vshrl.u32 %v12703_v59, %v5057_v63  ;;  %v5014_v31 = vsub.s32 4294967266, %v10939_v61  ;;  %v5068_v15 = vshll.u32 %v12703_v59, %v5056_v33 }
 0x45d   : > { %v5069_v6 = vshrl.u32 %v12707_v8, %v5057_v63  ;;  %v10958_v32 = vshll.u32 %v5050_v11, 8  ;;  %v5061_v3 = vor.u32 %v5060_v54, %v5059_v42  ;;  %v5064_v35 = vor.u32 %v5063_v58, %v5062_v26 }
 0x45e   : > { %v4897_v51 = vshll.u32 %v10950_v5, 30  ;;  %v5065_v7 = vshll.u32 %v12702_v1, %v5056_v33  ;;  %v4809_v22 = vor.u32 4788187, %v4808_v10  ;;  %v4812_v48 = vcvt.s32.f32 %v4805_v39 }
 0x45f   : > { %v5070_v14 = vor.u32 %v5069_v6, %v5068_v15  ;;  %v5149_v16 = vand.u32 2139095040, %v10929_v45  ;;  %vm10965_vm8 = vcmp.le.f32.partialorder %v4730_v20, 0.7853982  ;;  %vm5074_vm14 = vcmp.lt.s32.totalorder %v10947_v2, 1 }
 0x460   : > { %v10969_v49 = vsub.s32 %v4894_v34, %v4897_v51  ;;  %v5067_v53 = vor.u32 %v5066_v36, %v5065_v7  ;;  %vm5075_vm7 = vcmp.lt.s32.totalorder %v10947_v2, 2  ;;  %vm10975_vm13 = vcmp.le.f32.partialorder %v4938_v18, 0.7853982 }
 0x461   : > { %v5010_v57 = vsub.s32 32, %v10939_v61  ;;  %v5015_v52 = vadd.s32 127, %v5014_v31  ;;  %v5071_v20 = vshll.u32 %v12707_v8, %v5056_v33  ;;  %v5072_v60 = vshrl.u32 %v12708_v19, %v5057_v63 }
 0x462   : > { %v4900_v34 = vsub.s32 0, %v10969_v49  ;;  %vm5076_vm15 = vcmp.lt.s32.totalorder %v10947_v2, 3  ;;  %vm5077_vm6 = vcmp.lt.s32.totalorder %v10947_v2, 4  ;;  %v5082_v47 = vsel %vm5074_vm14, %v5061_v3, %v5064_v35 }
 0x463   : > { %v4810_v18 = vand.u32 2147483647, %v4809_v22  ;;  %v5058_v11 = vshrl.u32 %v12698_v40, %v5057_v63  ;;  %v5073_v25 = vor.u32 %v5072_v60, %v5071_v20  ;;  %v5083_v54 = vsel %vm5077_vm6, %v5070_v14, 920167782 }
 0x464   : > { %v7723_v39 = vmin.u32 %v4900_v34, %v10969_v49  ;;  %v5079_v10 = vsel %vm5077_vm6, %v5067_v53, 2102212464  ;;  %v5084_v33 = vsel %vm5076_vm15, %v5067_v53, %v5083_v54  ;;  %v5086_v58 = vsel %vm5074_vm14, %v5064_v35, %v5067_v53 }
 0x465   : > { %v5012_v42 = vshrl.u32 %v4994_v56, %v5010_v57  ;;  %v5016_v26 = vshll.u32 %v5015_v52, 23  ;;  %v5085_v36 = vsel %vm5075_vm7, %v5082_v47, %v5084_v33  ;;  %v5087_v31 = vsel %vm5077_vm6, %v5073_v25, 1326507024 }
 0x466   : > { %v4902_v15 = vclz %v7723_v39  ;;  %v5078_v63 = vsel %vm5074_vm14, %v5058_v11, %v5061_v3  ;;  %v5088_v6 = vsel %vm5076_vm15, %v5070_v14, %v5087_v31  ;;  %v5150_v51 = vshrl.u32 %v5149_v16, 23 }
 0x467   : > { %v5080_v7 = vsel %vm5076_vm15, %v5064_v35, %v5079_v10  ;;  %v5089_v22 = vsel %vm5075_vm7, %v5086_v58, %v5088_v6  ;;  %v11004_v56 = vmul.u32.u64.low %v10958_v32, %v5085_v36  ;;  %v11005_v53 = vmul.u32.u64.high %v10958_v32, %v5085_v36, %v11004_v56 }
 0x468   : > { %v4813_v57 = vmul.f32 %v4812_v48, %v4810_v18  ;;  %v7724_v52 = vadd.s32 4294967294, %v4902_v15  ;;  %v11009_v20 = vmul.u32.u64.low %v10958_v32, %v5089_v22  ;;  %v11010_v3 = vmul.u32.u64.high %v10958_v32, %v5089_v22, %v11009_v20 }
 0x469   : > { %v4819_v14 = vsel %vm10965_vm8, 0, %v10935_v41  ;;  %v5011_v35 = vshll.u32 %v10891_v17, %v10939_v61  ;;  %v5017_v16 = vor.u32 4788187, %v5016_v26  ;;  %v7734_v60 = vadd.s32 4294967169, %v5150_v51  ;;  %v11030_v26 = vpop.f32.mrb[13].mxu1 }
 0x46a   : > { %v5027_v34 = vsel %vm10975_vm13, 0, %v10944_v29  ;;  %vm7725_vm9 = vcmp.lt.s32.totalorder %v7724_v52, 0  ;;  %v5081_v48 = vsel %vm5075_vm7, %v5078_v63, %v5080_v7  ;;  %v5146_v47 = vand.u32 2147483647, %v10929_v45 }
 0x46b   : > { %v5013_v18 = vor.u32 %v5012_v42, %v5011_v35  ;;  %v4905_v11 = vsel %vm7725_vm9, 0, %v7724_v52  ;;  %v5100_v25 = vadd.s32 1, %v11005_v53  ;;  %v5156_v41 = vadd.s32 1, %v7734_v60 }
 0x46c   : > { %v4814_v54 = vxor.u32 2147483648, %v4813_v57  ;;  %v4890_v17 = vadd.s32 %v10905_v38, %v10903_v62  ;;  %v4906_v61 = vsub.s32 32, %v4905_v11  ;;  %v4910_v39 = vsub.s32 4294967266, %v4905_v11 }
 0x46d   : > { %v5018_v10 = vand.u32 2147483647, %v5017_v16  ;;  %v5097_v29 = vmul.u32 %v10958_v32, %v5081_v48  ;;  %vm5099_vm10 = vc.u32 %v11010_v3, %v11004_v56  ;;  %vm5157_vm4 = vcmp.gt.s32.totalorder %v5156_v41, 0 }
 0x46e   : > { %v4908_v2 = vshrl.u32 %v4890_v17, %v4906_v61  ;;  %v4911_v33 = vadd.s32 127, %v4910_v39  ;;  %v5101_v58 = vsel %vm5099_vm10, %v5100_v25, %v11005_v53  ;;  %v5158_v42 = vsel %vm5157_vm4, %v5156_v41, 0 }
 0x46f   : > { %v11032_v36 = vadd.s32 3, %v4819_v14  ;;  %v5020_v31 = vcvt.s32.f32 %v5013_v18  ;;  %v5102_v62 = vadd.s32 %v5101_v58, %v5097_v29  ;;  %v5160_v38 = vand.u32 31, %v5158_v42 }
 0x470   : > { %v4815_v15 = vsel %vm4732_vm12, %v4814_v54, %v4813_v57  ;;  %v11036_v32 = vadd.s32 3, %v5027_v34  ;;  %v4907_v63 = vshll.u32 %v10969_v49, %v4905_v11  ;;  %v4912_v6 = vshll.u32 %v4911_v33, 23 }
 0x471   : > { %v5021_v51 = vmul.f32 %v5020_v31, %v5018_v10  ;;  %v5103_v7 = vadd.s32 536870912, %v5102_v62  ;;  %v5153_v22 = vand.u32 8388607, %v5146_v47  ;;  %v5161_v53 = vsub.s32 32, %v5160_v38 }
 0x472   : > { %v4909_v52 = vor.u32 %v4908_v2, %v4907_v63  ;;  %v11041_v20 = vshrl.u32 %v5158_v42, 5  ;;  %v5163_v14 = vshll.u32 %v12698_v40, %v5160_v38  ;;  %v11046_v35 = vadd.f32 %v10781_v50, %v10920_v24 }
 0x473   : > { %v11048_v57 = vshrl.u32 %v5103_v7, 30  ;;  %v5164_v49 = vshrl.u32 %v12701_v4, %v5161_v53  ;;  %v5166_v16 = vshll.u32 %v12701_v4, %v5160_v38  ;;  %v5167_v60 = vshrl.u32 %v12702_v1, %v5161_v53 }
 0x474   : > { %12815 = vst [vmem:[#allocation15_spill] sm:$0xff] %v11046_v35  ;;  %v4913_v34 = vor.u32 4788187, %v4912_v6  ;;  %v5170_v48 = vshrl.u32 %v12703_v59, %v5161_v53  ;;  %v5172_v18 = vshll.u32 %v12703_v59, %v5160_v38  ;;  %v5173_v11 = vshrl.u32 %v12707_v8, %v5161_v53 }
 0x475   : > { %v5105_v25 = vshll.u32 %v11048_v57, 30  ;;  %v5165_v41 = vor.u32 %v5164_v49, %v5163_v14  ;;  %v5168_v50 = vor.u32 %v5167_v60, %v5166_v16  ;;  %v5169_v54 = vshll.u32 %v12702_v1, %v5160_v38 }
 0x476   : > { %v4818_v17 = vsel %vm10965_vm8, %v10764_v37, %v4815_v15  ;;  %v5174_v61 = vor.u32 %v5173_v11, %v5172_v18  ;;  %v5175_v39 = vshll.u32 %v12707_v8, %v5160_v38  ;;  %v5176_v10 = vshrl.u32 %v12708_v19, %v5161_v53 }
 0x477   : > { %v5022_v29 = vxor.u32 2147483648, %v5021_v51  ;;  %v11063_v2 = vsub.s32 %v5102_v62, %v5105_v25  ;;  %v5154_v33 = vor.u32 8388608, %v5153_v22  ;;  %v5171_v58 = vor.u32 %v5170_v48, %v5169_v54 }
 0x478   : > { %v4914_v42 = vand.u32 2147483647, %v4913_v34  ;;  %v5177_v31 = vor.u32 %v5176_v10, %v5175_v39  ;;  %vm5178_vm5 = vcmp.lt.s32.totalorder %v11041_v20, 1  ;;  %v5357_v63 = vand.u32 2139095040, %v11046_v35 }
 0x479   : > { %v4916_v6 = vcvt.s32.f32 %v4909_v52  ;;  %v5108_v44 = vsub.s32 0, %v11063_v2  ;;  %vm5181_vm0 = vcmp.lt.s32.totalorder %v11041_v20, 4  ;;  %v5186_v38 = vsel %vm5178_vm5, %v5165_v41, %v5168_v50 }
 0x47a   : > { %v5162_v15 = vshrl.u32 %v12698_v40, %v5161_v53  ;;  %vm5179_vm3 = vcmp.lt.s32.totalorder %v11041_v20, 2  ;;  %vm5180_vm1 = vcmp.lt.s32.totalorder %v11041_v20, 3  ;;  %v5187_v62 = vsel %vm5181_vm0, %v5174_v61, 920167782 }
 0x47b   : > { %v7731_v7 = vmin.u32 %v5108_v44, %v11063_v2  ;;  %v5183_v22 = vsel %vm5181_vm0, %v5171_v58, 2102212464  ;;  %v5188_v14 = vsel %vm5180_vm1, %v5171_v58, %v5187_v62  ;;  %v5190_v52 = vsel %vm5178_vm5, %v5168_v50, %v5171_v58 }
 0x47c   : > { %v4917_v49 = vmul.f32 %v4916_v6, %v4914_v42  ;;  %v5189_v16 = vsel %vm5179_vm3, %v5186_v38, %v5188_v14  ;;  %v5191_v60 = vsel %vm5181_vm0, %v5177_v31, 1326507024  ;;  %v5194_v34 = vshll.u32 %v5154_v33, 8 }
 0x47d   : > { %vm4836_vm12 = vcmp.lt.s32.totalorder %v10768_v28, 0  ;;  %v5110_v53 = vclz %v7731_v7  ;;  %v5182_v48 = vsel %vm5178_vm5, %v5162_v15, %v5165_v41  ;;  %v5192_v18 = vsel %vm5180_vm1, %v5174_v61, %v5191_v60 }
 0x47e   : > { %v5358_v11 = vshrl.u32 %v5357_v63, 23  ;;  %v5184_v25 = vsel %vm5180_vm1, %v5168_v50, %v5183_v22  ;;  %v5193_v54 = vsel %vm5179_vm3, %v5190_v52, %v5192_v18  ;;  %vm5044_vm8 = vcmp.lt.s32.totalorder %v10787_v9, 0  ;;  %v11128_v52 = vpop.permute.xlu0 %3329  ;;  %v11145_v18 = vpop.f32.mrb[14].mxu0 }
 0x47f   : > { %v11084_v39 = vmul.u32.u64.low %v5194_v34, %v5189_v16  ;;  %v11085_v10 = vmul.u32.u64.high %v5194_v34, %v5189_v16, %v11084_v39  ;;  %v7732_v58 = vadd.s32 4294967294, %v5110_v53  ;;  %v11093_v6 = vand.u32 3, %v11032_v36 }
 0x480   : > { %v11089_v33 = vmul.u32.u64.low %v5194_v34, %v5193_v54  ;;  %v11090_v42 = vmul.u32.u64.high %v5194_v34, %v5193_v54, %v11089_v33  ;;  %v7742_v31 = vadd.s32 4294967169, %v5358_v11  ;;  %v5023_v41 = vsel %vm4940_vm11, %v5022_v29, %v5021_v51 }
 0x481   : > { %12816 = vst [vmem:[#allocation8_spill] sm:$0xff] %v11093_v6  ;;  %v11098_v50 = vand.u32 3, %v11036_v32  ;;  %v12621_v61 = vand.u32 2147483647, %v11046_v35  ;;  %vm7733_vm14 = vcmp.lt.s32.totalorder %v7732_v58, 0  ;;  %v5185_v63 = vsel %vm5179_vm3, %v5182_v48, %v5184_v25 }
 0x482   : > { %v5364_v44 = vadd.s32 1, %v7742_v31  ;;  %v11105_v38 = vadd.f32 %v10783_v12, %v10920_v24  ;;  %8448 = vcosq.f32 %v4818_v17  ;;  %v4920_v36 = vsub.s32 4, %v10950_v5 }
 0x483   : > { %12817 = vst [vmem:[#allocation13_spill] sm:$0xff] %v11098_v50  ;;  %v11108_v15 = vsel %vm7733_vm14, 0, %v7732_v58  ;;  %v5204_v51 = vadd.s32 1, %v11085_v10  ;;  %8450 = vsinq.f32 %v4818_v17  ;;  %v5026_v32 = vsel %vm10975_vm13, %v10766_v27, %v5023_v41 }
 0x484   : > { %v4918_v29 = vxor.u32 2147483648, %v4917_v49  ;;  %v5128_v20 = vsub.s32 4, %v11048_v57  ;;  %v5201_v62 = vmul.u32 %v5194_v34, %v5185_v63  ;;  %vm5203_vm11 = vc.u32 %v11090_v42, %v11084_v39 }
 0x485   : > { %v5361_v12 = vand.u32 8388607, %v12621_v61  ;;  %vm5365_vm7 = vcmp.gt.s32.totalorder %v5364_v44, 0  ;;  %vm11121_vm15 = vcmp.le.f32.partialorder %v4834_v0, 0.7853982  ;;  %v5118_v55 = vsub.s32 4294967266, %v11108_v15 }
 0x486   : > { %v5205_v17 = vsel %vm5203_vm11, %v5204_v51, %v11085_v10  ;;  %v5366_v22 = vsel %vm5365_vm7, %v5364_v44, 0  ;;  %v5253_v14 = vand.u32 2139095040, %v11105_v38  ;;  %8452 = vcosq.f32 %v5026_v32 }
 0x487   : > { %v11133_v16 = vsel %vm4836_vm12, %v4920_v36, %v10950_v5  ;;  %v5206_v60 = vadd.s32 %v5205_v17, %v5201_v62  ;;  %v5368_v0 = vand.u32 31, %v5366_v22  ;;  %8454 = vsinq.f32 %v5026_v32 }
 0x488   : > { %v5098_v34 = vadd.s32 %v11004_v56, %v11010_v3  ;;  %v11139_v53 = vadd.f32 %v10785_v30, %v10920_v24  ;;  %v11143_v48 = vadd.f32 %v10808_v23, %v11128_v52  ;;  %v5114_v11 = vsub.s32 32, %v11108_v15 }
 0x489   : > { %v11151_v5 = vsel %vm5044_vm8, %v5128_v20, %v11048_v57  ;;  %v5207_v25 = vadd.s32 536870912, %v5206_v60  ;;  %v5369_v54 = vsub.s32 32, %v5368_v0  ;;  %v4919_v56 = vsel %vm4836_vm12, %v4918_v29, %v4917_v49 }
 0x48a   : > { %12820 = vst [vmem:[#allocation18_spill] sm:$0xff] %v11139_v53  ;;  %12821 = vst [vmem:[#allocation17_spill] sm:$0xff] %v11143_v48  ;;  %v5119_v30 = vadd.s32 127, %v5118_v55  ;;  %v5362_v24 = vor.u32 8388608, %v5361_v12  ;;  %v5254_v3 = vshrl.u32 %v5253_v14, 23  ;;  %v5371_v23 = vshll.u32 %v12698_v40, %v5368_v0 }
 0x48b   : > { %v11155_v10 = vshrl.u32 %v5207_v25, 30  ;;  %v5372_v58 = vshrl.u32 %v12701_v4, %v5369_v54  ;;  %v5375_v33 = vshrl.u32 %v12702_v1, %v5369_v54  ;;  %v5374_v31 = vshll.u32 %v12701_v4, %v5368_v0 }
 0x48c   : > { %v5378_v57 = vshrl.u32 %v12703_v59, %v5369_v54  ;;  %v5380_v41 = vshll.u32 %v12703_v59, %v5368_v0  ;;  %v5381_v63 = vshrl.u32 %v12707_v8, %v5369_v54  ;;  %v11164_v49 = vpop.eup %8448  ;;  %v5116_v44 = vshrl.u32 %v5098_v34, %v5114_v11 }
 0x48d   : > { %12822 = vst [vmem:[#allocation11_spill] sm:$0xff] %v11164_v49  ;;  %v5209_v36 = vshll.u32 %v11155_v10, 30  ;;  %v5367_v51 = vshrl.u32 %v5366_v22, 5  ;;  %v5377_v32 = vshll.u32 %v12702_v1, %v5368_v0  ;;  %v11168_v29 = vpop.eup %8450  ;;  %v5373_v20 = vor.u32 %v5372_v58, %v5371_v23 }
 0x48e   : > { %12823 = vst [vmem:[#allocation24_spill] sm:$0xff] %v11168_v29  ;;  %v5376_v62 = vor.u32 %v5375_v33, %v5374_v31  ;;  %v5382_v12 = vor.u32 %v5381_v63, %v5380_v41  ;;  %v5384_v55 = vshrl.u32 %v12708_v19, %v5369_v54  ;;  %v11174_v17 = vsel %vm11121_vm15, %v10768_v28, %v4919_v56 }
 0x48f   : > { %v11176_v14 = vsub.s32 %v5206_v60, %v5209_v36  ;;  %v5379_v34 = vor.u32 %v5378_v57, %v5377_v32  ;;  %v5383_v11 = vshll.u32 %v12707_v8, %v5368_v0  ;;  %v5115_v22 = vshll.u32 %v11063_v2, %v11108_v15 }
 0x490   : > { %v5120_v25 = vshll.u32 %v5119_v30, 23  ;;  %v5402_v61 = vshll.u32 %v5362_v24, 8  ;;  %v12623_v23 = vand.u32 2147483647, %v11105_v38  ;;  %v11182_v58 = vpop.eup %8452  ;;  %vm5386_vm13 = vcmp.lt.s32.totalorder %v5367_v51, 1 }
 0x491   : > { %12824 = vst [vmem:[#allocation21_spill] sm:$0xff] %v11182_v58  ;;  %v5212_v33 = vsub.s32 0, %v11176_v14  ;;  %v5385_v31 = vor.u32 %v5384_v55, %v5383_v11  ;;  %vm5389_vm6 = vcmp.lt.s32.totalorder %v5367_v51, 4  ;;  %v11185_v56 = vpop.eup %8454  ;;  %v5117_v60 = vor.u32 %v5116_v44, %v5115_v22 }
 0x492   : > { %12825 = vst [vmem:[#allocation23_spill] sm:$0xff] %v11185_v56  ;;  %vm5148_vm9 = vcmp.lt.s32.totalorder %v10929_v45, 0  ;;  %v5394_v0 = vsel %vm5386_vm13, %v5373_v20, %v5376_v62  ;;  %v5395_v2 = vsel %vm5389_vm6, %v5382_v12, 920167782  ;;  %v7738_v15 = vadd.s32 4294967169, %v5254_v3 }
 0x493   : > { %v7735_v30 = vmin.u32 %v5212_v33, %v11176_v14  ;;  %v5370_v24 = vshrl.u32 %v12698_v40, %v5369_v54  ;;  %vm5388_vm10 = vcmp.lt.s32.totalorder %v5367_v51, 3  ;;  %v5391_v57 = vsel %vm5389_vm6, %v5379_v34, 2102212464 }
 0x494   : > { %v5121_v41 = vor.u32 4788187, %v5120_v25  ;;  %vm5387_vm4 = vcmp.lt.s32.totalorder %v5367_v51, 2  ;;  %v5396_v63 = vsel %vm5388_vm10, %v5379_v34, %v5395_v2  ;;  %v5398_v36 = vsel %vm5386_vm13, %v5376_v62, %v5379_v34 }
 0x495   : > { %vm11196_vm5 = vcmp.le.f32.partialorder %v5146_v47, 0.7853982  ;;  %v5214_v32 = vclz %v7735_v30  ;;  %v5390_v3 = vsel %vm5386_vm13, %v5370_v24, %v5373_v20  ;;  %v5397_v55 = vsel %vm5387_vm4, %v5394_v0, %v5396_v63 }
 0x496   : > { %v5399_v54 = vsel %vm5389_vm6, %v5385_v31, 1326507024  ;;  %v5392_v11 = vsel %vm5388_vm10, %v5376_v62, %v5391_v57  ;;  %v11203_v25 = vmul.u32.u64.low %v5402_v61, %v5397_v55  ;;  %v11204_v33 = vmul.u32.u64.high %v5402_v61, %v5397_v55, %v11203_v25  ;;  %v11215_v62 = vpop.f32.mrb[14].mxu1 }
 0x497   : > { %v5400_v22 = vsel %vm5388_vm10, %v5382_v12, %v5399_v54  ;;  %v7736_v34 = vadd.s32 4294967294, %v5214_v32  ;;  %v5232_v2 = vsub.s32 4, %v11155_v10  ;;  %v5260_v43 = vadd.s32 1, %v7738_v15 }
 0x498   : > { %v5401_v47 = vsel %vm5387_vm4, %v5398_v36, %v5400_v22  ;;  %8456 = vcosq.f32 %v11174_v17  ;;  %v5257_v31 = vand.u32 8388607, %v12623_v23  ;;  %v5122_v12 = vand.u32 2147483647, %v5121_v41 }
 0x499   : > { %v11210_v30 = vmul.u32.u64.low %v5402_v61, %v5401_v47  ;;  %v11211_v20 = vmul.u32.u64.high %v5402_v61, %v5401_v47, %v11210_v30  ;;  %vm7737_vm0 = vcmp.lt.s32.totalorder %v7736_v34, 0  ;;  %v5393_v0 = vsel %vm5387_vm4, %v5390_v3, %v5392_v11 }
 0x49a   : > { %vm5261_vm3 = vcmp.gt.s32.totalorder %v5260_v43, 0  ;;  %v5217_v24 = vsel %vm7737_vm0, 0, %v7736_v34  ;;  %v5412_v57 = vadd.s32 1, %v11204_v33  ;;  %v5124_v36 = vcvt.s32.f32 %v5117_v60 }
 0x49b   : > { %v5262_v63 = vsel %vm5261_vm3, %v5260_v43, 0  ;;  %v5222_v32 = vsub.s32 4294967266, %v5217_v24  ;;  %v5233_v55 = vsel %vm5148_vm9, %v5232_v2, %v11155_v10  ;;  %v5461_v54 = vand.u32 2139095040, %v11139_v53 }
 0x49c   : > { %v5202_v41 = vadd.s32 %v11084_v39, %v11090_v42  ;;  %v5409_v51 = vmul.u32 %v5402_v61, %v5393_v0  ;;  %vm5411_vm1 = vc.u32 %v11211_v20, %v11203_v25  ;;  %v5264_v3 = vand.u32 31, %v5262_v63 }
 0x49d   : > { %v5125_v11 = vmul.f32 %v5124_v36, %v5122_v12  ;;  %v5223_v43 = vadd.s32 127, %v5222_v32  ;;  %v5413_v22 = vsel %vm5411_vm1, %v5412_v57, %v11204_v33  ;;  %v5258_v60 = vor.u32 8388608, %v5257_v31 }
 0x49e   : > { %v5218_v34 = vsub.s32 32, %v5217_v24  ;;  %v5235_v47 = vsel %vm11196_vm5, 0, %v5233_v55  ;;  %v5414_v10 = vadd.s32 %v5413_v22, %v5409_v51  ;;  %v5265_v2 = vsub.s32 32, %v5264_v3 }
 0x49f   : > { %v5263_v30 = vshrl.u32 %v5262_v63, 5  ;;  %v5267_v23 = vshll.u32 %v12698_v40, %v5264_v3  ;;  %v5270_v39 = vshll.u32 %v12701_v4, %v5264_v3  ;;  %v5462_v42 = vshrl.u32 %v5461_v54, 23 }
 0x4a0   : > { %v5224_v61 = vshll.u32 %v5223_v43, 23  ;;  %v5415_v0 = vadd.s32 536870912, %v5414_v10  ;;  %v5268_v12 = vshrl.u32 %v12701_v4, %v5265_v2  ;;  %v5271_v36 = vshrl.u32 %v12702_v1, %v5265_v2 }
 0x4a1   : > { %v5273_v33 = vshll.u32 %v12702_v1, %v5264_v3  ;;  %v5274_v31 = vshrl.u32 %v12703_v59, %v5265_v2  ;;  %v5276_v57 = vshll.u32 %v12703_v59, %v5264_v3  ;;  %v5277_v32 = vshrl.u32 %v12707_v8, %v5265_v2 }
 0x4a2   : > { %v11239_v63 = vpop.eup %8456  ;;  %v5220_v55 = vshrl.u32 %v5202_v41, %v5218_v34  ;;  %v11241_v51 = vshrl.u32 %v5415_v0, 30  ;;  %v5269_v54 = vor.u32 %v5268_v12, %v5267_v23  ;;  %v5272_v43 = vor.u32 %v5271_v36, %v5270_v39 }
 0x4a3   : > { %v5275_v22 = vor.u32 %v5274_v31, %v5273_v33  ;;  %v5278_v15 = vor.u32 %v5277_v32, %v5276_v57  ;;  %v5279_v21 = vshll.u32 %v12707_v8, %v5264_v3  ;;  %v5280_v58 = vshrl.u32 %v12708_v19, %v5265_v2 }
 0x4a4   : > { %v5126_v50 = vxor.u32 2147483648, %v5125_v11  ;;  %v5239_v56 = vadd.s32 3, %v5235_v47  ;;  %v5417_v27 = vshll.u32 %v11241_v51, 30  ;;  %v5298_v49 = vshll.u32 %v5258_v60, 8 }
 0x4a5   : > { %v12828_v29 = vand.u32 2147483647, %v10787_v9  ;;  %v5219_v23 = vshll.u32 %v11176_v14, %v5217_v24  ;;  %v5225_v41 = vor.u32 4788187, %v5224_v61  ;;  %v5281_v34 = vor.u32 %v5280_v58, %v5279_v21 }
 0x4a6   : > { %vm5282_vm14 = vcmp.lt.s32.totalorder %v5263_v30, 1  ;;  %v11253_v39 = vsub.s32 %v5414_v10, %v5417_v27  ;;  %vm5285_vm11 = vcmp.lt.s32.totalorder %v5263_v30, 4  ;;  %v7746_v47 = vadd.s32 4294967169, %v5462_v42 }
 0x4a7   : > { %vm11248_vm12 = vcmp.le.f32.partialorder %v12828_v29, 0.7853982  ;;  %v5290_v3 = vsel %vm5282_vm14, %v5269_v54, %v5272_v43  ;;  %v5221_v0 = vor.u32 %v5220_v55, %v5219_v23  ;;  %vm5284_vm7 = vcmp.lt.s32.totalorder %v5263_v30, 3 }
 0x4a8   : > { %v5287_v60 = vsel %vm5285_vm11, %v5275_v22, 2102212464  ;;  %v5291_v12 = vsel %vm5285_vm11, %v5278_v15, 920167782  ;;  %vm5356_vm13 = vcmp.lt.s32.totalorder %v11046_v35, 0  ;;  %v5420_v29 = vsub.s32 0, %v11253_v39 }
 0x4a9   : > { %v5266_v36 = vshrl.u32 %v12698_v40, %v5265_v2  ;;  %vm5283_vm6 = vcmp.lt.s32.totalorder %v5263_v30, 2  ;;  %v5292_v14 = vsel %vm5284_vm7, %v5275_v22, %v5291_v12  ;;  %v5226_v21 = vand.u32 2147483647, %v5225_v41 }
 0x4aa   : > { %v5293_v27 = vsel %vm5283_vm6, %v5290_v3, %v5292_v14  ;;  %v5294_v58 = vsel %vm5282_vm14, %v5272_v43, %v5275_v22  ;;  %v5295_v24 = vsel %vm5285_vm11, %v5281_v34, 1326507024  ;;  %v7743_v10 = vmin.u32 %v5420_v29, %v11253_v39  ;;  %v11292_v29 = vpop.f32.mrb[15].mxu0 }
 0x4ab   : > { %v5286_v42 = vsel %vm5282_vm14, %v5266_v36, %v5269_v54  ;;  %v5288_v61 = vsel %vm5284_vm7, %v5272_v43, %v5287_v60  ;;  %v5296_v33 = vsel %vm5284_vm7, %v5278_v15, %v5295_v24  ;;  %v5127_v31 = vsel %vm5044_vm8, %v5126_v50, %v5125_v11 }
 0x4ac   : > { %v5297_v57 = vsel %vm5283_vm6, %v5294_v58, %v5296_v33  ;;  %v11266_v2 = vmul.u32.u64.low %v5298_v49, %v5293_v27  ;;  %v11267_v32 = vmul.u32.u64.high %v5298_v49, %v5293_v27, %v11266_v2  ;;  %v5228_v55 = vcvt.s32.f32 %v5221_v0 }
 0x4ad   : > { %v5422_v23 = vclz %v7743_v10  ;;  %v11270_v41 = vmul.u32.u64.low %v5298_v49, %v5297_v57  ;;  %v11271_v22 = vmul.u32.u64.high %v5298_v49, %v5297_v57, %v11270_v41  ;;  %8458 = vsinq.f32 %v11174_v17 }
 0x4ae   : > { %v5440_v54 = vsub.s32 4, %v11241_v51  ;;  %v5289_v15 = vsel %vm5283_vm6, %v5286_v42, %v5288_v61  ;;  %v5468_v43 = vadd.s32 1, %v7746_v47  ;;  %v11279_v50 = vsel %vm11248_vm12, %v10787_v9, %v5127_v31 }
 0x4af   : > { %v11281_v11 = vmul.f32 %v5228_v55, %v5226_v21  ;;  %v11283_v34 = vand.u32 3, %v5239_v56  ;;  %v7744_v3 = vadd.s32 4294967294, %v5422_v23  ;;  %v5410_v0 = vadd.s32 %v11203_v25, %v11211_v20 }
 0x4b0   : > { %v5308_v17 = vadd.s32 1, %v11267_v32  ;;  %v12832_v60 = vand.u32 2147483647, %v11139_v53  ;;  %vm5469_vm8 = vcmp.gt.s32.totalorder %v5468_v43, 0  ;;  %v5305_v47 = vmul.u32 %v5298_v49, %v5289_v15 }
 0x4b1   : > { %12831 = vst [vmem:[#allocation9_spill] sm:$0xff] %v11283_v34  ;;  %vm7745_vm10 = vcmp.lt.s32.totalorder %v7744_v3, 0  ;;  %vm5307_vm4 = vc.u32 %v11271_v22, %v11266_v2  ;;  %v5470_v12 = vsel %vm5469_vm8, %v5468_v43, 0  ;;  %v11297_v36 = vsel %vm5356_vm13, %v5440_v54, %v11241_v51 }
 0x4b2   : > { %v5465_v30 = vand.u32 8388607, %v12832_v60  ;;  %v5425_v56 = vsel %vm7745_vm10, 0, %v7744_v3  ;;  %v5309_v25 = vsel %vm5307_vm4, %v5308_v17, %v11267_v32  ;;  %v5472_v20 = vand.u32 31, %v5470_v12 }
 0x4b3   : > { %v5230_v14 = vxor.u32 2147483648, %v11281_v11  ;;  %v5426_v21 = vsub.s32 32, %v5425_v56  ;;  %v5430_v27 = vsub.s32 4294967266, %v5425_v56  ;;  %v5310_v49 = vadd.s32 %v5309_v25, %v5305_v47 }
 0x4b4   : > { %v5427_v58 = vshll.u32 %v11253_v39, %v5425_v56  ;;  %v5466_v24 = vor.u32 8388608, %v5465_v30  ;;  %v11302_v10 = vshrl.u32 %v5470_v12, 5  ;;  %v5473_v42 = vsub.s32 32, %v5472_v20 }
 0x4b5   : > { %v5428_v61 = vshrl.u32 %v5410_v0, %v5426_v21  ;;  %v5431_v33 = vadd.s32 127, %v5430_v27  ;;  %v5311_v31 = vadd.s32 536870912, %v5310_v49  ;;  %v5475_v51 = vshll.u32 %v12698_v40, %v5472_v20 }
 0x4b6   : > { %v5476_v57 = vshrl.u32 %v12701_v4, %v5473_v42  ;;  %v5478_v32 = vshll.u32 %v12701_v4, %v5472_v20  ;;  %v5479_v55 = vshrl.u32 %v12702_v1, %v5473_v42  ;;  %v5482_v23 = vshrl.u32 %v12703_v59, %v5473_v42 }
 0x4b7   : > { %v5432_v41 = vshll.u32 %v5431_v33, 23  ;;  %v11309_v54 = vshrl.u32 %v5311_v31, 30  ;;  %v5481_v39 = vshll.u32 %v12702_v1, %v5472_v20  ;;  %v5485_v15 = vshrl.u32 %v12707_v8, %v5473_v42  ;;  %v11313_v43 = vpop.eup %8458 }
 0x4b8   : > { %v5429_v3 = vor.u32 %v5428_v61, %v5427_v58  ;;  %v5477_v0 = vor.u32 %v5476_v57, %v5475_v51  ;;  %v5480_v17 = vor.u32 %v5479_v55, %v5478_v32  ;;  %v5484_v60 = vshll.u32 %v12703_v59, %v5472_v20 }
 0x4b9   : > { %v12833_v30 = vand.u32 2147483647, %v11046_v35  ;;  %v5433_v12 = vor.u32 4788187, %v5432_v41  ;;  %v5313_v56 = vshll.u32 %v11309_v54, 30  ;;  %v5483_v25 = vor.u32 %v5482_v23, %v5481_v39 }
 0x4ba   : > { %v5565_v21 = vand.u32 2139095040, %v11143_v48  ;;  %v5486_v27 = vor.u32 %v5485_v15, %v5484_v60  ;;  %v5487_v33 = vshll.u32 %v12707_v8, %v5472_v20  ;;  %v5488_v58 = vshrl.u32 %v12708_v19, %v5473_v42 }
 0x4bb   : > { %vm11318_vm0 = vcmp.le.f32.partialorder %v12833_v30, 0.7853982  ;;  %v5506_v61 = vshll.u32 %v5466_v24, 8  ;;  %v5434_v31 = vand.u32 2147483647, %v5433_v12  ;;  %v11326_v51 = vsub.s32 %v5310_v49, %v5313_v56 }
 0x4bc   : > { %v5474_v57 = vshrl.u32 %v12698_v40, %v5473_v42  ;;  %vm5490_vm3 = vcmp.lt.s32.totalorder %v11302_v10, 1  ;;  %v5436_v32 = vcvt.s32.f32 %v5429_v3  ;;  %v5489_v55 = vor.u32 %v5488_v58, %v5487_v33 }
 0x4bd   : > { %vm5493_vm1 = vcmp.lt.s32.totalorder %v11302_v10, 4  ;;  %v5498_v23 = vsel %vm5490_vm3, %v5477_v0, %v5480_v17  ;;  %v5316_v41 = vsub.s32 0, %v11326_v51  ;;  %vm5492_vm14 = vcmp.lt.s32.totalorder %v11302_v10, 3 }
 0x4be   : > { %v5495_v20 = vsel %vm5493_vm1, %v5483_v25, 2102212464  ;;  %v5499_v39 = vsel %vm5493_vm1, %v5486_v27, 920167782  ;;  %vm5491_vm11 = vcmp.lt.s32.totalorder %v11302_v10, 2  ;;  %v5502_v49 = vsel %vm5490_vm3, %v5480_v17, %v5483_v25 }
 0x4bf   : > { %v5500_v24 = vsel %vm5492_vm14, %v5483_v25, %v5499_v39  ;;  %v5503_v15 = vsel %vm5493_vm1, %v5489_v55, 1326507024  ;;  %v5437_v60 = vmul.f32 %v5436_v32, %v5434_v31  ;;  %v7739_v42 = vmin.u32 %v5316_v41, %v11326_v51 }
 0x4c0   : > { %v5494_v30 = vsel %vm5490_vm3, %v5474_v57, %v5477_v0  ;;  %v5501_v3 = vsel %vm5491_vm11, %v5498_v23, %v5500_v24  ;;  %v5496_v12 = vsel %vm5492_vm14, %v5480_v17, %v5495_v20  ;;  %v5504_v56 = vsel %vm5492_vm14, %v5486_v27, %v5503_v15  ;;  %v11373_v20 = vpop.f32.mrb[15].mxu1 }
 0x4c1   : > { %v11337_v33 = vmul.u32.u64.low %v5506_v61, %v5501_v3  ;;  %v11338_v58 = vmul.u32.u64.high %v5506_v61, %v5501_v3, %v11337_v33  ;;  %v5318_v34 = vclz %v7739_v42  ;;  %v5505_v37 = vsel %vm5491_vm11, %v5502_v49, %v5504_v56 }
 0x4c2   : > { %v12636_v25 = vand.u32 2147483647, %v11143_v48  ;;  %v5566_v55 = vshrl.u32 %v5565_v21, 23  ;;  %v5231_v0 = vsel %vm5148_vm9, %v5230_v14, %v11281_v11  ;;  %v5443_v17 = vsel %vm11318_vm0, 0, %v11297_v36 }
 0x4c3   : > { %v11350_v27 = vmul.u32.u64.low %v5506_v61, %v5505_v37  ;;  %v11351_v31 = vmul.u32.u64.high %v5506_v61, %v5505_v37, %v11350_v27  ;;  %8460 = vcosq.f32 %v11279_v50  ;;  %v7740_v57 = vadd.s32 4294967294, %v5318_v34 }
 0x4c4   : > { %v5497_v32 = vsel %vm5491_vm11, %v5494_v30, %v5496_v12  ;;  %v7750_v23 = vadd.s32 4294967169, %v5566_v55  ;;  %8462 = vsinq.f32 %v11279_v50  ;;  %v5438_v21 = vxor.u32 2147483648, %v5437_v60 }
 0x4c5   : > { %v5516_v41 = vadd.s32 1, %v11338_v58  ;;  %v11360_v11 = vadd.f32 %v10867_v13, %v11128_v52  ;;  %v5234_v37 = vsel %vm11196_vm5, %v10929_v45, %v5231_v0  ;;  %v11365_v36 = vadd.s32 3, %v5443_v17 }
 0x4c6   : > { %vm7741_vm9 = vcmp.lt.s32.totalorder %v7740_v57, 0  ;;  %v5572_v34 = vadd.s32 1, %v7750_v23  ;;  %v5513_v10 = vmul.u32 %v5506_v61, %v5497_v32  ;;  %vm5515_vm7 = vc.u32 %v11351_v31, %v11337_v33 }
 0x4c7   : > { %12836 = vst [vmem:[#allocation20_spill] sm:$0xff] %v11360_v11  ;;  %v5321_v14 = vsel %vm7741_vm9, 0, %v7740_v57  ;;  %v11371_v50 = vand.u32 8388607, %v12636_v25  ;;  %v5306_v13 = vadd.s32 %v11266_v2, %v11271_v22  ;;  %v5517_v24 = vsel %vm5515_vm7, %v5516_v41, %v11338_v58 }
 0x4c8   : > { %v5322_v44 = vsub.s32 32, %v5321_v14  ;;  %v5326_v39 = vsub.s32 4294967266, %v5321_v14  ;;  %v5439_v49 = vsel %vm5356_vm13, %v5438_v21, %v5437_v60  ;;  %v5518_v61 = vadd.s32 %v5517_v24, %v5513_v10 }
 0x4c9   : > { %vm5573_vm5 = vcmp.gt.s32.totalorder %v5572_v34, 0  ;;  %v5773_v15 = vand.u32 2139095040, %v11360_v11  ;;  %8464 = vcosq.f32 %v5234_v37  ;;  %v11383_v2 = vadd.f32 %v10923_v46, %v11128_v52 }
 0x4ca   : > { %v5324_v42 = vshrl.u32 %v5306_v13, %v5322_v44  ;;  %v5327_v30 = vadd.s32 127, %v5326_v39  ;;  %v5574_v3 = vsel %vm5573_vm5, %v5572_v34, 0  ;;  %8466 = vsinq.f32 %v5234_v37 }
 0x4cb   : > { %v5519_v12 = vadd.s32 536870912, %v5518_v61  ;;  %v5576_v56 = vand.u32 31, %v5574_v3  ;;  %v11388_v22 = vsel %vm11318_vm0, %v11046_v35, %v5439_v49  ;;  %v5323_v60 = vshll.u32 %v11326_v51, %v5321_v14 }
 0x4cc   : > { %v5328_v58 = vshll.u32 %v5327_v30, 23  ;;  %v5570_v17 = vor.u32 8388608, %v11371_v50  ;;  %v5774_v57 = vshrl.u32 %v5773_v15, 23  ;;  %v5575_v23 = vshrl.u32 %v5574_v3, 5 }
 0x4cd   : > { %v11392_v0 = vshrl.u32 %v5519_v12, 30  ;;  %v5577_v27 = vsub.s32 32, %v5576_v56  ;;  %v11395_v32 = vpop.eup %8460  ;;  %v5325_v46 = vor.u32 %v5324_v42, %v5323_v60  ;;  %v5579_v21 = vshll.u32 %v12698_v40, %v5576_v56 }
 0x4ce   : > { %v5582_v47 = vshll.u32 %v12701_v4, %v5576_v56  ;;  %v11399_v41 = vpop.eup %8462  ;;  %v5329_v51 = vor.u32 4788187, %v5328_v58  ;;  %v5585_v14 = vshll.u32 %v12702_v1, %v5576_v56  ;;  %v5588_v13 = vshll.u32 %v12703_v59, %v5576_v56 }
 0x4cf   : > { %v5521_v37 = vshll.u32 %v11392_v0, 30  ;;  %v5580_v34 = vshrl.u32 %v12701_v4, %v5577_v27  ;;  %v5583_v10 = vshrl.u32 %v12702_v1, %v5577_v27  ;;  %v5586_v50 = vshrl.u32 %v12703_v59, %v5577_v27 }
 0x4d0   : > { %v5589_v44 = vshrl.u32 %v12707_v8, %v5577_v27  ;;  %8468 = vcosq.f32 %v11388_v22  ;;  %v12641_v49 = vand.u32 2147483647, %v11360_v11  ;;  %v7758_v3 = vadd.s32 4294967169, %v5774_v57 }
 0x4d1   : > { %v11409_v39 = vsub.s32 %v5518_v61, %v5521_v37  ;;  %v5581_v24 = vor.u32 %v5580_v34, %v5579_v21  ;;  %v5584_v15 = vor.u32 %v5583_v10, %v5582_v47  ;;  %v5587_v42 = vor.u32 %v5586_v50, %v5585_v14 }
 0x4d2   : > { %v5590_v30 = vor.u32 %v5589_v44, %v5588_v13  ;;  %v5332_v12 = vcvt.s32.f32 %v5325_v46  ;;  %v5591_v58 = vshll.u32 %v12707_v8, %v5576_v56  ;;  %v5592_v55 = vshrl.u32 %v12708_v19, %v5577_v27 }
 0x4d3   : > { %v5524_v60 = vsub.s32 0, %v11409_v39  ;;  %v11415_v25 = vpop.eup %8464  ;;  %v5330_v35 = vand.u32 2147483647, %v5329_v51  ;;  %v5578_v61 = vshrl.u32 %v12698_v40, %v5577_v27  ;;  %vm5594_vm13 = vcmp.lt.s32.totalorder %v5575_v23, 1 }
 0x4d4   : > { %12837 = vst [vmem:[#allocation14_spill] sm:$0xff] %v11415_v25  ;;  %vm5597_vm6 = vcmp.lt.s32.totalorder %v5575_v23, 4  ;;  %v11418_v21 = vpop.eup %8466  ;;  %v5593_v37 = vor.u32 %v5592_v55, %v5591_v58  ;;  %v5602_v46 = vsel %vm5594_vm13, %v5581_v24, %v5584_v15  ;;  %vm5595_vm8 = vcmp.lt.s32.totalorder %v5575_v23, 2 }
 0x4d5   : > { %12838 = vst [vmem:[#allocation19_spill] sm:$0xff] %v11418_v21  ;;  %v7747_v47 = vmin.u32 %v5524_v60, %v11409_v39  ;;  %v5599_v57 = vsel %vm5597_vm6, %v5587_v42, 2102212464  ;;  %vm5596_vm10 = vcmp.lt.s32.totalorder %v5575_v23, 3  ;;  %v5598_v56 = vsel %vm5594_vm13, %v5578_v61, %v5581_v24 }
 0x4d6   : > { %v5603_v34 = vsel %vm5597_vm6, %v5590_v30, 920167782  ;;  %vm5252_vm4 = vcmp.lt.s32.totalorder %v11105_v38, 0  ;;  %v5600_v14 = vsel %vm5596_vm10, %v5584_v15, %v5599_v57  ;;  %v5606_v10 = vsel %vm5594_vm13, %v5584_v15, %v5587_v42 }
 0x4d7   : > { %v5526_v51 = vclz %v7747_v47  ;;  %v5604_v27 = vsel %vm5596_vm10, %v5587_v42, %v5603_v34  ;;  %v5333_v50 = vmul.f32 %v5332_v12, %v5330_v35  ;;  %v5607_v44 = vsel %vm5597_vm6, %v5593_v37, 1326507024 }
 0x4d8   : > { %v5605_v13 = vsel %vm5595_vm8, %v5602_v46, %v5604_v27  ;;  %v5610_v55 = vshll.u32 %v5570_v17, 8  ;;  %v5608_v58 = vsel %vm5596_vm10, %v5590_v30, %v5607_v44  ;;  %v5777_v25 = vand.u32 8388607, %v12641_v49 }
 0x4d9   : > { %v7748_v60 = vadd.s32 4294967294, %v5526_v51  ;;  %v5780_v24 = vadd.s32 1, %v7758_v3  ;;  %v5601_v61 = vsel %vm5595_vm8, %v5598_v56, %v5600_v14  ;;  %v5609_v21 = vsel %vm5595_vm8, %v5606_v10, %v5608_v58 }
 0x4da   : > { %v11430_v47 = vmul.u32.u64.low %v5610_v55, %v5605_v13  ;;  %v11431_v57 = vmul.u32.u64.high %v5610_v55, %v5605_v13, %v11430_v47  ;;  %v11434_v35 = vpop.eup %8468  ;;  %v11436_v15 = vmul.u32.u64.low %v5610_v55, %v5609_v21  ;;  %v11437_v42 = vmul.u32.u64.high %v5610_v55, %v5609_v21, %v11436_v15 }
 0x4db   : > { %12839 = vst [vmem:[#allocation12_spill] sm:$0xff] %v11434_v35  ;;  %vm7749_vm0 = vcmp.lt.s32.totalorder %v7748_v60, 0  ;;  %vm5781_vm3 = vcmp.gt.s32.totalorder %v5780_v24, 0  ;;  %8470 = vsinq.f32 %v11388_v22  ;;  %v5334_v17 = vxor.u32 2147483648, %v5333_v50 }
 0x4dc   : > { %v5529_v30 = vsel %vm7749_vm0, 0, %v7748_v60  ;;  %v5782_v3 = vsel %vm5781_vm3, %v5780_v24, 0  ;;  %v5514_v23 = vadd.s32 %v11337_v33, %v11351_v31  ;;  %v5778_v46 = vor.u32 8388608, %v5777_v25 }
 0x4dd   : > { %v5530_v12 = vsub.s32 32, %v5529_v30  ;;  %v5534_v37 = vsub.s32 4294967266, %v5529_v30  ;;  %v5617_v56 = vmul.u32 %v5610_v55, %v5601_v61  ;;  %v5620_v34 = vadd.s32 1, %v11431_v57 }
 0x4de   : > { %v5784_v51 = vand.u32 31, %v5782_v3  ;;  %v12840_v21 = vand.u32 2147483647, %v11105_v38  ;;  %v5531_v22 = vshll.u32 %v11409_v39, %v5529_v30  ;;  %vm5619_vm14 = vc.u32 %v11437_v42, %v11430_v47 }
 0x4df   : > { %v5532_v10 = vshrl.u32 %v5514_v23, %v5530_v12  ;;  %v5535_v13 = vadd.s32 127, %v5534_v37  ;;  %v5335_v33 = vsel %vm5252_vm4, %v5334_v17, %v5333_v50  ;;  %v5621_v25 = vsel %vm5619_vm14, %v5620_v34, %v11431_v57 }
 0x4e0   : > { %vm11446_vm1 = vcmp.le.f32.partialorder %v12840_v21, 0.7853982  ;;  %v11456_v31 = vshrl.u32 %v5782_v3, 5  ;;  %v5785_v44 = vsub.s32 32, %v5784_v51  ;;  %vm5564_vm11 = vcmp.lt.s32.totalorder %v11143_v48, 0 }
 0x4e1   : > { %v5533_v55 = vor.u32 %v5532_v10, %v5531_v22  ;;  %v5536_v60 = vshll.u32 %v5535_v13, 23  ;;  %v5622_v58 = vadd.s32 %v5621_v25, %v5617_v56  ;;  %v5787_v39 = vshll.u32 %v12698_v40, %v5784_v51 }
 0x4e2   : > { %v5788_v24 = vshrl.u32 %v12701_v4, %v5785_v44  ;;  %v5790_v61 = vshll.u32 %v12701_v4, %v5784_v51  ;;  %v5791_v15 = vshrl.u32 %v12702_v1, %v5785_v44  ;;  %v5794_v50 = vshrl.u32 %v12703_v59, %v5785_v44 }
 0x4e3   : > { %v5537_v17 = vor.u32 4788187, %v5536_v60  ;;  %v5540_v57 = vcvt.s32.f32 %v5533_v55  ;;  %v5623_v30 = vadd.s32 536870912, %v5622_v58  ;;  %v5793_v3 = vshll.u32 %v12702_v1, %v5784_v51 }
 0x4e4   : > { %v12843_v23 = vand.u32 2147483647, %v11143_v48  ;;  %v5789_v37 = vor.u32 %v5788_v24, %v5787_v39  ;;  %v5792_v56 = vor.u32 %v5791_v15, %v5790_v61  ;;  %v5796_v34 = vshll.u32 %v12703_v59, %v5784_v51 }
 0x4e5   : > { %v5797_v21 = vshrl.u32 %v12707_v8, %v5785_v44  ;;  %vm5460_vm7 = vcmp.lt.s32.totalorder %v11139_v53, 0  ;;  %v5538_v22 = vand.u32 2147483647, %v5537_v17  ;;  %v5624_v10 = vshrl.u32 %v5623_v30, 30  ;;  %v11476_v55 = vpop.eup %8470 }
 0x4e6   : > { %vm11467_vm9 = vcmp.le.f32.partialorder %v12843_v23, 0.7853982  ;;  %v5799_v13 = vshll.u32 %v12707_v8, %v5784_v51  ;;  %v5800_v25 = vshrl.u32 %v12708_v19, %v5785_v44  ;;  %12846 = vst [vmem:[#allocation26_spill] sm:$0xff] %v11476_v55  ;;  %v5795_v60 = vor.u32 %v5794_v50, %v5793_v3 }
 0x4e7   : > { %v5798_v23 = vor.u32 %v5797_v21, %v5796_v34  ;;  %v11478_v49 = vshll.u32 %v5778_v46, 8  ;;  %v5669_v39 = vand.u32 2139095040, %v11383_v2  ;;  %v5541_v24 = vmul.f32 %v5540_v57, %v5538_v22 }
 0x4e8   : > { %v5625_v61 = vshll.u32 %v5624_v10, 30  ;;  %v5648_v15 = vsub.s32 4, %v5624_v10  ;;  %v5801_v14 = vor.u32 %v5800_v25, %v5799_v13  ;;  %v5338_v17 = vsel %vm11446_vm1, %v11105_v38, %v5335_v33 }
 0x4e9   : > { %v5786_v51 = vshrl.u32 %v12698_v40, %v5785_v44  ;;  %vm5802_vm5 = vcmp.lt.s32.totalorder %v11456_v31, 1  ;;  %v12847_v30 = vand.u32 2147483647, %v11383_v2  ;;  %v12848_v46 = vand.u32 2147483647, %v11139_v53 }
 0x4ea   : > { %v12849_v3 = vmov 0  ;;  %v5542_v57 = vxor.u32 2147483648, %v5541_v24  ;;  %v11496_v34 = vsub.s32 %v5622_v58, %v5625_v61  ;;  %vm5805_vm6 = vcmp.lt.s32.totalorder %v11456_v31, 4 }
 0x4eb   : > { %v11488_v50 = vand.u32 8388607, %v12847_v30  ;;  %vm11492_vm13 = vcmp.le.f32.partialorder %v12848_v46, 0.7853982  ;;  %v5810_v33 = vsel %vm5802_vm5, %v5789_v37, %v5792_v56  ;;  %v5649_v44 = vsel %vm5564_vm11, %v5648_v15, %v5624_v10 }
 0x4ec   : > { %v12850_v3 = vsel %vm11492_vm13, 4294967295, %v12849_v3  ;;  %v5807_v21 = vsel %vm5805_vm6, %v5795_v60, 2102212464  ;;  %v5811_v22 = vsel %vm5805_vm6, %v5798_v23, 920167782  ;;  %v5628_v25 = vsub.s32 0, %v11496_v34 }
 0x4ed   : > { %12851 = vst [vmem:[#allocation28_spill] sm:$0xff] %v12850_v3  ;;  %v5815_v13 = vsel %vm5805_vm6, %v5801_v14, 1326507024  ;;  %vm5804_vm8 = vcmp.lt.s32.totalorder %v11456_v31, 3  ;;  %v5814_v30 = vsel %vm5802_vm5, %v5792_v56, %v5795_v60  ;;  %v5670_v58 = vshrl.u32 %v5669_v39, 23 }
 0x4ee   : > { %vm5803_vm10 = vcmp.lt.s32.totalorder %v11456_v31, 2  ;;  %v5806_v61 = vsel %vm5802_vm5, %v5786_v51, %v5789_v37  ;;  %v5812_v46 = vsel %vm5804_vm8, %v5795_v60, %v5811_v22  ;;  %v5816_v35 = vsel %vm5804_vm8, %v5798_v23, %v5815_v13 }
 0x4ef   : > { %v7751_v10 = vmin.u32 %v5628_v25, %v11496_v34  ;;  %v5651_v14 = vsel %vm11467_vm9, 0, %v5649_v44  ;;  %v5808_v15 = vsel %vm5804_vm8, %v5792_v56, %v5807_v21  ;;  %v5813_v55 = vsel %vm5803_vm10, %v5810_v33, %v5812_v46 }
 0x4f0   : > { %v5543_v45 = vsel %vm5460_vm7, %v5542_v57, %v5541_v24  ;;  %v5817_v39 = vsel %vm5803_vm10, %v5814_v30, %v5816_v35  ;;  %v11520_v9 = vmul.u32.u64.low %v11478_v49, %v5813_v55  ;;  %v11521_v37 = vmul.u32.u64.high %v11478_v49, %v5813_v55, %v11520_v9 }
 0x4f1   : > { %v5630_v60 = vclz %v7751_v10  ;;  %v11525_v23 = vmul.u32.u64.low %v11478_v49, %v5817_v39  ;;  %v11526_v51 = vmul.u32.u64.high %v11478_v49, %v5817_v39, %v11525_v23  ;;  %v7754_v56 = vadd.s32 4294967169, %v5670_v58 }
 0x4f2   : > { %v11529_v44 = vand.u32 3, %v11365_v36  ;;  %v12853_v24 = vsub.s32 4, %v11309_v54  ;;  %8472 = vcosq.f32 %v5338_v17  ;;  %v5809_v55 = vsel %vm5803_vm10, %v5806_v61, %v5808_v15  ;;  %v11563_v15 = vpop.permute.xlu1 %3334 }
 0x4f3   : > { %8474 = vsinq.f32 %v5338_v17  ;;  %v5544_v57 = vsub.s32 4, %v11392_v0  ;;  %v7752_v33 = vadd.s32 4294967294, %v5630_v60  ;;  %v5676_v21 = vadd.s32 1, %v7754_v56 }
 0x4f4   : > { %12852 = vst [vmem:[#allocation25_spill] sm:$0xff] %v11529_v44  ;;  %v11536_v35 = vsel %vm5252_vm4, %v12853_v24, %v11309_v54  ;;  %v5546_v36 = vsel %vm11492_vm13, %v11139_v53, %v5543_v45  ;;  %v5655_v22 = vadd.s32 3, %v5651_v14  ;;  %v5828_v13 = vadd.s32 1, %v11521_v37 }
 0x4f5   : > { %v5674_v25 = vor.u32 8388608, %v11488_v50  ;;  %vm7753_vm4 = vcmp.lt.s32.totalorder %v7752_v33, 0  ;;  %v5825_v54 = vmul.u32 %v11478_v49, %v5809_v55  ;;  %vm5827_vm0 = vc.u32 %v11526_v51, %v11520_v9 }
 0x4f6   : > { %vm5677_vm3 = vcmp.gt.s32.totalorder %v5676_v21, 0  ;;  %v5633_v31 = vsel %vm7753_vm4, 0, %v7752_v33  ;;  %v5829_v17 = vsel %vm5827_vm0, %v5828_v13, %v11521_v37  ;;  %v11552_v58 = vadd.f32 %v11030_v26, %v11128_v52 }
 0x4f7   : > { %v5678_v30 = vsel %vm5677_vm3, %v5676_v21, 0  ;;  %v5618_v45 = vadd.s32 %v11430_v47, %v11437_v42  ;;  %v5634_v61 = vsub.s32 32, %v5633_v31  ;;  %v5638_v50 = vsub.s32 4294967266, %v5633_v31 }
 0x4f8   : > { %12854 = vst [vmem:[#allocation40_spill] sm:$0xff] %v11552_v58  ;;  %v5830_v46 = vadd.s32 %v5829_v17, %v5825_v54  ;;  %v11559_v49 = vsel %vm5460_vm7, %v5544_v57, %v11392_v0  ;;  %8476 = vcosq.f32 %v5546_v36  ;;  %v11561_v10 = vand.u32 3, %v5655_v22 }
 0x4f9   : > { %12855 = vst [vmem:[#allocation37_spill] sm:$0xff] %v11559_v49  ;;  %v5680_v14 = vand.u32 31, %v5678_v30  ;;  %8478 = vsinq.f32 %v5546_v36  ;;  %v5636_v26 = vshrl.u32 %v5618_v45, %v5634_v61  ;;  %v5639_v52 = vadd.s32 127, %v5638_v50 }
 0x4fa   : > { %12856 = vst [vmem:[#allocation39_spill] sm:$0xff] %v11561_v10  ;;  %v5831_v39 = vadd.s32 536870912, %v5830_v46  ;;  %v11565_v47 = vshll.u32 %v5674_v25, 8  ;;  %v5877_v42 = vand.u32 2139095040, %v11552_v58  ;;  %v11570_v60 = vadd.f32 %v11145_v18, %v11563_v15 }
 0x4fb   : > { %v5681_v37 = vsub.s32 32, %v5680_v14  ;;  %v5635_v0 = vshll.u32 %v11496_v34, %v5633_v31  ;;  %v5640_v23 = vshll.u32 %v5639_v52, 23  ;;  %vm5772_vm14 = vcmp.lt.s32.totalorder %v11360_v11, 0 }
 0x4fc   : > { %v5832_v56 = vshrl.u32 %v5831_v39, 30  ;;  %v5679_v24 = vshrl.u32 %v5678_v30, 5  ;;  %v11574_v55 = vpop.eup %8472  ;;  %v5683_v57 = vshll.u32 %v12698_v40, %v5680_v14  ;;  %v5689_v25 = vshll.u32 %v12702_v1, %v5680_v14 }
 0x4fd   : > { %v5684_v33 = vshrl.u32 %v12701_v4, %v5681_v37  ;;  %v5687_v21 = vshrl.u32 %v12702_v1, %v5681_v37  ;;  %v5690_v36 = vshrl.u32 %v12703_v59, %v5681_v37  ;;  %v11580_v22 = vpop.eup %8474  ;;  %v5637_v18 = vor.u32 %v5636_v26, %v5635_v0 }
 0x4fe   : > { %v5641_v13 = vor.u32 4788187, %v5640_v23  ;;  %v5833_v34 = vshll.u32 %v5832_v56, 30  ;;  %v5856_v54 = vsub.s32 4, %v5832_v56  ;;  %v5686_v31 = vshll.u32 %v12701_v4, %v5680_v14 }
 0x4ff   : > { %v5692_v17 = vshll.u32 %v12703_v59, %v5680_v14  ;;  %v5693_v30 = vshrl.u32 %v12707_v8, %v5681_v37  ;;  %v12857_v61 = vand.u32 2147483647, %v11360_v11  ;;  %v5685_v26 = vor.u32 %v5684_v33, %v5683_v57 }
 0x500   : > { %v5642_v45 = vand.u32 2147483647, %v5641_v13  ;;  %v11592_v52 = vsub.s32 %v5830_v46, %v5833_v34  ;;  %v5691_v39 = vor.u32 %v5690_v36, %v5689_v25  ;;  %v5688_v0 = vor.u32 %v5687_v21, %v5686_v31 }
 0x501   : > { %vm11588_vm7 = vcmp.le.f32.partialorder %v12857_v61, 0.7853982  ;;  %v5694_v23 = vor.u32 %v5693_v30, %v5692_v17  ;;  %v5695_v10 = vshll.u32 %v12707_v8, %v5680_v14  ;;  %v5696_v44 = vshrl.u32 %v12708_v19, %v5681_v37 }
 0x502   : > { %v5644_v53 = vcvt.s32.f32 %v5637_v18  ;;  %v5826_v13 = vadd.s32 %v11520_v9, %v11526_v51  ;;  %v5836_v3 = vsub.s32 0, %v11592_v52  ;;  %v11600_v49 = vpop.eup %8476  ;;  %v5682_v46 = vshrl.u32 %v12698_v40, %v5681_v37 }
 0x503   : > { %12860 = vst [vmem:[#allocation29_spill] sm:$0xff] %v11600_v49  ;;  %v5697_v57 = vor.u32 %v5696_v44, %v5695_v10  ;;  %vm5701_vm5 = vcmp.lt.s32.totalorder %v5679_v24, 4  ;;  %v5878_v33 = vshrl.u32 %v5877_v42, 23  ;;  %v11603_v21 = vpop.eup %8478  ;;  %vm5698_vm6 = vcmp.lt.s32.totalorder %v5679_v24, 1 }
 0x504   : > { %v5645_v14 = vmul.f32 %v5644_v53, %v5642_v45  ;;  %v7759_v36 = vmin.u32 %v5836_v3, %v11592_v52  ;;  %v5703_v18 = vsel %vm5701_vm5, %v5691_v39, 2102212464  ;;  %v5857_v9 = vsel %vm5772_vm14, %v5856_v54, %v5832_v56 }
 0x505   : > { %vm5700_vm8 = vcmp.lt.s32.totalorder %v5679_v24, 3  ;;  %v5706_v51 = vsel %vm5698_vm6, %v5685_v26, %v5688_v0  ;;  %v5707_v34 = vsel %vm5701_vm5, %v5694_v23, 920167782  ;;  %vm5699_vm10 = vcmp.lt.s32.totalorder %v5679_v24, 2 }
 0x506   : > { %v5838_v25 = vclz %v7759_v36  ;;  %v5708_v44 = vsel %vm5700_vm8, %v5691_v39, %v5707_v34  ;;  %v5710_v10 = vsel %vm5698_vm6, %v5688_v0, %v5691_v39  ;;  %v5702_v37 = vsel %vm5698_vm6, %v5682_v46, %v5685_v26 }
 0x507   : > { %v5704_v42 = vsel %vm5700_vm8, %v5688_v0, %v5703_v18  ;;  %v5709_v31 = vsel %vm5699_vm10, %v5706_v51, %v5708_v44  ;;  %v5711_v53 = vsel %vm5701_vm5, %v5697_v57, 1326507024  ;;  %v5646_v3 = vxor.u32 2147483648, %v5645_v14 }
 0x508   : > { %v7760_v17 = vadd.s32 4294967294, %v5838_v25  ;;  %v5712_v30 = vsel %vm5700_vm8, %v5694_v23, %v5711_v53  ;;  %v7762_v45 = vadd.s32 4294967169, %v5878_v33  ;;  %v5859_v56 = vsel %vm11588_vm7, 0, %v5857_v9 }
 0x509   : > { %v5713_v54 = vsel %vm5699_vm10, %v5710_v10, %v5712_v30  ;;  %v11614_v61 = vmul.u32.u64.low %v11565_v47, %v5709_v31  ;;  %v11615_v49 = vmul.u32.u64.high %v11565_v47, %v5709_v31, %v11614_v61  ;;  %v5705_v39 = vsel %vm5699_vm10, %v5702_v37, %v5704_v42 }
 0x50a   : > { %vm7761_vm4 = vcmp.lt.s32.totalorder %v7760_v17, 0  ;;  %v11619_v26 = vmul.u32.u64.low %v11565_v47, %v5713_v54  ;;  %v11620_v0 = vmul.u32.u64.high %v11565_v47, %v5713_v54, %v11619_v26  ;;  %v12861_v46 = vand.u32 2147483647, %v11552_v58 }
 0x50b   : > { %v5841_v24 = vsel %vm7761_vm4, 0, %v7760_v17  ;;  %v5884_v57 = vadd.s32 1, %v7762_v45  ;;  %v12654_v33 = vand.u32 2147483647, %v11570_v60  ;;  %v5647_v36 = vsel %vm5564_vm11, %v5646_v3, %v5645_v14 }
 0x50c   : > { %v5881_v23 = vand.u32 8388607, %v12861_v46  ;;  %v5842_v18 = vsub.s32 32, %v5841_v24  ;;  %v5846_v9 = vsub.s32 4294967266, %v5841_v24  ;;  %v5863_v51 = vadd.s32 3, %v5859_v56 }
 0x50d   : > { %v5843_v34 = vshll.u32 %v11592_v52, %v5841_v24  ;;  %v5721_v25 = vmul.u32 %v11565_v47, %v5705_v39  ;;  %v5724_v44 = vadd.s32 1, %v11615_v49  ;;  %vm5885_vm0 = vcmp.gt.s32.totalorder %v5884_v57, 0 }
 0x50e   : > { %v5844_v10 = vshrl.u32 %v5826_v13, %v5842_v18  ;;  %v5847_v37 = vadd.s32 127, %v5846_v9  ;;  %vm5723_vm3 = vc.u32 %v11620_v0, %v11614_v61  ;;  %v5981_v42 = vand.u32 2139095040, %v11570_v60 }
 0x50f   : > { %v5725_v31 = vsel %vm5723_vm3, %v5724_v44, %v11615_v49  ;;  %v5886_v14 = vsel %vm5885_vm0, %v5884_v57, 0  ;;  %v11636_v53 = vadd.f32 %v11215_v62, %v11563_v15  ;;  %v11640_v47 = vadd.f32 %v11292_v29, %v11563_v15 }
 0x510   : > { %v5845_v52 = vor.u32 %v5844_v10, %v5843_v34  ;;  %v5848_v3 = vshll.u32 %v5847_v37, 23  ;;  %v5726_v13 = vadd.s32 %v5725_v31, %v5721_v25  ;;  %v11644_v17 = vadd.f32 %v11373_v20, %v11563_v15 }
 0x511   : > { %v5650_v49 = vsel %vm11467_vm9, %v11143_v48, %v5647_v36  ;;  %v11649_v30 = vand.u32 3, %v5863_v51  ;;  %v5882_v45 = vor.u32 8388608, %v5881_v23  ;;  %v5888_v62 = vand.u32 31, %v5886_v14 }
 0x512   : > { %v5849_v56 = vor.u32 4788187, %v5848_v3  ;;  %v5727_v54 = vadd.s32 536870912, %v5726_v13  ;;  %v5982_v39 = vshrl.u32 %v5981_v42, 23  ;;  %v11653_v29 = vand.u32 8388607, %v12654_v33 }
 0x513   : > { %12862 = vst [vmem:[#allocation16_spill] sm:$0xff] %v11649_v30  ;;  %v5852_v26 = vcvt.s32.f32 %v5845_v52  ;;  %v5887_v24 = vshrl.u32 %v5886_v14, 5  ;;  %v5889_v46 = vsub.s32 32, %v5888_v62  ;;  %v5891_v20 = vshll.u32 %v12698_v40, %v5888_v62 }
 0x514   : > { %v5850_v15 = vand.u32 2147483647, %v5849_v56  ;;  %v5728_v57 = vshrl.u32 %v5727_v54, 30  ;;  %v5894_v12 = vshll.u32 %v12701_v4, %v5888_v62  ;;  %v5897_v36 = vshll.u32 %v12702_v1, %v5888_v62 }
 0x515   : > { %v5892_v23 = vshrl.u32 %v12701_v4, %v5889_v46  ;;  %v5895_v18 = vshrl.u32 %v12702_v1, %v5889_v46  ;;  %v5898_v9 = vshrl.u32 %v12703_v59, %v5889_v46  ;;  %v5900_v51 = vshll.u32 %v12703_v59, %v5888_v62 }
 0x516   : > { %v5853_v34 = vmul.f32 %v5852_v26, %v5850_v15  ;;  %v5729_v25 = vshll.u32 %v5728_v57, 30  ;;  %v5901_v44 = vshrl.u32 %v12707_v8, %v5889_v46  ;;  %v5903_v10 = vshll.u32 %v12707_v8, %v5888_v62 }
 0x517   : > { %v5893_v37 = vor.u32 %v5892_v23, %v5891_v20  ;;  %v5896_v42 = vor.u32 %v5895_v18, %v5894_v12  ;;  %v5899_v31 = vor.u32 %v5898_v9, %v5897_v36  ;;  %v5904_v14 = vshrl.u32 %v12708_v19, %v5889_v46 }
 0x518   : > { %v5854_v52 = vxor.u32 2147483648, %v5853_v34  ;;  %v11665_v3 = vsub.s32 %v5726_v13, %v5729_v25  ;;  %v5902_v56 = vor.u32 %v5901_v44, %v5900_v51  ;;  %v5922_v54 = vshll.u32 %v5882_v45, 8 }
 0x519   : > { %v5905_v33 = vor.u32 %v5904_v14, %v5903_v10  ;;  %vm5909_vm11 = vcmp.lt.s32.totalorder %v5887_v24, 4  ;;  %v7766_v30 = vadd.s32 4294967169, %v5982_v39  ;;  %v5986_v26 = vor.u32 8388608, %v11653_v29 }
 0x51a   : > { %vm5668_vm9 = vcmp.lt.s32.totalorder %v11383_v2, 0  ;;  %v5732_v15 = vsub.s32 0, %v11665_v3  ;;  %v5890_v62 = vshrl.u32 %v12698_v40, %v5889_v46  ;;  %vm5906_vm5 = vcmp.lt.s32.totalorder %v5887_v24, 1 }
 0x51b   : > { %v5911_v20 = vsel %vm5909_vm11, %v5899_v31, 2102212464  ;;  %vm5907_vm6 = vcmp.lt.s32.totalorder %v5887_v24, 2  ;;  %vm5908_vm8 = vcmp.lt.s32.totalorder %v5887_v24, 3  ;;  %v5914_v13 = vsel %vm5906_vm5, %v5893_v37, %v5896_v42 }
 0x51c   : > { %v5915_v12 = vsel %vm5909_vm11, %v5902_v56, 920167782  ;;  %v5855_v45 = vsel %vm5772_vm14, %v5854_v52, %v5853_v34  ;;  %v7755_v39 = vmin.u32 %v5732_v15, %v11665_v3  ;;  %v5910_v29 = vsel %vm5906_vm5, %v5890_v62, %v5893_v37 }
 0x51d   : > { %v5916_v36 = vsel %vm5908_vm8, %v5899_v31, %v5915_v12  ;;  %v5912_v23 = vsel %vm5908_vm8, %v5896_v42, %v5911_v20  ;;  %v5918_v9 = vsel %vm5906_vm5, %v5896_v42, %v5899_v31  ;;  %v5919_v46 = vsel %vm5909_vm11, %v5905_v33, 1326507024 }
 0x51e   : > { %v5917_v18 = vsel %vm5907_vm6, %v5914_v13, %v5916_v36  ;;  %v5734_v51 = vclz %v7755_v39  ;;  %v5920_v25 = vsel %vm5908_vm8, %v5902_v56, %v5919_v46  ;;  %8480 = vcosq.f32 %v5650_v49 }
 0x51f   : > { %v11678_v44 = vmul.u32.u64.low %v5922_v54, %v5917_v18  ;;  %v11679_v10 = vmul.u32.u64.high %v5922_v54, %v5917_v18, %v11678_v44  ;;  %v5752_v14 = vsub.s32 4, %v5728_v57  ;;  %v5921_v34 = vsel %vm5907_vm6, %v5918_v9, %v5920_v25 }
 0x520   : > { %v5988_v52 = vadd.s32 1, %v7766_v30  ;;  %8482 = vsinq.f32 %v5650_v49  ;;  %v7756_v37 = vadd.s32 4294967294, %v5734_v51  ;;  %v11689_v33 = vsel %vm11588_vm7, %v11360_v11, %v5855_v45 }
 0x521   : > { %v11683_v15 = vmul.u32.u64.low %v5922_v54, %v5921_v34  ;;  %v11684_v62 = vmul.u32.u64.high %v5922_v54, %v5921_v34, %v11683_v15  ;;  %v5722_v42 = vadd.s32 %v11614_v61, %v11620_v0  ;;  %v5913_v31 = vsel %vm5907_vm6, %v5910_v29, %v5912_v23 }
 0x522   : > { %vm5989_vm14 = vcmp.gt.s32.totalorder %v5988_v52, 0  ;;  %vm7757_vm10 = vcmp.lt.s32.totalorder %v7756_v37, 0  ;;  %v5932_v56 = vadd.s32 1, %v11679_v10  ;;  %v11695_v49 = vshll.u32 %v5986_v26, 8 }
 0x523   : > { %v5990_v30 = vsel %vm5989_vm14, %v5988_v52, 0  ;;  %v5737_v20 = vsel %vm7757_vm10, 0, %v7756_v37  ;;  %v11699_v13 = vsel %vm5668_vm9, %v5752_v14, %v5728_v57  ;;  %8484 = vcosq.f32 %v11689_v33 }
 0x524   : > { %v5992_v50 = vand.u32 31, %v5990_v30  ;;  %v5738_v61 = vsub.s32 32, %v5737_v20  ;;  %v5742_v0 = vsub.s32 4294967266, %v5737_v20  ;;  %v5929_v24 = vmul.u32 %v5922_v54, %v5913_v31 }
 0x525   : > { %v5739_v45 = vshll.u32 %v11665_v3, %v5737_v20  ;;  %vm5931_vm7 = vc.u32 %v11684_v62, %v11678_v44  ;;  %v6189_v39 = vand.u32 2139095040, %v11636_v53  ;;  %v5991_v37 = vshrl.u32 %v5990_v30, 5 }
 0x526   : > { %v5993_v26 = vsub.s32 32, %v5992_v50  ;;  %v5740_v29 = vshrl.u32 %v5722_v42, %v5738_v61  ;;  %v5743_v36 = vadd.s32 127, %v5742_v0  ;;  %v5933_v57 = vsel %vm5931_vm7, %v5932_v56, %v11679_v10 }
 0x527   : > { %v5995_v23 = vshll.u32 %v12698_v40, %v5992_v50  ;;  %v5934_v18 = vadd.s32 %v5933_v57, %v5929_v24  ;;  %v5998_v46 = vshll.u32 %v12701_v4, %v5992_v50  ;;  %v6001_v25 = vshll.u32 %v12702_v1, %v5992_v50 }
 0x528   : > { %v5996_v9 = vshrl.u32 %v12701_v4, %v5993_v26  ;;  %v5999_v54 = vshrl.u32 %v12702_v1, %v5993_v26  ;;  %v5741_v3 = vor.u32 %v5740_v29, %v5739_v45  ;;  %v5744_v51 = vshll.u32 %v5743_v36, 23  ;;  %v11714_v34 = vpop.eup %8480 }
 0x529   : > { %v6002_v14 = vshrl.u32 %v12703_v59, %v5993_v26  ;;  %12863 = vst [vmem:[#allocation31_spill] sm:$0xff] %v11714_v34  ;;  %v5935_v52 = vadd.s32 536870912, %v5934_v18  ;;  %v6004_v10 = vshll.u32 %v12703_v59, %v5992_v50  ;;  %v6005_v15 = vshrl.u32 %v12707_v8, %v5993_v26 }
 0x52a   : > { %v11718_v42 = vpop.eup %8482  ;;  %v5745_v31 = vor.u32 4788187, %v5744_v51  ;;  %v5997_v56 = vor.u32 %v5996_v9, %v5995_v23  ;;  %v6000_v20 = vor.u32 %v5999_v54, %v5998_v46  ;;  %v6007_v45 = vshll.u32 %v12707_v8, %v5992_v50 }
 0x52b   : > { %12864 = vst [vmem:[#allocation35_spill] sm:$0xff] %v11718_v42  ;;  %v6003_v61 = vor.u32 %v6002_v14, %v6001_v25  ;;  %v5936_v0 = vshrl.u32 %v5935_v52, 30  ;;  %v6006_v24 = vor.u32 %v6005_v15, %v6004_v10  ;;  %v6008_v29 = vshrl.u32 %v12708_v19, %v5993_v26 }
 0x52c   : > { %v5746_v36 = vand.u32 2147483647, %v5745_v31  ;;  %v5748_v57 = vcvt.s32.f32 %v5741_v3  ;;  %v6190_v12 = vshrl.u32 %v6189_v39, 23  ;;  %v12865_v30 = vand.u32 2147483647, %v11636_v53 }
 0x52d   : > { %v12866_v34 = vand.u32 2147483647, %v11383_v2  ;;  %v5937_v23 = vshll.u32 %v5936_v0, 30  ;;  %v6009_v9 = vor.u32 %v6008_v29, %v6007_v45  ;;  %vm6010_vm0 = vcmp.lt.s32.totalorder %v5991_v37, 1  ;;  %v11730_v46 = vpop.eup %8484 }
 0x52e   : > { %v6193_v11 = vand.u32 8388607, %v12865_v30  ;;  %vm6013_vm3 = vcmp.lt.s32.totalorder %v5991_v37, 4  ;;  %12869 = vst [vmem:[#allocation34_spill] sm:$0xff] %v11730_v46  ;;  %v5749_v50 = vmul.f32 %v5748_v57, %v5746_v36  ;;  %vm6012_vm11 = vcmp.lt.s32.totalorder %v5991_v37, 3 }
 0x52f   : > { %vm11726_vm4 = vcmp.le.f32.partialorder %v12866_v34, 0.7853982  ;;  %v6018_v54 = vsel %vm6010_vm0, %v5997_v56, %v6000_v20  ;;  %v6019_v39 = vsel %vm6013_vm3, %v6006_v24, 920167782  ;;  %vm5876_vm5 = vcmp.lt.s32.totalorder %v11552_v58, 0 }
 0x530   : > { %v11735_v3 = vsub.s32 %v5934_v18, %v5937_v23  ;;  %vm6011_vm6 = vcmp.lt.s32.totalorder %v5991_v37, 2  ;;  %v6015_v51 = vsel %vm6013_vm3, %v6003_v61, 2102212464  ;;  %v6020_v25 = vsel %vm6012_vm11, %v6003_v61, %v6019_v39 }
 0x531   : > { %v5750_v14 = vxor.u32 2147483648, %v5749_v50  ;;  %v5994_v34 = vshrl.u32 %v12698_v40, %v5993_v26  ;;  %v6021_v52 = vsel %vm6011_vm6, %v6018_v54, %v6020_v25  ;;  %v6022_v10 = vsel %vm6010_vm0, %v6000_v20, %v6003_v61 }
 0x532   : > { %v5940_v15 = vsub.s32 0, %v11735_v3  ;;  %v6023_v31 = vsel %vm6013_vm3, %v6009_v9, 1326507024  ;;  %v11745_v45 = vmul.u32.u64.low %v11695_v49, %v6021_v52  ;;  %v11746_v18 = vmul.u32.u64.high %v11695_v49, %v6021_v52, %v11745_v45 }
 0x533   : > { %v6014_v29 = vsel %vm6010_vm0, %v5994_v34, %v5997_v56  ;;  %v6016_v36 = vsel %vm6012_vm11, %v6000_v20, %v6015_v51  ;;  %v6024_v57 = vsel %vm6012_vm11, %v6006_v24, %v6023_v31  ;;  %v7774_v26 = vadd.s32 4294967169, %v6190_v12 }
 0x534   : > { %v5751_v30 = vsel %vm5668_vm9, %v5750_v14, %v5749_v50  ;;  %v7763_v61 = vmin.u32 %v5940_v15, %v11735_v3  ;;  %v6025_v23 = vsel %vm6011_vm6, %v6022_v10, %v6024_v57  ;;  %v12660_v9 = vand.u32 2147483647, %v11640_v47 }
 0x535   : > { %v5960_v54 = vsub.s32 4, %v5936_v0  ;;  %v11758_v39 = vmul.u32.u64.low %v11695_v49, %v6025_v23  ;;  %v11759_v25 = vmul.u32.u64.high %v11695_v49, %v6025_v23, %v11758_v39  ;;  %v6196_v56 = vadd.s32 1, %v7774_v26 }
 0x536   : > { %v5942_v34 = vclz %v7763_v61  ;;  %v6017_v20 = vsel %vm6011_vm6, %v6014_v29, %v6016_v36  ;;  %v6036_v12 = vadd.s32 1, %v11746_v18  ;;  %v6194_v24 = vor.u32 8388608, %v6193_v11 }
 0x537   : > { %8486 = vsinq.f32 %v11689_v33  ;;  %v11767_v50 = vsel %vm11726_vm4, %v11383_v2, %v5751_v30  ;;  %v5930_v51 = vadd.s32 %v11678_v44, %v11684_v62  ;;  %vm6197_vm9 = vcmp.gt.s32.totalorder %v6196_v56, 0 }
 0x538   : > { %v7764_v14 = vadd.s32 4294967294, %v5942_v34  ;;  %v6198_v52 = vsel %vm6197_vm9, %v6196_v56, 0  ;;  %v6085_v10 = vand.u32 2139095040, %v11640_v47  ;;  %v11774_v37 = vand.u32 8388607, %v12660_v9 }
 0x539   : > { %v11778_v11 = vsel %vm5876_vm5, %v5960_v54, %v5936_v0  ;;  %v6033_v33 = vmul.u32 %v11695_v49, %v6017_v20  ;;  %vm6035_vm8 = vc.u32 %v11759_v25, %v11745_v45  ;;  %v6200_v15 = vand.u32 31, %v6198_v52 }
 0x53a   : > { %12870 = vst [vmem:[#allocation41_spill] sm:$0xff] %v11778_v11  ;;  %8488 = vcosq.f32 %v11767_v50  ;;  %vm7765_vm14 = vcmp.lt.s32.totalorder %v7764_v14, 0  ;;  %vm5980_vm10 = vcmp.lt.s32.totalorder %v11570_v60, 0  ;;  %v6037_v44 = vsel %vm6035_vm8, %v6036_v12, %v11746_v18 }
 0x53b   : > { %v11786_v62 = vshll.u32 %v6194_v24, 8  ;;  %v5945_v31 = vsel %vm7765_vm14, 0, %v7764_v14  ;;  %v6038_v29 = vadd.s32 %v6037_v44, %v6033_v33  ;;  %v11788_v36 = vshrl.u32 %v6198_v52, 5 }
 0x53c   : > { %v6201_v0 = vsub.s32 32, %v6200_v15  ;;  %v5946_v57 = vsub.s32 32, %v5945_v31  ;;  %v5950_v49 = vsub.s32 4294967266, %v5945_v31  ;;  %v12871_v26 = vand.u32 2147483647, %v11570_v60 }
 0x53d   : > { %v6086_v61 = vshrl.u32 %v6085_v10, 23  ;;  %v5947_v18 = vshll.u32 %v11735_v3, %v5945_v31  ;;  %v6039_v54 = vadd.s32 536870912, %v6038_v29  ;;  %v6203_v39 = vshll.u32 %v12698_v40, %v6200_v15 }
 0x53e   : > { %vm11792_vm7 = vcmp.le.f32.partialorder %v12871_v26, 0.7853982  ;;  %v6204_v56 = vshrl.u32 %v12701_v4, %v6201_v0  ;;  %v5948_v34 = vshrl.u32 %v5930_v51, %v5946_v57  ;;  %v5951_v20 = vadd.s32 127, %v5950_v49 }
 0x53f   : > { %v6207_v12 = vshrl.u32 %v12702_v1, %v6201_v0  ;;  %v6210_v24 = vshrl.u32 %v12703_v59, %v6201_v0  ;;  %v6040_v14 = vshrl.u32 %v6039_v54, 30  ;;  %v6206_v33 = vshll.u32 %v12701_v4, %v6200_v15 }
 0x540   : > { %v6205_v52 = vor.u32 %v6204_v56, %v6203_v39  ;;  %v6209_v10 = vshll.u32 %v12702_v1, %v6200_v15  ;;  %v5949_v44 = vor.u32 %v5948_v34, %v5947_v18  ;;  %v5952_v26 = vshll.u32 %v5951_v20, 23 }
 0x541   : > { %v6212_v3 = vshll.u32 %v12703_v59, %v6200_v15  ;;  %v6213_v31 = vshrl.u32 %v12707_v8, %v6201_v0  ;;  %v11806_v9 = vpop.eup %8486  ;;  %v6041_v51 = vshll.u32 %v6040_v14, 30  ;;  %v6064_v57 = vsub.s32 4, %v6040_v14 }
 0x542   : > { %12874 = vst [vmem:[#allocation22_spill] sm:$0xff] %v11806_v9  ;;  %v6211_v49 = vor.u32 %v6210_v24, %v6209_v10  ;;  %v6216_v23 = vshrl.u32 %v12708_v19, %v6201_v0  ;;  %v5953_v46 = vor.u32 4788187, %v5952_v26  ;;  %v6208_v54 = vor.u32 %v6207_v12, %v6206_v33 }
 0x543   : > { %v6214_v39 = vor.u32 %v6213_v31, %v6212_v3  ;;  %v6215_v56 = vshll.u32 %v12707_v8, %v6200_v15  ;;  %v12875_v48 = vand.u32 2147483647, %v11552_v58  ;;  %v12876_v18 = vmov 0 }
 0x544   : > { %v5956_v34 = vcvt.s32.f32 %v5949_v44  ;;  %v11816_v20 = vsub.s32 %v6038_v29, %v6041_v51  ;;  %v6065_v9 = vsel %vm5980_vm10, %v6064_v57, %v6040_v14  ;;  %v6202_v24 = vshrl.u32 %v12698_v40, %v6201_v0  ;;  %v11821_v10 = vpop.eup %8488 }
 0x545   : > { %vm11812_vm0 = vcmp.le.f32.partialorder %v12875_v48, 0.7853982  ;;  %12879 = vst [vmem:[#allocation38_spill] sm:$0xff] %v11821_v10  ;;  %v5954_v12 = vand.u32 2147483647, %v5953_v46  ;;  %v6217_v33 = vor.u32 %v6216_v23, %v6215_v56  ;;  %vm6218_vm3 = vcmp.lt.s32.totalorder %v11788_v36, 1 }
 0x546   : > { %v12877_v18 = vsel %vm11812_vm0, 4294967295, %v12876_v18  ;;  %vm6221_vm11 = vcmp.lt.s32.totalorder %v11788_v36, 4  ;;  %v6044_v48 = vsub.s32 0, %v11816_v20  ;;  %v6067_v15 = vsel %vm11792_vm7, 0, %v6065_v9 }
 0x547   : > { %12878 = vst [vmem:[#allocation33_spill] sm:$0xff] %v12877_v18  ;;  %vm6219_vm6 = vcmp.lt.s32.totalorder %v11788_v36, 2  ;;  %v6223_v29 = vsel %vm6221_vm11, %v6211_v49, 2102212464  ;;  %v5957_v14 = vmul.f32 %v5956_v34, %v5954_v12  ;;  %vm6220_vm9 = vcmp.lt.s32.totalorder %v11788_v36, 3 }
 0x548   : > { %v6226_v46 = vsel %vm6218_vm3, %v6205_v52, %v6208_v54  ;;  %v6227_v0 = vsel %vm6221_vm11, %v6214_v39, 920167782  ;;  %v7767_v23 = vmin.u32 %v6044_v48, %v11816_v20  ;;  %v6222_v44 = vsel %vm6218_vm3, %v6202_v24, %v6205_v52 }
 0x549   : > { %v6224_v9 = vsel %vm6220_vm9, %v6208_v54, %v6223_v29  ;;  %v6228_v26 = vsel %vm6220_vm9, %v6211_v49, %v6227_v0  ;;  %v5958_v3 = vxor.u32 2147483648, %v5957_v14  ;;  %v6230_v51 = vsel %vm6218_vm3, %v6208_v54, %v6211_v49 }
 0x54a   : > { %v6229_v31 = vsel %vm6219_vm6, %v6226_v46, %v6228_v26  ;;  %v6231_v57 = vsel %vm6221_vm11, %v6217_v33, 1326507024  ;;  %v6046_v56 = vclz %v7767_v23  ;;  %v6071_v24 = vadd.s32 3, %v6067_v15 }
 0x54b   : > { %v6232_v34 = vsel %vm6220_vm9, %v6214_v39, %v6231_v57  ;;  %v11846_v12 = vmul.u32.u64.low %v11786_v62, %v6229_v31  ;;  %v11847_v48 = vmul.u32.u64.high %v11786_v62, %v6229_v31, %v11846_v12  ;;  %v5959_v52 = vsel %vm5876_vm5, %v5958_v3, %v5957_v14 }
 0x54c   : > { %v6233_v29 = vsel %vm6219_vm6, %v6230_v51, %v6232_v34  ;;  %v7770_v46 = vadd.s32 4294967169, %v6086_v61  ;;  %v7768_v0 = vadd.s32 4294967294, %v6046_v56  ;;  %v6225_v49 = vsel %vm6219_vm6, %v6222_v44, %v6224_v9 }
 0x54d   : > { %v11856_v54 = vmul.u32.u64.low %v11786_v62, %v6233_v29  ;;  %v11857_v33 = vmul.u32.u64.high %v11786_v62, %v6233_v29, %v11856_v54  ;;  %8490 = vsinq.f32 %v11767_v50  ;;  %v5962_v39 = vsel %vm11812_vm0, %v11552_v58, %v5959_v52 }
 0x54e   : > { %v6092_v14 = vadd.s32 1, %v7770_v46  ;;  %v12665_v15 = vand.u32 2147483647, %v11644_v17  ;;  %v6034_v61 = vadd.s32 %v11745_v45, %v11759_v25  ;;  %vm7769_vm5 = vcmp.lt.s32.totalorder %v7768_v0, 0 }
 0x54f   : > { %v6244_v36 = vadd.s32 1, %v11847_v48  ;;  %v6293_v23 = vand.u32 2139095040, %v11644_v17  ;;  %v6049_v44 = vsel %vm7769_vm5, 0, %v7768_v0  ;;  %v11868_v9 = vand.u32 3, %v6071_v24 }
 0x550   : > { %v6241_v50 = vmul.u32 %v11786_v62, %v6225_v49  ;;  %vm6093_vm8 = vcmp.gt.s32.totalorder %v6092_v14, 0  ;;  %8492 = vcosq.f32 %v5962_v39  ;;  %v6050_v26 = vsub.s32 32, %v6049_v44 }
 0x551   : > { %12880 = vst [vmem:[#allocation36_spill] sm:$0xff] %v11868_v9  ;;  %v6054_v3 = vsub.s32 4294967266, %v6049_v44  ;;  %v12881_v31 = vor.u32 8388608, %v11774_v37  ;;  %8494 = vsinq.f32 %v5962_v39  ;;  %vm6243_vm14 = vc.u32 %v11857_v33, %v11846_v12 }
 0x552   : > { %v6094_v45 = vsel %vm6093_vm8, %v6092_v14, 0  ;;  %v6294_v25 = vshrl.u32 %v6293_v23, 23  ;;  %v6051_v57 = vshll.u32 %v11816_v20, %v6049_v44  ;;  %v6052_v56 = vshrl.u32 %v6034_v61, %v6050_v26 }
 0x553   : > { %v11873_v51 = vshll.u32 %v12881_v31, 8  ;;  %v6055_v34 = vadd.s32 127, %v6054_v3  ;;  %vm6188_vm3 = vcmp.lt.s32.totalorder %v11636_v53, 0  ;;  %v6245_v62 = vsel %vm6243_vm14, %v6244_v36, %v11847_v48 }
 0x554   : > { %v6246_v52 = vadd.s32 %v6245_v62, %v6241_v50  ;;  %v6096_v24 = vand.u32 31, %v6094_v45  ;;  %v11881_v37 = vand.u32 8388607, %v12665_v15  ;;  %v6053_v46 = vor.u32 %v6052_v56, %v6051_v57 }
 0x555   : > { %v6056_v0 = vshll.u32 %v6055_v34, 23  ;;  %v12882_v20 = vand.u32 2147483647, %v11636_v53  ;;  %v11893_v48 = vadd.s32 %v11846_v12, %v11857_v33  ;;  %v6095_v54 = vshrl.u32 %v6094_v45, 5 }
 0x556   : > { %v6247_v39 = vadd.s32 536870912, %v6246_v52  ;;  %v6097_v14 = vsub.s32 32, %v6096_v24  ;;  %v6099_v61 = vshll.u32 %v12698_v40, %v6096_v24  ;;  %v7778_v36 = vadd.s32 4294967169, %v6294_v25 }
 0x557   : > { %vm11888_vm11 = vcmp.le.f32.partialorder %v12882_v20, 0.7853982  ;;  %v6057_v23 = vor.u32 4788187, %v6056_v0  ;;  %v6060_v44 = vcvt.s32.f32 %v6053_v46  ;;  %v6102_v50 = vshll.u32 %v12701_v4, %v6096_v24  ;;  %v11898_v3 = vpop.eup %8490 }
 0x558   : > { %v6105_v26 = vshll.u32 %v12702_v1, %v6096_v24  ;;  %v6248_v31 = vshrl.u32 %v6247_v39, 30  ;;  %v6100_v57 = vshrl.u32 %v12701_v4, %v6097_v14  ;;  %v6103_v12 = vshrl.u32 %v12702_v1, %v6097_v14 }
 0x559   : > { %v6108_v33 = vshll.u32 %v12703_v59, %v6096_v24  ;;  %v6058_v45 = vand.u32 2147483647, %v6057_v23  ;;  %v6106_v56 = vshrl.u32 %v12703_v59, %v6097_v14  ;;  %v6109_v25 = vshrl.u32 %v12707_v8, %v6097_v14 }
 0x55a   : > { %v6111_v34 = vshll.u32 %v12707_v8, %v6096_v24  ;;  %v6249_v62 = vshll.u32 %v6248_v31, 30  ;;  %v6272_v46 = vsub.s32 4, %v6248_v31  ;;  %v6101_v0 = vor.u32 %v6100_v57, %v6099_v61  ;;  %v11906_v15 = vpop.eup %8492 }
 0x55b   : > { %v6104_v20 = vor.u32 %v6103_v12, %v6102_v50  ;;  %v6061_v39 = vmul.f32 %v6060_v44, %v6058_v45  ;;  %v6107_v29 = vor.u32 %v6106_v56, %v6105_v26  ;;  %v6110_v9 = vor.u32 %v6109_v25, %v6108_v33  ;;  %v11909_v18 = vpop.eup %8494 }
 0x55c   : > { %v6112_v58 = vshrl.u32 %v12708_v19, %v6097_v14  ;;  %v11911_v23 = vsub.s32 %v6246_v52, %v6249_v62  ;;  %v6273_v11 = vsel %vm6188_vm3, %v6272_v46, %v6248_v31  ;;  %v6098_v24 = vshrl.u32 %v12698_v40, %v6097_v14 }
 0x55d   : > { %vm6114_vm6 = vcmp.lt.s32.totalorder %v6095_v54, 1  ;;  %v6062_v10 = vxor.u32 2147483648, %v6061_v39  ;;  %vm6116_vm9 = vcmp.lt.s32.totalorder %v6095_v54, 3  ;;  %vm6117_vm5 = vcmp.lt.s32.totalorder %v6095_v54, 4 }
 0x55e   : > { %v6113_v61 = vor.u32 %v6112_v58, %v6111_v34  ;;  %v6252_v44 = vsub.s32 0, %v11911_v23  ;;  %v6275_v50 = vsel %vm11888_vm11, 0, %v6273_v11  ;;  %v6118_v26 = vsel %vm6114_vm6, %v6098_v24, %v6101_v0 }
 0x55f   : > { %v6119_v57 = vsel %vm6117_vm5, %v6107_v29, 2102212464  ;;  %v6063_v52 = vsel %vm5980_vm10, %v6062_v10, %v6061_v39  ;;  %v6122_v12 = vsel %vm6114_vm6, %v6101_v0, %v6104_v20  ;;  %v6123_v14 = vsel %vm6117_vm5, %v6110_v9, 920167782 }
 0x560   : > { %v6120_v31 = vsel %vm6116_vm9, %v6104_v20, %v6119_v57  ;;  %v7775_v58 = vmin.u32 %v6252_v44, %v11911_v23  ;;  %vm6115_vm8 = vcmp.lt.s32.totalorder %v6095_v54, 2  ;;  %v6126_v33 = vsel %vm6114_vm6, %v6104_v20, %v6107_v29 }
 0x561   : > { %v6298_v45 = vor.u32 8388608, %v11881_v37  ;;  %v6066_v11 = vsel %vm11792_vm7, %v11570_v60, %v6063_v52  ;;  %v6279_v56 = vadd.s32 3, %v6275_v50  ;;  %v6124_v25 = vsel %vm6116_vm9, %v6107_v29, %v6123_v14 }
 0x562   : > { %v6127_v10 = vsel %vm6117_vm5, %v6113_v61, 1326507024  ;;  %v6254_v34 = vclz %v7775_v58  ;;  %v6121_v62 = vsel %vm6115_vm8, %v6118_v26, %v6120_v31  ;;  %v6125_v46 = vsel %vm6115_vm8, %v6122_v12, %v6124_v25 }
 0x563   : > { %v6128_v0 = vsel %vm6116_vm9, %v6110_v9, %v6127_v10  ;;  %v11933_v24 = vmul.u32.u64.low %v11873_v51, %v6125_v46  ;;  %v11934_v20 = vmul.u32.u64.high %v11873_v51, %v6125_v46, %v11933_v24  ;;  %v6300_v37 = vadd.s32 1, %v7778_v36 }
 0x564   : > { %v6129_v39 = vsel %vm6115_vm8, %v6126_v33, %v6128_v0  ;;  %v7776_v44 = vadd.s32 4294967294, %v6254_v34  ;;  %v11941_v29 = vshll.u32 %v6298_v45, 8  ;;  %8496 = vcosq.f32 %v6066_v11 }
 0x565   : > { %v11938_v30 = vmul.u32.u64.low %v11873_v51, %v6129_v39  ;;  %v11939_v50 = vmul.u32.u64.high %v11873_v51, %v6129_v39, %v11938_v30  ;;  %v11943_v61 = vand.u32 3, %v6279_v56  ;;  %v6137_v54 = vmul.u32 %v11873_v51, %v6121_v62 }
 0x566   : > { %vm6301_vm10 = vcmp.gt.s32.totalorder %v6300_v37, 0  ;;  %8498 = vsinq.f32 %v6066_v11  ;;  %vm7777_vm7 = vcmp.lt.s32.totalorder %v7776_v44, 0  ;;  %v12885_v36 = vsel %vm11121_vm15, 0, %v11133_v16 }
 0x567   : > { %v6302_v9 = vsel %vm6301_vm10, %v6300_v37, 0  ;;  %v11950_v26 = vadd.s32 3, %v12885_v36  ;;  %v6257_v57 = vsel %vm7777_vm7, 0, %v7776_v44  ;;  %v6140_v52 = vadd.s32 1, %v11934_v20 }
 0x568   : > { %v6304_v31 = vand.u32 31, %v6302_v9  ;;  %v4931_v12 = vxor.u32 2147483648, %v11313_v43  ;;  %v6258_v14 = vsub.s32 32, %v6257_v57  ;;  %v6262_v58 = vsub.s32 4294967266, %v6257_v57 }
 0x569   : > { %v11954_v33 = vshrl.u32 %v6302_v9, 5  ;;  %v5339_v51 = vsel %vm11446_vm1, 0, %v11536_v35  ;;  %v6259_v7 = vshll.u32 %v11911_v23, %v6257_v57  ;;  %vm6139_vm15 = vc.u32 %v11939_v50, %v11933_v24 }
 0x56a   : > { %v6305_v16 = vsub.s32 32, %v6304_v31  ;;  %v6307_v45 = vshll.u32 %v12698_v40, %v6304_v31  ;;  %v6260_v11 = vshrl.u32 %v11893_v48, %v6258_v14  ;;  %v6263_v56 = vadd.s32 127, %v6262_v58 }
 0x56b   : > { %v6141_v25 = vsel %vm6139_vm15, %v6140_v52, %v11934_v20  ;;  %v6310_v10 = vshll.u32 %v12701_v4, %v6304_v31  ;;  %v6313_v23 = vshll.u32 %v12702_v1, %v6304_v31  ;;  %v6316_v9 = vshll.u32 %v12703_v59, %v6304_v31 }
 0x56c   : > { %v6142_v34 = vadd.s32 %v6141_v25, %v6137_v54  ;;  %v6308_v62 = vshrl.u32 %v12701_v4, %v6305_v16  ;;  %v6311_v46 = vshrl.u32 %v12702_v1, %v6305_v16  ;;  %v6261_v0 = vor.u32 %v6260_v11, %v6259_v7 }
 0x56d   : > { %v6264_v39 = vshll.u32 %v6263_v56, 23  ;;  %v6306_v37 = vshrl.u32 %v12698_v40, %v6305_v16  ;;  %v6314_v44 = vshrl.u32 %v12703_v59, %v6305_v16  ;;  %v6317_v20 = vshrl.u32 %v12707_v8, %v6305_v16 }
 0x56e   : > { %v6143_v30 = vadd.s32 536870912, %v6142_v34  ;;  %v6309_v48 = vor.u32 %v6308_v62, %v6307_v45  ;;  %v6268_v54 = vcvt.s32.f32 %v6261_v0  ;;  %v6312_v57 = vor.u32 %v6311_v46, %v6310_v10  ;;  %v11973_v52 = vpop.eup %8496 }
 0x56f   : > { %v6265_v36 = vor.u32 4788187, %v6264_v39  ;;  %v6315_v4 = vor.u32 %v6314_v44, %v6313_v23  ;;  %vm6084_vm14 = vcmp.lt.s32.totalorder %v11640_v47, 0  ;;  %v6318_v14 = vor.u32 %v6317_v20, %v6316_v9 }
 0x570   : > { %v6144_v1 = vshrl.u32 %v6143_v30, 30  ;;  %v6319_v40 = vshll.u32 %v12707_v8, %v6304_v31  ;;  %v6320_v58 = vshrl.u32 %v12708_v19, %v6305_v16  ;;  %v11978_v7 = vpop.eup %8498  ;;  %vm6322_vm6 = vcmp.lt.s32.totalorder %v11954_v33, 1 }
 0x571   : > { %v6266_v45 = vand.u32 2147483647, %v6265_v36  ;;  %vm6323_vm9 = vcmp.lt.s32.totalorder %v11954_v33, 2  ;;  %vm6324_vm5 = vcmp.lt.s32.totalorder %v11954_v33, 3  ;;  %vm6325_vm8 = vcmp.lt.s32.totalorder %v11954_v33, 4 }
 0x572   : > { %v6145_v59 = vshll.u32 %v6144_v1, 30  ;;  %v6321_v11 = vor.u32 %v6320_v58, %v6319_v40  ;;  %v6326_v56 = vsel %vm6322_vm6, %v6306_v37, %v6309_v48  ;;  %v6327_v8 = vsel %vm6325_vm8, %v6315_v4, 2102212464 }
 0x573   : > { %v6269_v25 = vmul.f32 %v6268_v54, %v6266_v45  ;;  %v6330_v19 = vsel %vm6322_vm6, %v6309_v48, %v6312_v57  ;;  %v6331_v31 = vsel %vm6325_vm8, %v6318_v14, 920167782  ;;  %v6168_v10 = vsub.s32 4, %v6144_v1 }
 0x574   : > { %v11992_v16 = vsub.s32 %v6142_v34, %v6145_v59  ;;  %v6328_v62 = vsel %vm6324_vm5, %v6312_v57, %v6327_v8  ;;  %v6332_v46 = vsel %vm6324_vm5, %v6315_v4, %v6331_v31  ;;  %v6334_v37 = vsel %vm6322_vm6, %v6312_v57, %v6315_v4 }
 0x575   : > { %v6270_v23 = vxor.u32 2147483648, %v6269_v25  ;;  %v6329_v0 = vsel %vm6323_vm9, %v6326_v56, %v6328_v62  ;;  %v6333_v39 = vsel %vm6323_vm9, %v6330_v19, %v6332_v46  ;;  %vm4926_vm10 = vweird.f32 %v10768_v28 }
 0x576   : > { %v6148_v34 = vsub.s32 0, %v11992_v16  ;;  %v6335_v44 = vsel %vm6325_vm8, %v6321_v11, 1326507024  ;;  %v12009_v30 = vmul.u32.u64.low %v11941_v29, %v6333_v39  ;;  %v12010_v48 = vmul.u32.u64.high %v11941_v29, %v6333_v39, %v12009_v30 }
 0x577   : > { %v6271_v9 = vsel %vm6188_vm3, %v6270_v23, %v6269_v25  ;;  %v6336_v20 = vsel %vm6324_vm5, %v6318_v14, %v6335_v44  ;;  %v4928_v36 = vand.u32 3, %v11950_v26  ;;  %v4934_v54 = vxor.u32 2147483648, %v11239_v63 }
 0x578   : > { %v6138_v57 = vadd.s32 %v11933_v24, %v11939_v50  ;;  %v7771_v4 = vmin.u32 %v6148_v34, %v11992_v16  ;;  %v6337_v40 = vsel %vm6323_vm9, %v6334_v37, %v6336_v20  ;;  %v5343_v58 = vadd.s32 3, %v5339_v51 }
 0x579   : > { %v12029_v14 = vsel %vm6084_vm14, %v6168_v10, %v6144_v1  ;;  %v12032_v26 = vmul.u32.u64.low %v11941_v29, %v6337_v40  ;;  %v12033_v45 = vmul.u32.u64.high %v11941_v29, %v6337_v40, %v12032_v26  ;;  %v6345_v24 = vmul.u32 %v11941_v29, %v6329_v0 }
 0x57a   : > { %vm5342_vm3 = vweird.f32 %v11105_v38  ;;  %v6274_v50 = vsel %vm11888_vm11, %v11636_v53, %v6271_v9  ;;  %v6150_v27 = vclz %v7771_v4  ;;  %v6348_v35 = vadd.s32 1, %v12010_v48 }
 0x57b   : > { %vm4930_vm1 = vcmp.eq.s32.totalorder %v4928_v36, 0  ;;  %vm4933_vm7 = vcmp.eq.s32.totalorder %v4928_v36, 2  ;;  %v5344_v51 = vand.u32 3, %v5343_v58  ;;  %v5347_v1 = vxor.u32 2147483648, %v11580_v22 }
 0x57c   : > { %v4932_v33 = vsel %vm4930_vm1, %v11239_v63, %v4931_v12  ;;  %v7772_v59 = vadd.s32 4294967294, %v6150_v27  ;;  %vm4929_vm15 = vcmp.lt.s32.totalorder %v4928_v36, 2  ;;  %v4935_v29 = vsel %vm4933_vm7, %v4934_v54, %v11313_v43  ;;  %v12886_v54 = vld [vmem:[#allocation27_spill] sm:$0xff] }
 0x57d   : > { %v5350_v11 = vxor.u32 2147483648, %v11574_v55  ;;  %8500 = vcosq.f32 %v6274_v50  ;;  %vm6347_vm11 = vc.u32 %v12033_v45, %v12009_v30  ;;  %v4936_v49 = vsel %vm4929_vm15, %v4932_v33, %v4935_v29 }
 0x57e   : > { %v5131_v56 = vsel %vm11248_vm12, 0, %v11151_v5  ;;  %vm7773_vm6 = vcmp.lt.s32.totalorder %v7772_v59, 0  ;;  %v6349_v63 = vsel %vm6347_vm11, %v6348_v35, %v12010_v48  ;;  %v4937_v12 = vsel %vm4926_vm10, nan, %v4936_v49  ;;  %v12890_v35 = vld [vmem:[#allocation37_spill] sm:$0xff] }
 0x57f   : > { %vm5346_vm9 = vcmp.eq.s32.totalorder %v5344_v51, 0  ;;  %v6153_v25 = vsel %vm7773_vm6, 0, %v7772_v59  ;;  %v6350_v8 = vadd.s32 %v6349_v63, %v6345_v24  ;;  %vm5349_vm5 = vcmp.eq.s32.totalorder %v5344_v51, 2  ;;  %v12892_v63 = vld [vmem:[#allocation29_spill] sm:$0xff] }
 0x580   : > { %v5348_v43 = vsel %vm5346_vm9, %v11574_v55, %v5347_v1  ;;  %v6154_v19 = vsub.s32 32, %v6153_v25  ;;  %v6158_v31 = vsub.s32 4294967266, %v6153_v25  ;;  %vm5345_vm8 = vcmp.lt.s32.totalorder %v5344_v51, 2 }
 0x581   : > { %v5351_v10 = vsel %vm5349_vm5, %v5350_v11, %v11580_v22  ;;  %v6155_v6 = vshll.u32 %v11992_v16, %v6153_v25  ;;  %v6351_v5 = vadd.s32 536870912, %v6350_v8  ;;  %v6404_v46 = vand.u32 4294901760, %v4937_v12 }
 0x582   : > { %v5352_v62 = vsel %vm5345_vm8, %v5348_v43, %v5351_v10  ;;  %v6156_v23 = vshrl.u32 %v6138_v57, %v6154_v19  ;;  %v6159_v0 = vadd.s32 127, %v6158_v31  ;;  %vm6292_vm12 = vcmp.lt.s32.totalorder %v11644_v17, 0  ;;  %v12894_v10 = vld [vmem:[#allocation10_spill] sm:$0xff] }
 0x583   : > { %v5353_v28 = vsel %vm5342_vm3, nan, %v5352_v62  ;;  %v5135_v39 = vadd.s32 3, %v5131_v56  ;;  %8502 = vsinq.f32 %v6274_v50  ;;  %v6352_v55 = vshrl.u32 %v6351_v5, 30  ;;  %v12896_v5 = vld [vmem:[#allocation24_spill] sm:$0xff] }
 0x584   : > { %v6408_v37 = vand.u32 4294901760, %v5353_v28  ;;  %v5139_v34 = vxor.u32 2147483648, %v11399_v41  ;;  %v6157_v44 = vor.u32 %v6156_v23, %v6155_v6  ;;  %v6160_v22 = vshll.u32 %v6159_v0, 23  ;;  %v12895_v6 = vld [vmem:[#allocation8_spill] sm:$0xff] }
 0x585   : > { %v5136_v48 = vand.u32 3, %v5135_v39  ;;  %v5142_v16 = vxor.u32 2147483648, %v11395_v32  ;;  %v12063_v9 = vadd.s32 %v12009_v30, %v12033_v45  ;;  %v6353_v20 = vshll.u32 %v6352_v55, 30 }
 0x586   : > { %v12065_v36 = vpack.c.bf16 %v6408_v37, %v6404_v46  ;;  %vm5134_vm10 = vweird.f32 %v12886_v54  ;;  %v12887_v38 = vand.u32 2147483647, %v11640_v47  ;;  %v6161_v4 = vor.u32 4788187, %v6160_v22  ;;  %v12898_v54 = vld [vmem:[#allocation32_spill] sm:$0xff] }
 0x587   : > { %v6376_v40 = vsub.s32 4, %v6352_v55  ;;  %v12074_v58 = vsub.f32 %v4937_v12, %v6404_v46  ;;  %vm5138_vm1 = vcmp.eq.s32.totalorder %v5136_v48, 0  ;;  %v12076_v26 = vpop.eup %8500  ;;  %v6164_v30 = vcvt.s32.f32 %v6157_v44 }
 0x588   : > { %vm12070_vm3 = vcmp.le.f32.partialorder %v12887_v38, 0.7853982  ;;  %v12078_v45 = vsub.s32 %v6350_v8, %v6353_v20  ;;  %7889 = vmatprep.subr.bf16.mxu0 %v12065_v36  ;;  %v5140_v24 = vsel %vm5138_vm1, %v11395_v32, %v5139_v34  ;;  %vm5141_vm7 = vcmp.eq.s32.totalorder %v5136_v48, 2  ;;  %v12893_v8 = vld [vmem:[#allocation18_spill] sm:$0xff] }
 0x589   : > { %v6162_v50 = vand.u32 2147483647, %v6161_v4  ;;  %vm5137_vm15 = vcmp.lt.s32.totalorder %v5136_v48, 2  ;;  %v5143_v27 = vsel %vm5141_vm7, %v5142_v16, %v11399_v41  ;;  %v5547_v51 = vsel %vm11492_vm13, 0, %v12890_v35  ;;  %v12897_v48 = vld [vmem:[#allocation11_spill] sm:$0xff]  ;;  %v12900_v35 = vld [vmem:[#allocation9_spill] sm:$0xff] }
 0x58a   : > { %v6356_v1 = vsub.s32 0, %v12078_v45  ;;  %v12087_v59 = vsub.f32 %v5353_v28, %v6408_v37  ;;  %v5144_v29 = vsel %vm5137_vm15, %v5140_v24, %v5143_v27  ;;  %v5551_v11 = vadd.s32 3, %v5547_v51 }
 0x58b   : > { %v6165_v49 = vmul.f32 %v6164_v30, %v6162_v50  ;;  %v5145_v56 = vsel %vm5134_vm10, nan, %v5144_v29  ;;  %v5555_v32 = vxor.u32 2147483648, %v11603_v21  ;;  %v5558_v12 = vxor.u32 2147483648, %v12892_v63 }
 0x58c   : > { %v7779_v41 = vmin.u32 %v6356_v1, %v12078_v45  ;;  %v12096_v25 = vsel %vm6292_vm12, %v6376_v40, %v6352_v55  ;;  %vm5550_vm13 = vweird.f32 %v12893_v8  ;;  %v5552_v43 = vand.u32 3, %v5551_v11  ;;  %v12899_v40 = vld [vmem:[#allocation19_spill] sm:$0xff]  ;;  %v12901_v1 = vld [vmem:[#allocation14_spill] sm:$0xff] }
 0x58d   : > { %v6166_v19 = vxor.u32 2147483648, %v6165_v49  ;;  %v6947_v31 = vand.u32 4294901760, %v5145_v56  ;;  %vm4822_vm11 = vweird.f32 %v12894_v10  ;;  %vm4825_vm6 = vcmp.lt.s32.totalorder %v12895_v6, 2  ;;  %v12102_v46 = vpop.eup %8502  ;;  %v12905_v10 = vld [vmem:[#allocation21_spill] sm:$0xff] }
 0x58e   : > { %v4827_v62 = vxor.u32 2147483648, %v12896_v5  ;;  %v6358_v23 = vclz %v7779_v41  ;;  %vm5554_vm9 = vcmp.eq.s32.totalorder %v5552_v43, 0  ;;  %vm5557_vm5 = vcmp.eq.s32.totalorder %v5552_v43, 2 }
 0x58f   : > { %vm4826_vm8 = vcmp.eq.s32.totalorder %v12895_v6, 0  ;;  %v6167_v0 = vsel %vm6084_vm14, %v6166_v19, %v6165_v49  ;;  %vm5553_vm10 = vcmp.lt.s32.totalorder %v5552_v43, 2  ;;  %v5556_v28 = vsel %vm5554_vm9, %v12892_v63, %v5555_v32 }
 0x590   : > { %v5559_v39 = vsel %vm5557_vm5, %v5558_v12, %v11603_v21  ;;  %v6170_v55 = vsel %vm12070_vm3, %v11640_v47, %v6167_v0  ;;  %v7780_v37 = vadd.s32 4294967294, %v6358_v23  ;;  %vm4829_vm1 = vcmp.eq.s32.totalorder %v12895_v6, 2  ;;  %v12902_v12 = vld [vmem:[#allocation30_spill] sm:$0xff]  ;;  %v12904_v6 = vld [vmem:[#allocation13_spill] sm:$0xff] }
 0x591   : > { %v5560_v34 = vsel %vm5553_vm10, %v5556_v28, %v5559_v39  ;;  %v12115_v22 = vsub.f32 %v5145_v56, %v6947_v31  ;;  %v4828_v16 = vsel %vm4826_vm8, %v12897_v48, %v4827_v62  ;;  %v4830_v20 = vxor.u32 2147483648, %v12897_v48 }
 0x592   : > { %v5561_v44 = vsel %vm5550_vm13, nan, %v5560_v34  ;;  %8504 = vcosq.f32 %v6170_v55  ;;  %vm7781_vm14 = vcmp.lt.s32.totalorder %v7780_v37, 0  ;;  %vm5238_vm7 = vweird.f32 %v12898_v54 }
 0x593   : > { %v6951_v21 = vand.u32 4294901760, %v5561_v44  ;;  %8506 = vsinq.f32 %v6170_v55  ;;  %v6361_v38 = vsel %vm7781_vm14, 0, %v7780_v37  ;;  %v4831_v4 = vsel %vm4829_vm1, %v4830_v20, %v12896_v5 }
 0x594   : > { %v5243_v30 = vxor.u32 2147483648, %v12899_v40  ;;  %v6362_v24 = vsub.s32 32, %v6361_v38  ;;  %v6366_v50 = vsub.s32 4294967266, %v6361_v38  ;;  %vm5242_vm15 = vcmp.eq.s32.totalorder %v12900_v35, 0 }
 0x595   : > { %v12122_v27 = vpack.c.bf16 %v6951_v21, %v6947_v31  ;;  %v6363_v33 = vshll.u32 %v12078_v45, %v6361_v38  ;;  %v4832_v51 = vsel %vm4825_vm6, %v4828_v16, %v4831_v4  ;;  %vm5241_vm13 = vcmp.lt.s32.totalorder %v12900_v35, 2  ;;  %v12910_v38 = vld [vmem:[#allocation26_spill] sm:$0xff] }
 0x596   : > { %v5244_v29 = vsel %vm5242_vm15, %v12901_v1, %v5243_v30  ;;  %v6364_v11 = vshrl.u32 %v12063_v9, %v6362_v24  ;;  %v6367_v49 = vadd.s32 127, %v6366_v50  ;;  %v4833_v56 = vsel %vm4822_vm11, nan, %v4832_v51  ;;  %v12903_v9 = vld [vmem:[#allocation23_spill] sm:$0xff]  ;;  %v12911_v24 = vld [vmem:[#allocation25_spill] sm:$0xff] }
 0x597   : > { %7937 = vmatprep.subr.bf16.mxu1 %v12122_v27  ;;  %v5246_v32 = vxor.u32 2147483648, %v12901_v1  ;;  %v12135_v63 = vsub.f32 %v5561_v44, %v6951_v21  ;;  %vm5245_vm9 = vcmp.eq.s32.totalorder %v12900_v35, 2  ;;  %v6406_v45 = vand.u32 4294901760, %v4833_v56  ;;  %v12909_v21 = vld [vmem:[#allocation15_spill] sm:$0xff]  ;;  %v12912_v35 = vld [vmem:[#allocation12_spill] sm:$0xff] }
 0x598   : > { %vm5030_vm6 = vweird.f32 %v12902_v12  ;;  %v6365_v41 = vor.u32 %v6364_v11, %v6363_v33  ;;  %v6368_v8 = vshll.u32 %v6367_v49, 23  ;;  %v5035_v19 = vxor.u32 2147483648, %v12903_v9 }
 0x599   : > { %v5247_v43 = vsel %vm5245_vm9, %v5246_v32, %v12899_v40  ;;  %vm5033_vm5 = vcmp.lt.s32.totalorder %v12904_v6, 2  ;;  %vm5034_vm11 = vcmp.eq.s32.totalorder %v12904_v6, 0  ;;  %v5038_v5 = vxor.u32 2147483648, %v12905_v10 }
 0x59a   : > { %v5248_v31 = vsel %vm5241_vm13, %v5244_v29, %v5247_v43  ;;  %v12906_v62 = vand.u32 2147483647, %v11644_v17  ;;  %v6369_v0 = vor.u32 4788187, %v6368_v8  ;;  %v5036_v39 = vsel %vm5034_vm11, %v12905_v10, %v5035_v19  ;;  %v12913_v8 = vld [vmem:[#allocation38_spill] sm:$0xff] }
 0x59b   : > { %v5249_v28 = vsel %vm5238_vm7, nan, %v5248_v31  ;;  %vm5037_vm10 = vcmp.eq.s32.totalorder %v12904_v6, 2  ;;  %v6372_v55 = vcvt.s32.f32 %v6365_v41  ;;  %v12154_v34 = vsub.f32 %v4833_v56, %v6406_v45 }
 0x59c   : > { %vm12146_vm8 = vcmp.le.f32.partialorder %v12906_v62, 0.7853982  ;;  %v6410_v37 = vand.u32 4294901760, %v5249_v28  ;;  %v5039_v44 = vsel %vm5037_vm10, %v5038_v5, %v12903_v9  ;;  %v8505_v48 = vpop.eup %8504  ;;  %v6370_v16 = vand.u32 2147483647, %v6369_v0  ;;  %v12914_v5 = vld [vmem:[#allocation41_spill] sm:$0xff] }
 0x59d   : > { %v5040_v20 = vsel %vm5033_vm5, %v5036_v39, %v5039_v44  ;;  %vm5446_vm1 = vweird.f32 %v12909_v21  ;;  %v5451_v4 = vxor.u32 2147483648, %v12910_v38  ;;  %v8507_v40 = vpop.eup %8506  ;;  %vm5449_vm14 = vcmp.lt.s32.totalorder %v12911_v24, 2 }
 0x59e   : > { %v12159_v54 = vpack.c.bf16 %v6410_v37, %v6406_v45  ;;  %v5041_v30 = vsel %vm5030_vm6, nan, %v5040_v20  ;;  %vm5450_vm7 = vcmp.eq.s32.totalorder %v12911_v24, 0  ;;  %v6373_v50 = vmul.f32 %v6372_v55, %v6370_v16 }
 0x59f   : > { %v5452_v33 = vsel %vm5450_vm7, %v12912_v35, %v5451_v4  ;;  %v5454_v51 = vxor.u32 2147483648, %v12912_v35  ;;  %v6949_v1 = vand.u32 4294901760, %v5041_v30  ;;  %v12168_v29 = vsub.f32 %v5249_v28, %v6410_v37 }
 0x5a0   : > { %7891 = vmatpush1.bf16.msra.mxu0 %v12159_v54  ;;  %vm5453_vm15 = vcmp.eq.s32.totalorder %v12911_v24, 2  ;;  %v5755_v11 = vsel %vm11726_vm4, 0, %v11699_v13  ;;  %vm5758_vm13 = vweird.f32 %v11383_v2  ;;  %v6374_v49 = vxor.u32 2147483648, %v6373_v50 }
 0x5a1   : > { %v5455_v56 = vsel %vm5453_vm15, %v5454_v51, %v12910_v38  ;;  %v5759_v32 = vadd.s32 3, %v5755_v11  ;;  %v5763_v45 = vxor.u32 2147483648, %v11898_v3  ;;  %v12177_v41 = vsub.f32 %v5041_v30, %v6949_v1  ;;  %v12916_v51 = vld [vmem:[#allocation40_spill] sm:$0xff]  ;;  %v12917_v11 = vld [vmem:[#allocation17_spill] sm:$0xff] }
 0x5a2   : > { %v5456_v12 = vsel %vm5449_vm14, %v5452_v33, %v5455_v56  ;;  %v5766_v43 = vxor.u32 2147483648, %v12913_v8  ;;  %v6171_v9 = vsel %vm12070_vm3, 0, %v12029_v14  ;;  %v6375_v13 = vsel %vm6292_vm12, %v6374_v49, %v6373_v50  ;;  %v12918_v56 = vld [vmem:[#allocation39_spill] sm:$0xff] }
 0x5a3   : > { %v5457_v42 = vsel %vm5446_vm1, nan, %v5456_v12  ;;  %v5760_v19 = vand.u32 3, %v5759_v32  ;;  %v6175_v31 = vadd.s32 3, %v6171_v9  ;;  %v6378_v6 = vsel %vm12146_vm8, %v11644_v17, %v6375_v13  ;;  %v12919_v32 = vld [vmem:[#allocation35_spill] sm:$0xff] }
 0x5a4   : > { %v6953_v10 = vand.u32 4294901760, %v5457_v42  ;;  %vm6174_vm4 = vweird.f32 %v11640_v47  ;;  %v5963_v57 = vsel %vm11812_vm0, 0, %v12914_v5  ;;  %8508 = vcosq.f32 %v6378_v6 }
 0x5a5   : > { %vm5762_vm3 = vcmp.eq.s32.totalorder %v5760_v19, 0  ;;  %v6179_v14 = vxor.u32 2147483648, %v8507_v40  ;;  %v6182_v0 = vxor.u32 2147483648, %v8505_v48  ;;  %8510 = vsinq.f32 %v6378_v6 }
 0x5a6   : > { %v12194_v28 = vpack.c.bf16 %v6953_v10, %v6949_v1  ;;  %v5764_v39 = vsel %vm5762_vm3, %v12913_v8, %v5763_v45  ;;  %vm5765_vm12 = vcmp.eq.s32.totalorder %v5760_v19, 2  ;;  %vm5761_vm9 = vcmp.lt.s32.totalorder %v5760_v19, 2  ;;  %v12920_v19 = vld [vmem:[#allocation31_spill] sm:$0xff] }
 0x5a7   : > { %v5767_v55 = vsel %vm5765_vm12, %v5766_v43, %v11898_v3  ;;  %v6176_v37 = vand.u32 3, %v6175_v31  ;;  %v5967_v44 = vadd.s32 3, %v5963_v57  ;;  %v5971_v20 = vxor.u32 2147483648, %v11909_v18  ;;  %v12921_v57 = vld [vmem:[#allocation36_spill] sm:$0xff] }
 0x5a8   : > { %7939 = vmatpush1.bf16.msra.mxu1 %v12194_v28  ;;  %v5768_v16 = vsel %vm5761_vm9, %v5764_v39, %v5767_v55  ;;  %v5974_v21 = vxor.u32 2147483648, %v11906_v15  ;;  %v6379_v38 = vsel %vm12146_vm8, 0, %v12096_v25  ;;  %v12206_v35 = vsub.f32 %v5457_v42, %v6953_v10 }
 0x5a9   : > { %v5769_v4 = vsel %vm5758_vm13, nan, %v5768_v16  ;;  %vm6177_vm0 = vcmp.lt.s32.totalorder %v6176_v37, 2  ;;  %vm6178_vm6 = vcmp.eq.s32.totalorder %v6176_v37, 0  ;;  %vm6181_vm5 = vcmp.eq.s32.totalorder %v6176_v37, 2 }
 0x5aa   : > { %v6180_v3 = vsel %vm6178_vm6, %v8505_v48, %v6179_v14  ;;  %v6183_v30 = vsel %vm6181_vm5, %v6182_v0, %v8507_v40  ;;  %v6412_v24 = vand.u32 4294901760, %v5769_v4  ;;  %v5968_v50 = vand.u32 3, %v5967_v44 }
 0x5ab   : > { %v6184_v33 = vsel %vm6177_vm0, %v6180_v3, %v6183_v30  ;;  %vm5966_vm11 = vweird.f32 %v12916_v51  ;;  %v6383_v1 = vadd.s32 3, %v6379_v38  ;;  %vm6382_vm10 = vweird.f32 %v11644_v17  ;;  %v12924_v17 = vld [vmem:[#allocation22_spill] sm:$0xff] }
 0x5ac   : > { %v6185_v23 = vsel %vm6174_vm4, nan, %v6184_v33  ;;  %v12211_v25 = vsub.f32 %v5769_v4, %v6412_v24  ;;  %vm5970_vm8 = vcmp.eq.s32.totalorder %v5968_v50, 0  ;;  %vm5973_vm1 = vcmp.eq.s32.totalorder %v5968_v50, 2  ;;  %v12922_v4 = vld [vmem:[#allocation20_spill] sm:$0xff] }
 0x5ad   : > { %v6416_v2 = vand.u32 4294901760, %v6185_v23  ;;  %v5972_v48 = vsel %vm5970_vm8, %v11906_v15, %v5971_v20  ;;  %v6384_v40 = vand.u32 3, %v6383_v1  ;;  %vm5654_vm14 = vweird.f32 %v12917_v11 }
 0x5ae   : > { %vm5969_vm7 = vcmp.lt.s32.totalorder %v5968_v50, 2  ;;  %v5975_v49 = vsel %vm5973_vm1, %v5974_v21, %v11909_v18  ;;  %vm5657_vm15 = vcmp.lt.s32.totalorder %v12918_v56, 2  ;;  %v5659_v47 = vxor.u32 2147483648, %v12919_v32  ;;  %v8509_v45 = vpop.eup %8508 }
 0x5af   : > { %v12219_v12 = vpack.c.bf16 %v6416_v2, %v6412_v24  ;;  %v12221_v8 = vsub.f32 %v6185_v23, %v6416_v2  ;;  %v5976_v43 = vsel %vm5969_vm7, %v5972_v48, %v5975_v49  ;;  %vm5658_vm13 = vcmp.eq.s32.totalorder %v12918_v56, 0  ;;  %v8511_v15 = vpop.eup %8510  ;;  %v12923_v24 = vld [vmem:[#allocation16_spill] sm:$0xff]  ;;  %v12925_v23 = vld [vmem:[#allocation34_spill] sm:$0xff]  ;;  %v6394_v49 = vld [vmem:[%s12546_s5] sm:$0xf] }
 0x5b0   : > { %v5977_v9 = vsel %vm5966_vm11, nan, %v5976_v43  ;;  %vm6385_vm4 = vcmp.lt.s32.totalorder %v6384_v40, 2  ;;  %vm6386_vm3 = vcmp.eq.s32.totalorder %v6384_v40, 0  ;;  %v6390_v13 = vxor.u32 2147483648, %v8509_v45 }
 0x5b1   : > { %7893 = vmatprep.subr.bf16.mxu0 %v12219_v12  ;;  %v6387_v18 = vxor.u32 2147483648, %v8511_v15  ;;  %vm6389_vm12 = vcmp.eq.s32.totalorder %v6384_v40, 2  ;;  %v6955_v42 = vand.u32 4294901760, %v5977_v9  ;;  %v5660_v31 = vsel %vm5658_vm13, %v12920_v19, %v5659_v47 }
 0x5b2   : > { %v6391_v6 = vsel %vm6389_vm12, %v6390_v13, %v8511_v15  ;;  %vm5661_vm9 = vcmp.eq.s32.totalorder %v12918_v56, 2  ;;  %v5662_v10 = vxor.u32 2147483648, %v12920_v19  ;;  %vm6070_vm0 = vweird.f32 %v11570_v60 }
 0x5b3   : > { %v6388_v5 = vsel %vm6386_vm3, %v8509_v45, %v6387_v18  ;;  %v12231_v62 = vsub.f32 %v5977_v9, %v6955_v42  ;;  %vm6073_vm6 = vcmp.lt.s32.totalorder %v12921_v57, 2  ;;  %v6075_v14 = vxor.u32 2147483648, %v11978_v7 }
 0x5b4   : > { %v6392_v0 = vsel %vm6385_vm4, %v6388_v5, %v6391_v6  ;;  %v5663_v39 = vsel %vm5661_vm9, %v5662_v10, %v12919_v32  ;;  %vm6074_vm5 = vcmp.eq.s32.totalorder %v12921_v57, 0  ;;  %v6078_v55 = vxor.u32 2147483648, %v11973_v52 }
 0x5b5   : > { %v6393_v37 = vsel %vm6382_vm10, nan, %v6392_v0  ;;  %v5664_v44 = vsel %vm5657_vm15, %v5660_v31, %v5663_v39  ;;  %v6076_v16 = vsel %vm6074_vm5, %v11973_v52, %v6075_v14  ;;  %vm6077_vm11 = vcmp.eq.s32.totalorder %v12921_v57, 2 }
 0x5b6   : > { %v6959_v20 = vand.u32 4294901760, %v6393_v37  ;;  %v5665_v21 = vsel %vm5654_vm14, nan, %v5664_v44  ;;  %v6079_v38 = vsel %vm6077_vm11, %v6078_v55, %v11978_v7  ;;  %vm5862_vm8 = vweird.f32 %v12922_v4 }
 0x5b7   : > { %v6080_v3 = vsel %vm6073_vm6, %v6076_v16, %v6079_v38  ;;  %v6414_v30 = vand.u32 4294901760, %v5665_v21  ;;  %vm5865_vm1 = vcmp.lt.s32.totalorder %v12923_v24, 2  ;;  %v5867_v50 = vxor.u32 2147483648, %v12924_v17 }
 0x5b8   : > { %v12251_v33 = vpack.c.bf16 %v6959_v20, %v6955_v42  ;;  %v12253_v51 = vsub.f32 %v6393_v37, %v6959_v20  ;;  %v6081_v52 = vsel %vm6070_vm0, nan, %v6080_v3  ;;  %vm5866_vm10 = vcmp.eq.s32.totalorder %v12923_v24, 0 }
 0x5b9   : > { %v6418_v1 = vand.u32 4294901760, %v6081_v52  ;;  %v5868_v7 = vsel %vm5866_vm10, %v12925_v23, %v5867_v50  ;;  %vm5869_vm14 = vcmp.eq.s32.totalorder %v12923_v24, 2  ;;  %v5870_v2 = vxor.u32 2147483648, %v12925_v23 }
 0x5ba   : > { %7941 = vmatprep.subr.bf16.mxu1 %v12251_v33  ;;  %v12262_v48 = vsub.f32 %v5665_v21, %v6414_v30  ;;  %vm6278_vm7 = vweird.f32 %v11636_v53  ;;  %vm6281_vm15 = vcmp.lt.s32.totalorder %v11943_v61, 2  ;;  %v6283_v60 = vxor.u32 2147483648, %v12102_v46 }
 0x5bb   : > { %v12267_v40 = vpack.c.bf16 %v6418_v1, %v6414_v30  ;;  %v5871_v11 = vsel %vm5869_vm14, %v5870_v2, %v12924_v17  ;;  %vm6282_vm13 = vcmp.eq.s32.totalorder %v11943_v61, 0  ;;  %vm6285_vm4 = vcmp.eq.s32.totalorder %v11943_v61, 2 }
 0x5bc   : > { %v5872_v56 = vsel %vm5865_vm1, %v5868_v7, %v5871_v11  ;;  %v6284_v32 = vsel %vm6282_vm13, %v12076_v26, %v6283_v60  ;;  %v6286_v47 = vxor.u32 2147483648, %v12076_v26  ;;  %v6490_v45 = vand.u32 4294901760, %v12074_v58 }
 0x5bd   : > { %7895 = vmatpush1.bf16.msra.mxu0 %v12267_v40  ;;  %v5873_v43 = vsel %vm5862_vm8, nan, %v5872_v56  ;;  %v6502_v15 = vand.u32 4294901760, %v12087_v59  ;;  %v7033_v9 = vand.u32 4294901760, %v12115_v22  ;;  %v7045_v13 = vand.u32 4294901760, %v12135_v63 }
 0x5be   : > { %v6287_v18 = vsel %vm6285_vm4, %v6286_v47, %v12102_v46  ;;  %v6957_v42 = vand.u32 4294901760, %v5873_v43  ;;  %v6491_v26 = vsub.f32 %v12074_v58, %v6490_v45  ;;  %v6402_v19 = vsel %vm3337_vm2, %v6394_v49, 0 }
 0x5bf   : > { %v6288_v31 = vsel %vm6281_vm15, %v6284_v32, %v6287_v18  ;;  %v6503_v6 = vsub.f32 %v12087_v59, %v6502_v15  ;;  %v7034_v10 = vsub.f32 %v12115_v22, %v7033_v9  ;;  %v7046_v46 = vsub.f32 %v12135_v63, %v7045_v13 }
 0x5c0   : > { %v12302_v5 = vsub.f32 %v6081_v52, %v6418_v1  ;;  %v6289_v57 = vsel %vm6278_vm7, nan, %v6288_v31  ;;  %v6492_v14 = vand.u32 4294901760, %v6491_v26  ;;  %v12306_v61 = vand.u32 4294901760, %v6402_v19 }
 0x5c1   : > { %v6961_v0 = vand.u32 4294901760, %v6289_v57  ;;  %v6504_v39 = vand.u32 4294901760, %v6503_v6  ;;  %v7035_v55 = vand.u32 4294901760, %v7034_v10  ;;  %v7047_v37 = vand.u32 4294901760, %v7046_v46 }
 0x5c2   : > { %v12309_v44 = vsub.f32 %v6402_v19, %v12306_v61  ;;  %v6496_v16 = vand.u32 4294901760, %v12154_v34  ;;  %v6508_v20 = vand.u32 4294901760, %v12168_v29  ;;  %v7039_v21 = vand.u32 4294901760, %v12177_v41 }
 0x5c3   : > { %v12314_v38 = vpack.c.bf16 %v6961_v0, %v6957_v42  ;;  %v12316_v53 = vsub.f32 %v5873_v43, %v6957_v42  ;;  %v7896_v4 = vpack.c.bf16 %v6504_v39, %v6492_v14  ;;  %v7944_v3 = vpack.c.bf16 %v7047_v37, %v7035_v55 }
 0x5c4   : > { %v12319_v30 = vand.u32 4294901760, %v12309_v44  ;;  %v6497_v24 = vsub.f32 %v12154_v34, %v6496_v16  ;;  %v6509_v17 = vsub.f32 %v12168_v29, %v6508_v20  ;;  %v7040_v50 = vsub.f32 %v12177_v41, %v7039_v21 }
 0x5c5   : > { %7943 = vmatpush1.bf16.msra.mxu1 %v12314_v38  ;;  %7897 = vmatprep.subr.bf16.mxu0 %v7896_v4  ;;  %v7051_v52 = vand.u32 4294901760, %v12206_v35  ;;  %v6514_v1 = vand.u32 4294901760, %v12211_v25  ;;  %v6526_v23 = vand.u32 4294901760, %v12221_v8  ;;  %v7057_v7 = vand.u32 4294901760, %v12231_v62 }
 0x5c6   : > { %v12335_v2 = vsub.f32 %v6289_v57, %v6961_v0  ;;  %7945 = vmatprep.subr.bf16.mxu1 %v7944_v3  ;;  %v6480_v60 = vsub.f32 %v12309_v44, %v12319_v30  ;;  %v6498_v11 = vand.u32 4294901760, %v6497_v24  ;;  %v6510_v49 = vand.u32 4294901760, %v6509_v17 }
 0x5c7   : > { %v7041_v56 = vand.u32 4294901760, %v7040_v50  ;;  %v7052_v32 = vsub.f32 %v12206_v35, %v7051_v52  ;;  %v6515_v47 = vsub.f32 %v12211_v25, %v6514_v1  ;;  %v6527_v43 = vsub.f32 %v12221_v8, %v6526_v23 }
 0x5c8   : > { %v6481_v18 = vand.u32 4294901760, %v6480_v60  ;;  %v7058_v42 = vsub.f32 %v12231_v62, %v7057_v7  ;;  %v7069_v26 = vand.u32 4294901760, %v12253_v51  ;;  %v6520_v19 = vand.u32 4294901760, %v12262_v48 }
 0x5c9   : > { %v7898_v31 = vpack.c.bf16 %v6510_v49, %v6498_v11  ;;  %v7053_v6 = vand.u32 4294901760, %v7052_v32  ;;  %v6516_v10 = vand.u32 4294901760, %v6515_v47  ;;  %v6528_v46 = vand.u32 4294901760, %v6527_v43 }
 0x5ca   : > { %6482 = vmatmul.mubr.f32.vlgmr.msra.gmra.mrb[16].mxu0 %v6481_v18  ;;  %7025 = vmatmul.mubr.f32.vlgmr.msra.gmra.mrb[16].mxu1 %v6481_v18  ;;  %v7070_v57 = vsub.f32 %v12253_v51, %v7069_v26  ;;  %v6521_v14 = vsub.f32 %v12262_v48, %v6520_v19  ;;  %v6532_v0 = vand.u32 4294901760, %v12302_v5  ;;  %v7063_v39 = vand.u32 4294901760, %v12316_v53 }
 0x5cb   : > { %7899 = vmatpush1.bf16.msra.mxu0 %v7898_v31  ;;  %v7946_v55 = vpack.c.bf16 %v7053_v6, %v7041_v56  ;;  %v7900_v37 = vpack.c.bf16 %v6528_v46, %v6516_v10  ;;  %v7075_v4 = vand.u32 4294901760, %v12335_v2  ;;  %v12926_v3 = vmov 0.0  }
 0x5cc   : > { %6592 = vmatprep.mubr.f32.mxu0 %v12926_v3  ;;  %v7059_v24 = vand.u32 4294901760, %v7058_v42  ;;  %v7071_v17 = vand.u32 4294901760, %v7070_v57  ;;  %v6533_v50 = vsub.f32 %v12302_v5, %v6532_v0  ;;  %v7064_v60 = vsub.f32 %v12316_v53, %v7063_v39  ;;  %7135 = vmatprep.mubr.f32.mxu1 %v12926_v3 }
 0x5cd   : > { %7947 = vmatpush1.bf16.msra.mxu1 %v7946_v55  ;;  %7901 = vmatprep.subr.bf16.mxu0 %v7900_v37  ;;  %v7076_v11 = vsub.f32 %v12335_v2, %v7075_v4  ;;  %v6522_v56 = vand.u32 4294901760, %v6521_v14  ;;  %v7904_v31 = vpack.c.bf16 %v12087_v59, %v12074_v58  ;;  %v7952_v6 = vpack.c.bf16 %v12135_v63, %v12115_v22 }
 0x5ce   : > { %v7948_v49 = vpack.c.bf16 %v7071_v17, %v7059_v24  ;;  %v6534_v32 = vand.u32 4294901760, %v6533_v50  ;;  %v7065_v47 = vand.u32 4294901760, %v7064_v60  ;;  %v7906_v10 = vpack.c.bf16 %v12168_v29, %v12154_v34 }
 0x5cf   : > { %v7077_v43 = vand.u32 4294901760, %v7076_v11  ;;  %v7954_v46 = vpack.c.bf16 %v12206_v35, %v12177_v41  ;;  %v7908_v57 = vpack.c.bf16 %v12221_v8, %v12211_v25  ;;  %v7956_v14 = vpack.c.bf16 %v12253_v51, %v12231_v62 }
 0x5d0   : > { %7949 = vmatprep.subr.bf16.mxu1 %v7948_v49  ;;  %v7902_v18 = vpack.c.bf16 %v6534_v32, %v6522_v56  ;;  %v7910_v55 = vpack.c.bf16 %v12302_v5, %v12262_v48  ;;  %v7958_v37 = vpack.c.bf16 %v12335_v2, %v12316_v53  ;;  %v7920_v24 = vpack.c.bf16 %v6502_v15, %v6490_v45 }
 0x5d1   : > { %v7950_v42 = vpack.c.bf16 %v7077_v43, %v7065_v47  ;;  %v7922_v58 = vpack.c.bf16 %v6508_v20, %v6496_v16  ;;  %v7970_v59 = vpack.c.bf16 %v7051_v52, %v7039_v21  ;;  %v7924_v22 = vpack.c.bf16 %v6526_v23, %v6514_v1 }
 0x5d2   : > { %7903 = vmatpush1.bf16.msra.mxu0 %v7902_v18  ;;  %v7972_v63 = vpack.c.bf16 %v7069_v26, %v7057_v7  ;;  %v7926_v34 = vpack.c.bf16 %v6532_v0, %v6520_v19  ;;  %v7974_v29 = vpack.c.bf16 %v7075_v4, %v7063_v39 }
 0x5d3   : > { %7951 = vmatpush1.bf16.msra.mxu1 %v7950_v42  ;;  %7905 = vmatprep.subr.bf16.mxu0 %v7904_v31 }
 0x5d4   : > { %7953 = vmatprep.subr.bf16.mxu1 %v7952_v6 }
 0x5d5   : > { %6594 = vmatmul.mubr.f32.vlgmr.msra.gmra.mrb[16].mxu0 %v12306_v61 }
 0x5d6   : > { %7137 = vmatmul.mubr.f32.vlgmr.msra.gmra.mrb[16].mxu1 %v12306_v61  ;;  %7907 = vmatpush1.bf16.msra.mxu0 %v7906_v10 }
 0x5d7   : > { %7955 = vmatpush1.bf16.msra.mxu1 %v7954_v46  ;;  %7909 = vmatprep.subr.bf16.mxu0 %v7908_v57 }
 0x5d8   : > { %7957 = vmatprep.subr.bf16.mxu1 %v7956_v14  ;;  %6680 = vmatprep.mubr.f32.mxu0 %v12926_v3 }
 0x5d9   : > { %7223 = vmatprep.mubr.f32.mxu1 %v12926_v3 }
 0x5da   : > { %7911 = vmatpush1.bf16.msra.mxu0 %v7910_v55 }
 0x5db   : > { %7959 = vmatpush1.bf16.msra.mxu1 %v7958_v37  ;;  %7913 = vmatprep.subr.bf16.mxu0 %v12065_v36 }
 0x5dc   : > { %7961 = vmatprep.subr.bf16.mxu1 %v12122_v27 }
 0x5dd   : > { %6683 = vmatmul.mubr.f32.vlgmr.msra.gmra.mrb[16].mxu0 %v12309_v44 }
 0x5de   : > { %7226 = vmatmul.mubr.f32.vlgmr.msra.gmra.mrb[16].mxu1 %v12309_v44  ;;  %7915 = vmatpush1.bf16.msra.mxu0 %v12159_v54  ;;  %v7968_v44 = vpack.c.bf16 %v7045_v13, %v7033_v9 }
 0x5df   : > { %7963 = vmatpush1.bf16.msra.mxu1 %v12194_v28  ;;  %7917 = vmatprep.subr.bf16.mxu0 %v12219_v12 }
 0x5e0   : > { %7965 = vmatprep.subr.bf16.mxu1 %v12251_v33  ;;  %6761 = vmatprep.mubr.f32.mxu0 %v12926_v3 }
 0x5e1   : > { %7304 = vmatprep.mubr.f32.mxu1 %v12926_v3 }
 0x5e2   : > { %7919 = vmatpush1.bf16.msra.mxu0 %v12267_v40 }
 0x5e3   : > { %7967 = vmatpush1.bf16.msra.mxu1 %v12314_v38  ;;  %7921 = vmatprep.subr.bf16.mxu0 %v7920_v24 }
 0x5e4   : > { %7969 = vmatprep.subr.bf16.mxu1 %v7968_v44 }
 0x5e5   : > { %6765 = vmatmul.mubr.f32.vlgmr.msra.gmra.mrb[16].mxu0 %v12319_v30 }
 0x5e6   : > { %7308 = vmatmul.mubr.f32.vlgmr.msra.gmra.mrb[16].mxu1 %v12319_v30  ;;  %7923 = vmatpush1.bf16.msra.mxu0 %v7922_v58 }
 0x5e7   : > { %7971 = vmatpush1.bf16.msra.mxu1 %v7970_v59  ;;  %7925 = vmatprep.subr.bf16.mxu0 %v7924_v22 }
 0x5e8   : > { %7973 = vmatprep.subr.bf16.mxu1 %v7972_v63  ;;  %6859 = vmatprep.mubr.f32.mxu0 %v12926_v3 }
 0x5e9   : > { %7402 = vmatprep.mubr.f32.mxu1 %v12926_v3 }
 0x5ea   : > { %7927 = vmatpush1.bf16.msra.mxu0 %v7926_v34 }
 0x5eb   : > { %7975 = vmatpush1.bf16.msra.mxu1 %v7974_v29  ;;  %7929 = vmatprep.subr.bf16.mxu0 %v12065_v36  ;;  %v7500_v36 = vld [vmem:[%s361_s17] sm:$0xf]  ;;  %s8518_s17 = sshll.u32 %s8618_s16, 4  ;;  %s8519_s17 = int_to_ptr.vmem [resolvable:$false] %s8518_s17 }
 0x5ec   : > { %7977 = vmatprep.subr.bf16.mxu1 %v12122_v27  ;;  %v7501_v27 = vmul.f32 -0.1, %v7500_v36  ;;  %s8520_s23 = scalar_lea.vmem %s8519_s17, 128  ;;  %p8521_p0 = scmp.lt.s32.totalorder %s12469_s26, %s8519_s17 }
 0x5ed   : > { %6861 = vmatmul.mubr.f32.vlgmr.msra.gmra.mrb[16].mxu0 %v12306_v61  ;;  %p8522_p1 = scmp.lt.s32.totalorder %s8520_s23, %s8514_s14 }
 0x5ee   : > { %7404 = vmatmul.mubr.f32.vlgmr.msra.gmra.mrb[16].mxu1 %v12306_v61  ;;  %7931 = vmatpush1.bf16.msra.mxu0 %v12159_v54  ;;  %v7502_v54 = vmul.f32 %v7501_v27, %v7500_v36 }
 0x5ef   : > { %7979 = vmatpush1.bf16.msra.mxu1 %v12194_v28  ;;  %7933 = vmatprep.subr.bf16.mxu0 %v12219_v12  ;;  %v7506_v28 = vlaneseq  ;;  %p8523_p2 = por %p8522_p1, %p8521_p0 }
 0x5f0   : > { %7981 = vmatprep.subr.bf16.mxu1 %v12251_v33  ;;  %6939 = vmatprep.mubr.f32.mxu0 %v12926_v3  ;;  %v7503_v41 = vmul.f32 1.442695, %v7502_v54 }
 0x5f1   : > { %7482 = vmatprep.mubr.f32.mxu1 %v12926_v3  ;;  %vm7508_vm2 = vcmp.lt.s32.totalorder %v7506_v28, 512  ;;  %p8524_p3 = pnand %p8523_p2, %p8517_p13 }
 0x5f2   : > { %7935 = vmatpush1.bf16.msra.mxu0 %v12267_v40  ;;  %8512 = vpow2.f32 %v7503_v41 }
 0x5f3   : > { %7983 = vmatpush1.bf16.msra.mxu1 %v12314_v38 }
 0x5f5   : > { %6941 = vmatmul.mubr.f32.vlgmr.msra.gmra.mrb[16].mxu0 %v12306_v61 }
 0x5f6   : > { %7484 = vmatmul.mubr.f32.vlgmr.msra.gmra.mrb[16].mxu1 %v12306_v61 }
 0x5fc   : > { %v8513_v35 = vpop.eup %8512 }
 0x5fd   : > { %v7505_v25 = vsub.f32 1.0, %v8513_v35 }
 0x5ff   : > { %7510 = vst.msk [vmem:[%s351_s25] sm:$0xf] %vm7508_vm2, %v7505_v25 }
 0x600   : > { %8527 = shalt.err (!%p8524_p3)
}
 0x601   : > { %s8528_s24 = scalar_lea.hbm %s12467_s28, 64  ;;  %s8532_s21 = scalar_lea.hbm %s12550_s9, 128 }
 0x602   : > { %p8529_p4 = scmp.ne.s32.totalorder %s12467_s28, %s8528_s24  ;;  %p8533_p9 = scmp.lt.u32.totalorder %s12467_s28, %s12550_s9 }
 0x603   : > { %p8534_p10 = scmp.lt.u32.totalorder %s8532_s21, %s8528_s24  ;;  %p8536_p12 = scmp.lt.u32.totalorder %s8528_s24, %s12467_s28 }
 0x604   : > { %p8530_p7 = pnand %p8529_p4, %p8708_p5 }
 0x605   : > { %p8535_p11 = por %p8534_p10, %p8533_p9 }
 0x606   : > { %p8531_p8 = pneg %p8530_p7 }
 0x607   : > { %p8537_p13 = por %p8536_p12, %p8535_p11 }
 0x609   : > { %p8538_p0 = pnand %p8537_p13, %p8531_p8 }
 0x60b   : > { %8541 = shalt.err (!%p8538_p0)
}
 0x60c   : > { %8329 = dma.vmem_to_hbm [thread:$0]  (%p8708_p5), %s12469_s26, 64, %s12467_s28, %s7517_s29   ;;  %v6399_v12 = vpop.permute.xlu0 %6398 }
 0x60d   : > { %s7649_s14 = sshll.u32 %s12460_s22, 4  ;;  %s7790_s23 = sshll.u32 %s8691_s13, 8 }
 0x60e   : > { %s344_s24 = scalar_lea.vmem [#allocation2], %s7649_s14  ;;  %s12498_s26 = scalar_lea.hbm %s12549_s8, %s7790_s23 }
 0x60f   : > { %s7531_s25 = sshll.u32 %s344_s24, 4  ;;  %s7512_s28 = scalar_lea.sflag [#allocation3], %s12460_s22  ;;  %s12500_s25 = int_to_ptr.vmem [resolvable:$true] %s7531_s25 }
 0x610   : > { %s8542_s29 = scalar_lea.vmem %s12500_s25, 256  ;;  %s8619_s13 = smov [#allocation2]  }
 0x611   : > { %p8543_p1 = scmp.ne.s32.totalorder %s12500_s25, %s8542_s29  ;;  %s8546_s16 = sshll.u32 %s8619_s13, 4  ;;  %s8547_s16 = int_to_ptr.vmem [resolvable:$false] %s8546_s16 }
 0x612   : > { %s8548_s17 = scalar_lea.vmem %s8547_s16, 512  ;;  %p8549_p4 = scmp.lt.s32.totalorder %s12500_s25, %s8547_s16 }
 0x613   : > { %p8544_p2 = pnand %p8543_p1, %p8708_p5  ;;  %p8550_p7 = scmp.lt.s32.totalorder %s8548_s17, %s8542_s29 }
 0x615   : > { %p8545_p3 = pneg %p8544_p2  ;;  %p8551_p8 = por %p8550_p7, %p8549_p4 }
 0x617   : > { %p8552_p9 = pnand %p8551_p8, %p8545_p3 }
 0x6c8   : > { %v6942_v8 = vpop.f32.mrb[16].mxu0 }
 0x6c9   : > { %v8016_v62 = vadd.f32 %v6942_v8, %v6399_v12  ;;  %v7485_v33 = vpop.f32.mrb[16].mxu1  ;;  %v6944_v51 = vpop.f32.mrb[17].mxu0 }
 0x6ca   : > { %v8018_v48 = vadd.f32 %v7485_v33, %v6399_v12  ;;  %v8017_v40 = vadd.f32 %v6944_v51, %v6399_v12  ;;  %v7487_v45 = vpop.f32.mrb[17].mxu1 }
 0x6cb   : > { %v8019_v15 = vadd.f32 %v7487_v45, %v6399_v12 }
 0x6cc   : > { %v7494_v9 = vcombine.low %v8016_v62, %v8017_v40 }
 0x6cd   : > { %v7495_v13 = vcombine.low %v8018_v48, %v8019_v15 }
 0x6ce   : > { %7498 = vst [vmem:[%s344_s24] sm:$0xff] %v7494_v9 }
 0x6cf   : > { %7499 = vst [vmem:[%s344_s24 + $0x8] sm:$0xff] %v7495_v13 }
 0x6d0   : > { %8555 = shalt.err (!%p8552_p9)
}
 0x6d1   : > { %s8556_s22 = scalar_lea.hbm %s12498_s26, 256  ;;  %s8560_s24 = scalar_lea.hbm %s12549_s8, 512 }
 0x6d2   : > { %p8557_p10 = scmp.ne.s32.totalorder %s12498_s26, %s8556_s22  ;;  %p8561_p13 = scmp.lt.u32.totalorder %s12498_s26, %s12549_s8 }
 0x6d3   : > { %p8562_p0 = scmp.lt.u32.totalorder %s8560_s24, %s8556_s22  ;;  %p8564_p2 = scmp.lt.u32.totalorder %s8556_s22, %s12498_s26 }
 0x6d4   : > { %p8558_p11 = pnand %p8557_p10, %p8708_p5 }
 0x6d5   : > { %p8563_p1 = por %p8562_p0, %p8561_p13 }
 0x6d6   : > { %p8559_p12 = pneg %p8558_p11 }
 0x6d7   : > { %p8565_p3 = por %p8564_p2, %p8563_p1 }
 0x6d9   : > { %p8566_p4 = pnand %p8565_p3, %p8559_p12 }
 0x6db   : > { %8569 = shalt.err (!%p8566_p4)
}
 0x6dc   : > { %8328 = dma.vmem_to_hbm [thread:$0]  (%p8708_p5), %s12500_s25, 256, %s12498_s26, %s7512_s28  }
 0x6dd PF: > { %p8339_p7 = scmp.ge.s32.totalorder %s8608_s12, 2  ;;  %s7557_s29 = sand.u32 1, %s8596_s30  }
 0x6de   : > { %s7558_s13 = scalar_lea.sflag [#allocation3], %s7557_s29 }
 0x6df   : > { %p8333_p8 = pnand %p8339_p7, %p8712_p6 }
 0x6e1   : > { %8587 = dma.done.wait (!%p8333_p8), %s7558_s13, 256  }
 0x6e2   : > { %8589 = vsyncadd (!%p8333_p8), %s7558_s13, 4294967040  ;;  %s7567_s16 = scalar_lea.sflag [#allocation5], %s7557_s29 }
 0x6e3   : > { %8591 = dma.done.wait (!%p8333_p8), %s7567_s16, 64  }
 0x6e4   : > { %8593 = vsyncadd (!%p8333_p8), %s7567_s16, 4294967232  ;;  %p23_p5 = scmp.ge.s32.totalorder %s8695_s15, 4   ;;  %s12927_s30 = smov %s8600_s10 }
 0x6e5   : > { %s12928_s10 = smov %s8604_s11  ;;  %s12929_s11 = smov %s8706_s18 }
 0x6e6   : > { %s12930_s12 = smov %s8695_s15  ;;  %25 = sbr.rel (!%p23_p5) target bundleno = 5 (0x5), region = 107 }
 0x6ed   :  { %7572 = vsyncpa [#allocation3], 1 }
 0x6ee   :  { %7574 = vsyncpa [#allocation3 + $0x1], 1 }
 0x6ef   :  { %7575 = vsyncpa [#allocation5], 1 }
 0x6f0   :  { %7577 = vsyncpa [#allocation5 + $0x1], 1 }

</bundles_post_ra>
